<compile_context>
chip_gen: v7x
topology: tpu7x:2x2x1
jax: 0.10.0
libtpu: 0.0.40
codegen_flags: <defaults>
</compile_context>

<pallas_src>
import functools
import math

import jax
import jax.numpy as jnp
import numpy as np
from jax.experimental import pallas as pl
from jax.experimental.pallas import tpu as pltpu

LRELU_SLOPE = 0.2
SQRT2 = math.sqrt(2.0)
# MXU input dtype: bf16 inputs, f32 accumulation (preferred_element_type).
# Set to jnp.float32 for exact fp32 parity with the PyTorch reference.
MATMUL_DTYPE = jnp.bfloat16

_VMEM_LIMIT_BYTES = 48 * 1024 * 1024   # explicit scoped-VMEM cap (safe on v5e/v6e/v7x)
_VMEM_BUDGET_BYTES = 20 * 1024 * 1024  # target live bytes when picking the batch tile


# ----------------------------------------------------------------------------
# Pallas kernel: one whole SynthesisBlock (conv0 upsample + conv1 + torgb)
# ----------------------------------------------------------------------------
def _synthesis_block_kernel(x_ref, w0_ref, b0_ref, w1_ref, b1_ref, w2_ref, b2_ref,
                            xo_ref, rgb_ref,
                            xp_ref, pp_ref, s0_ref, s1_ref, *,
                            bt, h, cin, cout, c1, act_gain, clamp):
    """Fused SynthesisBlock for `bt` samples (one grid step).

    x_ref:   (bt, h, h, cin)       input activation (unpadded; padded in VMEM)
    w0_ref:  (bt, 9*cin, 4*cout)   folded conv0 phase weights (tap-major rows,
                                   phase-major cols; style+demod+FIR folded in)
    b0_ref:  (1, 4*cout)           conv0 bias tiled over the 4 output phases
    w1_ref:  (bt, 9*cout, c1)      folded conv1 weights (tap-major rows)
    b1_ref:  (1, c1)
    w2_ref:  (bt, c1, 3)           folded torgb 1x1 weights
    b2_ref:  (1, 3)
    xo_ref:  (bt, 4, h, h, c1)     phase-separated conv1 output (p = 2*ry + rx)
    rgb_ref: (bt, 4, h, h, 3)      phase-separated torgb output
    scratch: xp (h+2,h+2,cin) f32, pp (4,h+2,h+2,cout) f32,
             s0 (h*h, 9*cin) / s1 (h*h, 9*cout) im2col slabs in MATMUL_DTYPE
    """
    m = h * h
    # Zero the padded scratches once per grid step: only the 1-pixel halo needs
    # to stay zero, the interiors are fully overwritten for every sample below.
    xp_ref[...] = jnp.zeros(xp_ref.shape, xp_ref.dtype)
    pp_ref[...] = jnp.zeros(pp_ref.shape, pp_ref.dtype)

    for s in range(bt):
        # ---- conv0: modulated 2x transposed conv + FIR blur, phase decomposed.
        xp_ref[1:h + 1, 1:h + 1, :] = x_ref[s]
        for dy in range(3):
            for dx in range(3):
                t = dy * 3 + dx
                s0_ref[:, t * cin:(t + 1) * cin] = (
                    xp_ref[dy:dy + h, dx:dx + h, :]
                    .reshape(m, cin).astype(s0_ref.dtype))
        y0 = jnp.dot(s0_ref[...], w0_ref[s],
                     preferred_element_type=jnp.float32)      # (m, 4*cout)
        y0 = y0 + b0_ref[...]
        y0 = jnp.where(y0 >= 0.0, y0, LRELU_SLOPE * y0) * act_gain
        if clamp is not None:
            y0 = jnp.clip(y0, -clamp, clamp)
        # Scatter the 4 conv0 output phases into padded coarse planes (VMEM only,
        # never touches HBM): pp[p, 1+iy, 1+ix] = y0 phase p at coarse (iy, ix).
        for p in range(4):
            pp_ref[p, 1:h + 1, 1:h + 1, :] = (
                y0[:, p * cout:(p + 1) * cout].reshape(h, h, cout))

        # ---- conv1 (3x3 on the interleaved 2h x 2h image), polyphase form:
        # output fine pixel (2*iy+ry, 2*ix+rx); tap (dy,dx) reads input phase
        # plane (ry', rx') at coarse offset (a, b) of the padded planes.
        for ry in range(2):
            for rx in range(2):
                for dy in range(3):
                    for dx in range(3):
                        t = dy * 3 + dx
                        ey, ex = ry + dy - 1, rx + dx - 1
                        ry2, rx2 = ey % 2, ex % 2
                        a, b = (ey - ry2) // 2, (ex - rx2) // 2
                        pin = 2 * ry2 + rx2
                        s1_ref[:, t * cout:(t + 1) * cout] = (
                            pp_ref[pin, a + 1:a + 1 + h, b + 1:b + 1 + h, :]
                            .reshape(m, cout).astype(s1_ref.dtype))
                y1 = jnp.dot(s1_ref[...], w1_ref[s],
                             preferred_element_type=jnp.float32)   # (m, c1)
                y1 = y1 + b1_ref[...]
                y1 = jnp.where(y1 >= 0.0, y1, LRELU_SLOPE * y1) * act_gain
                if clamp is not None:
                    y1 = jnp.clip(y1, -clamp, clamp)
                pidx = 2 * ry + rx
                xo_ref[s, pidx] = y1.reshape(h, h, c1).astype(xo_ref.dtype)

                # torgb 1x1 conv on the still-in-VMEM activation (linear act).
                # TODO(synk): the 3-lane rgb output store is masked; for very
                # large resolutions a width-minor rgb layout would be denser.
                rgb = jnp.dot(y1.astype(MATMUL_DTYPE), w2_ref[s],
                              preferred_element_type=jnp.float32)  # (m, 3)
                rgb = rgb + b2_ref[...]
                if clamp is not None:
                    rgb = jnp.clip(rgb, -clamp, clamp)
                rgb_ref[s, pidx] = rgb.reshape(h, h, 3).astype(rgb_ref.dtype)


# ----------------------------------------------------------------------------
# pallas_call wrapper
# ----------------------------------------------------------------------------
def _round_up(v, m):
    return ((v + m - 1) // m) * m


def _padded_bytes(shape, dtype):
    itemsize = np.dtype(dtype).itemsize
    if len(shape) == 1:
        return _round_up(shape[0], 128) * itemsize
    lead = int(np.prod(shape[:-2])) if len(shape) > 2 else 1
    return lead * _round_up(shape[-2], 8) * _round_up(shape[-1], 128) * itemsize


def _pick_batch_tile(n, per_sample_bytes, scratch_bytes):
    """Largest divisor of n whose double-buffered blocks fit the VMEM budget."""
    for bt in range(n, 0, -1):
        if n % bt:
            continue
        if bt == 1 or 2 * bt * per_sample_bytes + scratch_bytes <= _VMEM_BUDGET_BYTES:
            return bt
    return 1


def _run_synthesis_block(x, w0, b0, w1, b1, w2, b2, *, conv_clamp):
    n, h, _, cin = x.shape
    cout4 = w0.shape[2]
    cout = cout4 // 4
    c1 = w1.shape[2]
    m = h * h

    per_sample = (_padded_bytes((h, h, cin), x.dtype)
                  + _padded_bytes((9 * cin, cout4), w0.dtype)
                  + _padded_bytes((9 * cout, c1), w1.dtype)
                  + _padded_bytes((c1, 3), w2.dtype)
                  + _padded_bytes((4, h, h, c1), jnp.float32)
                  + _padded_bytes((4, h, h, 3), jnp.float32))
    scratch = (_padded_bytes((h + 2, h + 2, cin), jnp.float32)
               + _padded_bytes((4, h + 2, h + 2, cout), jnp.float32)
               + _padded_bytes((m, 9 * cin), MATMUL_DTYPE)
               + _padded_bytes((m, 9 * cout), MATMUL_DTYPE))
    bt = _pick_batch_tile(n, per_sample, scratch)
    # TODO(synk): for resolutions where a whole sample exceeds the VMEM budget
    # (>~128^2 @ 64ch), add an output-row-tile grid axis with halo reads.

    kernel = functools.partial(
        _synthesis_block_kernel, bt=bt, h=h, cin=cin, cout=cout, c1=c1,
        act_gain=SQRT2, clamp=conv_clamp)
    return pl.pallas_call(
        kernel,
        out_shape=(jax.ShapeDtypeStruct((n, 4, h, h, c1), jnp.float32),
                   jax.ShapeDtypeStruct((n, 4, h, h, 3), jnp.float32)),
        grid_spec=pltpu.PrefetchScalarGridSpec(
            num_scalar_prefetch=0,
            grid=(n // bt,),
            in_specs=[
                pl.BlockSpec((bt, h, h, cin), lambda i: (i, 0, 0, 0)),
                pl.BlockSpec((bt, 9 * cin, cout4), lambda i: (i, 0, 0)),
                pl.BlockSpec((1, cout4), lambda i: (0, 0)),
                pl.BlockSpec((bt, 9 * cout, c1), lambda i: (i, 0, 0)),
                pl.BlockSpec((1, c1), lambda i: (0, 0)),
                pl.BlockSpec((bt, c1, 3), lambda i: (i, 0, 0)),
                pl.BlockSpec((1, 3), lambda i: (0, 0)),
            ],
            out_specs=[
                pl.BlockSpec((bt, 4, h, h, c1), lambda i: (i, 0, 0, 0, 0)),
                pl.BlockSpec((bt, 4, h, h, 3), lambda i: (i, 0, 0, 0, 0)),
            ],
            scratch_shapes=[
                pltpu.VMEM((h + 2, h + 2, cin), jnp.float32),
                pltpu.VMEM((4, h + 2, h + 2, cout), jnp.float32),
                pltpu.VMEM((m, 9 * cin), MATMUL_DTYPE),
                pltpu.VMEM((m, 9 * cout), MATMUL_DTYPE),
            ]),
        compiler_params=pltpu.CompilerParams(
            dimension_semantics=("parallel",),
            vmem_limit_bytes=_VMEM_LIMIT_BYTES),
    )(x, w0, b0, w1, b1, w2, b2)


# ----------------------------------------------------------------------------
# Plain-JAX glue: layout plumbing, RGB path, per-sample weight folding
# ----------------------------------------------------------------------------
def nchw_to_nhwc(x):
    return jnp.transpose(x, (0, 2, 3, 1))


def nhwc_to_nchw(x):
    return jnp.transpose(x, (0, 3, 1, 2))


def _style(wcode, aff_w):
    # DenseLayer with use_wscale=True, wscale_gain=1, lr_mul=1, init_bias=1.0
    a_wscale = 1.0 / math.sqrt(aff_w.shape[1])
    return wcode @ (aff_w * a_wscale).T + 1.0


def _mod_demod_weight(weight, style, eps):
    """Fold per-sample style (input channels) and demod (output channels) into
    the runtime-scaled weight.  Returns (N, kh, kw, Cin, Cout), float32."""
    cout, cin, kh, kw = weight.shape
    wscale = 1.0 / math.sqrt(cin * kh * kw)
    w_rt = weight * wscale
    wmod = w_rt[None] * style[:, None, :, None, None]              # (N,Cout,Cin,kh,kw)
    d = jax.lax.rsqrt(jnp.sum(wmod * wmod, axis=(2, 3, 4)) + eps)  # (N,Cout)
    return jnp.transpose(wmod, (0, 3, 4, 2, 1)) * d[:, None, None, None, :]


def _upconv_phase_weights(w_eff, fir2d):
    """Fold the 4x4 FIR blur into the stride-2 transposed-conv weight and
    phase-decompose the result into four 3x3 convs on the non-upsampled input.
    Returns (N, 9*Cin, 4*Cout): rows tap-major (dy,dx,ci), cols phase-major."""
    n, _, _, cin, cout = w_eff.shape
    # Effective 6x6 kernel: K[p+2, q+2] = sum_{fy,fx} fir[fy,fx] * w[p+fy-1, q+fx-1]
    k6 = jnp.zeros((n, 6, 6, cin, cout), w_eff.dtype)
    for fy in range(4):
        for fx in range(4):
            k6 = k6 + fir2d[fy, fx] * jnp.pad(
                w_eff, ((0, 0), (3 - fy, fy), (3 - fx, fx), (0, 0), (0, 0)))
    taps = []
    for dy in (-1, 0, 1):
        for dx in (-1, 0, 1):
            phases = [k6[:, ry - 2 * dy + 2, rx - 2 * dx + 2]
                      for ry in (0, 1) for rx in (0, 1)]     # each (N, Cin, Cout)
            taps.append(jnp.stack(phases, axis=2))           # (N, Cin, 4, Cout)
    w_phase = jnp.stack(taps, axis=1)                        # (N, 9, Cin, 4, Cout)
    return w_phase.reshape(n, 9 * cin, 4 * cout)


def _interleave_phases(y_phase):
    """(N, 4, h, w, c) phase-major (p = 2*ry + rx) -> (N, 2h, 2w, c)."""
    n, _, h, w, c = y_phase.shape
    y = y_phase.reshape(n, 2, 2, h, w, c)
    y = jnp.transpose(y, (0, 3, 1, 4, 2, 5))
    return y.reshape(n, 2 * h, 2 * w, c)


def _fir_upsample2x(rgb, row_taps, col_taps):
    """Separable 4-tap FIR 2x upsample (upfirdn2d.upsample2d) of a NHWC image.
    Runs in plain JAX/XLA: 3-channel work is negligible and keeping it out of
    the Pallas kernels avoids 3->128 lane-padded VMEM buffers."""
    n, h, w, c = rgb.shape
    rp = jnp.pad(rgb, ((0, 0), (1, 1), (1, 1), (0, 0)))
    rows = []
    for ry in range(2):
        cols = []
        for rx in range(2):
            acc = jnp.zeros((n, h, w, c), rgb.dtype)
            for cy, oy in row_taps[ry]:
                for cx, ox in col_taps[rx]:
                    acc = acc + (cy * cx) * rp[:, oy:oy + h, ox:ox + w, :]
            cols.append(acc)
        rows.append(jnp.stack(cols, axis=3))   # (n, h, w, 2, c)
    y = jnp.stack(rows, axis=2)                # (n, h, 2, w, 2, c)
    return y.reshape(n, 2 * h, 2 * w, c)


def synthesis_block(params, x, rgb, wp3, *, fir2d, row_taps, col_taps,
                    conv_clamp, eps):
    n = x.shape[0]
    cout = params["w0"].shape[0]
    c1 = params["w1"].shape[0]

    # Per-sample weight folding (tiny tensors, plain JAX).
    s0 = _style(wp3[:, 0], params["a0"])
    w0 = _upconv_phase_weights(_mod_demod_weight(params["w0"], s0, eps),
                               fir2d).astype(MATMUL_DTYPE)
    b0 = jnp.tile(params["b0"], 4)[None, :]
    s1 = _style(wp3[:, 1], params["a1"])
    w1 = _mod_demod_weight(params["w1"], s1, eps).reshape(
        n, 9 * cout, c1).astype(MATMUL_DTYPE)
    s2 = _style(wp3[:, 2], params["a2"])
    w2 = _mod_demod_weight(params["w2"], s2, eps).reshape(
        n, c1, 3).astype(MATMUL_DTYPE)

    x_ph, rgb_ph = _run_synthesis_block(
        x, w0, b0, w1, params["b1"][None, :], w2, params["b2"][None, :],
        conv_clamp=conv_clamp)

    x_out = _interleave_phases(x_ph)       # (N, 2h, 2h, c1)
    y_rgb = _interleave_phases(rgb_ph)     # (N, 2h, 2h, 3)
    if rgb is None:
        rgb_out = y_rgb
    else:
        rgb_out = y_rgb + _fir_upsample2x(rgb, row_taps, col_taps)
    return x_out, rgb_out


# ----------------------------------------------------------------------------
# SuperResolution module (deterministic synthetic parameters)
# ----------------------------------------------------------------------------
class SuperResolutionPallas:
    def __init__(self, in_channels, input_res, image_res, fmaps_max, fmaps_base,
                 filter_kernel, conv_clamp, eps, w_dim, out_channels=None,
                 kernel_size=3, key=None):
        assert kernel_size == 3  # phase-decomposed upsample conv assumes 3x3
        self.input_res = input_res
        self.image_res = image_res
        self.conv_clamp = conv_clamp
        self.eps = eps
        self.num_stages = int(math.log2(image_res // input_res))

        f1 = np.asarray(filter_kernel, np.float64)
        f1 = f1 / f1.sum()
        assert f1.shape[0] == 4  # TODO(synk): general-length FIR filters
        self.fir2d = jnp.asarray(np.outer(f1, f1) * 4.0, jnp.float32)  # gain=up**2
        # Separable 2-taps-per-axis phase coefficients for the RGB 2x upsample
        # (upfirdn2d flips the filter): (coefficient, padded offset) per phase.
        self.row_taps = (((float(2.0 * f1[3]), 0), (float(2.0 * f1[1]), 1)),
                         ((float(2.0 * f1[2]), 1), (float(2.0 * f1[0]), 2)))
        self.col_taps = self.row_taps

        def get_nf(res):
            return min(fmaps_base // res, fmaps_max)

        key = jax.random.PRNGKey(0) if key is None else key
        self.blocks = []
        for lod_idx in range(self.num_stages - 1, -1, -1):
            block_idx = self.num_stages - lod_idx - 1
            cur_res = input_res * 2 ** block_idx
            in_chs = get_nf(cur_res // 2) if block_idx != 0 else in_channels
            out_chs = get_nf(cur_res)
            final_dim = out_channels if lod_idx == 0 else None
            c1_out = final_dim or out_chs
            key, *ks = jax.random.split(key, 7)
            self.blocks.append({
                "w0": jax.random.normal(ks[0], (out_chs, in_chs, 3, 3), jnp.float32),
                "a0": jax.random.normal(ks[1], (in_chs, w_dim), jnp.float32),
                "b0": jnp.zeros((out_chs,), jnp.float32),
                "w1": jax.random.normal(ks[2], (c1_out, out_chs, 3, 3), jnp.float32),
                "a1": jax.random.normal(ks[3], (out_chs, w_dim), jnp.float32),
                "b1": jnp.zeros((c1_out,), jnp.float32),
                "w2": jax.random.normal(ks[4], (3, c1_out, 1, 1), jnp.float32),
                "a2": jax.random.normal(ks[5], (c1_out, w_dim), jnp.float32),
                "b2": jnp.zeros((3,), jnp.float32),
            })

    def __call__(self, x_nchw, rgb_nchw, wp, lod=0.0):
        # Registered `lod` buffer defaults to 0 -> every block applied, rgb=cur_rgb.
        # TODO(synk): fractional-lod nearest-upsample blending path (F.interpolate
        # + alpha mixing) not implemented; only lod == 0 is supported.
        # TODO(synk): noise injection (noise_type != 'none') not implemented.
        assert lod == 0.0
        nerf_rgb = rgb_nchw
        x = nchw_to_nhwc(x_nchw)
        cur_rgb = nchw_to_nhwc(rgb_nchw) if rgb_nchw is not None else None
        for block_idx, params in enumerate(self.blocks):
            wp3 = wp[:, 2 * block_idx:2 * block_idx + 3]
            x, cur_rgb = synthesis_block(
                params, x, cur_rgb, wp3, fir2d=self.fir2d,
                row_taps=self.row_taps, col_taps=self.col_taps,
                conv_clamp=self.conv_clamp, eps=self.eps)
        return {
            "image": nhwc_to_nchw(cur_rgb),
            "nerf_image": nerf_rgb,
            "feature": nhwc_to_nchw(x),
        }


if __name__ == "__main__":
    key = jax.random.PRNGKey(0)
    k_x, k_rgb, k_wp, k_params = jax.random.split(key, 4)

    batch = 2
    in_channels = 8
    input_res = 8
    image_res = 16
    w_dim = 16

    model = SuperResolutionPallas(
        in_channels=in_channels, input_res=input_res, image_res=image_res,
        fmaps_max=64, fmaps_base=128, filter_kernel=(1, 3, 3, 1),
        conv_clamp=256.0, eps=1e-8, w_dim=w_dim, key=k_params)

    x = jax.random.normal(k_x, (batch, in_channels, input_res, input_res), jnp.float32)
    rgb = jax.random.normal(k_rgb, (batch, 3, input_res, input_res), jnp.float32)
    wp = jax.random.normal(k_wp, (batch, 2 * model.num_stages + 1, w_dim), jnp.float32)

    fwd = jax.jit(lambda x_, rgb_, wp_: model(x_, rgb_, wp_))
    out = fwd(x, rgb, wp)
    jax.block_until_ready(out["image"])

    assert out["image"].shape == (batch, 3, image_res, image_res)
    assert out["image"].dtype == jnp.float32
    assert out["feature"].shape[2:] == (image_res, image_res)
    assert out["nerf_image"].shape == (batch, 3, input_res, input_res)
    assert bool(jnp.all(jnp.isfinite(out["image"])))
    print("KERNEL_OK")
</pallas_src>

<mosaic_0001>
module attributes {stable_mosaic.version = 11 : i64} {
  func.func @_synthesis_block_kernel(%arg0: i32, %arg1: memref<2x8x8x8xf32, #tpu.memory_space<vmem>>, %arg2: memref<2x72x64xbf16, #tpu.memory_space<vmem>>, %arg3: memref<1x64xf32, #tpu.memory_space<vmem>>, %arg4: memref<2x144x16xbf16, #tpu.memory_space<vmem>>, %arg5: memref<1x16xf32, #tpu.memory_space<vmem>>, %arg6: memref<2x16x3xbf16, #tpu.memory_space<vmem>>, %arg7: memref<1x3xf32, #tpu.memory_space<vmem>>, %arg8: memref<2x4x8x8x16xf32, #tpu.memory_space<vmem>>, %arg9: memref<2x4x8x8x3xf32, #tpu.memory_space<vmem>>, %arg10: memref<10x10x8xf32, #tpu.memory_space<vmem>>, %arg11: memref<4x10x10x16xf32, #tpu.memory_space<vmem>>, %arg12: memref<64x72xbf16, #tpu.memory_space<vmem>>, %arg13: memref<64x144xbf16, #tpu.memory_space<vmem>>) attributes {dimension_semantics = [#tpu.dimension_semantics<parallel>], iteration_bounds = array<i64: 1>, scalar_prefetch = 0 : i64, scratch_operands = 4 : i64, tpu.core_type = #tpu.core_type<tc>, window_params = [{transform_indices = @transform_0, window_bounds = array<i64: 2, 8, 8, 8>}, {transform_indices = @transform_1, window_bounds = array<i64: 2, 72, 64>}, {pipeline_mode = #tpu.pipeline_mode<synchronous>, transform_indices = @transform_2, window_bounds = array<i64: 1, 64>}, {transform_indices = @transform_3, window_bounds = array<i64: 2, 144, 16>}, {pipeline_mode = #tpu.pipeline_mode<synchronous>, transform_indices = @transform_4, window_bounds = array<i64: 1, 16>}, {transform_indices = @transform_5, window_bounds = array<i64: 2, 16, 3>}, {pipeline_mode = #tpu.pipeline_mode<synchronous>, transform_indices = @transform_6, window_bounds = array<i64: 1, 3>}, {transform_indices = @transform_7, window_bounds = array<i64: 2, 4, 8, 8, 16>}, {transform_indices = @transform_8, window_bounds = array<i64: 2, 4, 8, 8, 3>}]} {
    %cst = arith.constant 0.000000e+00 : f32
    %0 = vector.broadcast %cst : f32 to vector<10x10x8xf32>
    %c0 = arith.constant 0 : index
    %c0_0 = arith.constant 0 : index
    %c0_1 = arith.constant 0 : index
    %1 = vector.load %arg10[%c0, %c0_0, %c0_1] : memref<10x10x8xf32, #tpu.memory_space<vmem>>, vector<10x10x8xf32>
    tpu.vector_store %arg10[%c0, %c0_0, %c0_1], %0 {strides = array<i32>} : memref<10x10x8xf32, #tpu.memory_space<vmem>>, vector<10x10x8xf32>,
    %cst_2 = arith.constant 0.000000e+00 : f32
    %2 = vector.broadcast %cst_2 : f32 to vector<4x10x10x16xf32>
    %c0_3 = arith.constant 0 : index
    %c0_4 = arith.constant 0 : index
    %c0_5 = arith.constant 0 : index
    %c0_6 = arith.constant 0 : index
    %3 = vector.load %arg11[%c0_3, %c0_4, %c0_5, %c0_6] : memref<4x10x10x16xf32, #tpu.memory_space<vmem>>, vector<4x10x10x16xf32>
    tpu.vector_store %arg11[%c0_3, %c0_4, %c0_5, %c0_6], %2 {strides = array<i32>} : memref<4x10x10x16xf32, #tpu.memory_space<vmem>>, vector<4x10x10x16xf32>,
    %c0_7 = arith.constant 0 : index
    %c0_8 = arith.constant 0 : index
    %c0_9 = arith.constant 0 : index
    %c0_10 = arith.constant 0 : index
    %4 = vector.load %arg1[%c0_7, %c0_8, %c0_9, %c0_10] : memref<2x8x8x8xf32, #tpu.memory_space<vmem>>, vector<1x8x8x8xf32>
    %5 = vector.shape_cast %4 : vector<1x8x8x8xf32> to vector<8x8x8xf32>
    %c1 = arith.constant 1 : index
    %c1_11 = arith.constant 1 : index
    %c0_12 = arith.constant 0 : index
    %6 = vector.load %arg10[%c1, %c1_11, %c0_12] : memref<10x10x8xf32, #tpu.memory_space<vmem>>, vector<8x8x8xf32>
    tpu.vector_store %arg10[%c1, %c1_11, %c0_12], %5 {strides = array<i32>} : memref<10x10x8xf32, #tpu.memory_space<vmem>>, vector<8x8x8xf32>,
    %c0_13 = arith.constant 0 : index
    %c0_14 = arith.constant 0 : index
    %c0_15 = arith.constant 0 : index
    %7 = vector.load %arg10[%c0_13, %c0_14, %c0_15] : memref<10x10x8xf32, #tpu.memory_space<vmem>>, vector<8x8x8xf32>
    %8 = vector.shape_cast %7 : vector<8x8x8xf32> to vector<64x8xf32>
    %9 = arith.truncf %8 : vector<64x8xf32> to vector<64x8xbf16>
    %c0_16 = arith.constant 0 : index
    %c0_17 = arith.constant 0 : index
    %10 = vector.load %arg12[%c0_16, %c0_17] : memref<64x72xbf16, #tpu.memory_space<vmem>>, vector<64x8xbf16>
    tpu.vector_store %arg12[%c0_16, %c0_17], %9 {strides = array<i32>} : memref<64x72xbf16, #tpu.memory_space<vmem>>, vector<64x8xbf16>,
    %c0_18 = arith.constant 0 : index
    %c1_19 = arith.constant 1 : index
    %c0_20 = arith.constant 0 : index
    %11 = vector.load %arg10[%c0_18, %c1_19, %c0_20] : memref<10x10x8xf32, #tpu.memory_space<vmem>>, vector<8x8x8xf32>
    %12 = vector.shape_cast %11 : vector<8x8x8xf32> to vector<64x8xf32>
    %13 = arith.truncf %12 : vector<64x8xf32> to vector<64x8xbf16>
    %c0_21 = arith.constant 0 : index
    %c8 = arith.constant 8 : index
    %14 = vector.load %arg12[%c0_21, %c8] : memref<64x72xbf16, #tpu.memory_space<vmem>>, vector<64x8xbf16>
    tpu.vector_store %arg12[%c0_21, %c8], %13 {strides = array<i32>} : memref<64x72xbf16, #tpu.memory_space<vmem>>, vector<64x8xbf16>,
    %c0_22 = arith.constant 0 : index
    %c2 = arith.constant 2 : index
    %c0_23 = arith.constant 0 : index
    %15 = vector.load %arg10[%c0_22, %c2, %c0_23] : memref<10x10x8xf32, #tpu.memory_space<vmem>>, vector<8x8x8xf32>
    %16 = vector.shape_cast %15 : vector<8x8x8xf32> to vector<64x8xf32>
    %17 = arith.truncf %16 : vector<64x8xf32> to vector<64x8xbf16>
    %c0_24 = arith.constant 0 : index
    %c16 = arith.constant 16 : index
    %18 = vector.load %arg12[%c0_24, %c16] : memref<64x72xbf16, #tpu.memory_space<vmem>>, vector<64x8xbf16>
    tpu.vector_store %arg12[%c0_24, %c16], %17 {strides = array<i32>} : memref<64x72xbf16, #tpu.memory_space<vmem>>, vector<64x8xbf16>,
    %c1_25 = arith.constant 1 : index
    %c0_26 = arith.constant 0 : index
    %c0_27 = arith.constant 0 : index
    %19 = vector.load %arg10[%c1_25, %c0_26, %c0_27] : memref<10x10x8xf32, #tpu.memory_space<vmem>>, vector<8x8x8xf32>
    %20 = vector.shape_cast %19 : vector<8x8x8xf32> to vector<64x8xf32>
    %21 = arith.truncf %20 : vector<64x8xf32> to vector<64x8xbf16>
    %c0_28 = arith.constant 0 : index
    %c24 = arith.constant 24 : index
    %22 = vector.load %arg12[%c0_28, %c24] : memref<64x72xbf16, #tpu.memory_space<vmem>>, vector<64x8xbf16>
    tpu.vector_store %arg12[%c0_28, %c24], %21 {strides = array<i32>} : memref<64x72xbf16, #tpu.memory_space<vmem>>, vector<64x8xbf16>,
    %c1_29 = arith.constant 1 : index
    %c1_30 = arith.constant 1 : index
    %c0_31 = arith.constant 0 : index
    %23 = vector.load %arg10[%c1_29, %c1_30, %c0_31] : memref<10x10x8xf32, #tpu.memory_space<vmem>>, vector<8x8x8xf32>
    %24 = vector.shape_cast %23 : vector<8x8x8xf32> to vector<64x8xf32>
    %25 = arith.truncf %24 : vector<64x8xf32> to vector<64x8xbf16>
    %c0_32 = arith.constant 0 : index
    %c32 = arith.constant 32 : index
    %26 = vector.load %arg12[%c0_32, %c32] : memref<64x72xbf16, #tpu.memory_space<vmem>>, vector<64x8xbf16>
    tpu.vector_store %arg12[%c0_32, %c32], %25 {strides = array<i32>} : memref<64x72xbf16, #tpu.memory_space<vmem>>, vector<64x8xbf16>,
    %c1_33 = arith.constant 1 : index
    %c2_34 = arith.constant 2 : index
    %c0_35 = arith.constant 0 : index
    %27 = vector.load %arg10[%c1_33, %c2_34, %c0_35] : memref<10x10x8xf32, #tpu.memory_space<vmem>>, vector<8x8x8xf32>
    %28 = vector.shape_cast %27 : vector<8x8x8xf32> to vector<64x8xf32>
    %29 = arith.truncf %28 : vector<64x8xf32> to vector<64x8xbf16>
    %c0_36 = arith.constant 0 : index
    %c40 = arith.constant 40 : index
    %30 = vector.load %arg12[%c0_36, %c40] : memref<64x72xbf16, #tpu.memory_space<vmem>>, vector<64x8xbf16>
    tpu.vector_store %arg12[%c0_36, %c40], %29 {strides = array<i32>} : memref<64x72xbf16, #tpu.memory_space<vmem>>, vector<64x8xbf16>,
    %c2_37 = arith.constant 2 : index
    %c0_38 = arith.constant 0 : index
    %c0_39 = arith.constant 0 : index
    %31 = vector.load %arg10[%c2_37, %c0_38, %c0_39] : memref<10x10x8xf32, #tpu.memory_space<vmem>>, vector<8x8x8xf32>
    %32 = vector.shape_cast %31 : vector<8x8x8xf32> to vector<64x8xf32>
    %33 = arith.truncf %32 : vector<64x8xf32> to vector<64x8xbf16>
    %c0_40 = arith.constant 0 : index
    %c48 = arith.constant 48 : index
    %34 = vector.load %arg12[%c0_40, %c48] : memref<64x72xbf16, #tpu.memory_space<vmem>>, vector<64x8xbf16>
    tpu.vector_store %arg12[%c0_40, %c48], %33 {strides = array<i32>} : memref<64x72xbf16, #tpu.memory_space<vmem>>, vector<64x8xbf16>,
    %c2_41 = arith.constant 2 : index
    %c1_42 = arith.constant 1 : index
    %c0_43 = arith.constant 0 : index
    %35 = vector.load %arg10[%c2_41, %c1_42, %c0_43] : memref<10x10x8xf32, #tpu.memory_space<vmem>>, vector<8x8x8xf32>
    %36 = vector.shape_cast %35 : vector<8x8x8xf32> to vector<64x8xf32>
    %37 = arith.truncf %36 : vector<64x8xf32> to vector<64x8xbf16>
    %c0_44 = arith.constant 0 : index
    %c56 = arith.constant 56 : index
    %38 = vector.load %arg12[%c0_44, %c56] : memref<64x72xbf16, #tpu.memory_space<vmem>>, vector<64x8xbf16>
    tpu.vector_store %arg12[%c0_44, %c56], %37 {strides = array<i32>} : memref<64x72xbf16, #tpu.memory_space<vmem>>, vector<64x8xbf16>,
    %c2_45 = arith.constant 2 : index
    %c2_46 = arith.constant 2 : index
    %c0_47 = arith.constant 0 : index
    %39 = vector.load %arg10[%c2_45, %c2_46, %c0_47] : memref<10x10x8xf32, #tpu.memory_space<vmem>>, vector<8x8x8xf32>
    %40 = vector.shape_cast %39 : vector<8x8x8xf32> to vector<64x8xf32>
    %41 = arith.truncf %40 : vector<64x8xf32> to vector<64x8xbf16>
    %c0_48 = arith.constant 0 : index
    %c64 = arith.constant 64 : index
    %42 = vector.load %arg12[%c0_48, %c64] : memref<64x72xbf16, #tpu.memory_space<vmem>>, vector<64x8xbf16>
    tpu.vector_store %arg12[%c0_48, %c64], %41 {strides = array<i32>} : memref<64x72xbf16, #tpu.memory_space<vmem>>, vector<64x8xbf16>,
    %c0_49 = arith.constant 0 : index
    %c0_50 = arith.constant 0 : index
    %43 = vector.load %arg12[%c0_49, %c0_50] : memref<64x72xbf16, #tpu.memory_space<vmem>>, vector<64x72xbf16>
    %c0_51 = arith.constant 0 : index
    %c0_52 = arith.constant 0 : index
    %c0_53 = arith.constant 0 : index
    %44 = vector.load %arg2[%c0_51, %c0_52, %c0_53] : memref<2x72x64xbf16, #tpu.memory_space<vmem>>, vector<1x72x64xbf16>
    %45 = vector.shape_cast %44 : vector<1x72x64xbf16> to vector<72x64xbf16>
    %cst_54 = arith.constant dense<0.000000e+00> : vector<64x64xf32>
    %46 = tpu.matmul %43, %45, %cst_54 {dimension_numbers = #tpu.dot_dimension_numbers<[1], [0], [0], [1], [0, 0, 1, 1], [], []>} : vector<64x72xbf16>, vector<72x64xbf16>, vector<64x64xf32> -> vector<64x64xf32>
    %c0_55 = arith.constant 0 : index
    %c0_56 = arith.constant 0 : index
    %47 = vector.load %arg3[%c0_55, %c0_56] : memref<1x64xf32, #tpu.memory_space<vmem>>, vector<1x64xf32>
    %48 = vector.broadcast %47 : vector<1x64xf32> to vector<64x64xf32>
    %49 = arith.addf %46, %48 : vector<64x64xf32>
    %cst_57 = arith.constant 0.000000e+00 : f32
    %50 = vector.broadcast %cst_57 : f32 to vector<64x64xf32>
    %51 = arith.cmpf oge, %49, %50 : vector<64x64xf32>
    %cst_58 = arith.constant 2.000000e-01 : f32
    %52 = vector.broadcast %cst_58 : f32 to vector<64x64xf32>
    %53 = arith.mulf %52, %49 : vector<64x64xf32>
    %54 = arith.select %51, %49, %53 : vector<64x64xi1>, vector<64x64xf32>
    %cst_59 = arith.constant 1.41421354 : f32
    %55 = vector.broadcast %cst_59 : f32 to vector<64x64xf32>
    %56 = arith.mulf %54, %55 : vector<64x64xf32>
    %cst_60 = arith.constant -2.560000e+02 : f32
    %cst_61 = arith.constant 2.560000e+02 : f32
    %57 = vector.broadcast %cst_60 : f32 to vector<64x64xf32>
    %58 = arith.maximumf %57, %56 : vector<64x64xf32>
    %59 = vector.broadcast %cst_61 : f32 to vector<64x64xf32>
    %60 = arith.minimumf %59, %58 : vector<64x64xf32>
    %61 = vector.extract_strided_slice %60 {offsets = [0, 0], sizes = [64, 16], strides = [1, 1]} : vector<64x64xf32> to vector<64x16xf32>
    %62 = vector.shape_cast %61 : vector<64x16xf32> to vector<8x8x16xf32>
    %c0_62 = arith.constant 0 : index
    %c1_63 = arith.constant 1 : index
    %c1_64 = arith.constant 1 : index
    %c0_65 = arith.constant 0 : index
    %63 = vector.load %arg11[%c0_62, %c1_63, %c1_64, %c0_65] : memref<4x10x10x16xf32, #tpu.memory_space<vmem>>, vector<1x8x8x16xf32>
    %64 = vector.shape_cast %63 : vector<1x8x8x16xf32> to vector<8x8x16xf32>
    %65 = vector.shape_cast %62 : vector<8x8x16xf32> to vector<1x8x8x16xf32>
    tpu.vector_store %arg11[%c0_62, %c1_63, %c1_64, %c0_65], %65 {strides = array<i32>} : memref<4x10x10x16xf32, #tpu.memory_space<vmem>>, vector<1x8x8x16xf32>,
    %66 = vector.extract_strided_slice %60 {offsets = [0, 16], sizes = [64, 16], strides = [1, 1]} : vector<64x64xf32> to vector<64x16xf32>
    %67 = vector.shape_cast %66 : vector<64x16xf32> to vector<8x8x16xf32>
    %c1_66 = arith.constant 1 : index
    %c1_67 = arith.constant 1 : index
    %c1_68 = arith.constant 1 : index
    %c0_69 = arith.constant 0 : index
    %68 = vector.load %arg11[%c1_66, %c1_67, %c1_68, %c0_69] : memref<4x10x10x16xf32, #tpu.memory_space<vmem>>, vector<1x8x8x16xf32>
    %69 = vector.shape_cast %68 : vector<1x8x8x16xf32> to vector<8x8x16xf32>
    %70 = vector.shape_cast %67 : vector<8x8x16xf32> to vector<1x8x8x16xf32>
    tpu.vector_store %arg11[%c1_66, %c1_67, %c1_68, %c0_69], %70 {strides = array<i32>} : memref<4x10x10x16xf32, #tpu.memory_space<vmem>>, vector<1x8x8x16xf32>,
    %71 = vector.extract_strided_slice %60 {offsets = [0, 32], sizes = [64, 16], strides = [1, 1]} : vector<64x64xf32> to vector<64x16xf32>
    %72 = vector.shape_cast %71 : vector<64x16xf32> to vector<8x8x16xf32>
    %c2_70 = arith.constant 2 : index
    %c1_71 = arith.constant 1 : index
    %c1_72 = arith.constant 1 : index
    %c0_73 = arith.constant 0 : index
    %73 = vector.load %arg11[%c2_70, %c1_71, %c1_72, %c0_73] : memref<4x10x10x16xf32, #tpu.memory_space<vmem>>, vector<1x8x8x16xf32>
    %74 = vector.shape_cast %73 : vector<1x8x8x16xf32> to vector<8x8x16xf32>
    %75 = vector.shape_cast %72 : vector<8x8x16xf32> to vector<1x8x8x16xf32>
    tpu.vector_store %arg11[%c2_70, %c1_71, %c1_72, %c0_73], %75 {strides = array<i32>} : memref<4x10x10x16xf32, #tpu.memory_space<vmem>>, vector<1x8x8x16xf32>,
    %76 = vector.extract_strided_slice %60 {offsets = [0, 48], sizes = [64, 16], strides = [1, 1]} : vector<64x64xf32> to vector<64x16xf32>
    %77 = vector.shape_cast %76 : vector<64x16xf32> to vector<8x8x16xf32>
    %c3 = arith.constant 3 : index
    %c1_74 = arith.constant 1 : index
    %c1_75 = arith.constant 1 : index
    %c0_76 = arith.constant 0 : index
    %78 = vector.load %arg11[%c3, %c1_74, %c1_75, %c0_76] : memref<4x10x10x16xf32, #tpu.memory_space<vmem>>, vector<1x8x8x16xf32>
    %79 = vector.shape_cast %78 : vector<1x8x8x16xf32> to vector<8x8x16xf32>
    %80 = vector.shape_cast %77 : vector<8x8x16xf32> to vector<1x8x8x16xf32>
    tpu.vector_store %arg11[%c3, %c1_74, %c1_75, %c0_76], %80 {strides = array<i32>} : memref<4x10x10x16xf32, #tpu.memory_space<vmem>>, vector<1x8x8x16xf32>,
    %c3_77 = arith.constant 3 : index
    %c0_78 = arith.constant 0 : index
    %c0_79 = arith.constant 0 : index
    %c0_80 = arith.constant 0 : index
    %81 = vector.load %arg11[%c3_77, %c0_78, %c0_79, %c0_80] : memref<4x10x10x16xf32, #tpu.memory_space<vmem>>, vector<1x8x8x16xf32>
    %82 = vector.shape_cast %81 : vector<1x8x8x16xf32> to vector<8x8x16xf32>
    %83 = vector.shape_cast %82 : vector<8x8x16xf32> to vector<64x16xf32>
    %84 = arith.truncf %83 : vector<64x16xf32> to vector<64x16xbf16>
    %c0_81 = arith.constant 0 : index
    %c0_82 = arith.constant 0 : index
    %85 = vector.load %arg13[%c0_81, %c0_82] : memref<64x144xbf16, #tpu.memory_space<vmem>>, vector<64x16xbf16>
    tpu.vector_store %arg13[%c0_81, %c0_82], %84 {strides = array<i32>} : memref<64x144xbf16, #tpu.memory_space<vmem>>, vector<64x16xbf16>,
    %c2_83 = arith.constant 2 : index
    %c0_84 = arith.constant 0 : index
    %c1_85 = arith.constant 1 : index
    %c0_86 = arith.constant 0 : index
    %86 = vector.load %arg11[%c2_83, %c0_84, %c1_85, %c0_86] : memref<4x10x10x16xf32, #tpu.memory_space<vmem>>, vector<1x8x8x16xf32>
    %87 = vector.shape_cast %86 : vector<1x8x8x16xf32> to vector<8x8x16xf32>
    %88 = vector.shape_cast %87 : vector<8x8x16xf32> to vector<64x16xf32>
    %89 = arith.truncf %88 : vector<64x16xf32> to vector<64x16xbf16>
    %c0_87 = arith.constant 0 : index
    %c16_88 = arith.constant 16 : index
    %90 = vector.load %arg13[%c0_87, %c16_88] : memref<64x144xbf16, #tpu.memory_space<vmem>>, vector<64x16xbf16>
    tpu.vector_store %arg13[%c0_87, %c16_88], %89 {strides = array<i32>} : memref<64x144xbf16, #tpu.memory_space<vmem>>, vector<64x16xbf16>,
    %c3_89 = arith.constant 3 : index
    %c0_90 = arith.constant 0 : index
    %c1_91 = arith.constant 1 : index
    %c0_92 = arith.constant 0 : index
    %91 = vector.load %arg11[%c3_89, %c0_90, %c1_91, %c0_92] : memref<4x10x10x16xf32, #tpu.memory_space<vmem>>, vector<1x8x8x16xf32>
    %92 = vector.shape_cast %91 : vector<1x8x8x16xf32> to vector<8x8x16xf32>
    %93 = vector.shape_cast %92 : vector<8x8x16xf32> to vector<64x16xf32>
    %94 = arith.truncf %93 : vector<64x16xf32> to vector<64x16xbf16>
    %c0_93 = arith.constant 0 : index
    %c32_94 = arith.constant 32 : index
    %95 = vector.load %arg13[%c0_93, %c32_94] : memref<64x144xbf16, #tpu.memory_space<vmem>>, vector<64x16xbf16>
    tpu.vector_store %arg13[%c0_93, %c32_94], %94 {strides = array<i32>} : memref<64x144xbf16, #tpu.memory_space<vmem>>, vector<64x16xbf16>,
    %c1_95 = arith.constant 1 : index
    %c1_96 = arith.constant 1 : index
    %c0_97 = arith.constant 0 : index
    %c0_98 = arith.constant 0 : index
    %96 = vector.load %arg11[%c1_95, %c1_96, %c0_97, %c0_98] : memref<4x10x10x16xf32, #tpu.memory_space<vmem>>, vector<1x8x8x16xf32>
    %97 = vector.shape_cast %96 : vector<1x8x8x16xf32> to vector<8x8x16xf32>
    %98 = vector.shape_cast %97 : vector<8x8x16xf32> to vector<64x16xf32>
    %99 = arith.truncf %98 : vector<64x16xf32> to vector<64x16xbf16>
    %c0_99 = arith.constant 0 : index
    %c48_100 = arith.constant 48 : index
    %100 = vector.load %arg13[%c0_99, %c48_100] : memref<64x144xbf16, #tpu.memory_space<vmem>>, vector<64x16xbf16>
    tpu.vector_store %arg13[%c0_99, %c48_100], %99 {strides = array<i32>} : memref<64x144xbf16, #tpu.memory_space<vmem>>, vector<64x16xbf16>,
    %c0_101 = arith.constant 0 : index
    %c1_102 = arith.constant 1 : index
    %c1_103 = arith.constant 1 : index
    %c0_104 = arith.constant 0 : index
    %101 = vector.load %arg11[%c0_101, %c1_102, %c1_103, %c0_104] : memref<4x10x10x16xf32, #tpu.memory_space<vmem>>, vector<1x8x8x16xf32>
    %102 = vector.shape_cast %101 : vector<1x8x8x16xf32> to vector<8x8x16xf32>
    %103 = vector.shape_cast %102 : vector<8x8x16xf32> to vector<64x16xf32>
    %104 = arith.truncf %103 : vector<64x16xf32> to vector<64x16xbf16>
    %c0_105 = arith.constant 0 : index
    %c64_106 = arith.constant 64 : index
    %105 = vector.load %arg13[%c0_105, %c64_106] : memref<64x144xbf16, #tpu.memory_space<vmem>>, vector<64x16xbf16>
    tpu.vector_store %arg13[%c0_105, %c64_106], %104 {strides = array<i32>} : memref<64x144xbf16, #tpu.memory_space<vmem>>, vector<64x16xbf16>,
    %c1_107 = arith.constant 1 : index
    %c1_108 = arith.constant 1 : index
    %c1_109 = arith.constant 1 : index
    %c0_110 = arith.constant 0 : index
    %106 = vector.load %arg11[%c1_107, %c1_108, %c1_109, %c0_110] : memref<4x10x10x16xf32, #tpu.memory_space<vmem>>, vector<1x8x8x16xf32>
    %107 = vector.shape_cast %106 : vector<1x8x8x16xf32> to vector<8x8x16xf32>
    %108 = vector.shape_cast %107 : vector<8x8x16xf32> to vector<64x16xf32>
    %109 = arith.truncf %108 : vector<64x16xf32> to vector<64x16xbf16>
    %c0_111 = arith.constant 0 : index
    %c80 = arith.constant 80 : index
    %110 = vector.load %arg13[%c0_111, %c80] : memref<64x144xbf16, #tpu.memory_space<vmem>>, vector<64x16xbf16>
    tpu.vector_store %arg13[%c0_111, %c80], %109 {strides = array<i32>} : memref<64x144xbf16, #tpu.memory_space<vmem>>, vector<64x16xbf16>,
    %c3_112 = arith.constant 3 : index
    %c1_113 = arith.constant 1 : index
    %c0_114 = arith.constant 0 : index
    %c0_115 = arith.constant 0 : index
    %111 = vector.load %arg11[%c3_112, %c1_113, %c0_114, %c0_115] : memref<4x10x10x16xf32, #tpu.memory_space<vmem>>, vector<1x8x8x16xf32>
    %112 = vector.shape_cast %111 : vector<1x8x8x16xf32> to vector<8x8x16xf32>
    %113 = vector.shape_cast %112 : vector<8x8x16xf32> to vector<64x16xf32>
    %114 = arith.truncf %113 : vector<64x16xf32> to vector<64x16xbf16>
    %c0_116 = arith.constant 0 : index
    %c96 = arith.constant 96 : index
    %115 = vector.load %arg13[%c0_116, %c96] : memref<64x144xbf16, #tpu.memory_space<vmem>>, vector<64x16xbf16>
    tpu.vector_store %arg13[%c0_116, %c96], %114 {strides = array<i32>} : memref<64x144xbf16, #tpu.memory_space<vmem>>, vector<64x16xbf16>,
    %c2_117 = arith.constant 2 : index
    %c1_118 = arith.constant 1 : index
    %c1_119 = arith.constant 1 : index
    %c0_120 = arith.constant 0 : index
    %116 = vector.load %arg11[%c2_117, %c1_118, %c1_119, %c0_120] : memref<4x10x10x16xf32, #tpu.memory_space<vmem>>, vector<1x8x8x16xf32>
    %117 = vector.shape_cast %116 : vector<1x8x8x16xf32> to vector<8x8x16xf32>
    %118 = vector.shape_cast %117 : vector<8x8x16xf32> to vector<64x16xf32>
    %119 = arith.truncf %118 : vector<64x16xf32> to vector<64x16xbf16>
    %c0_121 = arith.constant 0 : index
    %c112 = arith.constant 112 : index
    %120 = vector.load %arg13[%c0_121, %c112] : memref<64x144xbf16, #tpu.memory_space<vmem>>, vector<64x16xbf16>
    tpu.vector_store %arg13[%c0_121, %c112], %119 {strides = array<i32>} : memref<64x144xbf16, #tpu.memory_space<vmem>>, vector<64x16xbf16>,
    %c3_122 = arith.constant 3 : index
    %c1_123 = arith.constant 1 : index
    %c1_124 = arith.constant 1 : index
    %c0_125 = arith.constant 0 : index
    %121 = vector.load %arg11[%c3_122, %c1_123, %c1_124, %c0_125] : memref<4x10x10x16xf32, #tpu.memory_space<vmem>>, vector<1x8x8x16xf32>
    %122 = vector.shape_cast %121 : vector<1x8x8x16xf32> to vector<8x8x16xf32>
    %123 = vector.shape_cast %122 : vector<8x8x16xf32> to vector<64x16xf32>
    %124 = arith.truncf %123 : vector<64x16xf32> to vector<64x16xbf16>
    %c0_126 = arith.constant 0 : index
    %c128 = arith.constant 128 : index
    %125 = vector.load %arg13[%c0_126, %c128] : memref<64x144xbf16, #tpu.memory_space<vmem>>, vector<64x16xbf16>
    tpu.vector_store %arg13[%c0_126, %c128], %124 {strides = array<i32>} : memref<64x144xbf16, #tpu.memory_space<vmem>>, vector<64x16xbf16>,
    %c0_127 = arith.constant 0 : index
    %c0_128 = arith.constant 0 : index
    %126 = vector.load %arg13[%c0_127, %c0_128] : memref<64x144xbf16, #tpu.memory_space<vmem>>, vector<64x144xbf16>
    %c0_129 = arith.constant 0 : index
    %c0_130 = arith.constant 0 : index
    %c0_131 = arith.constant 0 : index
    %127 = vector.load %arg4[%c0_129, %c0_130, %c0_131] : memref<2x144x16xbf16, #tpu.memory_space<vmem>>, vector<1x144x16xbf16>
    %128 = vector.shape_cast %127 : vector<1x144x16xbf16> to vector<144x16xbf16>
    %cst_132 = arith.constant dense<0.000000e+00> : vector<64x16xf32>
    %129 = tpu.matmul %126, %128, %cst_132 {dimension_numbers = #tpu.dot_dimension_numbers<[1], [0], [0], [1], [0, 0, 1, 1], [], []>} : vector<64x144xbf16>, vector<144x16xbf16>, vector<64x16xf32> -> vector<64x16xf32>
    %c0_133 = arith.constant 0 : index
    %c0_134 = arith.constant 0 : index
    %130 = vector.load %arg5[%c0_133, %c0_134] : memref<1x16xf32, #tpu.memory_space<vmem>>, vector<1x16xf32>
    %131 = vector.broadcast %130 : vector<1x16xf32> to vector<64x16xf32>
    %132 = arith.addf %129, %131 : vector<64x16xf32>
    %cst_135 = arith.constant 0.000000e+00 : f32
    %133 = vector.broadcast %cst_135 : f32 to vector<64x16xf32>
    %134 = arith.cmpf oge, %132, %133 : vector<64x16xf32>
    %cst_136 = arith.constant 2.000000e-01 : f32
    %135 = vector.broadcast %cst_136 : f32 to vector<64x16xf32>
    %136 = arith.mulf %135, %132 : vector<64x16xf32>
    %137 = arith.select %134, %132, %136 : vector<64x16xi1>, vector<64x16xf32>
    %cst_137 = arith.constant 1.41421354 : f32
    %138 = vector.broadcast %cst_137 : f32 to vector<64x16xf32>
    %139 = arith.mulf %137, %138 : vector<64x16xf32>
    %cst_138 = arith.constant -2.560000e+02 : f32
    %cst_139 = arith.constant 2.560000e+02 : f32
    %140 = vector.broadcast %cst_138 : f32 to vector<64x16xf32>
    %141 = arith.maximumf %140, %139 : vector<64x16xf32>
    %142 = vector.broadcast %cst_139 : f32 to vector<64x16xf32>
    %143 = arith.minimumf %142, %141 : vector<64x16xf32>
    %144 = vector.shape_cast %143 : vector<64x16xf32> to vector<8x8x16xf32>
    %c0_140 = arith.constant 0 : index
    %c0_141 = arith.constant 0 : index
    %c0_142 = arith.constant 0 : index
    %c0_143 = arith.constant 0 : index
    %c0_144 = arith.constant 0 : index
    %145 = vector.load %arg8[%c0_140, %c0_141, %c0_142, %c0_143, %c0_144] : memref<2x4x8x8x16xf32, #tpu.memory_space<vmem>>, vector<1x1x8x8x16xf32>
    %146 = vector.shape_cast %145 : vector<1x1x8x8x16xf32> to vector<8x8x16xf32>
    %147 = vector.shape_cast %144 : vector<8x8x16xf32> to vector<1x1x8x8x16xf32>
    tpu.vector_store %arg8[%c0_140, %c0_141, %c0_142, %c0_143, %c0_144], %147 {strides = array<i32>} : memref<2x4x8x8x16xf32, #tpu.memory_space<vmem>>, vector<1x1x8x8x16xf32>,
    %148 = arith.truncf %143 : vector<64x16xf32> to vector<64x16xbf16>
    %c0_145 = arith.constant 0 : index
    %c0_146 = arith.constant 0 : index
    %c0_147 = arith.constant 0 : index
    %149 = vector.load %arg6[%c0_145, %c0_146, %c0_147] : memref<2x16x3xbf16, #tpu.memory_space<vmem>>, vector<1x16x3xbf16>
    %150 = vector.shape_cast %149 : vector<1x16x3xbf16> to vector<16x3xbf16>
    %cst_148 = arith.constant dense<0.000000e+00> : vector<64x3xf32>
    %151 = tpu.matmul %148, %150, %cst_148 {dimension_numbers = #tpu.dot_dimension_numbers<[1], [0], [0], [1], [0, 0, 1, 1], [], []>} : vector<64x16xbf16>, vector<16x3xbf16>, vector<64x3xf32> -> vector<64x3xf32>
    %c0_149 = arith.constant 0 : index
    %c0_150 = arith.constant 0 : index
    %152 = vector.load %arg7[%c0_149, %c0_150] : memref<1x3xf32, #tpu.memory_space<vmem>>, vector<1x3xf32>
    %153 = vector.broadcast %152 : vector<1x3xf32> to vector<64x3xf32>
    %154 = arith.addf %151, %153 : vector<64x3xf32>
    %cst_151 = arith.constant -2.560000e+02 : f32
    %cst_152 = arith.constant 2.560000e+02 : f32
    %155 = vector.broadcast %cst_151 : f32 to vector<64x3xf32>
    %156 = arith.maximumf %155, %154 : vector<64x3xf32>
    %157 = vector.broadcast %cst_152 : f32 to vector<64x3xf32>
    %158 = arith.minimumf %157, %156 : vector<64x3xf32>
    %159 = vector.shape_cast %158 : vector<64x3xf32> to vector<8x8x3xf32>
    %c0_153 = arith.constant 0 : index
    %c0_154 = arith.constant 0 : index
    %c0_155 = arith.constant 0 : index
    %c0_156 = arith.constant 0 : index
    %c0_157 = arith.constant 0 : index
    %160 = vector.load %arg9[%c0_153, %c0_154, %c0_155, %c0_156, %c0_157] : memref<2x4x8x8x3xf32, #tpu.memory_space<vmem>>, vector<1x1x8x8x3xf32>
    %161 = vector.shape_cast %160 : vector<1x1x8x8x3xf32> to vector<8x8x3xf32>
    %162 = vector.shape_cast %159 : vector<8x8x3xf32> to vector<1x1x8x8x3xf32>
    tpu.vector_store %arg9[%c0_153, %c0_154, %c0_155, %c0_156, %c0_157], %162 {strides = array<i32>} : memref<2x4x8x8x3xf32, #tpu.memory_space<vmem>>, vector<1x1x8x8x3xf32>,
    %c2_158 = arith.constant 2 : index
    %c0_159 = arith.constant 0 : index
    %c1_160 = arith.constant 1 : index
    %c0_161 = arith.constant 0 : index
    %163 = vector.load %arg11[%c2_158, %c0_159, %c1_160, %c0_161] : memref<4x10x10x16xf32, #tpu.memory_space<vmem>>, vector<1x8x8x16xf32>
    %164 = vector.shape_cast %163 : vector<1x8x8x16xf32> to vector<8x8x16xf32>
    %165 = vector.shape_cast %164 : vector<8x8x16xf32> to vector<64x16xf32>
    %166 = arith.truncf %165 : vector<64x16xf32> to vector<64x16xbf16>
    %c0_162 = arith.constant 0 : index
    %c0_163 = arith.constant 0 : index
    %167 = vector.load %arg13[%c0_162, %c0_163] : memref<64x144xbf16, #tpu.memory_space<vmem>>, vector<64x16xbf16>
    tpu.vector_store %arg13[%c0_162, %c0_163], %166 {strides = array<i32>} : memref<64x144xbf16, #tpu.memory_space<vmem>>, vector<64x16xbf16>,
    %c3_164 = arith.constant 3 : index
    %c0_165 = arith.constant 0 : index
    %c1_166 = arith.constant 1 : index
    %c0_167 = arith.constant 0 : index
    %168 = vector.load %arg11[%c3_164, %c0_165, %c1_166, %c0_167] : memref<4x10x10x16xf32, #tpu.memory_space<vmem>>, vector<1x8x8x16xf32>
    %169 = vector.shape_cast %168 : vector<1x8x8x16xf32> to vector<8x8x16xf32>
    %170 = vector.shape_cast %169 : vector<8x8x16xf32> to vector<64x16xf32>
    %171 = arith.truncf %170 : vector<64x16xf32> to vector<64x16xbf16>
    %c0_168 = arith.constant 0 : index
    %c16_169 = arith.constant 16 : index
    %172 = vector.load %arg13[%c0_168, %c16_169] : memref<64x144xbf16, #tpu.memory_space<vmem>>, vector<64x16xbf16>
    tpu.vector_store %arg13[%c0_168, %c16_169], %171 {strides = array<i32>} : memref<64x144xbf16, #tpu.memory_space<vmem>>, vector<64x16xbf16>,
    %c2_170 = arith.constant 2 : index
    %c0_171 = arith.constant 0 : index
    %c2_172 = arith.constant 2 : index
    %c0_173 = arith.constant 0 : index
    %173 = vector.load %arg11[%c2_170, %c0_171, %c2_172, %c0_173] : memref<4x10x10x16xf32, #tpu.memory_space<vmem>>, vector<1x8x8x16xf32>
    %174 = vector.shape_cast %173 : vector<1x8x8x16xf32> to vector<8x8x16xf32>
    %175 = vector.shape_cast %174 : vector<8x8x16xf32> to vector<64x16xf32>
    %176 = arith.truncf %175 : vector<64x16xf32> to vector<64x16xbf16>
    %c0_174 = arith.constant 0 : index
    %c32_175 = arith.constant 32 : index
    %177 = vector.load %arg13[%c0_174, %c32_175] : memref<64x144xbf16, #tpu.memory_space<vmem>>, vector<64x16xbf16>
    tpu.vector_store %arg13[%c0_174, %c32_175], %176 {strides = array<i32>} : memref<64x144xbf16, #tpu.memory_space<vmem>>, vector<64x16xbf16>,
    %c0_176 = arith.constant 0 : index
    %c1_177 = arith.constant 1 : index
    %c1_178 = arith.constant 1 : index
    %c0_179 = arith.constant 0 : index
    %178 = vector.load %arg11[%c0_176, %c1_177, %c1_178, %c0_179] : memref<4x10x10x16xf32, #tpu.memory_space<vmem>>, vector<1x8x8x16xf32>
    %179 = vector.shape_cast %178 : vector<1x8x8x16xf32> to vector<8x8x16xf32>
    %180 = vector.shape_cast %179 : vector<8x8x16xf32> to vector<64x16xf32>
    %181 = arith.truncf %180 : vector<64x16xf32> to vector<64x16xbf16>
    %c0_180 = arith.constant 0 : index
    %c48_181 = arith.constant 48 : index
    %182 = vector.load %arg13[%c0_180, %c48_181] : memref<64x144xbf16, #tpu.memory_space<vmem>>, vector<64x16xbf16>
    tpu.vector_store %arg13[%c0_180, %c48_181], %181 {strides = array<i32>} : memref<64x144xbf16, #tpu.memory_space<vmem>>, vector<64x16xbf16>,
    %c1_182 = arith.constant 1 : index
    %c1_183 = arith.constant 1 : index
    %c1_184 = arith.constant 1 : index
    %c0_185 = arith.constant 0 : index
    %183 = vector.load %arg11[%c1_182, %c1_183, %c1_184, %c0_185] : memref<4x10x10x16xf32, #tpu.memory_space<vmem>>, vector<1x8x8x16xf32>
    %184 = vector.shape_cast %183 : vector<1x8x8x16xf32> to vector<8x8x16xf32>
    %185 = vector.shape_cast %184 : vector<8x8x16xf32> to vector<64x16xf32>
    %186 = arith.truncf %185 : vector<64x16xf32> to vector<64x16xbf16>
    %c0_186 = arith.constant 0 : index
    %c64_187 = arith.constant 64 : index
    %187 = vector.load %arg13[%c0_186, %c64_187] : memref<64x144xbf16, #tpu.memory_space<vmem>>, vector<64x16xbf16>
    tpu.vector_store %arg13[%c0_186, %c64_187], %186 {strides = array<i32>} : memref<64x144xbf16, #tpu.memory_space<vmem>>, vector<64x16xbf16>,
    %c0_188 = arith.constant 0 : index
    %c1_189 = arith.constant 1 : index
    %c2_190 = arith.constant 2 : index
    %c0_191 = arith.constant 0 : index
    %188 = vector.load %arg11[%c0_188, %c1_189, %c2_190, %c0_191] : memref<4x10x10x16xf32, #tpu.memory_space<vmem>>, vector<1x8x8x16xf32>
    %189 = vector.shape_cast %188 : vector<1x8x8x16xf32> to vector<8x8x16xf32>
    %190 = vector.shape_cast %189 : vector<8x8x16xf32> to vector<64x16xf32>
    %191 = arith.truncf %190 : vector<64x16xf32> to vector<64x16xbf16>
    %c0_192 = arith.constant 0 : index
    %c80_193 = arith.constant 80 : index
    %192 = vector.load %arg13[%c0_192, %c80_193] : memref<64x144xbf16, #tpu.memory_space<vmem>>, vector<64x16xbf16>
    tpu.vector_store %arg13[%c0_192, %c80_193], %191 {strides = array<i32>} : memref<64x144xbf16, #tpu.memory_space<vmem>>, vector<64x16xbf16>,
    %c2_194 = arith.constant 2 : index
    %c1_195 = arith.constant 1 : index
    %c1_196 = arith.constant 1 : index
    %c0_197 = arith.constant 0 : index
    %193 = vector.load %arg11[%c2_194, %c1_195, %c1_196, %c0_197] : memref<4x10x10x16xf32, #tpu.memory_space<vmem>>, vector<1x8x8x16xf32>
    %194 = vector.shape_cast %193 : vector<1x8x8x16xf32> to vector<8x8x16xf32>
    %195 = vector.shape_cast %194 : vector<8x8x16xf32> to vector<64x16xf32>
    %196 = arith.truncf %195 : vector<64x16xf32> to vector<64x16xbf16>
    %c0_198 = arith.constant 0 : index
    %c96_199 = arith.constant 96 : index
    %197 = vector.load %arg13[%c0_198, %c96_199] : memref<64x144xbf16, #tpu.memory_space<vmem>>, vector<64x16xbf16>
    tpu.vector_store %arg13[%c0_198, %c96_199], %196 {strides = array<i32>} : memref<64x144xbf16, #tpu.memory_space<vmem>>, vector<64x16xbf16>,
    %c3_200 = arith.constant 3 : index
    %c1_201 = arith.constant 1 : index
    %c1_202 = arith.constant 1 : index
    %c0_203 = arith.constant 0 : index
    %198 = vector.load %arg11[%c3_200, %c1_201, %c1_202, %c0_203] : memref<4x10x10x16xf32, #tpu.memory_space<vmem>>, vector<1x8x8x16xf32>
    %199 = vector.shape_cast %198 : vector<1x8x8x16xf32> to vector<8x8x16xf32>
    %200 = vector.shape_cast %199 : vector<8x8x16xf32> to vector<64x16xf32>
    %201 = arith.truncf %200 : vector<64x16xf32> to vector<64x16xbf16>
    %c0_204 = arith.constant 0 : index
    %c112_205 = arith.constant 112 : index
    %202 = vector.load %arg13[%c0_204, %c112_205] : memref<64x144xbf16, #tpu.memory_space<vmem>>, vector<64x16xbf16>
    tpu.vector_store %arg13[%c0_204, %c112_205], %201 {strides = array<i32>} : memref<64x144xbf16, #tpu.memory_space<vmem>>, vector<64x16xbf16>,
    %c2_206 = arith.constant 2 : index
    %c1_207 = arith.constant 1 : index
    %c2_208 = arith.constant 2 : index
    %c0_209 = arith.constant 0 : index
    %203 = vector.load %arg11[%c2_206, %c1_207, %c2_208, %c0_209] : memref<4x10x10x16xf32, #tpu.memory_space<vmem>>, vector<1x8x8x16xf32>
    %204 = vector.shape_cast %203 : vector<1x8x8x16xf32> to vector<8x8x16xf32>
    %205 = vector.shape_cast %204 : vector<8x8x16xf32> to vector<64x16xf32>
    %206 = arith.truncf %205 : vector<64x16xf32> to vector<64x16xbf16>
    %c0_210 = arith.constant 0 : index
    %c128_211 = arith.constant 128 : index
    %207 = vector.load %arg13[%c0_210, %c128_211] : memref<64x144xbf16, #tpu.memory_space<vmem>>, vector<64x16xbf16>
    tpu.vector_store %arg13[%c0_210, %c128_211], %206 {strides = array<i32>} : memref<64x144xbf16, #tpu.memory_space<vmem>>, vector<64x16xbf16>,
    %c0_212 = arith.constant 0 : index
    %c0_213 = arith.constant 0 : index
    %208 = vector.load %arg13[%c0_212, %c0_213] : memref<64x144xbf16, #tpu.memory_space<vmem>>, vector<64x144xbf16>
    %c0_214 = arith.constant 0 : index
    %c0_215 = arith.constant 0 : index
    %c0_216 = arith.constant 0 : index
    %209 = vector.load %arg4[%c0_214, %c0_215, %c0_216] : memref<2x144x16xbf16, #tpu.memory_space<vmem>>, vector<1x144x16xbf16>
    %210 = vector.shape_cast %209 : vector<1x144x16xbf16> to vector<144x16xbf16>
    %cst_217 = arith.constant dense<0.000000e+00> : vector<64x16xf32>
    %211 = tpu.matmul %208, %210, %cst_217 {dimension_numbers = #tpu.dot_dimension_numbers<[1], [0], [0], [1], [0, 0, 1, 1], [], []>} : vector<64x144xbf16>, vector<144x16xbf16>, vector<64x16xf32> -> vector<64x16xf32>
    %c0_218 = arith.constant 0 : index
    %c0_219 = arith.constant 0 : index
    %212 = vector.load %arg5[%c0_218, %c0_219] : memref<1x16xf32, #tpu.memory_space<vmem>>, vector<1x16xf32>
    %213 = vector.broadcast %212 : vector<1x16xf32> to vector<64x16xf32>
    %214 = arith.addf %211, %213 : vector<64x16xf32>
    %cst_220 = arith.constant 0.000000e+00 : f32
    %215 = vector.broadcast %cst_220 : f32 to vector<64x16xf32>
    %216 = arith.cmpf oge, %214, %215 : vector<64x16xf32>
    %cst_221 = arith.constant 2.000000e-01 : f32
    %217 = vector.broadcast %cst_221 : f32 to vector<64x16xf32>
    %218 = arith.mulf %217, %214 : vector<64x16xf32>
    %219 = arith.select %216, %214, %218 : vector<64x16xi1>, vector<64x16xf32>
    %cst_222 = arith.constant 1.41421354 : f32
    %220 = vector.broadcast %cst_222 : f32 to vector<64x16xf32>
    %221 = arith.mulf %219, %220 : vector<64x16xf32>
    %cst_223 = arith.constant -2.560000e+02 : f32
    %cst_224 = arith.constant 2.560000e+02 : f32
    %222 = vector.broadcast %cst_223 : f32 to vector<64x16xf32>
    %223 = arith.maximumf %222, %221 : vector<64x16xf32>
    %224 = vector.broadcast %cst_224 : f32 to vector<64x16xf32>
    %225 = arith.minimumf %224, %223 : vector<64x16xf32>
    %226 = vector.shape_cast %225 : vector<64x16xf32> to vector<8x8x16xf32>
    %c0_225 = arith.constant 0 : index
    %c1_226 = arith.constant 1 : index
    %c0_227 = arith.constant 0 : index
    %c0_228 = arith.constant 0 : index
    %c0_229 = arith.constant 0 : index
    %227 = vector.load %arg8[%c0_225, %c1_226, %c0_227, %c0_228, %c0_229] : memref<2x4x8x8x16xf32, #tpu.memory_space<vmem>>, vector<1x1x8x8x16xf32>
    %228 = vector.shape_cast %227 : vector<1x1x8x8x16xf32> to vector<8x8x16xf32>
    %229 = vector.shape_cast %226 : vector<8x8x16xf32> to vector<1x1x8x8x16xf32>
    tpu.vector_store %arg8[%c0_225, %c1_226, %c0_227, %c0_228, %c0_229], %229 {strides = array<i32>} : memref<2x4x8x8x16xf32, #tpu.memory_space<vmem>>, vector<1x1x8x8x16xf32>,
    %230 = arith.truncf %225 : vector<64x16xf32> to vector<64x16xbf16>
    %c0_230 = arith.constant 0 : index
    %c0_231 = arith.constant 0 : index
    %c0_232 = arith.constant 0 : index
    %231 = vector.load %arg6[%c0_230, %c0_231, %c0_232] : memref<2x16x3xbf16, #tpu.memory_space<vmem>>, vector<1x16x3xbf16>
    %232 = vector.shape_cast %231 : vector<1x16x3xbf16> to vector<16x3xbf16>
    %cst_233 = arith.constant dense<0.000000e+00> : vector<64x3xf32>
    %233 = tpu.matmul %230, %232, %cst_233 {dimension_numbers = #tpu.dot_dimension_numbers<[1], [0], [0], [1], [0, 0, 1, 1], [], []>} : vector<64x16xbf16>, vector<16x3xbf16>, vector<64x3xf32> -> vector<64x3xf32>
    %c0_234 = arith.constant 0 : index
    %c0_235 = arith.constant 0 : index
    %234 = vector.load %arg7[%c0_234, %c0_235] : memref<1x3xf32, #tpu.memory_space<vmem>>, vector<1x3xf32>
    %235 = vector.broadcast %234 : vector<1x3xf32> to vector<64x3xf32>
    %236 = arith.addf %233, %235 : vector<64x3xf32>
    %cst_236 = arith.constant -2.560000e+02 : f32
    %cst_237 = arith.constant 2.560000e+02 : f32
    %237 = vector.broadcast %cst_236 : f32 to vector<64x3xf32>
    %238 = arith.maximumf %237, %236 : vector<64x3xf32>
    %239 = vector.broadcast %cst_237 : f32 to vector<64x3xf32>
    %240 = arith.minimumf %239, %238 : vector<64x3xf32>
    %241 = vector.shape_cast %240 : vector<64x3xf32> to vector<8x8x3xf32>
    %c0_238 = arith.constant 0 : index
    %c1_239 = arith.constant 1 : index
    %c0_240 = arith.constant 0 : index
    %c0_241 = arith.constant 0 : index
    %c0_242 = arith.constant 0 : index
    %242 = vector.load %arg9[%c0_238, %c1_239, %c0_240, %c0_241, %c0_242] : memref<2x4x8x8x3xf32, #tpu.memory_space<vmem>>, vector<1x1x8x8x3xf32>
    %243 = vector.shape_cast %242 : vector<1x1x8x8x3xf32> to vector<8x8x3xf32>
    %244 = vector.shape_cast %241 : vector<8x8x3xf32> to vector<1x1x8x8x3xf32>
    tpu.vector_store %arg9[%c0_238, %c1_239, %c0_240, %c0_241, %c0_242], %244 {strides = array<i32>} : memref<2x4x8x8x3xf32, #tpu.memory_space<vmem>>, vector<1x1x8x8x3xf32>,
    %c1_243 = arith.constant 1 : index
    %c1_244 = arith.constant 1 : index
    %c0_245 = arith.constant 0 : index
    %c0_246 = arith.constant 0 : index
    %245 = vector.load %arg11[%c1_243, %c1_244, %c0_245, %c0_246] : memref<4x10x10x16xf32, #tpu.memory_space<vmem>>, vector<1x8x8x16xf32>
    %246 = vector.shape_cast %245 : vector<1x8x8x16xf32> to vector<8x8x16xf32>
    %247 = vector.shape_cast %246 : vector<8x8x16xf32> to vector<64x16xf32>
    %248 = arith.truncf %247 : vector<64x16xf32> to vector<64x16xbf16>
    %c0_247 = arith.constant 0 : index
    %c0_248 = arith.constant 0 : index
    %249 = vector.load %arg13[%c0_247, %c0_248] : memref<64x144xbf16, #tpu.memory_space<vmem>>, vector<64x16xbf16>
    tpu.vector_store %arg13[%c0_247, %c0_248], %248 {strides = array<i32>} : memref<64x144xbf16, #tpu.memory_space<vmem>>, vector<64x16xbf16>,
    %c0_249 = arith.constant 0 : index
    %c1_250 = arith.constant 1 : index
    %c1_251 = arith.constant 1 : index
    %c0_252 = arith.constant 0 : index
    %250 = vector.load %arg11[%c0_249, %c1_250, %c1_251, %c0_252] : memref<4x10x10x16xf32, #tpu.memory_space<vmem>>, vector<1x8x8x16xf32>
    %251 = vector.shape_cast %250 : vector<1x8x8x16xf32> to vector<8x8x16xf32>
    %252 = vector.shape_cast %251 : vector<8x8x16xf32> to vector<64x16xf32>
    %253 = arith.truncf %252 : vector<64x16xf32> to vector<64x16xbf16>
    %c0_253 = arith.constant 0 : index
    %c16_254 = arith.constant 16 : index
    %254 = vector.load %arg13[%c0_253, %c16_254] : memref<64x144xbf16, #tpu.memory_space<vmem>>, vector<64x16xbf16>
    tpu.vector_store %arg13[%c0_253, %c16_254], %253 {strides = array<i32>} : memref<64x144xbf16, #tpu.memory_space<vmem>>, vector<64x16xbf16>,
    %c1_255 = arith.constant 1 : index
    %c1_256 = arith.constant 1 : index
    %c1_257 = arith.constant 1 : index
    %c0_258 = arith.constant 0 : index
    %255 = vector.load %arg11[%c1_255, %c1_256, %c1_257, %c0_258] : memref<4x10x10x16xf32, #tpu.memory_space<vmem>>, vector<1x8x8x16xf32>
    %256 = vector.shape_cast %255 : vector<1x8x8x16xf32> to vector<8x8x16xf32>
    %257 = vector.shape_cast %256 : vector<8x8x16xf32> to vector<64x16xf32>
    %258 = arith.truncf %257 : vector<64x16xf32> to vector<64x16xbf16>
    %c0_259 = arith.constant 0 : index
    %c32_260 = arith.constant 32 : index
    %259 = vector.load %arg13[%c0_259, %c32_260] : memref<64x144xbf16, #tpu.memory_space<vmem>>, vector<64x16xbf16>
    tpu.vector_store %arg13[%c0_259, %c32_260], %258 {strides = array<i32>} : memref<64x144xbf16, #tpu.memory_space<vmem>>, vector<64x16xbf16>,
    %c3_261 = arith.constant 3 : index
    %c1_262 = arith.constant 1 : index
    %c0_263 = arith.constant 0 : index
    %c0_264 = arith.constant 0 : index
    %260 = vector.load %arg11[%c3_261, %c1_262, %c0_263, %c0_264] : memref<4x10x10x16xf32, #tpu.memory_space<vmem>>, vector<1x8x8x16xf32>
    %261 = vector.shape_cast %260 : vector<1x8x8x16xf32> to vector<8x8x16xf32>
    %262 = vector.shape_cast %261 : vector<8x8x16xf32> to vector<64x16xf32>
    %263 = arith.truncf %262 : vector<64x16xf32> to vector<64x16xbf16>
    %c0_265 = arith.constant 0 : index
    %c48_266 = arith.constant 48 : index
    %264 = vector.load %arg13[%c0_265, %c48_266] : memref<64x144xbf16, #tpu.memory_space<vmem>>, vector<64x16xbf16>
    tpu.vector_store %arg13[%c0_265, %c48_266], %263 {strides = array<i32>} : memref<64x144xbf16, #tpu.memory_space<vmem>>, vector<64x16xbf16>,
    %c2_267 = arith.constant 2 : index
    %c1_268 = arith.constant 1 : index
    %c1_269 = arith.constant 1 : index
    %c0_270 = arith.constant 0 : index
    %265 = vector.load %arg11[%c2_267, %c1_268, %c1_269, %c0_270] : memref<4x10x10x16xf32, #tpu.memory_space<vmem>>, vector<1x8x8x16xf32>
    %266 = vector.shape_cast %265 : vector<1x8x8x16xf32> to vector<8x8x16xf32>
    %267 = vector.shape_cast %266 : vector<8x8x16xf32> to vector<64x16xf32>
    %268 = arith.truncf %267 : vector<64x16xf32> to vector<64x16xbf16>
    %c0_271 = arith.constant 0 : index
    %c64_272 = arith.constant 64 : index
    %269 = vector.load %arg13[%c0_271, %c64_272] : memref<64x144xbf16, #tpu.memory_space<vmem>>, vector<64x16xbf16>
    tpu.vector_store %arg13[%c0_271, %c64_272], %268 {strides = array<i32>} : memref<64x144xbf16, #tpu.memory_space<vmem>>, vector<64x16xbf16>,
    %c3_273 = arith.constant 3 : index
    %c1_274 = arith.constant 1 : index
    %c1_275 = arith.constant 1 : index
    %c0_276 = arith.constant 0 : index
    %270 = vector.load %arg11[%c3_273, %c1_274, %c1_275, %c0_276] : memref<4x10x10x16xf32, #tpu.memory_space<vmem>>, vector<1x8x8x16xf32>
    %271 = vector.shape_cast %270 : vector<1x8x8x16xf32> to vector<8x8x16xf32>
    %272 = vector.shape_cast %271 : vector<8x8x16xf32> to vector<64x16xf32>
    %273 = arith.truncf %272 : vector<64x16xf32> to vector<64x16xbf16>
    %c0_277 = arith.constant 0 : index
    %c80_278 = arith.constant 80 : index
    %274 = vector.load %arg13[%c0_277, %c80_278] : memref<64x144xbf16, #tpu.memory_space<vmem>>, vector<64x16xbf16>
    tpu.vector_store %arg13[%c0_277, %c80_278], %273 {strides = array<i32>} : memref<64x144xbf16, #tpu.memory_space<vmem>>, vector<64x16xbf16>,
    %c1_279 = arith.constant 1 : index
    %c2_280 = arith.constant 2 : index
    %c0_281 = arith.constant 0 : index
    %c0_282 = arith.constant 0 : index
    %275 = vector.load %arg11[%c1_279, %c2_280, %c0_281, %c0_282] : memref<4x10x10x16xf32, #tpu.memory_space<vmem>>, vector<1x8x8x16xf32>
    %276 = vector.shape_cast %275 : vector<1x8x8x16xf32> to vector<8x8x16xf32>
    %277 = vector.shape_cast %276 : vector<8x8x16xf32> to vector<64x16xf32>
    %278 = arith.truncf %277 : vector<64x16xf32> to vector<64x16xbf16>
    %c0_283 = arith.constant 0 : index
    %c96_284 = arith.constant 96 : index
    %279 = vector.load %arg13[%c0_283, %c96_284] : memref<64x144xbf16, #tpu.memory_space<vmem>>, vector<64x16xbf16>
    tpu.vector_store %arg13[%c0_283, %c96_284], %278 {strides = array<i32>} : memref<64x144xbf16, #tpu.memory_space<vmem>>, vector<64x16xbf16>,
    %c0_285 = arith.constant 0 : index
    %c2_286 = arith.constant 2 : index
    %c1_287 = arith.constant 1 : index
    %c0_288 = arith.constant 0 : index
    %280 = vector.load %arg11[%c0_285, %c2_286, %c1_287, %c0_288] : memref<4x10x10x16xf32, #tpu.memory_space<vmem>>, vector<1x8x8x16xf32>
    %281 = vector.shape_cast %280 : vector<1x8x8x16xf32> to vector<8x8x16xf32>
    %282 = vector.shape_cast %281 : vector<8x8x16xf32> to vector<64x16xf32>
    %283 = arith.truncf %282 : vector<64x16xf32> to vector<64x16xbf16>
    %c0_289 = arith.constant 0 : index
    %c112_290 = arith.constant 112 : index
    %284 = vector.load %arg13[%c0_289, %c112_290] : memref<64x144xbf16, #tpu.memory_space<vmem>>, vector<64x16xbf16>
    tpu.vector_store %arg13[%c0_289, %c112_290], %283 {strides = array<i32>} : memref<64x144xbf16, #tpu.memory_space<vmem>>, vector<64x16xbf16>,
    %c1_291 = arith.constant 1 : index
    %c2_292 = arith.constant 2 : index
    %c1_293 = arith.constant 1 : index
    %c0_294 = arith.constant 0 : index
    %285 = vector.load %arg11[%c1_291, %c2_292, %c1_293, %c0_294] : memref<4x10x10x16xf32, #tpu.memory_space<vmem>>, vector<1x8x8x16xf32>
    %286 = vector.shape_cast %285 : vector<1x8x8x16xf32> to vector<8x8x16xf32>
    %287 = vector.shape_cast %286 : vector<8x8x16xf32> to vector<64x16xf32>
    %288 = arith.truncf %287 : vector<64x16xf32> to vector<64x16xbf16>
    %c0_295 = arith.constant 0 : index
    %c128_296 = arith.constant 128 : index
    %289 = vector.load %arg13[%c0_295, %c128_296] : memref<64x144xbf16, #tpu.memory_space<vmem>>, vector<64x16xbf16>
    tpu.vector_store %arg13[%c0_295, %c128_296], %288 {strides = array<i32>} : memref<64x144xbf16, #tpu.memory_space<vmem>>, vector<64x16xbf16>,
    %c0_297 = arith.constant 0 : index
    %c0_298 = arith.constant 0 : index
    %290 = vector.load %arg13[%c0_297, %c0_298] : memref<64x144xbf16, #tpu.memory_space<vmem>>, vector<64x144xbf16>
    %c0_299 = arith.constant 0 : index
    %c0_300 = arith.constant 0 : index
    %c0_301 = arith.constant 0 : index
    %291 = vector.load %arg4[%c0_299, %c0_300, %c0_301] : memref<2x144x16xbf16, #tpu.memory_space<vmem>>, vector<1x144x16xbf16>
    %292 = vector.shape_cast %291 : vector<1x144x16xbf16> to vector<144x16xbf16>
    %cst_302 = arith.constant dense<0.000000e+00> : vector<64x16xf32>
    %293 = tpu.matmul %290, %292, %cst_302 {dimension_numbers = #tpu.dot_dimension_numbers<[1], [0], [0], [1], [0, 0, 1, 1], [], []>} : vector<64x144xbf16>, vector<144x16xbf16>, vector<64x16xf32> -> vector<64x16xf32>
    %c0_303 = arith.constant 0 : index
    %c0_304 = arith.constant 0 : index
    %294 = vector.load %arg5[%c0_303, %c0_304] : memref<1x16xf32, #tpu.memory_space<vmem>>, vector<1x16xf32>
    %295 = vector.broadcast %294 : vector<1x16xf32> to vector<64x16xf32>
    %296 = arith.addf %293, %295 : vector<64x16xf32>
    %cst_305 = arith.constant 0.000000e+00 : f32
    %297 = vector.broadcast %cst_305 : f32 to vector<64x16xf32>
    %298 = arith.cmpf oge, %296, %297 : vector<64x16xf32>
    %cst_306 = arith.constant 2.000000e-01 : f32
    %299 = vector.broadcast %cst_306 : f32 to vector<64x16xf32>
    %300 = arith.mulf %299, %296 : vector<64x16xf32>
    %301 = arith.select %298, %296, %300 : vector<64x16xi1>, vector<64x16xf32>
    %cst_307 = arith.constant 1.41421354 : f32
    %302 = vector.broadcast %cst_307 : f32 to vector<64x16xf32>
    %303 = arith.mulf %301, %302 : vector<64x16xf32>
    %cst_308 = arith.constant -2.560000e+02 : f32
    %cst_309 = arith.constant 2.560000e+02 : f32
    %304 = vector.broadcast %cst_308 : f32 to vector<64x16xf32>
    %305 = arith.maximumf %304, %303 : vector<64x16xf32>
    %306 = vector.broadcast %cst_309 : f32 to vector<64x16xf32>
    %307 = arith.minimumf %306, %305 : vector<64x16xf32>
    %308 = vector.shape_cast %307 : vector<64x16xf32> to vector<8x8x16xf32>
    %c0_310 = arith.constant 0 : index
    %c2_311 = arith.constant 2 : index
    %c0_312 = arith.constant 0 : index
    %c0_313 = arith.constant 0 : index
    %c0_314 = arith.constant 0 : index
    %309 = vector.load %arg8[%c0_310, %c2_311, %c0_312, %c0_313, %c0_314] : memref<2x4x8x8x16xf32, #tpu.memory_space<vmem>>, vector<1x1x8x8x16xf32>
    %310 = vector.shape_cast %309 : vector<1x1x8x8x16xf32> to vector<8x8x16xf32>
    %311 = vector.shape_cast %308 : vector<8x8x16xf32> to vector<1x1x8x8x16xf32>
    tpu.vector_store %arg8[%c0_310, %c2_311, %c0_312, %c0_313, %c0_314], %311 {strides = array<i32>} : memref<2x4x8x8x16xf32, #tpu.memory_space<vmem>>, vector<1x1x8x8x16xf32>,
    %312 = arith.truncf %307 : vector<64x16xf32> to vector<64x16xbf16>
    %c0_315 = arith.constant 0 : index
    %c0_316 = arith.constant 0 : index
    %c0_317 = arith.constant 0 : index
    %313 = vector.load %arg6[%c0_315, %c0_316, %c0_317] : memref<2x16x3xbf16, #tpu.memory_space<vmem>>, vector<1x16x3xbf16>
    %314 = vector.shape_cast %313 : vector<1x16x3xbf16> to vector<16x3xbf16>
    %cst_318 = arith.constant dense<0.000000e+00> : vector<64x3xf32>
    %315 = tpu.matmul %312, %314, %cst_318 {dimension_numbers = #tpu.dot_dimension_numbers<[1], [0], [0], [1], [0, 0, 1, 1], [], []>} : vector<64x16xbf16>, vector<16x3xbf16>, vector<64x3xf32> -> vector<64x3xf32>
    %c0_319 = arith.constant 0 : index
    %c0_320 = arith.constant 0 : index
    %316 = vector.load %arg7[%c0_319, %c0_320] : memref<1x3xf32, #tpu.memory_space<vmem>>, vector<1x3xf32>
    %317 = vector.broadcast %316 : vector<1x3xf32> to vector<64x3xf32>
    %318 = arith.addf %315, %317 : vector<64x3xf32>
    %cst_321 = arith.constant -2.560000e+02 : f32
    %cst_322 = arith.constant 2.560000e+02 : f32
    %319 = vector.broadcast %cst_321 : f32 to vector<64x3xf32>
    %320 = arith.maximumf %319, %318 : vector<64x3xf32>
    %321 = vector.broadcast %cst_322 : f32 to vector<64x3xf32>
    %322 = arith.minimumf %321, %320 : vector<64x3xf32>
    %323 = vector.shape_cast %322 : vector<64x3xf32> to vector<8x8x3xf32>
    %c0_323 = arith.constant 0 : index
    %c2_324 = arith.constant 2 : index
    %c0_325 = arith.constant 0 : index
    %c0_326 = arith.constant 0 : index
    %c0_327 = arith.constant 0 : index
    %324 = vector.load %arg9[%c0_323, %c2_324, %c0_325, %c0_326, %c0_327] : memref<2x4x8x8x3xf32, #tpu.memory_space<vmem>>, vector<1x1x8x8x3xf32>
    %325 = vector.shape_cast %324 : vector<1x1x8x8x3xf32> to vector<8x8x3xf32>
    %326 = vector.shape_cast %323 : vector<8x8x3xf32> to vector<1x1x8x8x3xf32>
    tpu.vector_store %arg9[%c0_323, %c2_324, %c0_325, %c0_326, %c0_327], %326 {strides = array<i32>} : memref<2x4x8x8x3xf32, #tpu.memory_space<vmem>>, vector<1x1x8x8x3xf32>,
    %c0_328 = arith.constant 0 : index
    %c1_329 = arith.constant 1 : index
    %c1_330 = arith.constant 1 : index
    %c0_331 = arith.constant 0 : index
    %327 = vector.load %arg11[%c0_328, %c1_329, %c1_330, %c0_331] : memref<4x10x10x16xf32, #tpu.memory_space<vmem>>, vector<1x8x8x16xf32>
    %328 = vector.shape_cast %327 : vector<1x8x8x16xf32> to vector<8x8x16xf32>
    %329 = vector.shape_cast %328 : vector<8x8x16xf32> to vector<64x16xf32>
    %330 = arith.truncf %329 : vector<64x16xf32> to vector<64x16xbf16>
    %c0_332 = arith.constant 0 : index
    %c0_333 = arith.constant 0 : index
    %331 = vector.load %arg13[%c0_332, %c0_333] : memref<64x144xbf16, #tpu.memory_space<vmem>>, vector<64x16xbf16>
    tpu.vector_store %arg13[%c0_332, %c0_333], %330 {strides = array<i32>} : memref<64x144xbf16, #tpu.memory_space<vmem>>, vector<64x16xbf16>,
    %c1_334 = arith.constant 1 : index
    %c1_335 = arith.constant 1 : index
    %c1_336 = arith.constant 1 : index
    %c0_337 = arith.constant 0 : index
    %332 = vector.load %arg11[%c1_334, %c1_335, %c1_336, %c0_337] : memref<4x10x10x16xf32, #tpu.memory_space<vmem>>, vector<1x8x8x16xf32>
    %333 = vector.shape_cast %332 : vector<1x8x8x16xf32> to vector<8x8x16xf32>
    %334 = vector.shape_cast %333 : vector<8x8x16xf32> to vector<64x16xf32>
    %335 = arith.truncf %334 : vector<64x16xf32> to vector<64x16xbf16>
    %c0_338 = arith.constant 0 : index
    %c16_339 = arith.constant 16 : index
    %336 = vector.load %arg13[%c0_338, %c16_339] : memref<64x144xbf16, #tpu.memory_space<vmem>>, vector<64x16xbf16>
    tpu.vector_store %arg13[%c0_338, %c16_339], %335 {strides = array<i32>} : memref<64x144xbf16, #tpu.memory_space<vmem>>, vector<64x16xbf16>,
    %c0_340 = arith.constant 0 : index
    %c1_341 = arith.constant 1 : index
    %c2_342 = arith.constant 2 : index
    %c0_343 = arith.constant 0 : index
    %337 = vector.load %arg11[%c0_340, %c1_341, %c2_342, %c0_343] : memref<4x10x10x16xf32, #tpu.memory_space<vmem>>, vector<1x8x8x16xf32>
    %338 = vector.shape_cast %337 : vector<1x8x8x16xf32> to vector<8x8x16xf32>
    %339 = vector.shape_cast %338 : vector<8x8x16xf32> to vector<64x16xf32>
    %340 = arith.truncf %339 : vector<64x16xf32> to vector<64x16xbf16>
    %c0_344 = arith.constant 0 : index
    %c32_345 = arith.constant 32 : index
    %341 = vector.load %arg13[%c0_344, %c32_345] : memref<64x144xbf16, #tpu.memory_space<vmem>>, vector<64x16xbf16>
    tpu.vector_store %arg13[%c0_344, %c32_345], %340 {strides = array<i32>} : memref<64x144xbf16, #tpu.memory_space<vmem>>, vector<64x16xbf16>,
    %c2_346 = arith.constant 2 : index
    %c1_347 = arith.constant 1 : index
    %c1_348 = arith.constant 1 : index
    %c0_349 = arith.constant 0 : index
    %342 = vector.load %arg11[%c2_346, %c1_347, %c1_348, %c0_349] : memref<4x10x10x16xf32, #tpu.memory_space<vmem>>, vector<1x8x8x16xf32>
    %343 = vector.shape_cast %342 : vector<1x8x8x16xf32> to vector<8x8x16xf32>
    %344 = vector.shape_cast %343 : vector<8x8x16xf32> to vector<64x16xf32>
    %345 = arith.truncf %344 : vector<64x16xf32> to vector<64x16xbf16>
    %c0_350 = arith.constant 0 : index
    %c48_351 = arith.constant 48 : index
    %346 = vector.load %arg13[%c0_350, %c48_351] : memref<64x144xbf16, #tpu.memory_space<vmem>>, vector<64x16xbf16>
    tpu.vector_store %arg13[%c0_350, %c48_351], %345 {strides = array<i32>} : memref<64x144xbf16, #tpu.memory_space<vmem>>, vector<64x16xbf16>,
    %c3_352 = arith.constant 3 : index
    %c1_353 = arith.constant 1 : index
    %c1_354 = arith.constant 1 : index
    %c0_355 = arith.constant 0 : index
    %347 = vector.load %arg11[%c3_352, %c1_353, %c1_354, %c0_355] : memref<4x10x10x16xf32, #tpu.memory_space<vmem>>, vector<1x8x8x16xf32>
    %348 = vector.shape_cast %347 : vector<1x8x8x16xf32> to vector<8x8x16xf32>
    %349 = vector.shape_cast %348 : vector<8x8x16xf32> to vector<64x16xf32>
    %350 = arith.truncf %349 : vector<64x16xf32> to vector<64x16xbf16>
    %c0_356 = arith.constant 0 : index
    %c64_357 = arith.constant 64 : index
    %351 = vector.load %arg13[%c0_356, %c64_357] : memref<64x144xbf16, #tpu.memory_space<vmem>>, vector<64x16xbf16>
    tpu.vector_store %arg13[%c0_356, %c64_357], %350 {strides = array<i32>} : memref<64x144xbf16, #tpu.memory_space<vmem>>, vector<64x16xbf16>,
    %c2_358 = arith.constant 2 : index
    %c1_359 = arith.constant 1 : index
    %c2_360 = arith.constant 2 : index
    %c0_361 = arith.constant 0 : index
    %352 = vector.load %arg11[%c2_358, %c1_359, %c2_360, %c0_361] : memref<4x10x10x16xf32, #tpu.memory_space<vmem>>, vector<1x8x8x16xf32>
    %353 = vector.shape_cast %352 : vector<1x8x8x16xf32> to vector<8x8x16xf32>
    %354 = vector.shape_cast %353 : vector<8x8x16xf32> to vector<64x16xf32>
    %355 = arith.truncf %354 : vector<64x16xf32> to vector<64x16xbf16>
    %c0_362 = arith.constant 0 : index
    %c80_363 = arith.constant 80 : index
    %356 = vector.load %arg13[%c0_362, %c80_363] : memref<64x144xbf16, #tpu.memory_space<vmem>>, vector<64x16xbf16>
    tpu.vector_store %arg13[%c0_362, %c80_363], %355 {strides = array<i32>} : memref<64x144xbf16, #tpu.memory_space<vmem>>, vector<64x16xbf16>,
    %c0_364 = arith.constant 0 : index
    %c2_365 = arith.constant 2 : index
    %c1_366 = arith.constant 1 : index
    %c0_367 = arith.constant 0 : index
    %357 = vector.load %arg11[%c0_364, %c2_365, %c1_366, %c0_367] : memref<4x10x10x16xf32, #tpu.memory_space<vmem>>, vector<1x8x8x16xf32>
    %358 = vector.shape_cast %357 : vector<1x8x8x16xf32> to vector<8x8x16xf32>
    %359 = vector.shape_cast %358 : vector<8x8x16xf32> to vector<64x16xf32>
    %360 = arith.truncf %359 : vector<64x16xf32> to vector<64x16xbf16>
    %c0_368 = arith.constant 0 : index
    %c96_369 = arith.constant 96 : index
    %361 = vector.load %arg13[%c0_368, %c96_369] : memref<64x144xbf16, #tpu.memory_space<vmem>>, vector<64x16xbf16>
    tpu.vector_store %arg13[%c0_368, %c96_369], %360 {strides = array<i32>} : memref<64x144xbf16, #tpu.memory_space<vmem>>, vector<64x16xbf16>,
    %c1_370 = arith.constant 1 : index
    %c2_371 = arith.constant 2 : index
    %c1_372 = arith.constant 1 : index
    %c0_373 = arith.constant 0 : index
    %362 = vector.load %arg11[%c1_370, %c2_371, %c1_372, %c0_373] : memref<4x10x10x16xf32, #tpu.memory_space<vmem>>, vector<1x8x8x16xf32>
    %363 = vector.shape_cast %362 : vector<1x8x8x16xf32> to vector<8x8x16xf32>
    %364 = vector.shape_cast %363 : vector<8x8x16xf32> to vector<64x16xf32>
    %365 = arith.truncf %364 : vector<64x16xf32> to vector<64x16xbf16>
    %c0_374 = arith.constant 0 : index
    %c112_375 = arith.constant 112 : index
    %366 = vector.load %arg13[%c0_374, %c112_375] : memref<64x144xbf16, #tpu.memory_space<vmem>>, vector<64x16xbf16>
    tpu.vector_store %arg13[%c0_374, %c112_375], %365 {strides = array<i32>} : memref<64x144xbf16, #tpu.memory_space<vmem>>, vector<64x16xbf16>,
    %c0_376 = arith.constant 0 : index
    %c2_377 = arith.constant 2 : index
    %c2_378 = arith.constant 2 : index
    %c0_379 = arith.constant 0 : index
    %367 = vector.load %arg11[%c0_376, %c2_377, %c2_378, %c0_379] : memref<4x10x10x16xf32, #tpu.memory_space<vmem>>, vector<1x8x8x16xf32>
    %368 = vector.shape_cast %367 : vector<1x8x8x16xf32> to vector<8x8x16xf32>
    %369 = vector.shape_cast %368 : vector<8x8x16xf32> to vector<64x16xf32>
    %370 = arith.truncf %369 : vector<64x16xf32> to vector<64x16xbf16>
    %c0_380 = arith.constant 0 : index
    %c128_381 = arith.constant 128 : index
    %371 = vector.load %arg13[%c0_380, %c128_381] : memref<64x144xbf16, #tpu.memory_space<vmem>>, vector<64x16xbf16>
    tpu.vector_store %arg13[%c0_380, %c128_381], %370 {strides = array<i32>} : memref<64x144xbf16, #tpu.memory_space<vmem>>, vector<64x16xbf16>,
    %c0_382 = arith.constant 0 : index
    %c0_383 = arith.constant 0 : index
    %372 = vector.load %arg13[%c0_382, %c0_383] : memref<64x144xbf16, #tpu.memory_space<vmem>>, vector<64x144xbf16>
    %c0_384 = arith.constant 0 : index
    %c0_385 = arith.constant 0 : index
    %c0_386 = arith.constant 0 : index
    %373 = vector.load %arg4[%c0_384, %c0_385, %c0_386] : memref<2x144x16xbf16, #tpu.memory_space<vmem>>, vector<1x144x16xbf16>
    %374 = vector.shape_cast %373 : vector<1x144x16xbf16> to vector<144x16xbf16>
    %cst_387 = arith.constant dense<0.000000e+00> : vector<64x16xf32>
    %375 = tpu.matmul %372, %374, %cst_387 {dimension_numbers = #tpu.dot_dimension_numbers<[1], [0], [0], [1], [0, 0, 1, 1], [], []>} : vector<64x144xbf16>, vector<144x16xbf16>, vector<64x16xf32> -> vector<64x16xf32>
    %c0_388 = arith.constant 0 : index
    %c0_389 = arith.constant 0 : index
    %376 = vector.load %arg5[%c0_388, %c0_389] : memref<1x16xf32, #tpu.memory_space<vmem>>, vector<1x16xf32>
    %377 = vector.broadcast %376 : vector<1x16xf32> to vector<64x16xf32>
    %378 = arith.addf %375, %377 : vector<64x16xf32>
    %cst_390 = arith.constant 0.000000e+00 : f32
    %379 = vector.broadcast %cst_390 : f32 to vector<64x16xf32>
    %380 = arith.cmpf oge, %378, %379 : vector<64x16xf32>
    %cst_391 = arith.constant 2.000000e-01 : f32
    %381 = vector.broadcast %cst_391 : f32 to vector<64x16xf32>
    %382 = arith.mulf %381, %378 : vector<64x16xf32>
    %383 = arith.select %380, %378, %382 : vector<64x16xi1>, vector<64x16xf32>
    %cst_392 = arith.constant 1.41421354 : f32
    %384 = vector.broadcast %cst_392 : f32 to vector<64x16xf32>
    %385 = arith.mulf %383, %384 : vector<64x16xf32>
    %cst_393 = arith.constant -2.560000e+02 : f32
    %cst_394 = arith.constant 2.560000e+02 : f32
    %386 = vector.broadcast %cst_393 : f32 to vector<64x16xf32>
    %387 = arith.maximumf %386, %385 : vector<64x16xf32>
    %388 = vector.broadcast %cst_394 : f32 to vector<64x16xf32>
    %389 = arith.minimumf %388, %387 : vector<64x16xf32>
    %390 = vector.shape_cast %389 : vector<64x16xf32> to vector<8x8x16xf32>
    %c0_395 = arith.constant 0 : index
    %c3_396 = arith.constant 3 : index
    %c0_397 = arith.constant 0 : index
    %c0_398 = arith.constant 0 : index
    %c0_399 = arith.constant 0 : index
    %391 = vector.load %arg8[%c0_395, %c3_396, %c0_397, %c0_398, %c0_399] : memref<2x4x8x8x16xf32, #tpu.memory_space<vmem>>, vector<1x1x8x8x16xf32>
    %392 = vector.shape_cast %391 : vector<1x1x8x8x16xf32> to vector<8x8x16xf32>
    %393 = vector.shape_cast %390 : vector<8x8x16xf32> to vector<1x1x8x8x16xf32>
    tpu.vector_store %arg8[%c0_395, %c3_396, %c0_397, %c0_398, %c0_399], %393 {strides = array<i32>} : memref<2x4x8x8x16xf32, #tpu.memory_space<vmem>>, vector<1x1x8x8x16xf32>,
    %394 = arith.truncf %389 : vector<64x16xf32> to vector<64x16xbf16>
    %c0_400 = arith.constant 0 : index
    %c0_401 = arith.constant 0 : index
    %c0_402 = arith.constant 0 : index
    %395 = vector.load %arg6[%c0_400, %c0_401, %c0_402] : memref<2x16x3xbf16, #tpu.memory_space<vmem>>, vector<1x16x3xbf16>
    %396 = vector.shape_cast %395 : vector<1x16x3xbf16> to vector<16x3xbf16>
    %cst_403 = arith.constant dense<0.000000e+00> : vector<64x3xf32>
    %397 = tpu.matmul %394, %396, %cst_403 {dimension_numbers = #tpu.dot_dimension_numbers<[1], [0], [0], [1], [0, 0, 1, 1], [], []>} : vector<64x16xbf16>, vector<16x3xbf16>, vector<64x3xf32> -> vector<64x3xf32>
    %c0_404 = arith.constant 0 : index
    %c0_405 = arith.constant 0 : index
    %398 = vector.load %arg7[%c0_404, %c0_405] : memref<1x3xf32, #tpu.memory_space<vmem>>, vector<1x3xf32>
    %399 = vector.broadcast %398 : vector<1x3xf32> to vector<64x3xf32>
    %400 = arith.addf %397, %399 : vector<64x3xf32>
    %cst_406 = arith.constant -2.560000e+02 : f32
    %cst_407 = arith.constant 2.560000e+02 : f32
    %401 = vector.broadcast %cst_406 : f32 to vector<64x3xf32>
    %402 = arith.maximumf %401, %400 : vector<64x3xf32>
    %403 = vector.broadcast %cst_407 : f32 to vector<64x3xf32>
    %404 = arith.minimumf %403, %402 : vector<64x3xf32>
    %405 = vector.shape_cast %404 : vector<64x3xf32> to vector<8x8x3xf32>
    %c0_408 = arith.constant 0 : index
    %c3_409 = arith.constant 3 : index
    %c0_410 = arith.constant 0 : index
    %c0_411 = arith.constant 0 : index
    %c0_412 = arith.constant 0 : index
    %406 = vector.load %arg9[%c0_408, %c3_409, %c0_410, %c0_411, %c0_412] : memref<2x4x8x8x3xf32, #tpu.memory_space<vmem>>, vector<1x1x8x8x3xf32>
    %407 = vector.shape_cast %406 : vector<1x1x8x8x3xf32> to vector<8x8x3xf32>
    %408 = vector.shape_cast %405 : vector<8x8x3xf32> to vector<1x1x8x8x3xf32>
    tpu.vector_store %arg9[%c0_408, %c3_409, %c0_410, %c0_411, %c0_412], %408 {strides = array<i32>} : memref<2x4x8x8x3xf32, #tpu.memory_space<vmem>>, vector<1x1x8x8x3xf32>,
    %c1_413 = arith.constant 1 : index
    %c0_414 = arith.constant 0 : index
    %c0_415 = arith.constant 0 : index
    %c0_416 = arith.constant 0 : index
    %409 = vector.load %arg1[%c1_413, %c0_414, %c0_415, %c0_416] : memref<2x8x8x8xf32, #tpu.memory_space<vmem>>, vector<1x8x8x8xf32>
    %410 = vector.shape_cast %409 : vector<1x8x8x8xf32> to vector<8x8x8xf32>
    %c1_417 = arith.constant 1 : index
    %c1_418 = arith.constant 1 : index
    %c0_419 = arith.constant 0 : index
    %411 = vector.load %arg10[%c1_417, %c1_418, %c0_419] : memref<10x10x8xf32, #tpu.memory_space<vmem>>, vector<8x8x8xf32>
    tpu.vector_store %arg10[%c1_417, %c1_418, %c0_419], %410 {strides = array<i32>} : memref<10x10x8xf32, #tpu.memory_space<vmem>>, vector<8x8x8xf32>,
    %c0_420 = arith.constant 0 : index
    %c0_421 = arith.constant 0 : index
    %c0_422 = arith.constant 0 : index
    %412 = vector.load %arg10[%c0_420, %c0_421, %c0_422] : memref<10x10x8xf32, #tpu.memory_space<vmem>>, vector<8x8x8xf32>
    %413 = vector.shape_cast %412 : vector<8x8x8xf32> to vector<64x8xf32>
    %414 = arith.truncf %413 : vector<64x8xf32> to vector<64x8xbf16>
    %c0_423 = arith.constant 0 : index
    %c0_424 = arith.constant 0 : index
    %415 = vector.load %arg12[%c0_423, %c0_424] : memref<64x72xbf16, #tpu.memory_space<vmem>>, vector<64x8xbf16>
    tpu.vector_store %arg12[%c0_423, %c0_424], %414 {strides = array<i32>} : memref<64x72xbf16, #tpu.memory_space<vmem>>, vector<64x8xbf16>,
    %c0_425 = arith.constant 0 : index
    %c1_426 = arith.constant 1 : index
    %c0_427 = arith.constant 0 : index
    %416 = vector.load %arg10[%c0_425, %c1_426, %c0_427] : memref<10x10x8xf32, #tpu.memory_space<vmem>>, vector<8x8x8xf32>
    %417 = vector.shape_cast %416 : vector<8x8x8xf32> to vector<64x8xf32>
    %418 = arith.truncf %417 : vector<64x8xf32> to vector<64x8xbf16>
    %c0_428 = arith.constant 0 : index
    %c8_429 = arith.constant 8 : index
    %419 = vector.load %arg12[%c0_428, %c8_429] : memref<64x72xbf16, #tpu.memory_space<vmem>>, vector<64x8xbf16>
    tpu.vector_store %arg12[%c0_428, %c8_429], %418 {strides = array<i32>} : memref<64x72xbf16, #tpu.memory_space<vmem>>, vector<64x8xbf16>,
    %c0_430 = arith.constant 0 : index
    %c2_431 = arith.constant 2 : index
    %c0_432 = arith.constant 0 : index
    %420 = vector.load %arg10[%c0_430, %c2_431, %c0_432] : memref<10x10x8xf32, #tpu.memory_space<vmem>>, vector<8x8x8xf32>
    %421 = vector.shape_cast %420 : vector<8x8x8xf32> to vector<64x8xf32>
    %422 = arith.truncf %421 : vector<64x8xf32> to vector<64x8xbf16>
    %c0_433 = arith.constant 0 : index
    %c16_434 = arith.constant 16 : index
    %423 = vector.load %arg12[%c0_433, %c16_434] : memref<64x72xbf16, #tpu.memory_space<vmem>>, vector<64x8xbf16>
    tpu.vector_store %arg12[%c0_433, %c16_434], %422 {strides = array<i32>} : memref<64x72xbf16, #tpu.memory_space<vmem>>, vector<64x8xbf16>,
    %c1_435 = arith.constant 1 : index
    %c0_436 = arith.constant 0 : index
    %c0_437 = arith.constant 0 : index
    %424 = vector.load %arg10[%c1_435, %c0_436, %c0_437] : memref<10x10x8xf32, #tpu.memory_space<vmem>>, vector<8x8x8xf32>
    %425 = vector.shape_cast %424 : vector<8x8x8xf32> to vector<64x8xf32>
    %426 = arith.truncf %425 : vector<64x8xf32> to vector<64x8xbf16>
    %c0_438 = arith.constant 0 : index
    %c24_439 = arith.constant 24 : index
    %427 = vector.load %arg12[%c0_438, %c24_439] : memref<64x72xbf16, #tpu.memory_space<vmem>>, vector<64x8xbf16>
    tpu.vector_store %arg12[%c0_438, %c24_439], %426 {strides = array<i32>} : memref<64x72xbf16, #tpu.memory_space<vmem>>, vector<64x8xbf16>,
    %c1_440 = arith.constant 1 : index
    %c1_441 = arith.constant 1 : index
    %c0_442 = arith.constant 0 : index
    %428 = vector.load %arg10[%c1_440, %c1_441, %c0_442] : memref<10x10x8xf32, #tpu.memory_space<vmem>>, vector<8x8x8xf32>
    %429 = vector.shape_cast %428 : vector<8x8x8xf32> to vector<64x8xf32>
    %430 = arith.truncf %429 : vector<64x8xf32> to vector<64x8xbf16>
    %c0_443 = arith.constant 0 : index
    %c32_444 = arith.constant 32 : index
    %431 = vector.load %arg12[%c0_443, %c32_444] : memref<64x72xbf16, #tpu.memory_space<vmem>>, vector<64x8xbf16>
    tpu.vector_store %arg12[%c0_443, %c32_444], %430 {strides = array<i32>} : memref<64x72xbf16, #tpu.memory_space<vmem>>, vector<64x8xbf16>,
    %c1_445 = arith.constant 1 : index
    %c2_446 = arith.constant 2 : index
    %c0_447 = arith.constant 0 : index
    %432 = vector.load %arg10[%c1_445, %c2_446, %c0_447] : memref<10x10x8xf32, #tpu.memory_space<vmem>>, vector<8x8x8xf32>
    %433 = vector.shape_cast %432 : vector<8x8x8xf32> to vector<64x8xf32>
    %434 = arith.truncf %433 : vector<64x8xf32> to vector<64x8xbf16>
    %c0_448 = arith.constant 0 : index
    %c40_449 = arith.constant 40 : index
    %435 = vector.load %arg12[%c0_448, %c40_449] : memref<64x72xbf16, #tpu.memory_space<vmem>>, vector<64x8xbf16>
    tpu.vector_store %arg12[%c0_448, %c40_449], %434 {strides = array<i32>} : memref<64x72xbf16, #tpu.memory_space<vmem>>, vector<64x8xbf16>,
    %c2_450 = arith.constant 2 : index
    %c0_451 = arith.constant 0 : index
    %c0_452 = arith.constant 0 : index
    %436 = vector.load %arg10[%c2_450, %c0_451, %c0_452] : memref<10x10x8xf32, #tpu.memory_space<vmem>>, vector<8x8x8xf32>
    %437 = vector.shape_cast %436 : vector<8x8x8xf32> to vector<64x8xf32>
    %438 = arith.truncf %437 : vector<64x8xf32> to vector<64x8xbf16>
    %c0_453 = arith.constant 0 : index
    %c48_454 = arith.constant 48 : index
    %439 = vector.load %arg12[%c0_453, %c48_454] : memref<64x72xbf16, #tpu.memory_space<vmem>>, vector<64x8xbf16>
    tpu.vector_store %arg12[%c0_453, %c48_454], %438 {strides = array<i32>} : memref<64x72xbf16, #tpu.memory_space<vmem>>, vector<64x8xbf16>,
    %c2_455 = arith.constant 2 : index
    %c1_456 = arith.constant 1 : index
    %c0_457 = arith.constant 0 : index
    %440 = vector.load %arg10[%c2_455, %c1_456, %c0_457] : memref<10x10x8xf32, #tpu.memory_space<vmem>>, vector<8x8x8xf32>
    %441 = vector.shape_cast %440 : vector<8x8x8xf32> to vector<64x8xf32>
    %442 = arith.truncf %441 : vector<64x8xf32> to vector<64x8xbf16>
    %c0_458 = arith.constant 0 : index
    %c56_459 = arith.constant 56 : index
    %443 = vector.load %arg12[%c0_458, %c56_459] : memref<64x72xbf16, #tpu.memory_space<vmem>>, vector<64x8xbf16>
    tpu.vector_store %arg12[%c0_458, %c56_459], %442 {strides = array<i32>} : memref<64x72xbf16, #tpu.memory_space<vmem>>, vector<64x8xbf16>,
    %c2_460 = arith.constant 2 : index
    %c2_461 = arith.constant 2 : index
    %c0_462 = arith.constant 0 : index
    %444 = vector.load %arg10[%c2_460, %c2_461, %c0_462] : memref<10x10x8xf32, #tpu.memory_space<vmem>>, vector<8x8x8xf32>
    %445 = vector.shape_cast %444 : vector<8x8x8xf32> to vector<64x8xf32>
    %446 = arith.truncf %445 : vector<64x8xf32> to vector<64x8xbf16>
    %c0_463 = arith.constant 0 : index
    %c64_464 = arith.constant 64 : index
    %447 = vector.load %arg12[%c0_463, %c64_464] : memref<64x72xbf16, #tpu.memory_space<vmem>>, vector<64x8xbf16>
    tpu.vector_store %arg12[%c0_463, %c64_464], %446 {strides = array<i32>} : memref<64x72xbf16, #tpu.memory_space<vmem>>, vector<64x8xbf16>,
    %c0_465 = arith.constant 0 : index
    %c0_466 = arith.constant 0 : index
    %448 = vector.load %arg12[%c0_465, %c0_466] : memref<64x72xbf16, #tpu.memory_space<vmem>>, vector<64x72xbf16>
    %c1_467 = arith.constant 1 : index
    %c0_468 = arith.constant 0 : index
    %c0_469 = arith.constant 0 : index
    %449 = vector.load %arg2[%c1_467, %c0_468, %c0_469] : memref<2x72x64xbf16, #tpu.memory_space<vmem>>, vector<1x72x64xbf16>
    %450 = vector.shape_cast %449 : vector<1x72x64xbf16> to vector<72x64xbf16>
    %cst_470 = arith.constant dense<0.000000e+00> : vector<64x64xf32>
    %451 = tpu.matmul %448, %450, %cst_470 {dimension_numbers = #tpu.dot_dimension_numbers<[1], [0], [0], [1], [0, 0, 1, 1], [], []>} : vector<64x72xbf16>, vector<72x64xbf16>, vector<64x64xf32> -> vector<64x64xf32>
    %c0_471 = arith.constant 0 : index
    %c0_472 = arith.constant 0 : index
    %452 = vector.load %arg3[%c0_471, %c0_472] : memref<1x64xf32, #tpu.memory_space<vmem>>, vector<1x64xf32>
    %453 = vector.broadcast %452 : vector<1x64xf32> to vector<64x64xf32>
    %454 = arith.addf %451, %453 : vector<64x64xf32>
    %cst_473 = arith.constant 0.000000e+00 : f32
    %455 = vector.broadcast %cst_473 : f32 to vector<64x64xf32>
    %456 = arith.cmpf oge, %454, %455 : vector<64x64xf32>
    %cst_474 = arith.constant 2.000000e-01 : f32
    %457 = vector.broadcast %cst_474 : f32 to vector<64x64xf32>
    %458 = arith.mulf %457, %454 : vector<64x64xf32>
    %459 = arith.select %456, %454, %458 : vector<64x64xi1>, vector<64x64xf32>
    %cst_475 = arith.constant 1.41421354 : f32
    %460 = vector.broadcast %cst_475 : f32 to vector<64x64xf32>
    %461 = arith.mulf %459, %460 : vector<64x64xf32>
    %cst_476 = arith.constant -2.560000e+02 : f32
    %cst_477 = arith.constant 2.560000e+02 : f32
    %462 = vector.broadcast %cst_476 : f32 to vector<64x64xf32>
    %463 = arith.maximumf %462, %461 : vector<64x64xf32>
    %464 = vector.broadcast %cst_477 : f32 to vector<64x64xf32>
    %465 = arith.minimumf %464, %463 : vector<64x64xf32>
    %466 = vector.extract_strided_slice %465 {offsets = [0, 0], sizes = [64, 16], strides = [1, 1]} : vector<64x64xf32> to vector<64x16xf32>
    %467 = vector.shape_cast %466 : vector<64x16xf32> to vector<8x8x16xf32>
    %c0_478 = arith.constant 0 : index
    %c1_479 = arith.constant 1 : index
    %c1_480 = arith.constant 1 : index
    %c0_481 = arith.constant 0 : index
    %468 = vector.load %arg11[%c0_478, %c1_479, %c1_480, %c0_481] : memref<4x10x10x16xf32, #tpu.memory_space<vmem>>, vector<1x8x8x16xf32>
    %469 = vector.shape_cast %468 : vector<1x8x8x16xf32> to vector<8x8x16xf32>
    %470 = vector.shape_cast %467 : vector<8x8x16xf32> to vector<1x8x8x16xf32>
    tpu.vector_store %arg11[%c0_478, %c1_479, %c1_480, %c0_481], %470 {strides = array<i32>} : memref<4x10x10x16xf32, #tpu.memory_space<vmem>>, vector<1x8x8x16xf32>,
    %471 = vector.extract_strided_slice %465 {offsets = [0, 16], sizes = [64, 16], strides = [1, 1]} : vector<64x64xf32> to vector<64x16xf32>
    %472 = vector.shape_cast %471 : vector<64x16xf32> to vector<8x8x16xf32>
    %c1_482 = arith.constant 1 : index
    %c1_483 = arith.constant 1 : index
    %c1_484 = arith.constant 1 : index
    %c0_485 = arith.constant 0 : index
    %473 = vector.load %arg11[%c1_482, %c1_483, %c1_484, %c0_485] : memref<4x10x10x16xf32, #tpu.memory_space<vmem>>, vector<1x8x8x16xf32>
    %474 = vector.shape_cast %473 : vector<1x8x8x16xf32> to vector<8x8x16xf32>
    %475 = vector.shape_cast %472 : vector<8x8x16xf32> to vector<1x8x8x16xf32>
    tpu.vector_store %arg11[%c1_482, %c1_483, %c1_484, %c0_485], %475 {strides = array<i32>} : memref<4x10x10x16xf32, #tpu.memory_space<vmem>>, vector<1x8x8x16xf32>,
    %476 = vector.extract_strided_slice %465 {offsets = [0, 32], sizes = [64, 16], strides = [1, 1]} : vector<64x64xf32> to vector<64x16xf32>
    %477 = vector.shape_cast %476 : vector<64x16xf32> to vector<8x8x16xf32>
    %c2_486 = arith.constant 2 : index
    %c1_487 = arith.constant 1 : index
    %c1_488 = arith.constant 1 : index
    %c0_489 = arith.constant 0 : index
    %478 = vector.load %arg11[%c2_486, %c1_487, %c1_488, %c0_489] : memref<4x10x10x16xf32, #tpu.memory_space<vmem>>, vector<1x8x8x16xf32>
    %479 = vector.shape_cast %478 : vector<1x8x8x16xf32> to vector<8x8x16xf32>
    %480 = vector.shape_cast %477 : vector<8x8x16xf32> to vector<1x8x8x16xf32>
    tpu.vector_store %arg11[%c2_486, %c1_487, %c1_488, %c0_489], %480 {strides = array<i32>} : memref<4x10x10x16xf32, #tpu.memory_space<vmem>>, vector<1x8x8x16xf32>,
    %481 = vector.extract_strided_slice %465 {offsets = [0, 48], sizes = [64, 16], strides = [1, 1]} : vector<64x64xf32> to vector<64x16xf32>
    %482 = vector.shape_cast %481 : vector<64x16xf32> to vector<8x8x16xf32>
    %c3_490 = arith.constant 3 : index
    %c1_491 = arith.constant 1 : index
    %c1_492 = arith.constant 1 : index
    %c0_493 = arith.constant 0 : index
    %483 = vector.load %arg11[%c3_490, %c1_491, %c1_492, %c0_493] : memref<4x10x10x16xf32, #tpu.memory_space<vmem>>, vector<1x8x8x16xf32>
    %484 = vector.shape_cast %483 : vector<1x8x8x16xf32> to vector<8x8x16xf32>
    %485 = vector.shape_cast %482 : vector<8x8x16xf32> to vector<1x8x8x16xf32>
    tpu.vector_store %arg11[%c3_490, %c1_491, %c1_492, %c0_493], %485 {strides = array<i32>} : memref<4x10x10x16xf32, #tpu.memory_space<vmem>>, vector<1x8x8x16xf32>,
    %c3_494 = arith.constant 3 : index
    %c0_495 = arith.constant 0 : index
    %c0_496 = arith.constant 0 : index
    %c0_497 = arith.constant 0 : index
    %486 = vector.load %arg11[%c3_494, %c0_495, %c0_496, %c0_497] : memref<4x10x10x16xf32, #tpu.memory_space<vmem>>, vector<1x8x8x16xf32>
    %487 = vector.shape_cast %486 : vector<1x8x8x16xf32> to vector<8x8x16xf32>
    %488 = vector.shape_cast %487 : vector<8x8x16xf32> to vector<64x16xf32>
    %489 = arith.truncf %488 : vector<64x16xf32> to vector<64x16xbf16>
    %c0_498 = arith.constant 0 : index
    %c0_499 = arith.constant 0 : index
    %490 = vector.load %arg13[%c0_498, %c0_499] : memref<64x144xbf16, #tpu.memory_space<vmem>>, vector<64x16xbf16>
    tpu.vector_store %arg13[%c0_498, %c0_499], %489 {strides = array<i32>} : memref<64x144xbf16, #tpu.memory_space<vmem>>, vector<64x16xbf16>,
    %c2_500 = arith.constant 2 : index
    %c0_501 = arith.constant 0 : index
    %c1_502 = arith.constant 1 : index
    %c0_503 = arith.constant 0 : index
    %491 = vector.load %arg11[%c2_500, %c0_501, %c1_502, %c0_503] : memref<4x10x10x16xf32, #tpu.memory_space<vmem>>, vector<1x8x8x16xf32>
    %492 = vector.shape_cast %491 : vector<1x8x8x16xf32> to vector<8x8x16xf32>
    %493 = vector.shape_cast %492 : vector<8x8x16xf32> to vector<64x16xf32>
    %494 = arith.truncf %493 : vector<64x16xf32> to vector<64x16xbf16>
    %c0_504 = arith.constant 0 : index
    %c16_505 = arith.constant 16 : index
    %495 = vector.load %arg13[%c0_504, %c16_505] : memref<64x144xbf16, #tpu.memory_space<vmem>>, vector<64x16xbf16>
    tpu.vector_store %arg13[%c0_504, %c16_505], %494 {strides = array<i32>} : memref<64x144xbf16, #tpu.memory_space<vmem>>, vector<64x16xbf16>,
    %c3_506 = arith.constant 3 : index
    %c0_507 = arith.constant 0 : index
    %c1_508 = arith.constant 1 : index
    %c0_509 = arith.constant 0 : index
    %496 = vector.load %arg11[%c3_506, %c0_507, %c1_508, %c0_509] : memref<4x10x10x16xf32, #tpu.memory_space<vmem>>, vector<1x8x8x16xf32>
    %497 = vector.shape_cast %496 : vector<1x8x8x16xf32> to vector<8x8x16xf32>
    %498 = vector.shape_cast %497 : vector<8x8x16xf32> to vector<64x16xf32>
    %499 = arith.truncf %498 : vector<64x16xf32> to vector<64x16xbf16>
    %c0_510 = arith.constant 0 : index
    %c32_511 = arith.constant 32 : index
    %500 = vector.load %arg13[%c0_510, %c32_511] : memref<64x144xbf16, #tpu.memory_space<vmem>>, vector<64x16xbf16>
    tpu.vector_store %arg13[%c0_510, %c32_511], %499 {strides = array<i32>} : memref<64x144xbf16, #tpu.memory_space<vmem>>, vector<64x16xbf16>,
    %c1_512 = arith.constant 1 : index
    %c1_513 = arith.constant 1 : index
    %c0_514 = arith.constant 0 : index
    %c0_515 = arith.constant 0 : index
    %501 = vector.load %arg11[%c1_512, %c1_513, %c0_514, %c0_515] : memref<4x10x10x16xf32, #tpu.memory_space<vmem>>, vector<1x8x8x16xf32>
    %502 = vector.shape_cast %501 : vector<1x8x8x16xf32> to vector<8x8x16xf32>
    %503 = vector.shape_cast %502 : vector<8x8x16xf32> to vector<64x16xf32>
    %504 = arith.truncf %503 : vector<64x16xf32> to vector<64x16xbf16>
    %c0_516 = arith.constant 0 : index
    %c48_517 = arith.constant 48 : index
    %505 = vector.load %arg13[%c0_516, %c48_517] : memref<64x144xbf16, #tpu.memory_space<vmem>>, vector<64x16xbf16>
    tpu.vector_store %arg13[%c0_516, %c48_517], %504 {strides = array<i32>} : memref<64x144xbf16, #tpu.memory_space<vmem>>, vector<64x16xbf16>,
    %c0_518 = arith.constant 0 : index
    %c1_519 = arith.constant 1 : index
    %c1_520 = arith.constant 1 : index
    %c0_521 = arith.constant 0 : index
    %506 = vector.load %arg11[%c0_518, %c1_519, %c1_520, %c0_521] : memref<4x10x10x16xf32, #tpu.memory_space<vmem>>, vector<1x8x8x16xf32>
    %507 = vector.shape_cast %506 : vector<1x8x8x16xf32> to vector<8x8x16xf32>
    %508 = vector.shape_cast %507 : vector<8x8x16xf32> to vector<64x16xf32>
    %509 = arith.truncf %508 : vector<64x16xf32> to vector<64x16xbf16>
    %c0_522 = arith.constant 0 : index
    %c64_523 = arith.constant 64 : index
    %510 = vector.load %arg13[%c0_522, %c64_523] : memref<64x144xbf16, #tpu.memory_space<vmem>>, vector<64x16xbf16>
    tpu.vector_store %arg13[%c0_522, %c64_523], %509 {strides = array<i32>} : memref<64x144xbf16, #tpu.memory_space<vmem>>, vector<64x16xbf16>,
    %c1_524 = arith.constant 1 : index
    %c1_525 = arith.constant 1 : index
    %c1_526 = arith.constant 1 : index
    %c0_527 = arith.constant 0 : index
    %511 = vector.load %arg11[%c1_524, %c1_525, %c1_526, %c0_527] : memref<4x10x10x16xf32, #tpu.memory_space<vmem>>, vector<1x8x8x16xf32>
    %512 = vector.shape_cast %511 : vector<1x8x8x16xf32> to vector<8x8x16xf32>
    %513 = vector.shape_cast %512 : vector<8x8x16xf32> to vector<64x16xf32>
    %514 = arith.truncf %513 : vector<64x16xf32> to vector<64x16xbf16>
    %c0_528 = arith.constant 0 : index
    %c80_529 = arith.constant 80 : index
    %515 = vector.load %arg13[%c0_528, %c80_529] : memref<64x144xbf16, #tpu.memory_space<vmem>>, vector<64x16xbf16>
    tpu.vector_store %arg13[%c0_528, %c80_529], %514 {strides = array<i32>} : memref<64x144xbf16, #tpu.memory_space<vmem>>, vector<64x16xbf16>,
    %c3_530 = arith.constant 3 : index
    %c1_531 = arith.constant 1 : index
    %c0_532 = arith.constant 0 : index
    %c0_533 = arith.constant 0 : index
    %516 = vector.load %arg11[%c3_530, %c1_531, %c0_532, %c0_533] : memref<4x10x10x16xf32, #tpu.memory_space<vmem>>, vector<1x8x8x16xf32>
    %517 = vector.shape_cast %516 : vector<1x8x8x16xf32> to vector<8x8x16xf32>
    %518 = vector.shape_cast %517 : vector<8x8x16xf32> to vector<64x16xf32>
    %519 = arith.truncf %518 : vector<64x16xf32> to vector<64x16xbf16>
    %c0_534 = arith.constant 0 : index
    %c96_535 = arith.constant 96 : index
    %520 = vector.load %arg13[%c0_534, %c96_535] : memref<64x144xbf16, #tpu.memory_space<vmem>>, vector<64x16xbf16>
    tpu.vector_store %arg13[%c0_534, %c96_535], %519 {strides = array<i32>} : memref<64x144xbf16, #tpu.memory_space<vmem>>, vector<64x16xbf16>,
    %c2_536 = arith.constant 2 : index
    %c1_537 = arith.constant 1 : index
    %c1_538 = arith.constant 1 : index
    %c0_539 = arith.constant 0 : index
    %521 = vector.load %arg11[%c2_536, %c1_537, %c1_538, %c0_539] : memref<4x10x10x16xf32, #tpu.memory_space<vmem>>, vector<1x8x8x16xf32>
    %522 = vector.shape_cast %521 : vector<1x8x8x16xf32> to vector<8x8x16xf32>
    %523 = vector.shape_cast %522 : vector<8x8x16xf32> to vector<64x16xf32>
    %524 = arith.truncf %523 : vector<64x16xf32> to vector<64x16xbf16>
    %c0_540 = arith.constant 0 : index
    %c112_541 = arith.constant 112 : index
    %525 = vector.load %arg13[%c0_540, %c112_541] : memref<64x144xbf16, #tpu.memory_space<vmem>>, vector<64x16xbf16>
    tpu.vector_store %arg13[%c0_540, %c112_541], %524 {strides = array<i32>} : memref<64x144xbf16, #tpu.memory_space<vmem>>, vector<64x16xbf16>,
    %c3_542 = arith.constant 3 : index
    %c1_543 = arith.constant 1 : index
    %c1_544 = arith.constant 1 : index
    %c0_545 = arith.constant 0 : index
    %526 = vector.load %arg11[%c3_542, %c1_543, %c1_544, %c0_545] : memref<4x10x10x16xf32, #tpu.memory_space<vmem>>, vector<1x8x8x16xf32>
    %527 = vector.shape_cast %526 : vector<1x8x8x16xf32> to vector<8x8x16xf32>
    %528 = vector.shape_cast %527 : vector<8x8x16xf32> to vector<64x16xf32>
    %529 = arith.truncf %528 : vector<64x16xf32> to vector<64x16xbf16>
    %c0_546 = arith.constant 0 : index
    %c128_547 = arith.constant 128 : index
    %530 = vector.load %arg13[%c0_546, %c128_547] : memref<64x144xbf16, #tpu.memory_space<vmem>>, vector<64x16xbf16>
    tpu.vector_store %arg13[%c0_546, %c128_547], %529 {strides = array<i32>} : memref<64x144xbf16, #tpu.memory_space<vmem>>, vector<64x16xbf16>,
    %c0_548 = arith.constant 0 : index
    %c0_549 = arith.constant 0 : index
    %531 = vector.load %arg13[%c0_548, %c0_549] : memref<64x144xbf16, #tpu.memory_space<vmem>>, vector<64x144xbf16>
    %c1_550 = arith.constant 1 : index
    %c0_551 = arith.constant 0 : index
    %c0_552 = arith.constant 0 : index
    %532 = vector.load %arg4[%c1_550, %c0_551, %c0_552] : memref<2x144x16xbf16, #tpu.memory_space<vmem>>, vector<1x144x16xbf16>
    %533 = vector.shape_cast %532 : vector<1x144x16xbf16> to vector<144x16xbf16>
    %cst_553 = arith.constant dense<0.000000e+00> : vector<64x16xf32>
    %534 = tpu.matmul %531, %533, %cst_553 {dimension_numbers = #tpu.dot_dimension_numbers<[1], [0], [0], [1], [0, 0, 1, 1], [], []>} : vector<64x144xbf16>, vector<144x16xbf16>, vector<64x16xf32> -> vector<64x16xf32>
    %c0_554 = arith.constant 0 : index
    %c0_555 = arith.constant 0 : index
    %535 = vector.load %arg5[%c0_554, %c0_555] : memref<1x16xf32, #tpu.memory_space<vmem>>, vector<1x16xf32>
    %536 = vector.broadcast %535 : vector<1x16xf32> to vector<64x16xf32>
    %537 = arith.addf %534, %536 : vector<64x16xf32>
    %cst_556 = arith.constant 0.000000e+00 : f32
    %538 = vector.broadcast %cst_556 : f32 to vector<64x16xf32>
    %539 = arith.cmpf oge, %537, %538 : vector<64x16xf32>
    %cst_557 = arith.constant 2.000000e-01 : f32
    %540 = vector.broadcast %cst_557 : f32 to vector<64x16xf32>
    %541 = arith.mulf %540, %537 : vector<64x16xf32>
    %542 = arith.select %539, %537, %541 : vector<64x16xi1>, vector<64x16xf32>
    %cst_558 = arith.constant 1.41421354 : f32
    %543 = vector.broadcast %cst_558 : f32 to vector<64x16xf32>
    %544 = arith.mulf %542, %543 : vector<64x16xf32>
    %cst_559 = arith.constant -2.560000e+02 : f32
    %cst_560 = arith.constant 2.560000e+02 : f32
    %545 = vector.broadcast %cst_559 : f32 to vector<64x16xf32>
    %546 = arith.maximumf %545, %544 : vector<64x16xf32>
    %547 = vector.broadcast %cst_560 : f32 to vector<64x16xf32>
    %548 = arith.minimumf %547, %546 : vector<64x16xf32>
    %549 = vector.shape_cast %548 : vector<64x16xf32> to vector<8x8x16xf32>
    %c1_561 = arith.constant 1 : index
    %c0_562 = arith.constant 0 : index
    %c0_563 = arith.constant 0 : index
    %c0_564 = arith.constant 0 : index
    %c0_565 = arith.constant 0 : index
    %550 = vector.load %arg8[%c1_561, %c0_562, %c0_563, %c0_564, %c0_565] : memref<2x4x8x8x16xf32, #tpu.memory_space<vmem>>, vector<1x1x8x8x16xf32>
    %551 = vector.shape_cast %550 : vector<1x1x8x8x16xf32> to vector<8x8x16xf32>
    %552 = vector.shape_cast %549 : vector<8x8x16xf32> to vector<1x1x8x8x16xf32>
    tpu.vector_store %arg8[%c1_561, %c0_562, %c0_563, %c0_564, %c0_565], %552 {strides = array<i32>} : memref<2x4x8x8x16xf32, #tpu.memory_space<vmem>>, vector<1x1x8x8x16xf32>,
    %553 = arith.truncf %548 : vector<64x16xf32> to vector<64x16xbf16>
    %c1_566 = arith.constant 1 : index
    %c0_567 = arith.constant 0 : index
    %c0_568 = arith.constant 0 : index
    %554 = vector.load %arg6[%c1_566, %c0_567, %c0_568] : memref<2x16x3xbf16, #tpu.memory_space<vmem>>, vector<1x16x3xbf16>
    %555 = vector.shape_cast %554 : vector<1x16x3xbf16> to vector<16x3xbf16>
    %cst_569 = arith.constant dense<0.000000e+00> : vector<64x3xf32>
    %556 = tpu.matmul %553, %555, %cst_569 {dimension_numbers = #tpu.dot_dimension_numbers<[1], [0], [0], [1], [0, 0, 1, 1], [], []>} : vector<64x16xbf16>, vector<16x3xbf16>, vector<64x3xf32> -> vector<64x3xf32>
    %c0_570 = arith.constant 0 : index
    %c0_571 = arith.constant 0 : index
    %557 = vector.load %arg7[%c0_570, %c0_571] : memref<1x3xf32, #tpu.memory_space<vmem>>, vector<1x3xf32>
    %558 = vector.broadcast %557 : vector<1x3xf32> to vector<64x3xf32>
    %559 = arith.addf %556, %558 : vector<64x3xf32>
    %cst_572 = arith.constant -2.560000e+02 : f32
    %cst_573 = arith.constant 2.560000e+02 : f32
    %560 = vector.broadcast %cst_572 : f32 to vector<64x3xf32>
    %561 = arith.maximumf %560, %559 : vector<64x3xf32>
    %562 = vector.broadcast %cst_573 : f32 to vector<64x3xf32>
    %563 = arith.minimumf %562, %561 : vector<64x3xf32>
    %564 = vector.shape_cast %563 : vector<64x3xf32> to vector<8x8x3xf32>
    %c1_574 = arith.constant 1 : index
    %c0_575 = arith.constant 0 : index
    %c0_576 = arith.constant 0 : index
    %c0_577 = arith.constant 0 : index
    %c0_578 = arith.constant 0 : index
    %565 = vector.load %arg9[%c1_574, %c0_575, %c0_576, %c0_577, %c0_578] : memref<2x4x8x8x3xf32, #tpu.memory_space<vmem>>, vector<1x1x8x8x3xf32>
    %566 = vector.shape_cast %565 : vector<1x1x8x8x3xf32> to vector<8x8x3xf32>
    %567 = vector.shape_cast %564 : vector<8x8x3xf32> to vector<1x1x8x8x3xf32>
    tpu.vector_store %arg9[%c1_574, %c0_575, %c0_576, %c0_577, %c0_578], %567 {strides = array<i32>} : memref<2x4x8x8x3xf32, #tpu.memory_space<vmem>>, vector<1x1x8x8x3xf32>,
    %c2_579 = arith.constant 2 : index
    %c0_580 = arith.constant 0 : index
    %c1_581 = arith.constant 1 : index
    %c0_582 = arith.constant 0 : index
    %568 = vector.load %arg11[%c2_579, %c0_580, %c1_581, %c0_582] : memref<4x10x10x16xf32, #tpu.memory_space<vmem>>, vector<1x8x8x16xf32>
    %569 = vector.shape_cast %568 : vector<1x8x8x16xf32> to vector<8x8x16xf32>
    %570 = vector.shape_cast %569 : vector<8x8x16xf32> to vector<64x16xf32>
    %571 = arith.truncf %570 : vector<64x16xf32> to vector<64x16xbf16>
    %c0_583 = arith.constant 0 : index
    %c0_584 = arith.constant 0 : index
    %572 = vector.load %arg13[%c0_583, %c0_584] : memref<64x144xbf16, #tpu.memory_space<vmem>>, vector<64x16xbf16>
    tpu.vector_store %arg13[%c0_583, %c0_584], %571 {strides = array<i32>} : memref<64x144xbf16, #tpu.memory_space<vmem>>, vector<64x16xbf16>,
    %c3_585 = arith.constant 3 : index
    %c0_586 = arith.constant 0 : index
    %c1_587 = arith.constant 1 : index
    %c0_588 = arith.constant 0 : index
    %573 = vector.load %arg11[%c3_585, %c0_586, %c1_587, %c0_588] : memref<4x10x10x16xf32, #tpu.memory_space<vmem>>, vector<1x8x8x16xf32>
    %574 = vector.shape_cast %573 : vector<1x8x8x16xf32> to vector<8x8x16xf32>
    %575 = vector.shape_cast %574 : vector<8x8x16xf32> to vector<64x16xf32>
    %576 = arith.truncf %575 : vector<64x16xf32> to vector<64x16xbf16>
    %c0_589 = arith.constant 0 : index
    %c16_590 = arith.constant 16 : index
    %577 = vector.load %arg13[%c0_589, %c16_590] : memref<64x144xbf16, #tpu.memory_space<vmem>>, vector<64x16xbf16>
    tpu.vector_store %arg13[%c0_589, %c16_590], %576 {strides = array<i32>} : memref<64x144xbf16, #tpu.memory_space<vmem>>, vector<64x16xbf16>,
    %c2_591 = arith.constant 2 : index
    %c0_592 = arith.constant 0 : index
    %c2_593 = arith.constant 2 : index
    %c0_594 = arith.constant 0 : index
    %578 = vector.load %arg11[%c2_591, %c0_592, %c2_593, %c0_594] : memref<4x10x10x16xf32, #tpu.memory_space<vmem>>, vector<1x8x8x16xf32>
    %579 = vector.shape_cast %578 : vector<1x8x8x16xf32> to vector<8x8x16xf32>
    %580 = vector.shape_cast %579 : vector<8x8x16xf32> to vector<64x16xf32>
    %581 = arith.truncf %580 : vector<64x16xf32> to vector<64x16xbf16>
    %c0_595 = arith.constant 0 : index
    %c32_596 = arith.constant 32 : index
    %582 = vector.load %arg13[%c0_595, %c32_596] : memref<64x144xbf16, #tpu.memory_space<vmem>>, vector<64x16xbf16>
    tpu.vector_store %arg13[%c0_595, %c32_596], %581 {strides = array<i32>} : memref<64x144xbf16, #tpu.memory_space<vmem>>, vector<64x16xbf16>,
    %c0_597 = arith.constant 0 : index
    %c1_598 = arith.constant 1 : index
    %c1_599 = arith.constant 1 : index
    %c0_600 = arith.constant 0 : index
    %583 = vector.load %arg11[%c0_597, %c1_598, %c1_599, %c0_600] : memref<4x10x10x16xf32, #tpu.memory_space<vmem>>, vector<1x8x8x16xf32>
    %584 = vector.shape_cast %583 : vector<1x8x8x16xf32> to vector<8x8x16xf32>
    %585 = vector.shape_cast %584 : vector<8x8x16xf32> to vector<64x16xf32>
    %586 = arith.truncf %585 : vector<64x16xf32> to vector<64x16xbf16>
    %c0_601 = arith.constant 0 : index
    %c48_602 = arith.constant 48 : index
    %587 = vector.load %arg13[%c0_601, %c48_602] : memref<64x144xbf16, #tpu.memory_space<vmem>>, vector<64x16xbf16>
    tpu.vector_store %arg13[%c0_601, %c48_602], %586 {strides = array<i32>} : memref<64x144xbf16, #tpu.memory_space<vmem>>, vector<64x16xbf16>,
    %c1_603 = arith.constant 1 : index
    %c1_604 = arith.constant 1 : index
    %c1_605 = arith.constant 1 : index
    %c0_606 = arith.constant 0 : index
    %588 = vector.load %arg11[%c1_603, %c1_604, %c1_605, %c0_606] : memref<4x10x10x16xf32, #tpu.memory_space<vmem>>, vector<1x8x8x16xf32>
    %589 = vector.shape_cast %588 : vector<1x8x8x16xf32> to vector<8x8x16xf32>
    %590 = vector.shape_cast %589 : vector<8x8x16xf32> to vector<64x16xf32>
    %591 = arith.truncf %590 : vector<64x16xf32> to vector<64x16xbf16>
    %c0_607 = arith.constant 0 : index
    %c64_608 = arith.constant 64 : index
    %592 = vector.load %arg13[%c0_607, %c64_608] : memref<64x144xbf16, #tpu.memory_space<vmem>>, vector<64x16xbf16>
    tpu.vector_store %arg13[%c0_607, %c64_608], %591 {strides = array<i32>} : memref<64x144xbf16, #tpu.memory_space<vmem>>, vector<64x16xbf16>,
    %c0_609 = arith.constant 0 : index
    %c1_610 = arith.constant 1 : index
    %c2_611 = arith.constant 2 : index
    %c0_612 = arith.constant 0 : index
    %593 = vector.load %arg11[%c0_609, %c1_610, %c2_611, %c0_612] : memref<4x10x10x16xf32, #tpu.memory_space<vmem>>, vector<1x8x8x16xf32>
    %594 = vector.shape_cast %593 : vector<1x8x8x16xf32> to vector<8x8x16xf32>
    %595 = vector.shape_cast %594 : vector<8x8x16xf32> to vector<64x16xf32>
    %596 = arith.truncf %595 : vector<64x16xf32> to vector<64x16xbf16>
    %c0_613 = arith.constant 0 : index
    %c80_614 = arith.constant 80 : index
    %597 = vector.load %arg13[%c0_613, %c80_614] : memref<64x144xbf16, #tpu.memory_space<vmem>>, vector<64x16xbf16>
    tpu.vector_store %arg13[%c0_613, %c80_614], %596 {strides = array<i32>} : memref<64x144xbf16, #tpu.memory_space<vmem>>, vector<64x16xbf16>,
    %c2_615 = arith.constant 2 : index
    %c1_616 = arith.constant 1 : index
    %c1_617 = arith.constant 1 : index
    %c0_618 = arith.constant 0 : index
    %598 = vector.load %arg11[%c2_615, %c1_616, %c1_617, %c0_618] : memref<4x10x10x16xf32, #tpu.memory_space<vmem>>, vector<1x8x8x16xf32>
    %599 = vector.shape_cast %598 : vector<1x8x8x16xf32> to vector<8x8x16xf32>
    %600 = vector.shape_cast %599 : vector<8x8x16xf32> to vector<64x16xf32>
    %601 = arith.truncf %600 : vector<64x16xf32> to vector<64x16xbf16>
    %c0_619 = arith.constant 0 : index
    %c96_620 = arith.constant 96 : index
    %602 = vector.load %arg13[%c0_619, %c96_620] : memref<64x144xbf16, #tpu.memory_space<vmem>>, vector<64x16xbf16>
    tpu.vector_store %arg13[%c0_619, %c96_620], %601 {strides = array<i32>} : memref<64x144xbf16, #tpu.memory_space<vmem>>, vector<64x16xbf16>,
    %c3_621 = arith.constant 3 : index
    %c1_622 = arith.constant 1 : index
    %c1_623 = arith.constant 1 : index
    %c0_624 = arith.constant 0 : index
    %603 = vector.load %arg11[%c3_621, %c1_622, %c1_623, %c0_624] : memref<4x10x10x16xf32, #tpu.memory_space<vmem>>, vector<1x8x8x16xf32>
    %604 = vector.shape_cast %603 : vector<1x8x8x16xf32> to vector<8x8x16xf32>
    %605 = vector.shape_cast %604 : vector<8x8x16xf32> to vector<64x16xf32>
    %606 = arith.truncf %605 : vector<64x16xf32> to vector<64x16xbf16>
    %c0_625 = arith.constant 0 : index
    %c112_626 = arith.constant 112 : index
    %607 = vector.load %arg13[%c0_625, %c112_626] : memref<64x144xbf16, #tpu.memory_space<vmem>>, vector<64x16xbf16>
    tpu.vector_store %arg13[%c0_625, %c112_626], %606 {strides = array<i32>} : memref<64x144xbf16, #tpu.memory_space<vmem>>, vector<64x16xbf16>,
    %c2_627 = arith.constant 2 : index
    %c1_628 = arith.constant 1 : index
    %c2_629 = arith.constant 2 : index
    %c0_630 = arith.constant 0 : index
    %608 = vector.load %arg11[%c2_627, %c1_628, %c2_629, %c0_630] : memref<4x10x10x16xf32, #tpu.memory_space<vmem>>, vector<1x8x8x16xf32>
    %609 = vector.shape_cast %608 : vector<1x8x8x16xf32> to vector<8x8x16xf32>
    %610 = vector.shape_cast %609 : vector<8x8x16xf32> to vector<64x16xf32>
    %611 = arith.truncf %610 : vector<64x16xf32> to vector<64x16xbf16>
    %c0_631 = arith.constant 0 : index
    %c128_632 = arith.constant 128 : index
    %612 = vector.load %arg13[%c0_631, %c128_632] : memref<64x144xbf16, #tpu.memory_space<vmem>>, vector<64x16xbf16>
    tpu.vector_store %arg13[%c0_631, %c128_632], %611 {strides = array<i32>} : memref<64x144xbf16, #tpu.memory_space<vmem>>, vector<64x16xbf16>,
    %c0_633 = arith.constant 0 : index
    %c0_634 = arith.constant 0 : index
    %613 = vector.load %arg13[%c0_633, %c0_634] : memref<64x144xbf16, #tpu.memory_space<vmem>>, vector<64x144xbf16>
    %c1_635 = arith.constant 1 : index
    %c0_636 = arith.constant 0 : index
    %c0_637 = arith.constant 0 : index
    %614 = vector.load %arg4[%c1_635, %c0_636, %c0_637] : memref<2x144x16xbf16, #tpu.memory_space<vmem>>, vector<1x144x16xbf16>
    %615 = vector.shape_cast %614 : vector<1x144x16xbf16> to vector<144x16xbf16>
    %cst_638 = arith.constant dense<0.000000e+00> : vector<64x16xf32>
    %616 = tpu.matmul %613, %615, %cst_638 {dimension_numbers = #tpu.dot_dimension_numbers<[1], [0], [0], [1], [0, 0, 1, 1], [], []>} : vector<64x144xbf16>, vector<144x16xbf16>, vector<64x16xf32> -> vector<64x16xf32>
    %c0_639 = arith.constant 0 : index
    %c0_640 = arith.constant 0 : index
    %617 = vector.load %arg5[%c0_639, %c0_640] : memref<1x16xf32, #tpu.memory_space<vmem>>, vector<1x16xf32>
    %618 = vector.broadcast %617 : vector<1x16xf32> to vector<64x16xf32>
    %619 = arith.addf %616, %618 : vector<64x16xf32>
    %cst_641 = arith.constant 0.000000e+00 : f32
    %620 = vector.broadcast %cst_641 : f32 to vector<64x16xf32>
    %621 = arith.cmpf oge, %619, %620 : vector<64x16xf32>
    %cst_642 = arith.constant 2.000000e-01 : f32
    %622 = vector.broadcast %cst_642 : f32 to vector<64x16xf32>
    %623 = arith.mulf %622, %619 : vector<64x16xf32>
    %624 = arith.select %621, %619, %623 : vector<64x16xi1>, vector<64x16xf32>
    %cst_643 = arith.constant 1.41421354 : f32
    %625 = vector.broadcast %cst_643 : f32 to vector<64x16xf32>
    %626 = arith.mulf %624, %625 : vector<64x16xf32>
    %cst_644 = arith.constant -2.560000e+02 : f32
    %cst_645 = arith.constant 2.560000e+02 : f32
    %627 = vector.broadcast %cst_644 : f32 to vector<64x16xf32>
    %628 = arith.maximumf %627, %626 : vector<64x16xf32>
    %629 = vector.broadcast %cst_645 : f32 to vector<64x16xf32>
    %630 = arith.minimumf %629, %628 : vector<64x16xf32>
    %631 = vector.shape_cast %630 : vector<64x16xf32> to vector<8x8x16xf32>
    %c1_646 = arith.constant 1 : index
    %c1_647 = arith.constant 1 : index
    %c0_648 = arith.constant 0 : index
    %c0_649 = arith.constant 0 : index
    %c0_650 = arith.constant 0 : index
    %632 = vector.load %arg8[%c1_646, %c1_647, %c0_648, %c0_649, %c0_650] : memref<2x4x8x8x16xf32, #tpu.memory_space<vmem>>, vector<1x1x8x8x16xf32>
    %633 = vector.shape_cast %632 : vector<1x1x8x8x16xf32> to vector<8x8x16xf32>
    %634 = vector.shape_cast %631 : vector<8x8x16xf32> to vector<1x1x8x8x16xf32>
    tpu.vector_store %arg8[%c1_646, %c1_647, %c0_648, %c0_649, %c0_650], %634 {strides = array<i32>} : memref<2x4x8x8x16xf32, #tpu.memory_space<vmem>>, vector<1x1x8x8x16xf32>,
    %635 = arith.truncf %630 : vector<64x16xf32> to vector<64x16xbf16>
    %c1_651 = arith.constant 1 : index
    %c0_652 = arith.constant 0 : index
    %c0_653 = arith.constant 0 : index
    %636 = vector.load %arg6[%c1_651, %c0_652, %c0_653] : memref<2x16x3xbf16, #tpu.memory_space<vmem>>, vector<1x16x3xbf16>
    %637 = vector.shape_cast %636 : vector<1x16x3xbf16> to vector<16x3xbf16>
    %cst_654 = arith.constant dense<0.000000e+00> : vector<64x3xf32>
    %638 = tpu.matmul %635, %637, %cst_654 {dimension_numbers = #tpu.dot_dimension_numbers<[1], [0], [0], [1], [0, 0, 1, 1], [], []>} : vector<64x16xbf16>, vector<16x3xbf16>, vector<64x3xf32> -> vector<64x3xf32>
    %c0_655 = arith.constant 0 : index
    %c0_656 = arith.constant 0 : index
    %639 = vector.load %arg7[%c0_655, %c0_656] : memref<1x3xf32, #tpu.memory_space<vmem>>, vector<1x3xf32>
    %640 = vector.broadcast %639 : vector<1x3xf32> to vector<64x3xf32>
    %641 = arith.addf %638, %640 : vector<64x3xf32>
    %cst_657 = arith.constant -2.560000e+02 : f32
    %cst_658 = arith.constant 2.560000e+02 : f32
    %642 = vector.broadcast %cst_657 : f32 to vector<64x3xf32>
    %643 = arith.maximumf %642, %641 : vector<64x3xf32>
    %644 = vector.broadcast %cst_658 : f32 to vector<64x3xf32>
    %645 = arith.minimumf %644, %643 : vector<64x3xf32>
    %646 = vector.shape_cast %645 : vector<64x3xf32> to vector<8x8x3xf32>
    %c1_659 = arith.constant 1 : index
    %c1_660 = arith.constant 1 : index
    %c0_661 = arith.constant 0 : index
    %c0_662 = arith.constant 0 : index
    %c0_663 = arith.constant 0 : index
    %647 = vector.load %arg9[%c1_659, %c1_660, %c0_661, %c0_662, %c0_663] : memref<2x4x8x8x3xf32, #tpu.memory_space<vmem>>, vector<1x1x8x8x3xf32>
    %648 = vector.shape_cast %647 : vector<1x1x8x8x3xf32> to vector<8x8x3xf32>
    %649 = vector.shape_cast %646 : vector<8x8x3xf32> to vector<1x1x8x8x3xf32>
    tpu.vector_store %arg9[%c1_659, %c1_660, %c0_661, %c0_662, %c0_663], %649 {strides = array<i32>} : memref<2x4x8x8x3xf32, #tpu.memory_space<vmem>>, vector<1x1x8x8x3xf32>,
    %c1_664 = arith.constant 1 : index
    %c1_665 = arith.constant 1 : index
    %c0_666 = arith.constant 0 : index
    %c0_667 = arith.constant 0 : index
    %650 = vector.load %arg11[%c1_664, %c1_665, %c0_666, %c0_667] : memref<4x10x10x16xf32, #tpu.memory_space<vmem>>, vector<1x8x8x16xf32>
    %651 = vector.shape_cast %650 : vector<1x8x8x16xf32> to vector<8x8x16xf32>
    %652 = vector.shape_cast %651 : vector<8x8x16xf32> to vector<64x16xf32>
    %653 = arith.truncf %652 : vector<64x16xf32> to vector<64x16xbf16>
    %c0_668 = arith.constant 0 : index
    %c0_669 = arith.constant 0 : index
    %654 = vector.load %arg13[%c0_668, %c0_669] : memref<64x144xbf16, #tpu.memory_space<vmem>>, vector<64x16xbf16>
    tpu.vector_store %arg13[%c0_668, %c0_669], %653 {strides = array<i32>} : memref<64x144xbf16, #tpu.memory_space<vmem>>, vector<64x16xbf16>,
    %c0_670 = arith.constant 0 : index
    %c1_671 = arith.constant 1 : index
    %c1_672 = arith.constant 1 : index
    %c0_673 = arith.constant 0 : index
    %655 = vector.load %arg11[%c0_670, %c1_671, %c1_672, %c0_673] : memref<4x10x10x16xf32, #tpu.memory_space<vmem>>, vector<1x8x8x16xf32>
    %656 = vector.shape_cast %655 : vector<1x8x8x16xf32> to vector<8x8x16xf32>
    %657 = vector.shape_cast %656 : vector<8x8x16xf32> to vector<64x16xf32>
    %658 = arith.truncf %657 : vector<64x16xf32> to vector<64x16xbf16>
    %c0_674 = arith.constant 0 : index
    %c16_675 = arith.constant 16 : index
    %659 = vector.load %arg13[%c0_674, %c16_675] : memref<64x144xbf16, #tpu.memory_space<vmem>>, vector<64x16xbf16>
    tpu.vector_store %arg13[%c0_674, %c16_675], %658 {strides = array<i32>} : memref<64x144xbf16, #tpu.memory_space<vmem>>, vector<64x16xbf16>,
    %c1_676 = arith.constant 1 : index
    %c1_677 = arith.constant 1 : index
    %c1_678 = arith.constant 1 : index
    %c0_679 = arith.constant 0 : index
    %660 = vector.load %arg11[%c1_676, %c1_677, %c1_678, %c0_679] : memref<4x10x10x16xf32, #tpu.memory_space<vmem>>, vector<1x8x8x16xf32>
    %661 = vector.shape_cast %660 : vector<1x8x8x16xf32> to vector<8x8x16xf32>
    %662 = vector.shape_cast %661 : vector<8x8x16xf32> to vector<64x16xf32>
    %663 = arith.truncf %662 : vector<64x16xf32> to vector<64x16xbf16>
    %c0_680 = arith.constant 0 : index
    %c32_681 = arith.constant 32 : index
    %664 = vector.load %arg13[%c0_680, %c32_681] : memref<64x144xbf16, #tpu.memory_space<vmem>>, vector<64x16xbf16>
    tpu.vector_store %arg13[%c0_680, %c32_681], %663 {strides = array<i32>} : memref<64x144xbf16, #tpu.memory_space<vmem>>, vector<64x16xbf16>,
    %c3_682 = arith.constant 3 : index
    %c1_683 = arith.constant 1 : index
    %c0_684 = arith.constant 0 : index
    %c0_685 = arith.constant 0 : index
    %665 = vector.load %arg11[%c3_682, %c1_683, %c0_684, %c0_685] : memref<4x10x10x16xf32, #tpu.memory_space<vmem>>, vector<1x8x8x16xf32>
    %666 = vector.shape_cast %665 : vector<1x8x8x16xf32> to vector<8x8x16xf32>
    %667 = vector.shape_cast %666 : vector<8x8x16xf32> to vector<64x16xf32>
    %668 = arith.truncf %667 : vector<64x16xf32> to vector<64x16xbf16>
    %c0_686 = arith.constant 0 : index
    %c48_687 = arith.constant 48 : index
    %669 = vector.load %arg13[%c0_686, %c48_687] : memref<64x144xbf16, #tpu.memory_space<vmem>>, vector<64x16xbf16>
    tpu.vector_store %arg13[%c0_686, %c48_687], %668 {strides = array<i32>} : memref<64x144xbf16, #tpu.memory_space<vmem>>, vector<64x16xbf16>,
    %c2_688 = arith.constant 2 : index
    %c1_689 = arith.constant 1 : index
    %c1_690 = arith.constant 1 : index
    %c0_691 = arith.constant 0 : index
    %670 = vector.load %arg11[%c2_688, %c1_689, %c1_690, %c0_691] : memref<4x10x10x16xf32, #tpu.memory_space<vmem>>, vector<1x8x8x16xf32>
    %671 = vector.shape_cast %670 : vector<1x8x8x16xf32> to vector<8x8x16xf32>
    %672 = vector.shape_cast %671 : vector<8x8x16xf32> to vector<64x16xf32>
    %673 = arith.truncf %672 : vector<64x16xf32> to vector<64x16xbf16>
    %c0_692 = arith.constant 0 : index
    %c64_693 = arith.constant 64 : index
    %674 = vector.load %arg13[%c0_692, %c64_693] : memref<64x144xbf16, #tpu.memory_space<vmem>>, vector<64x16xbf16>
    tpu.vector_store %arg13[%c0_692, %c64_693], %673 {strides = array<i32>} : memref<64x144xbf16, #tpu.memory_space<vmem>>, vector<64x16xbf16>,
    %c3_694 = arith.constant 3 : index
    %c1_695 = arith.constant 1 : index
    %c1_696 = arith.constant 1 : index
    %c0_697 = arith.constant 0 : index
    %675 = vector.load %arg11[%c3_694, %c1_695, %c1_696, %c0_697] : memref<4x10x10x16xf32, #tpu.memory_space<vmem>>, vector<1x8x8x16xf32>
    %676 = vector.shape_cast %675 : vector<1x8x8x16xf32> to vector<8x8x16xf32>
    %677 = vector.shape_cast %676 : vector<8x8x16xf32> to vector<64x16xf32>
    %678 = arith.truncf %677 : vector<64x16xf32> to vector<64x16xbf16>
    %c0_698 = arith.constant 0 : index
    %c80_699 = arith.constant 80 : index
    %679 = vector.load %arg13[%c0_698, %c80_699] : memref<64x144xbf16, #tpu.memory_space<vmem>>, vector<64x16xbf16>
    tpu.vector_store %arg13[%c0_698, %c80_699], %678 {strides = array<i32>} : memref<64x144xbf16, #tpu.memory_space<vmem>>, vector<64x16xbf16>,
    %c1_700 = arith.constant 1 : index
    %c2_701 = arith.constant 2 : index
    %c0_702 = arith.constant 0 : index
    %c0_703 = arith.constant 0 : index
    %680 = vector.load %arg11[%c1_700, %c2_701, %c0_702, %c0_703] : memref<4x10x10x16xf32, #tpu.memory_space<vmem>>, vector<1x8x8x16xf32>
    %681 = vector.shape_cast %680 : vector<1x8x8x16xf32> to vector<8x8x16xf32>
    %682 = vector.shape_cast %681 : vector<8x8x16xf32> to vector<64x16xf32>
    %683 = arith.truncf %682 : vector<64x16xf32> to vector<64x16xbf16>
    %c0_704 = arith.constant 0 : index
    %c96_705 = arith.constant 96 : index
    %684 = vector.load %arg13[%c0_704, %c96_705] : memref<64x144xbf16, #tpu.memory_space<vmem>>, vector<64x16xbf16>
    tpu.vector_store %arg13[%c0_704, %c96_705], %683 {strides = array<i32>} : memref<64x144xbf16, #tpu.memory_space<vmem>>, vector<64x16xbf16>,
    %c0_706 = arith.constant 0 : index
    %c2_707 = arith.constant 2 : index
    %c1_708 = arith.constant 1 : index
    %c0_709 = arith.constant 0 : index
    %685 = vector.load %arg11[%c0_706, %c2_707, %c1_708, %c0_709] : memref<4x10x10x16xf32, #tpu.memory_space<vmem>>, vector<1x8x8x16xf32>
    %686 = vector.shape_cast %685 : vector<1x8x8x16xf32> to vector<8x8x16xf32>
    %687 = vector.shape_cast %686 : vector<8x8x16xf32> to vector<64x16xf32>
    %688 = arith.truncf %687 : vector<64x16xf32> to vector<64x16xbf16>
    %c0_710 = arith.constant 0 : index
    %c112_711 = arith.constant 112 : index
    %689 = vector.load %arg13[%c0_710, %c112_711] : memref<64x144xbf16, #tpu.memory_space<vmem>>, vector<64x16xbf16>
    tpu.vector_store %arg13[%c0_710, %c112_711], %688 {strides = array<i32>} : memref<64x144xbf16, #tpu.memory_space<vmem>>, vector<64x16xbf16>,
    %c1_712 = arith.constant 1 : index
    %c2_713 = arith.constant 2 : index
    %c1_714 = arith.constant 1 : index
    %c0_715 = arith.constant 0 : index
    %690 = vector.load %arg11[%c1_712, %c2_713, %c1_714, %c0_715] : memref<4x10x10x16xf32, #tpu.memory_space<vmem>>, vector<1x8x8x16xf32>
    %691 = vector.shape_cast %690 : vector<1x8x8x16xf32> to vector<8x8x16xf32>
    %692 = vector.shape_cast %691 : vector<8x8x16xf32> to vector<64x16xf32>
    %693 = arith.truncf %692 : vector<64x16xf32> to vector<64x16xbf16>
    %c0_716 = arith.constant 0 : index
    %c128_717 = arith.constant 128 : index
    %694 = vector.load %arg13[%c0_716, %c128_717] : memref<64x144xbf16, #tpu.memory_space<vmem>>, vector<64x16xbf16>
    tpu.vector_store %arg13[%c0_716, %c128_717], %693 {strides = array<i32>} : memref<64x144xbf16, #tpu.memory_space<vmem>>, vector<64x16xbf16>,
    %c0_718 = arith.constant 0 : index
    %c0_719 = arith.constant 0 : index
    %695 = vector.load %arg13[%c0_718, %c0_719] : memref<64x144xbf16, #tpu.memory_space<vmem>>, vector<64x144xbf16>
    %c1_720 = arith.constant 1 : index
    %c0_721 = arith.constant 0 : index
    %c0_722 = arith.constant 0 : index
    %696 = vector.load %arg4[%c1_720, %c0_721, %c0_722] : memref<2x144x16xbf16, #tpu.memory_space<vmem>>, vector<1x144x16xbf16>
    %697 = vector.shape_cast %696 : vector<1x144x16xbf16> to vector<144x16xbf16>
    %cst_723 = arith.constant dense<0.000000e+00> : vector<64x16xf32>
    %698 = tpu.matmul %695, %697, %cst_723 {dimension_numbers = #tpu.dot_dimension_numbers<[1], [0], [0], [1], [0, 0, 1, 1], [], []>} : vector<64x144xbf16>, vector<144x16xbf16>, vector<64x16xf32> -> vector<64x16xf32>
    %c0_724 = arith.constant 0 : index
    %c0_725 = arith.constant 0 : index
    %699 = vector.load %arg5[%c0_724, %c0_725] : memref<1x16xf32, #tpu.memory_space<vmem>>, vector<1x16xf32>
    %700 = vector.broadcast %699 : vector<1x16xf32> to vector<64x16xf32>
    %701 = arith.addf %698, %700 : vector<64x16xf32>
    %cst_726 = arith.constant 0.000000e+00 : f32
    %702 = vector.broadcast %cst_726 : f32 to vector<64x16xf32>
    %703 = arith.cmpf oge, %701, %702 : vector<64x16xf32>
    %cst_727 = arith.constant 2.000000e-01 : f32
    %704 = vector.broadcast %cst_727 : f32 to vector<64x16xf32>
    %705 = arith.mulf %704, %701 : vector<64x16xf32>
    %706 = arith.select %703, %701, %705 : vector<64x16xi1>, vector<64x16xf32>
    %cst_728 = arith.constant 1.41421354 : f32
    %707 = vector.broadcast %cst_728 : f32 to vector<64x16xf32>
    %708 = arith.mulf %706, %707 : vector<64x16xf32>
    %cst_729 = arith.constant -2.560000e+02 : f32
    %cst_730 = arith.constant 2.560000e+02 : f32
    %709 = vector.broadcast %cst_729 : f32 to vector<64x16xf32>
    %710 = arith.maximumf %709, %708 : vector<64x16xf32>
    %711 = vector.broadcast %cst_730 : f32 to vector<64x16xf32>
    %712 = arith.minimumf %711, %710 : vector<64x16xf32>
    %713 = vector.shape_cast %712 : vector<64x16xf32> to vector<8x8x16xf32>
    %c1_731 = arith.constant 1 : index
    %c2_732 = arith.constant 2 : index
    %c0_733 = arith.constant 0 : index
    %c0_734 = arith.constant 0 : index
    %c0_735 = arith.constant 0 : index
    %714 = vector.load %arg8[%c1_731, %c2_732, %c0_733, %c0_734, %c0_735] : memref<2x4x8x8x16xf32, #tpu.memory_space<vmem>>, vector<1x1x8x8x16xf32>
    %715 = vector.shape_cast %714 : vector<1x1x8x8x16xf32> to vector<8x8x16xf32>
    %716 = vector.shape_cast %713 : vector<8x8x16xf32> to vector<1x1x8x8x16xf32>
    tpu.vector_store %arg8[%c1_731, %c2_732, %c0_733, %c0_734, %c0_735], %716 {strides = array<i32>} : memref<2x4x8x8x16xf32, #tpu.memory_space<vmem>>, vector<1x1x8x8x16xf32>,
    %717 = arith.truncf %712 : vector<64x16xf32> to vector<64x16xbf16>
    %c1_736 = arith.constant 1 : index
    %c0_737 = arith.constant 0 : index
    %c0_738 = arith.constant 0 : index
    %718 = vector.load %arg6[%c1_736, %c0_737, %c0_738] : memref<2x16x3xbf16, #tpu.memory_space<vmem>>, vector<1x16x3xbf16>
    %719 = vector.shape_cast %718 : vector<1x16x3xbf16> to vector<16x3xbf16>
    %cst_739 = arith.constant dense<0.000000e+00> : vector<64x3xf32>
    %720 = tpu.matmul %717, %719, %cst_739 {dimension_numbers = #tpu.dot_dimension_numbers<[1], [0], [0], [1], [0, 0, 1, 1], [], []>} : vector<64x16xbf16>, vector<16x3xbf16>, vector<64x3xf32> -> vector<64x3xf32>
    %c0_740 = arith.constant 0 : index
    %c0_741 = arith.constant 0 : index
    %721 = vector.load %arg7[%c0_740, %c0_741] : memref<1x3xf32, #tpu.memory_space<vmem>>, vector<1x3xf32>
    %722 = vector.broadcast %721 : vector<1x3xf32> to vector<64x3xf32>
    %723 = arith.addf %720, %722 : vector<64x3xf32>
    %cst_742 = arith.constant -2.560000e+02 : f32
    %cst_743 = arith.constant 2.560000e+02 : f32
    %724 = vector.broadcast %cst_742 : f32 to vector<64x3xf32>
    %725 = arith.maximumf %724, %723 : vector<64x3xf32>
    %726 = vector.broadcast %cst_743 : f32 to vector<64x3xf32>
    %727 = arith.minimumf %726, %725 : vector<64x3xf32>
    %728 = vector.shape_cast %727 : vector<64x3xf32> to vector<8x8x3xf32>
    %c1_744 = arith.constant 1 : index
    %c2_745 = arith.constant 2 : index
    %c0_746 = arith.constant 0 : index
    %c0_747 = arith.constant 0 : index
    %c0_748 = arith.constant 0 : index
    %729 = vector.load %arg9[%c1_744, %c2_745, %c0_746, %c0_747, %c0_748] : memref<2x4x8x8x3xf32, #tpu.memory_space<vmem>>, vector<1x1x8x8x3xf32>
    %730 = vector.shape_cast %729 : vector<1x1x8x8x3xf32> to vector<8x8x3xf32>
    %731 = vector.shape_cast %728 : vector<8x8x3xf32> to vector<1x1x8x8x3xf32>
    tpu.vector_store %arg9[%c1_744, %c2_745, %c0_746, %c0_747, %c0_748], %731 {strides = array<i32>} : memref<2x4x8x8x3xf32, #tpu.memory_space<vmem>>, vector<1x1x8x8x3xf32>,
    %c0_749 = arith.constant 0 : index
    %c1_750 = arith.constant 1 : index
    %c1_751 = arith.constant 1 : index
    %c0_752 = arith.constant 0 : index
    %732 = vector.load %arg11[%c0_749, %c1_750, %c1_751, %c0_752] : memref<4x10x10x16xf32, #tpu.memory_space<vmem>>, vector<1x8x8x16xf32>
    %733 = vector.shape_cast %732 : vector<1x8x8x16xf32> to vector<8x8x16xf32>
    %734 = vector.shape_cast %733 : vector<8x8x16xf32> to vector<64x16xf32>
    %735 = arith.truncf %734 : vector<64x16xf32> to vector<64x16xbf16>
    %c0_753 = arith.constant 0 : index
    %c0_754 = arith.constant 0 : index
    %736 = vector.load %arg13[%c0_753, %c0_754] : memref<64x144xbf16, #tpu.memory_space<vmem>>, vector<64x16xbf16>
    tpu.vector_store %arg13[%c0_753, %c0_754], %735 {strides = array<i32>} : memref<64x144xbf16, #tpu.memory_space<vmem>>, vector<64x16xbf16>,
    %c1_755 = arith.constant 1 : index
    %c1_756 = arith.constant 1 : index
    %c1_757 = arith.constant 1 : index
    %c0_758 = arith.constant 0 : index
    %737 = vector.load %arg11[%c1_755, %c1_756, %c1_757, %c0_758] : memref<4x10x10x16xf32, #tpu.memory_space<vmem>>, vector<1x8x8x16xf32>
    %738 = vector.shape_cast %737 : vector<1x8x8x16xf32> to vector<8x8x16xf32>
    %739 = vector.shape_cast %738 : vector<8x8x16xf32> to vector<64x16xf32>
    %740 = arith.truncf %739 : vector<64x16xf32> to vector<64x16xbf16>
    %c0_759 = arith.constant 0 : index
    %c16_760 = arith.constant 16 : index
    %741 = vector.load %arg13[%c0_759, %c16_760] : memref<64x144xbf16, #tpu.memory_space<vmem>>, vector<64x16xbf16>
    tpu.vector_store %arg13[%c0_759, %c16_760], %740 {strides = array<i32>} : memref<64x144xbf16, #tpu.memory_space<vmem>>, vector<64x16xbf16>,
    %c0_761 = arith.constant 0 : index
    %c1_762 = arith.constant 1 : index
    %c2_763 = arith.constant 2 : index
    %c0_764 = arith.constant 0 : index
    %742 = vector.load %arg11[%c0_761, %c1_762, %c2_763, %c0_764] : memref<4x10x10x16xf32, #tpu.memory_space<vmem>>, vector<1x8x8x16xf32>
    %743 = vector.shape_cast %742 : vector<1x8x8x16xf32> to vector<8x8x16xf32>
    %744 = vector.shape_cast %743 : vector<8x8x16xf32> to vector<64x16xf32>
    %745 = arith.truncf %744 : vector<64x16xf32> to vector<64x16xbf16>
    %c0_765 = arith.constant 0 : index
    %c32_766 = arith.constant 32 : index
    %746 = vector.load %arg13[%c0_765, %c32_766] : memref<64x144xbf16, #tpu.memory_space<vmem>>, vector<64x16xbf16>
    tpu.vector_store %arg13[%c0_765, %c32_766], %745 {strides = array<i32>} : memref<64x144xbf16, #tpu.memory_space<vmem>>, vector<64x16xbf16>,
    %c2_767 = arith.constant 2 : index
    %c1_768 = arith.constant 1 : index
    %c1_769 = arith.constant 1 : index
    %c0_770 = arith.constant 0 : index
    %747 = vector.load %arg11[%c2_767, %c1_768, %c1_769, %c0_770] : memref<4x10x10x16xf32, #tpu.memory_space<vmem>>, vector<1x8x8x16xf32>
    %748 = vector.shape_cast %747 : vector<1x8x8x16xf32> to vector<8x8x16xf32>
    %749 = vector.shape_cast %748 : vector<8x8x16xf32> to vector<64x16xf32>
    %750 = arith.truncf %749 : vector<64x16xf32> to vector<64x16xbf16>
    %c0_771 = arith.constant 0 : index
    %c48_772 = arith.constant 48 : index
    %751 = vector.load %arg13[%c0_771, %c48_772] : memref<64x144xbf16, #tpu.memory_space<vmem>>, vector<64x16xbf16>
    tpu.vector_store %arg13[%c0_771, %c48_772], %750 {strides = array<i32>} : memref<64x144xbf16, #tpu.memory_space<vmem>>, vector<64x16xbf16>,
    %c3_773 = arith.constant 3 : index
    %c1_774 = arith.constant 1 : index
    %c1_775 = arith.constant 1 : index
    %c0_776 = arith.constant 0 : index
    %752 = vector.load %arg11[%c3_773, %c1_774, %c1_775, %c0_776] : memref<4x10x10x16xf32, #tpu.memory_space<vmem>>, vector<1x8x8x16xf32>
    %753 = vector.shape_cast %752 : vector<1x8x8x16xf32> to vector<8x8x16xf32>
    %754 = vector.shape_cast %753 : vector<8x8x16xf32> to vector<64x16xf32>
    %755 = arith.truncf %754 : vector<64x16xf32> to vector<64x16xbf16>
    %c0_777 = arith.constant 0 : index
    %c64_778 = arith.constant 64 : index
    %756 = vector.load %arg13[%c0_777, %c64_778] : memref<64x144xbf16, #tpu.memory_space<vmem>>, vector<64x16xbf16>
    tpu.vector_store %arg13[%c0_777, %c64_778], %755 {strides = array<i32>} : memref<64x144xbf16, #tpu.memory_space<vmem>>, vector<64x16xbf16>,
    %c2_779 = arith.constant 2 : index
    %c1_780 = arith.constant 1 : index
    %c2_781 = arith.constant 2 : index
    %c0_782 = arith.constant 0 : index
    %757 = vector.load %arg11[%c2_779, %c1_780, %c2_781, %c0_782] : memref<4x10x10x16xf32, #tpu.memory_space<vmem>>, vector<1x8x8x16xf32>
    %758 = vector.shape_cast %757 : vector<1x8x8x16xf32> to vector<8x8x16xf32>
    %759 = vector.shape_cast %758 : vector<8x8x16xf32> to vector<64x16xf32>
    %760 = arith.truncf %759 : vector<64x16xf32> to vector<64x16xbf16>
    %c0_783 = arith.constant 0 : index
    %c80_784 = arith.constant 80 : index
    %761 = vector.load %arg13[%c0_783, %c80_784] : memref<64x144xbf16, #tpu.memory_space<vmem>>, vector<64x16xbf16>
    tpu.vector_store %arg13[%c0_783, %c80_784], %760 {strides = array<i32>} : memref<64x144xbf16, #tpu.memory_space<vmem>>, vector<64x16xbf16>,
    %c0_785 = arith.constant 0 : index
    %c2_786 = arith.constant 2 : index
    %c1_787 = arith.constant 1 : index
    %c0_788 = arith.constant 0 : index
    %762 = vector.load %arg11[%c0_785, %c2_786, %c1_787, %c0_788] : memref<4x10x10x16xf32, #tpu.memory_space<vmem>>, vector<1x8x8x16xf32>
    %763 = vector.shape_cast %762 : vector<1x8x8x16xf32> to vector<8x8x16xf32>
    %764 = vector.shape_cast %763 : vector<8x8x16xf32> to vector<64x16xf32>
    %765 = arith.truncf %764 : vector<64x16xf32> to vector<64x16xbf16>
    %c0_789 = arith.constant 0 : index
    %c96_790 = arith.constant 96 : index
    %766 = vector.load %arg13[%c0_789, %c96_790] : memref<64x144xbf16, #tpu.memory_space<vmem>>, vector<64x16xbf16>
    tpu.vector_store %arg13[%c0_789, %c96_790], %765 {strides = array<i32>} : memref<64x144xbf16, #tpu.memory_space<vmem>>, vector<64x16xbf16>,
    %c1_791 = arith.constant 1 : index
    %c2_792 = arith.constant 2 : index
    %c1_793 = arith.constant 1 : index
    %c0_794 = arith.constant 0 : index
    %767 = vector.load %arg11[%c1_791, %c2_792, %c1_793, %c0_794] : memref<4x10x10x16xf32, #tpu.memory_space<vmem>>, vector<1x8x8x16xf32>
    %768 = vector.shape_cast %767 : vector<1x8x8x16xf32> to vector<8x8x16xf32>
    %769 = vector.shape_cast %768 : vector<8x8x16xf32> to vector<64x16xf32>
    %770 = arith.truncf %769 : vector<64x16xf32> to vector<64x16xbf16>
    %c0_795 = arith.constant 0 : index
    %c112_796 = arith.constant 112 : index
    %771 = vector.load %arg13[%c0_795, %c112_796] : memref<64x144xbf16, #tpu.memory_space<vmem>>, vector<64x16xbf16>
    tpu.vector_store %arg13[%c0_795, %c112_796], %770 {strides = array<i32>} : memref<64x144xbf16, #tpu.memory_space<vmem>>, vector<64x16xbf16>,
    %c0_797 = arith.constant 0 : index
    %c2_798 = arith.constant 2 : index
    %c2_799 = arith.constant 2 : index
    %c0_800 = arith.constant 0 : index
    %772 = vector.load %arg11[%c0_797, %c2_798, %c2_799, %c0_800] : memref<4x10x10x16xf32, #tpu.memory_space<vmem>>, vector<1x8x8x16xf32>
    %773 = vector.shape_cast %772 : vector<1x8x8x16xf32> to vector<8x8x16xf32>
    %774 = vector.shape_cast %773 : vector<8x8x16xf32> to vector<64x16xf32>
    %775 = arith.truncf %774 : vector<64x16xf32> to vector<64x16xbf16>
    %c0_801 = arith.constant 0 : index
    %c128_802 = arith.constant 128 : index
    %776 = vector.load %arg13[%c0_801, %c128_802] : memref<64x144xbf16, #tpu.memory_space<vmem>>, vector<64x16xbf16>
    tpu.vector_store %arg13[%c0_801, %c128_802], %775 {strides = array<i32>} : memref<64x144xbf16, #tpu.memory_space<vmem>>, vector<64x16xbf16>,
    %c0_803 = arith.constant 0 : index
    %c0_804 = arith.constant 0 : index
    %777 = vector.load %arg13[%c0_803, %c0_804] : memref<64x144xbf16, #tpu.memory_space<vmem>>, vector<64x144xbf16>
    %c1_805 = arith.constant 1 : index
    %c0_806 = arith.constant 0 : index
    %c0_807 = arith.constant 0 : index
    %778 = vector.load %arg4[%c1_805, %c0_806, %c0_807] : memref<2x144x16xbf16, #tpu.memory_space<vmem>>, vector<1x144x16xbf16>
    %779 = vector.shape_cast %778 : vector<1x144x16xbf16> to vector<144x16xbf16>
    %cst_808 = arith.constant dense<0.000000e+00> : vector<64x16xf32>
    %780 = tpu.matmul %777, %779, %cst_808 {dimension_numbers = #tpu.dot_dimension_numbers<[1], [0], [0], [1], [0, 0, 1, 1], [], []>} : vector<64x144xbf16>, vector<144x16xbf16>, vector<64x16xf32> -> vector<64x16xf32>
    %c0_809 = arith.constant 0 : index
    %c0_810 = arith.constant 0 : index
    %781 = vector.load %arg5[%c0_809, %c0_810] : memref<1x16xf32, #tpu.memory_space<vmem>>, vector<1x16xf32>
    %782 = vector.broadcast %781 : vector<1x16xf32> to vector<64x16xf32>
    %783 = arith.addf %780, %782 : vector<64x16xf32>
    %cst_811 = arith.constant 0.000000e+00 : f32
    %784 = vector.broadcast %cst_811 : f32 to vector<64x16xf32>
    %785 = arith.cmpf oge, %783, %784 : vector<64x16xf32>
    %cst_812 = arith.constant 2.000000e-01 : f32
    %786 = vector.broadcast %cst_812 : f32 to vector<64x16xf32>
    %787 = arith.mulf %786, %783 : vector<64x16xf32>
    %788 = arith.select %785, %783, %787 : vector<64x16xi1>, vector<64x16xf32>
    %cst_813 = arith.constant 1.41421354 : f32
    %789 = vector.broadcast %cst_813 : f32 to vector<64x16xf32>
    %790 = arith.mulf %788, %789 : vector<64x16xf32>
    %cst_814 = arith.constant -2.560000e+02 : f32
    %cst_815 = arith.constant 2.560000e+02 : f32
    %791 = vector.broadcast %cst_814 : f32 to vector<64x16xf32>
    %792 = arith.maximumf %791, %790 : vector<64x16xf32>
    %793 = vector.broadcast %cst_815 : f32 to vector<64x16xf32>
    %794 = arith.minimumf %793, %792 : vector<64x16xf32>
    %795 = vector.shape_cast %794 : vector<64x16xf32> to vector<8x8x16xf32>
    %c1_816 = arith.constant 1 : index
    %c3_817 = arith.constant 3 : index
    %c0_818 = arith.constant 0 : index
    %c0_819 = arith.constant 0 : index
    %c0_820 = arith.constant 0 : index
    %796 = vector.load %arg8[%c1_816, %c3_817, %c0_818, %c0_819, %c0_820] : memref<2x4x8x8x16xf32, #tpu.memory_space<vmem>>, vector<1x1x8x8x16xf32>
    %797 = vector.shape_cast %796 : vector<1x1x8x8x16xf32> to vector<8x8x16xf32>
    %798 = vector.shape_cast %795 : vector<8x8x16xf32> to vector<1x1x8x8x16xf32>
    tpu.vector_store %arg8[%c1_816, %c3_817, %c0_818, %c0_819, %c0_820], %798 {strides = array<i32>} : memref<2x4x8x8x16xf32, #tpu.memory_space<vmem>>, vector<1x1x8x8x16xf32>,
    %799 = arith.truncf %794 : vector<64x16xf32> to vector<64x16xbf16>
    %c1_821 = arith.constant 1 : index
    %c0_822 = arith.constant 0 : index
    %c0_823 = arith.constant 0 : index
    %800 = vector.load %arg6[%c1_821, %c0_822, %c0_823] : memref<2x16x3xbf16, #tpu.memory_space<vmem>>, vector<1x16x3xbf16>
    %801 = vector.shape_cast %800 : vector<1x16x3xbf16> to vector<16x3xbf16>
    %cst_824 = arith.constant dense<0.000000e+00> : vector<64x3xf32>
    %802 = tpu.matmul %799, %801, %cst_824 {dimension_numbers = #tpu.dot_dimension_numbers<[1], [0], [0], [1], [0, 0, 1, 1], [], []>} : vector<64x16xbf16>, vector<16x3xbf16>, vector<64x3xf32> -> vector<64x3xf32>
    %c0_825 = arith.constant 0 : index
    %c0_826 = arith.constant 0 : index
    %803 = vector.load %arg7[%c0_825, %c0_826] : memref<1x3xf32, #tpu.memory_space<vmem>>, vector<1x3xf32>
    %804 = vector.broadcast %803 : vector<1x3xf32> to vector<64x3xf32>
    %805 = arith.addf %802, %804 : vector<64x3xf32>
    %cst_827 = arith.constant -2.560000e+02 : f32
    %cst_828 = arith.constant 2.560000e+02 : f32
    %806 = vector.broadcast %cst_827 : f32 to vector<64x3xf32>
    %807 = arith.maximumf %806, %805 : vector<64x3xf32>
    %808 = vector.broadcast %cst_828 : f32 to vector<64x3xf32>
    %809 = arith.minimumf %808, %807 : vector<64x3xf32>
    %810 = vector.shape_cast %809 : vector<64x3xf32> to vector<8x8x3xf32>
    %c1_829 = arith.constant 1 : index
    %c3_830 = arith.constant 3 : index
    %c0_831 = arith.constant 0 : index
    %c0_832 = arith.constant 0 : index
    %c0_833 = arith.constant 0 : index
    %811 = vector.load %arg9[%c1_829, %c3_830, %c0_831, %c0_832, %c0_833] : memref<2x4x8x8x3xf32, #tpu.memory_space<vmem>>, vector<1x1x8x8x3xf32>
    %812 = vector.shape_cast %811 : vector<1x1x8x8x3xf32> to vector<8x8x3xf32>
    %813 = vector.shape_cast %810 : vector<8x8x3xf32> to vector<1x1x8x8x3xf32>
    tpu.vector_store %arg9[%c1_829, %c3_830, %c0_831, %c0_832, %c0_833], %813 {strides = array<i32>} : memref<2x4x8x8x3xf32, #tpu.memory_space<vmem>>, vector<1x1x8x8x3xf32>,
    return
  }
  func.func @transform_0(%arg0: i32) -> (i32, i32, i32, i32) {
    %c0_i32 = arith.constant 0 : i32
    %c0_i32_0 = arith.constant 0 : i32
    %c0_i32_1 = arith.constant 0 : i32
    %c0_i32_2 = arith.constant 0 : i32
    return %arg0, %c0_i32, %c0_i32_0, %c0_i32_1 : i32, i32, i32, i32
  }
  func.func @transform_1(%arg0: i32) -> (i32, i32, i32) {
    %c0_i32 = arith.constant 0 : i32
    %c0_i32_0 = arith.constant 0 : i32
    %c0_i32_1 = arith.constant 0 : i32
    return %arg0, %c0_i32, %c0_i32_0 : i32, i32, i32
  }
  func.func @transform_2(%arg0: i32) -> (i32, i32) {
    %c0_i32 = arith.constant 0 : i32
    %c0_i32_0 = arith.constant 0 : i32
    %c0_i32_1 = arith.constant 0 : i32
    return %c0_i32, %c0_i32_0 : i32, i32
  }
  func.func @transform_3(%arg0: i32) -> (i32, i32, i32) {
    %c0_i32 = arith.constant 0 : i32
    %c0_i32_0 = arith.constant 0 : i32
    %c0_i32_1 = arith.constant 0 : i32
    return %arg0, %c0_i32, %c0_i32_0 : i32, i32, i32
  }
  func.func @transform_4(%arg0: i32) -> (i32, i32) {
    %c0_i32 = arith.constant 0 : i32
    %c0_i32_0 = arith.constant 0 : i32
    %c0_i32_1 = arith.constant 0 : i32
    return %c0_i32, %c0_i32_0 : i32, i32
  }
  func.func @transform_5(%arg0: i32) -> (i32, i32, i32) {
    %c0_i32 = arith.constant 0 : i32
    %c0_i32_0 = arith.constant 0 : i32
    %c0_i32_1 = arith.constant 0 : i32
    return %arg0, %c0_i32, %c0_i32_0 : i32, i32, i32
  }
  func.func @transform_6(%arg0: i32) -> (i32, i32) {
    %c0_i32 = arith.constant 0 : i32
    %c0_i32_0 = arith.constant 0 : i32
    %c0_i32_1 = arith.constant 0 : i32
    return %c0_i32, %c0_i32_0 : i32, i32
  }
  func.func @transform_7(%arg0: i32) -> (i32, i32, i32, i32, i32) {
    %c0_i32 = arith.constant 0 : i32
    %c0_i32_0 = arith.constant 0 : i32
    %c0_i32_1 = arith.constant 0 : i32
    %c0_i32_2 = arith.constant 0 : i32
    %c0_i32_3 = arith.constant 0 : i32
    return %arg0, %c0_i32, %c0_i32_0, %c0_i32_1, %c0_i32_2 : i32, i32, i32, i32, i32
  }
  func.func @transform_8(%arg0: i32) -> (i32, i32, i32, i32, i32) {
    %c0_i32 = arith.constant 0 : i32
    %c0_i32_0 = arith.constant 0 : i32
    %c0_i32_1 = arith.constant 0 : i32
    %c0_i32_2 = arith.constant 0 : i32
    %c0_i32_3 = arith.constant 0 : i32
    return %arg0, %c0_i32, %c0_i32_0, %c0_i32_1, %c0_i32_2 : i32, i32, i32, i32, i32
  }
}

</mosaic_0001>

<bundles_post_ra>
// kernel: tile.1
= control target key start
LH: loop header
LB: loop body
LE: loop exit
PB: predicated region body
PF: predicated region fallthrough
CT: control target
= control target key end

     0   :  { %s20_s0 = inlined_call_operand.<no memory space> [shape: f32[], index: 0, kind: input, shape index: {}]   ;;  %s21_s1 = inlined_call_operand.vmem [shape: f32[1,64], index: 1, kind: output, shape index: {}]  }
   0x1   :  { %v2_v0 = vstv %s20_s0 }
   0x2   :  { %3 = vst [vmem:[%s21_s1] sm:$0x1] %v2_v0 }

// kernel: _lambda_.1
= control target key start
LH: loop header
LB: loop body
LE: loop exit
PB: predicated region body
PF: predicated region fallthrough
CT: control target
= control target key end

     0   :  { %vm29_vm0 = vcmask 64512   ;;  %vm31_vm1 = vcmask 58368   ;;  %v6918_v0 = vmov 0.0   ;;  %s6919_s23 = smov 8   ;;  %s6920_s24 = smov 16   ;;  %vm10002_vm2 = vcmask 1043456   ;;  %s9978_s0 = inlined_call_operand.vmem [shape: f32[2,8,8,8], index: 0, kind: input, shape index: {}]   ;;  %s9979_s1 = inlined_call_operand.vmem [shape: bf16[2,72,64], index: 1, kind: input, shape index: {}]   ;;  %s9980_s2 = inlined_call_operand.vmem [shape: f32[1,64], index: 2, kind: input, shape index: {}]   ;;  %s9981_s3 = inlined_call_operand.vmem [shape: bf16[2,144,16], index: 3, kind: input, shape index: {}]   ;;  %s9982_s5 = inlined_call_operand.vmem [shape: bf16[2,16,3], index: 5, kind: input, shape index: {}]   ;;  %s9983_s4 = inlined_call_operand.vmem [shape: f32[1,16], index: 4, kind: input, shape index: {}]   ;;  %s9984_s7 = inlined_call_operand.vmem [shape: f32[2,4,8,8,16], index: 7, kind: output, shape index: {0}]   ;;  %s9985_s6 = inlined_call_operand.vmem [shape: f32[1,3], index: 6, kind: input, shape index: {}]   ;;  %s9986_s8 = inlined_call_operand.vmem [shape: f32[2,4,8,8,3], index: 8, kind: output, shape index: {1}]  }
   0x1   :  { %30 = vst.msk [vmem:[#allocation2] sm:$0xff] %vm29_vm0, %v6918_v0  ;;  %33 = vst.msk [vmem:[#allocation2 + $0x10] sm:$0xff] %vm29_vm0, %v6918_v0  ;;  %v133_v1 = vld [vmem:[%s9978_s0] sm:$0xff]  ;;  %v134_v2 = vld [vmem:[%s9978_s0 + $0x8] sm:$0xff]  ;;  %s6921_s9 = smov 24   ;;  %s6922_s12 = smov 32  }
   0x2   :  { %32 = vst.msk [vmem:[#allocation2 + $0x8] sm:$0x3] %vm31_vm1, %v6918_v0  ;;  %34 = vst.msk [vmem:[#allocation2 + $0x18] sm:$0x3] %vm31_vm1, %v6918_v0  ;;  %v135_v3 = vld [vmem:[%s9978_s0 + $0x10] sm:$0xff]  ;;  %v136_v4 = vld [vmem:[%s9978_s0 + $0x18] sm:$0xff] }
   0x3   :  { %35 = vst.msk [vmem:[#allocation2 + $0x20] sm:$0xff] %vm29_vm0, %v6918_v0  ;;  %37 = vst.msk [vmem:[#allocation2 + $0x30] sm:$0xff] %vm29_vm0, %v6918_v0  ;;  %v137_v5 = vld [vmem:[%s9978_s0 + $0x20] sm:$0xff]  ;;  %v138_v6 = vld [vmem:[%s9978_s0 + $0x28] sm:$0xff]  ;;  %s6923_s15 = smov 40   ;;  %s6924_s18 = smov 48  }
   0x4   :  { %36 = vst.msk [vmem:[#allocation2 + $0x28] sm:$0x3] %vm31_vm1, %v6918_v0  ;;  %38 = vst.msk [vmem:[#allocation2 + $0x38] sm:$0x3] %vm31_vm1, %v6918_v0  ;;  %v139_v7 = vld [vmem:[%s9978_s0 + $0x30] sm:$0xff]  ;;  %v140_v8 = vld [vmem:[%s9978_s0 + $0x38] sm:$0xff] }
   0x5   :  { %39 = vst.msk [vmem:[#allocation2 + $0x40] sm:$0xff] %vm29_vm0, %v6918_v0  ;;  %41 = vst.msk [vmem:[#allocation2 + $0x50] sm:$0xff] %vm29_vm0, %v6918_v0  ;;  %v6315_v11 = vld [vmem:[%s9978_s0 + $0x40] sm:$0xff]  ;;  %v6322_v29 = vld [vmem:[%s9978_s0 + $0x78] sm:$0xff]  ;;  %s6925_s19 = smov 56   ;;  %s6926_s20 = smov 64  }
   0x6   :  { %40 = vst.msk [vmem:[#allocation2 + $0x48] sm:$0x3] %vm31_vm1, %v6918_v0  ;;  %42 = vst.msk [vmem:[#allocation2 + $0x58] sm:$0x3] %vm31_vm1, %v6918_v0  ;;  %v6827_v41 = vld [vmem:[%s9979_s1] sm:$0xff]   ;;  %v6828_v42 = vld [vmem:[%s9979_s1 + $0x8] sm:$0xff]  }
   0x7   :  { %43 = vst.msk [vmem:[#allocation2 + $0x60] sm:$0xff] %vm29_vm0, %v6918_v0  ;;  %45 = vst.msk [vmem:[#allocation2 + $0x70] sm:$0xff] %vm29_vm0, %v6918_v0  ;;  %6696 = vmatprep.subr.bf16.mxu0 %v6827_v41  ;;  %v6829_v46 = vld [vmem:[%s9979_s1 + $0x10] sm:$0xff]   ;;  %v6830_v49 = vld [vmem:[%s9979_s1 + $0x18] sm:$0xff]   ;;  %vm51_vm3 = vcmask 130048   ;;  %vm53_vm4 = vcmask 123904  }
   0x8   :  { %44 = vst.msk [vmem:[#allocation2 + $0x68] sm:$0x3] %vm31_vm1, %v6918_v0  ;;  %46 = vst.msk [vmem:[#allocation2 + $0x78] sm:$0x3] %vm31_vm1, %v6918_v0  ;;  %v150_v39 = vld [vmem:[#allocation2] sm:$0xff]  ;;  %6697 = vmatpush3.bf16.msra.mxu0 %v6827_v41  ;;  %vm194_vm5 = vcmask 130112  }
   0x9   :  { %47 = vst.msk [vmem:[#allocation2 + $0x80] sm:$0xff] %vm29_vm0, %v6918_v0  ;;  %49 = vst.msk [vmem:[#allocation2 + $0x90] sm:$0xff] %vm29_vm0, %v6918_v0  ;;  %v166_v9 = vld [vmem:[#allocation2 + $0x1] sm:$0xff]  ;;  %6698 = vmatprep.subr.bf16.mxu0 %v6828_v42  ;;  %v6831_v51 = vld [vmem:[%s9979_s1 + $0x20] ss:$0 sps:$4 sm:$0xff]   ;;  %vm227_vm6 = vcmask 195712  }
   0xa   :  { %48 = vst.msk [vmem:[#allocation2 + $0x88] sm:$0x3] %vm31_vm1, %v6918_v0  ;;  %50 = vst.msk [vmem:[#allocation2 + $0x98] sm:$0x3] %vm31_vm1, %v6918_v0  ;;  %v199_v10 = vld [vmem:[#allocation2 + $0x2] sm:$0xff]  ;;  %v493_v54 = vsel %vm10002_vm2, %v6831_v51, 0 }
   0xb   :  { %142 = vst.msk [vmem:[#allocation2 + $0x11] sm:$0xff] %vm29_vm0, %v133_v1  ;;  %143 = vst.msk [vmem:[#allocation2 + $0x21] sm:$0xff] %vm29_vm0, %v134_v2  ;;  %vm260_vm7 = vcmask 261312   ;;  %vm293_vm8 = vcmask 326912   ;;  %vm326_vm9 = vcmask 392512   ;;  %vm360_vm10 = vcmask 458112  }
   0xc   :  { %144 = vst.msk [vmem:[#allocation2 + $0x31] sm:$0xff] %vm29_vm0, %v135_v3  ;;  %145 = vst.msk [vmem:[#allocation2 + $0x41] sm:$0xff] %vm29_vm0, %v136_v4  ;;  %6699 = vmatpush3.bf16.msra.mxu0 %v6828_v42  ;;  %vm393_vm11 = vcmask 523712   ;;  %vm10003_vm12 = vcmask 589312   ;;  %vm10001_vm13 = vcmask 588800   ;;  %s6927_s25 = smov 80  }
   0xd   :  { %146 = vst.msk [vmem:[#allocation2 + $0x51] sm:$0xff] %vm29_vm0, %v137_v5  ;;  %147 = vst.msk [vmem:[#allocation2 + $0x61] sm:$0xff] %vm29_vm0, %v138_v6  ;;  %6700 = vmatprep.subr.bf16.mxu0 %v6829_v46  ;;  %s6928_s26 = smov 96   ;;  %s6929_s27 = smov 112  }
   0xe   :  { %148 = vst.msk [vmem:[#allocation2 + $0x71] sm:$0xff] %vm29_vm0, %v139_v7  ;;  %149 = vst.msk [vmem:[#allocation2 + $0x81] sm:$0xff] %vm29_vm0, %v140_v8 }
   0xf   :  { %59 = vst.msk [vmem:[#allocation3 + $0x30] sm:$0xff] %vm51_vm3, %v6918_v0  ;;  %55 = vst.msk [vmem:[#allocation3 + $0x10] sm:$0xff] %vm51_vm3, %v6918_v0 }
  0x10   :  { %6701 = vmatpush3.bf16.msra.mxu0 %v6829_v46  ;;  %v339_v5 = vld [vmem:[#allocation2 + $0x90] sm:$0xff]  ;;  %60 = vst.msk [vmem:[#allocation3 + $0x38] sm:$0x3] %vm53_vm4, %v6918_v0  ;;  %56 = vst.msk [vmem:[#allocation3 + $0x18] sm:$0x3] %vm53_vm4, %v6918_v0 }
  0x11   :  { %6702 = vmatprep.subr.bf16.mxu0 %v6830_v49  ;;  %v372_v7 = vld [vmem:[#allocation2 + $0x91] sm:$0xff]  ;;  %57 = vst.msk [vmem:[#allocation3 + $0x20] sm:$0xff] %vm51_vm3, %v6918_v0  ;;  %61 = vst.msk [vmem:[#allocation3 + $0x40] sm:$0xff] %vm51_vm3, %v6918_v0  ;;  %v6105_v46 = vld [vmem:[%s9980_s2] ss:$0 sm:$0xff] }
  0x12   :  { %v167_v12 = vld [vmem:[#allocation2 + $0x11] sm:$0xff]  ;;  %v168_v14 = vld [vmem:[#allocation2 + $0x21] sm:$0xff]  ;;  %58 = vst.msk [vmem:[#allocation3 + $0x28] sm:$0x3] %vm53_vm4, %v6918_v0  ;;  %62 = vst.msk [vmem:[#allocation3 + $0x48] sm:$0x3] %vm53_vm4, %v6918_v0 }
  0x13   :  { %v200_v13 = vld [vmem:[#allocation2 + $0x12] sm:$0xff]  ;;  %v174_v15 = vpack.c.bf16 %v167_v12, %v166_v9  ;;  %v201_v18 = vld [vmem:[#allocation2 + $0x22] sm:$0xff]  ;;  %v273_v43 = vpack.c.bf16 %v168_v14, %v167_v12  ;;  %63 = vst.msk [vmem:[#allocation3 + $0x50] sm:$0xff] %vm51_vm3, %v6918_v0  ;;  %65 = vst.msk [vmem:[#allocation3 + $0x60] sm:$0xff] %vm51_vm3, %v6918_v0 }
  0x14   :  { %v207_v16 = vpack.c.bf16 %v200_v13, %v199_v10  ;;  %v169_v17 = vld [vmem:[#allocation2 + $0x31] sm:$0xff]  ;;  %v233_v21 = vld [vmem:[#allocation2 + $0x20] sm:$0xff]  ;;  %v306_v47 = vpack.c.bf16 %v201_v18, %v200_v13  ;;  %6703 = vmatpush3.bf16.msra.mxu0 %v6830_v49  ;;  %64 = vst.msk [vmem:[#allocation3 + $0x58] sm:$0x3] %vm53_vm4, %v6918_v0  ;;  %66 = vst.msk [vmem:[#allocation3 + $0x68] sm:$0x3] %vm53_vm4, %v6918_v0 }
  0x15   :  { %v202_v19 = vld [vmem:[#allocation2 + $0x32] sm:$0xff]  ;;  %182 = vrot.lane.b32.xlu0 %v174_v15, %s6919_s23  ;;  %v7053_v23 = vpack.c.bf16 %v169_v17, %v168_v14  ;;  %v235_v26 = vld [vmem:[#allocation2 + $0x40] sm:$0xff]  ;;  %6812 = vmatprep.subr.msk.bf16.mxu0 %vm10002_vm2, %v6831_v51  ;;  %67 = vst.msk [vmem:[#allocation3 + $0x70] sm:$0xff] %vm51_vm3, %v6918_v0  ;;  %69 = vst.msk [vmem:[#allocation3 + $0x80] sm:$0xff] %vm51_vm3, %v6918_v0  ;;  %vm10005_vm2 = vcmask 917248  }
  0x16   :  { %v232_v20 = vld [vmem:[#allocation2 + $0x10] sm:$0xff]  ;;  %215 = vrot.lane.b32.xlu1 %v207_v16, %s6920_s24  ;;  %v7055_v24 = vpack.c.bf16 %v202_v19, %v201_v18  ;;  %v7065_v30 = vld [vmem:[#allocation2 + $0x60] sm:$0xff]  ;;  %68 = vst.msk [vmem:[#allocation3 + $0x78] sm:$0x3] %vm53_vm4, %v6918_v0  ;;  %70 = vst.msk [vmem:[#allocation3 + $0x88] sm:$0x3] %vm53_vm4, %v6918_v0 }
  0x17   :  { %v234_v22 = vld [vmem:[#allocation2 + $0x30] sm:$0xff]  ;;  %3135 = vst.msk [vmem:[#allocation2 + $0x11] sm:$0xff] %vm29_vm0, %v6315_v11  ;;  %v240_v32 = vpack.c.bf16 %v233_v21, %v232_v20  ;;  %v7073_v34 = vld [vmem:[#allocation2 + $0x80] sm:$0xff]  ;;  %v158_v40 = vpack.c.bf16 %v232_v20, %v150_v39 }
  0x18   :  { %v340_v25 = vpack.c.bf16 %v234_v22, %v233_v21  ;;  %v7058_v27 = vld [vmem:[#allocation2 + $0x50] sm:$0xff]  ;;  %v241_v33 = vpack.c.bf16 %v235_v26, %v234_v22  ;;  %v7075_v35 = vld [vmem:[#allocation2 + $0x81] sm:$0xff]  ;;  %6705 = vmatpush3.bf16.msra.mxu0 %v493_v54  ;;  %v343_v6 = vpack.c.bf16 %v339_v5, %v7073_v34  ;;  %71 = vst.msk [vmem:[#allocation3 + $0x90] sm:$0xff] %vm51_vm3, %v6918_v0  ;;  %75 = vst.msk [vmem:[#allocation3 + $0xb0] sm:$0xff] %vm51_vm3, %v6918_v0 }
  0x19   :  { %v341_v28 = vpack.c.bf16 %v7058_v27, %v235_v26  ;;  %v7067_v31 = vld [vmem:[#allocation2 + $0x70] sm:$0xff]  ;;  %184 = vrot.lane.b32.xlu0 %v7053_v23, %s6919_s23  ;;  %v7077_v36 = vld [vmem:[#allocation2 + $0x82] sm:$0xff]  ;;  %162 = vst.msk [vmem:[#allocation4] sm:$0xff] %vm29_vm0, %v158_v40  ;;  %v242_v62 = vpack.c.bf16 %v7065_v30, %v7058_v27  ;;  %v376_v8 = vpack.c.bf16 %v372_v7, %v7075_v35 }
  0x1a   :  { %163 = vst.msk [vmem:[#allocation4 + $0x8] sm:$0xff] %vm29_vm0, %v340_v25  ;;  %217 = vrot.lane.b32.xlu1 %v7055_v24, %s6920_s24  ;;  %v7081_v37 = vpack.c.bf16 %v7067_v31, %v7065_v30  ;;  %v268_v38 = vld [vmem:[#allocation2 + $0x41] sm:$0xff]  ;;  %3142 = vst.msk [vmem:[#allocation2 + $0x81] sm:$0xff] %vm29_vm0, %v6322_v29  ;;  %v368_v50 = vld [vmem:[#allocation2 + $0x51] sm:$0xff]  ;;  %v243_v63 = vpack.c.bf16 %v7073_v34, %v7067_v31 }
  0x1b   :  { %164 = vst.msk [vmem:[#allocation4 + $0x10] sm:$0xff] %vm29_vm0, %v341_v28  ;;  %v274_v44 = vpack.c.bf16 %v268_v38, %v169_v17  ;;  %v301_v45 = vld [vmem:[#allocation2 + $0x42] sm:$0xff]  ;;  %v374_v52 = vpack.c.bf16 %v368_v50, %v268_v38  ;;  %v401_v53 = vld [vmem:[#allocation2 + $0x52] sm:$0xff] }
  0x1c   :  { %165 = vst.msk [vmem:[#allocation4 + $0x18] sm:$0xff] %vm29_vm0, %v7081_v37  ;;  %v307_v48 = vpack.c.bf16 %v301_v45, %v202_v19  ;;  %v407_v55 = vpack.c.bf16 %v401_v53, %v301_v45  ;;  %v172_v56 = vld [vmem:[#allocation2 + $0x61] sm:$0xff]  ;;  %v173_v57 = vld [vmem:[#allocation2 + $0x71] sm:$0xff] }
  0x1d   :  { %248 = vrot.lane.b32.xlu0 %v240_v32, %s6921_s9  ;;  %v177_v58 = vpack.c.bf16 %v173_v57, %v172_v56  ;;  %v205_v59 = vld [vmem:[#allocation2 + $0x62] sm:$0xff]  ;;  %v206_v60 = vld [vmem:[#allocation2 + $0x72] sm:$0xff]  ;;  %v275_v1 = vpack.c.bf16 %v172_v56, %v368_v50  ;;  %v276_v2 = vpack.c.bf16 %v7075_v35, %v173_v57  ;;  %72 = vst.msk [vmem:[#allocation3 + $0x98] sm:$0x3] %vm53_vm4, %v6918_v0  ;;  %76 = vst.msk [vmem:[#allocation3 + $0xb8] sm:$0x3] %vm53_vm4, %v6918_v0 }
  0x1e   :  { %250 = vrot.lane.b32.xlu1 %v241_v33, %s6921_s9  ;;  %v7121_v61 = vpack.c.bf16 %v206_v60, %v205_v59  ;;  %v308_v3 = vpack.c.bf16 %v205_v59, %v401_v53  ;;  %v309_v4 = vpack.c.bf16 %v7077_v36, %v206_v60  ;;  %v7143_v9 = vld [vmem:[#allocation2 + $0x92] sm:$0xff]  ;;  %77 = vst.msk [vmem:[#allocation3 + $0xc0] sm:$0xff] %vm51_vm3, %v6918_v0  ;;  %79 = vst.msk [vmem:[#allocation3 + $0xd0] sm:$0xff] %vm51_vm3, %v6918_v0 }
  0x1f   :  { %v409_v10 = vpack.c.bf16 %v7143_v9, %v7077_v36  ;;  %78 = vst.msk [vmem:[#allocation3 + $0xc8] sm:$0x3] %vm53_vm4, %v6918_v0  ;;  %80 = vst.msk [vmem:[#allocation3 + $0xd8] sm:$0x3] %vm53_vm4, %v6918_v0 }
  0x20   :  { %81 = vst.msk [vmem:[#allocation3 + $0xe0] sm:$0xff] %vm51_vm3, %v6918_v0  ;;  %83 = vst.msk [vmem:[#allocation3 + $0xf0] sm:$0xff] %vm51_vm3, %v6918_v0 }
  0x21   :  { %281 = vrot.lane.b32.xlu0 %v273_v43, %s6922_s12  ;;  %82 = vst.msk [vmem:[#allocation3 + $0xe8] sm:$0x3] %vm53_vm4, %v6918_v0  ;;  %84 = vst.msk [vmem:[#allocation3 + $0xf8] sm:$0x3] %vm53_vm4, %v6918_v0 }
  0x22   :  { %283 = vrot.lane.b32.xlu1 %v274_v44, %s6922_s12  ;;  %85 = vst.msk [vmem:[#allocation3 + $0x100] sm:$0xff] %vm51_vm3, %v6918_v0  ;;  %87 = vst.msk [vmem:[#allocation3 + $0x110] sm:$0xff] %vm51_vm3, %v6918_v0 }
  0x23   :  { %86 = vst.msk [vmem:[#allocation3 + $0x108] sm:$0x3] %vm53_vm4, %v6918_v0  ;;  %88 = vst.msk [vmem:[#allocation3 + $0x118] sm:$0x3] %vm53_vm4, %v6918_v0 }
  0x24   :  { %89 = vst.msk [vmem:[#allocation3 + $0x120] sm:$0xff] %vm51_vm3, %v6918_v0  ;;  %91 = vst.msk [vmem:[#allocation3 + $0x130] sm:$0xff] %vm51_vm3, %v6918_v0 }
  0x25   :  { %314 = vrot.lane.b32.xlu0 %v306_v47, %s6923_s15  ;;  %90 = vst.msk [vmem:[#allocation3 + $0x128] sm:$0x3] %vm53_vm4, %v6918_v0  ;;  %92 = vst.msk [vmem:[#allocation3 + $0x138] sm:$0x3] %vm53_vm4, %v6918_v0 }
  0x26   :  { %316 = vrot.lane.b32.xlu1 %v307_v48, %s6923_s15  ;;  %93 = vst.msk [vmem:[#allocation3 + $0x140] sm:$0xff] %vm51_vm3, %v6918_v0  ;;  %95 = vst.msk [vmem:[#allocation3 + $0x150] sm:$0xff] %vm51_vm3, %v6918_v0 }
  0x27   :  { %94 = vst.msk [vmem:[#allocation3 + $0x148] sm:$0x3] %vm53_vm4, %v6918_v0  ;;  %96 = vst.msk [vmem:[#allocation3 + $0x158] sm:$0x3] %vm53_vm4, %v6918_v0 }
  0x28   :  { %97 = vst.msk [vmem:[#allocation3 + $0x160] sm:$0xff] %vm51_vm3, %v6918_v0  ;;  %99 = vst.msk [vmem:[#allocation3 + $0x170] sm:$0xff] %vm51_vm3, %v6918_v0 }
  0x29   :  { %348 = vrot.lane.b32.xlu0 %v340_v25, %s6924_s18  ;;  %98 = vst.msk [vmem:[#allocation3 + $0x168] sm:$0x3] %vm53_vm4, %v6918_v0  ;;  %100 = vst.msk [vmem:[#allocation3 + $0x178] sm:$0x3] %vm53_vm4, %v6918_v0 }
  0x2a   :  { %350 = vrot.lane.b32.xlu1 %v341_v28, %s6924_s18  ;;  %101 = vst.msk [vmem:[#allocation3 + $0x180] sm:$0xff] %vm51_vm3, %v6918_v0  ;;  %103 = vst.msk [vmem:[#allocation3 + $0x190] sm:$0xff] %vm51_vm3, %v6918_v0 }
  0x2b   :  { %102 = vst.msk [vmem:[#allocation3 + $0x188] sm:$0x3] %vm53_vm4, %v6918_v0  ;;  %104 = vst.msk [vmem:[#allocation3 + $0x198] sm:$0x3] %vm53_vm4, %v6918_v0 }
  0x2c   :  { %105 = vst.msk [vmem:[#allocation3 + $0x1a0] sm:$0xff] %vm51_vm3, %v6918_v0  ;;  %107 = vst.msk [vmem:[#allocation3 + $0x1b0] sm:$0xff] %vm51_vm3, %v6918_v0 }
  0x2d   :  { %381 = vrot.lane.b32.xlu0 %v7053_v23, %s6925_s19  ;;  %106 = vst.msk [vmem:[#allocation3 + $0x1a8] sm:$0x3] %vm53_vm4, %v6918_v0  ;;  %108 = vst.msk [vmem:[#allocation3 + $0x1b8] sm:$0x3] %vm53_vm4, %v6918_v0 }
  0x2e   :  { %383 = vrot.lane.b32.xlu1 %v374_v52, %s6925_s19  ;;  %109 = vst.msk [vmem:[#allocation3 + $0x1c0] sm:$0xff] %vm51_vm3, %v6918_v0  ;;  %113 = vst.msk [vmem:[#allocation3 + $0x1e0] sm:$0xff] %vm51_vm3, %v6918_v0 }
  0x2f   :  { %110 = vst.msk [vmem:[#allocation3 + $0x1c8] sm:$0x3] %vm53_vm4, %v6918_v0  ;;  %114 = vst.msk [vmem:[#allocation3 + $0x1e8] sm:$0x3] %vm53_vm4, %v6918_v0 }
  0x30   :  { %115 = vst.msk [vmem:[#allocation3 + $0x1f0] sm:$0xff] %vm51_vm3, %v6918_v0  ;;  %117 = vst.msk [vmem:[#allocation3 + $0x200] sm:$0xff] %vm51_vm3, %v6918_v0 }
  0x31   :  { %414 = vrot.lane.b32.xlu0 %v7055_v24, %s6926_s20  ;;  %116 = vst.msk [vmem:[#allocation3 + $0x1f8] sm:$0x3] %vm53_vm4, %v6918_v0  ;;  %118 = vst.msk [vmem:[#allocation3 + $0x208] sm:$0x3] %vm53_vm4, %v6918_v0 }
  0x32   :  { %416 = vrot.lane.b32.xlu1 %v407_v55, %s6926_s20  ;;  %119 = vst.msk [vmem:[#allocation3 + $0x210] sm:$0xff] %vm51_vm3, %v6918_v0  ;;  %121 = vst.msk [vmem:[#allocation3 + $0x220] sm:$0xff] %vm51_vm3, %v6918_v0 }
  0x33   :  { %120 = vst.msk [vmem:[#allocation3 + $0x218] sm:$0x3] %vm53_vm4, %v6918_v0  ;;  %122 = vst.msk [vmem:[#allocation3 + $0x228] sm:$0x3] %vm53_vm4, %v6918_v0 }
  0x34   :  { %123 = vst.msk [vmem:[#allocation3 + $0x230] sm:$0xff] %vm51_vm3, %v6918_v0  ;;  %125 = vst.msk [vmem:[#allocation3 + $0x240] sm:$0xff] %vm51_vm3, %v6918_v0 }
  0x35   :  { %186 = vrot.lane.b32.xlu0 %v374_v52, %s6919_s23  ;;  %124 = vst.msk [vmem:[#allocation3 + $0x238] sm:$0x3] %vm53_vm4, %v6918_v0  ;;  %126 = vst.msk [vmem:[#allocation3 + $0x248] sm:$0x3] %vm53_vm4, %v6918_v0 }
  0x36   :  { %188 = vrot.lane.b32.xlu1 %v177_v58, %s6919_s23  ;;  %127 = vst.msk [vmem:[#allocation3 + $0x250] sm:$0xff] %vm51_vm3, %v6918_v0  ;;  %129 = vst.msk [vmem:[#allocation3 + $0x260] sm:$0xff] %vm51_vm3, %v6918_v0 }
  0x37   :  { %128 = vst.msk [vmem:[#allocation3 + $0x258] sm:$0x3] %vm53_vm4, %v6918_v0  ;;  %130 = vst.msk [vmem:[#allocation3 + $0x268] sm:$0x3] %vm53_vm4, %v6918_v0 }
  0x39   :  { %219 = vrot.lane.b32.xlu0 %v407_v55, %s6920_s24 }
  0x3a   :  { %221 = vrot.lane.b32.xlu1 %v7121_v61, %s6920_s24 }
  0x3d   :  { %252 = vrot.lane.b32.xlu0 %v242_v62, %s6921_s9 }
  0x3e   :  { %254 = vrot.lane.b32.xlu1 %v243_v63, %s6921_s9 }
  0x41   :  { %285 = vrot.lane.b32.xlu0 %v275_v1, %s6922_s12 }
  0x42   :  { %287 = vrot.lane.b32.xlu1 %v276_v2, %s6922_s12 }
  0x45   :  { %318 = vrot.lane.b32.xlu0 %v308_v3, %s6923_s15 }
  0x46   :  { %320 = vrot.lane.b32.xlu1 %v309_v4, %s6923_s15 }
  0x49   :  { %352 = vrot.lane.b32.xlu0 %v7081_v37, %s6924_s18 }
  0x4a   :  { %354 = vrot.lane.b32.xlu1 %v343_v6, %s6924_s18 }
  0x4d   :  { %385 = vrot.lane.b32.xlu0 %v177_v58, %s6925_s19 }
  0x4e   :  { %387 = vrot.lane.b32.xlu1 %v376_v8, %s6925_s19 }
  0x51   :  { %418 = vrot.lane.b32.xlu0 %v7121_v61, %s6926_s20 }
  0x52   :  { %420 = vrot.lane.b32.xlu1 %v409_v10, %s6926_s20 }
  0x87   :  { %v183_v11 = vpop.permute.xlu0 %182 }
  0x88   :  { %v216_v12 = vpop.permute.xlu1 %215  ;;  %195 = vst.msk [vmem:[#allocation4] sm:$0xff] %vm194_vm5, %v183_v11 }
  0x89   :  { %228 = vst.msk [vmem:[#allocation4] sm:$0xff] %vm227_vm6, %v216_v12 }
  0x8b   :  { %v185_v13 = vpop.permute.xlu0 %184 }
  0x8c   :  { %v218_v14 = vpop.permute.xlu1 %217  ;;  %196 = vst.msk [vmem:[#allocation4 + $0x8] sm:$0xff] %vm194_vm5, %v185_v13 }
  0x8d   :  { %229 = vst.msk [vmem:[#allocation4 + $0x8] sm:$0xff] %vm227_vm6, %v218_v14 }
  0x8f   :  { %v249_v0 = vpop.permute.xlu0 %248 }
  0x90   :  { %v251_v15 = vpop.permute.xlu1 %250  ;;  %261 = vst.msk [vmem:[#allocation4] sm:$0xff] %vm260_vm7, %v249_v0 }
  0x91   :  { %262 = vst.msk [vmem:[#allocation4 + $0x8] sm:$0xff] %vm260_vm7, %v251_v15 }
  0x93   :  { %v282_v16 = vpop.permute.xlu0 %281 }
  0x94   :  { %v284_v17 = vpop.permute.xlu1 %283  ;;  %294 = vst.msk [vmem:[#allocation4] sm:$0xff] %vm293_vm8, %v282_v16 }
  0x95   :  { %295 = vst.msk [vmem:[#allocation4 + $0x8] sm:$0xff] %vm293_vm8, %v284_v17 }
  0x97   :  { %v315_v18 = vpop.permute.xlu0 %314 }
  0x98   :  { %v317_v19 = vpop.permute.xlu1 %316  ;;  %327 = vst.msk [vmem:[#allocation4] sm:$0xff] %vm326_vm9, %v315_v18 }
  0x99   :  { %328 = vst.msk [vmem:[#allocation4 + $0x8] sm:$0xff] %vm326_vm9, %v317_v19 }
  0x9b   :  { %v349_v20 = vpop.permute.xlu0 %348 }
  0x9c   :  { %v351_v21 = vpop.permute.xlu1 %350  ;;  %361 = vst.msk [vmem:[#allocation4] sm:$0xff] %vm360_vm10, %v349_v20 }
  0x9d   :  { %362 = vst.msk [vmem:[#allocation4 + $0x8] sm:$0xff] %vm360_vm10, %v351_v21 }
  0x9f   :  { %v382_v22 = vpop.permute.xlu0 %381 }
  0xa0   :  { %v384_v23 = vpop.permute.xlu1 %383  ;;  %394 = vst.msk [vmem:[#allocation4] sm:$0xff] %vm393_vm11, %v382_v22 }
  0xa1   :  { %395 = vst.msk [vmem:[#allocation4 + $0x8] sm:$0xff] %vm393_vm11, %v384_v23 }
  0xa3   :  { %v415_v24 = vpop.permute.xlu0 %414 }
  0xa4   :  { %v417_v25 = vpop.permute.xlu1 %416  ;;  %427 = vst.msk [vmem:[#allocation4] sm:$0xff] %vm10003_vm12, %v415_v24 }
  0xa5   :  { %428 = vst.msk [vmem:[#allocation4 + $0x8] sm:$0xff] %vm10003_vm12, %v417_v25 }
  0xa7   :  { %v187_v26 = vpop.permute.xlu0 %186 }
  0xa8   :  { %v189_v27 = vpop.permute.xlu1 %188  ;;  %197 = vst.msk [vmem:[#allocation4 + $0x10] sm:$0xff] %vm194_vm5, %v187_v26 }
  0xa9   :  { %198 = vst.msk [vmem:[#allocation4 + $0x18] sm:$0xff] %vm194_vm5, %v189_v27 }
  0xab   :  { %v220_v28 = vpop.permute.xlu0 %219  ;;  %v431_v30 = vld [vmem:[#allocation4] sm:$0xff] }
  0xac   :  { %v222_v29 = vpop.permute.xlu1 %221  ;;  %v432_v31 = vld [vmem:[#allocation4 + $0x8] sm:$0xff]  ;;  %230 = vst.msk [vmem:[#allocation4 + $0x10] sm:$0xff] %vm227_vm6, %v220_v28  ;;  %6706 = vmatprep.mubr.msk.bf16.mxu0 %vm10001_vm13, %v431_v30 }
  0xad   :  { %231 = vst.msk [vmem:[#allocation4 + $0x18] sm:$0xff] %vm227_vm6, %v222_v29  ;;  %6707 = vmatmul.mubr.msk.bf16.vlgmr.msra.gmra.mrb[0].mxu0 %vm10001_vm13, %v432_v31 }
  0xaf   :  { %v253_v32 = vpop.permute.xlu0 %252 }
  0xb0   :  { %v255_v33 = vpop.permute.xlu1 %254  ;;  %263 = vst.msk [vmem:[#allocation4 + $0x10] sm:$0xff] %vm260_vm7, %v253_v32 }
  0xb1   :  { %264 = vst.msk [vmem:[#allocation4 + $0x18] sm:$0xff] %vm260_vm7, %v255_v33 }
  0xb3   :  { %v286_v34 = vpop.permute.xlu0 %285 }
  0xb4   :  { %v288_v35 = vpop.permute.xlu1 %287  ;;  %296 = vst.msk [vmem:[#allocation4 + $0x10] sm:$0xff] %vm293_vm8, %v286_v34 }
  0xb5   :  { %297 = vst.msk [vmem:[#allocation4 + $0x18] sm:$0xff] %vm293_vm8, %v288_v35 }
  0xb7   :  { %v319_v36 = vpop.permute.xlu0 %318 }
  0xb8   :  { %v321_v37 = vpop.permute.xlu1 %320  ;;  %329 = vst.msk [vmem:[#allocation4 + $0x10] sm:$0xff] %vm326_vm9, %v319_v36 }
  0xb9   :  { %330 = vst.msk [vmem:[#allocation4 + $0x18] sm:$0xff] %vm326_vm9, %v321_v37  ;;  %v9987_v37 = vmov 0  }
  0xba   :  { %1088 = vmatprep.subr.bf16.mxu1 %v9987_v37 }
  0xbb   :  { %v353_v38 = vpop.permute.xlu0 %352 }
  0xbc   :  { %v355_v39 = vpop.permute.xlu1 %354  ;;  %363 = vst.msk [vmem:[#allocation4 + $0x10] sm:$0xff] %vm360_vm10, %v353_v38  ;;  %v6832_v38 = vld [vmem:[%s9981_s3] sm:$0xff]  }
  0xbd   :  { %364 = vst.msk [vmem:[#allocation4 + $0x18] sm:$0xff] %vm360_vm10, %v355_v39  ;;  %1089 = vmatpush1.bf16.msra.mxu1 %v6832_v38  ;;  %v6833_v39 = vld [vmem:[%s9981_s3 + $0x8] sm:$0xff]  }
  0xbe   :  { %1090 = vmatprep.subr.bf16.mxu1 %v9987_v37 }
  0xbf   :  { %v386_v40 = vpop.permute.xlu0 %385 }
  0xc0   :  { %v388_v41 = vpop.permute.xlu1 %387  ;;  %396 = vst.msk [vmem:[#allocation4 + $0x10] sm:$0xff] %vm393_vm11, %v386_v40  ;;  %v6834_v40 = vld [vmem:[%s9981_s3 + $0x10] sm:$0xff]  }
  0xc1   :  { %397 = vst.msk [vmem:[#allocation4 + $0x18] sm:$0xff] %vm393_vm11, %v388_v41  ;;  %1091 = vmatpush1.bf16.msra.mxu1 %v6833_v39 }
  0xc2   :  { %1092 = vmatprep.subr.bf16.mxu1 %v9987_v37 }
  0xc3   :  { %v419_v42 = vpop.permute.xlu0 %418 }
  0xc4   :  { %v421_v43 = vpop.permute.xlu1 %420  ;;  %429 = vst.msk [vmem:[#allocation4 + $0x10] sm:$0xff] %vm10003_vm12, %v419_v42 }
  0xc5   :  { %430 = vst.msk [vmem:[#allocation4 + $0x18] sm:$0xff] %vm10003_vm12, %v421_v43  ;;  %1093 = vmatpush1.bf16.msra.mxu1 %v6834_v40  ;;  %v6835_v43 = vld [vmem:[%s9981_s3 + $0x18] sm:$0xff]   ;;  %vm10006_vm12 = vcmask 1048448  }
  0xc6   :  { %1094 = vmatprep.subr.bf16.mxu1 %v9987_v37 }
  0xc9   :  { %1095 = vmatpush1.bf16.msra.mxu1 %v6835_v43 }
  0xca   :  { %1096 = vmatprep.subr.bf16.mxu1 %v9987_v37 }
  0xcb   :  { %v433_v44 = vld [vmem:[#allocation4 + $0x10] sm:$0xff] }
  0xcc   :  { %v434_v45 = vld [vmem:[#allocation4 + $0x18] sm:$0xff]  ;;  %6710 = vmatprep.mubr.msk.bf16.mxu0 %vm10001_vm13, %v433_v44 }
  0xcd   :  { %6711 = vmatmul.mubr.msk.bf16.gmra.mrb[4].mxu0 %vm10001_vm13, %v434_v45  ;;  %vm10007_vm13 = vcmask 786048  }
 0x180   :  { %v6708_v47 = vpop.f32.mrb[0].mxu0 }
 0x181   :  { %v538_v48 = vadd.f32 %v6708_v47, %v6105_v46  ;;  %v529_v49 = vpop.f32.mrb[1].mxu0 }
 0x182   :  { %v530_v50 = vadd.f32 %v6105_v46, %v529_v49  ;;  %v6709_v51 = vpop.f32.mrb[2].mxu0  ;;  %v742_v49 = vld [vmem:[#allocation3 + $0x141] sm:$0xff] }
 0x183   :  { %vm562_vm14 = vcmp.ge.f32.partialorder %v538_v48, 0.0  ;;  %v570_v52 = vmul.f32 0.2, %v538_v48  ;;  %v541_v53 = vadd.f32 %v6709_v51, %v6105_v46  ;;  %v532_v54 = vpop.f32.mrb[3].mxu0  ;;  %v725_v51 = vld [vmem:[#allocation3 + $0x1e0] sm:$0xff] }
 0x184   :  { %vm560_vm15 = vcmp.ge.f32.partialorder %v530_v50, 0.0  ;;  %v568_v55 = vmul.f32 0.2, %v530_v50  ;;  %v533_v56 = vadd.f32 %v6105_v46, %v532_v54 }
 0x185   :  { %v578_v57 = vsel %vm562_vm14, %v538_v48, %v570_v52  ;;  %vm563_vm1 = vcmp.ge.f32.partialorder %v541_v53, 0.0  ;;  %v571_v58 = vmul.f32 0.2, %v541_v53  ;;  %v6837_v52 = vld [vmem:[%s9981_s3 + $0x28] sm:$0xff]  }
 0x186   :  { %v586_v59 = vmul.f32 1.4142135, %v578_v57  ;;  %v576_v60 = vsel %vm560_vm15, %v530_v50, %v568_v55  ;;  %vm561_vm4 = vcmp.ge.f32.partialorder %v533_v56, 0.0  ;;  %v569_v61 = vmul.f32 0.2, %v533_v56  ;;  %v775_v50 = vld [vmem:[#allocation3 + $0x1e1] sm:$0xff] }
 0x187   :  { %v584_v62 = vmul.f32 1.4142135, %v576_v60  ;;  %v579_v63 = vsel %vm563_vm1, %v541_v53, %v571_v58 }
 0x188   :  { %v6117_v1 = vclamps-f32 %v586_v59, 256.0  ;;  %v587_v2 = vmul.f32 1.4142135, %v579_v63  ;;  %v577_v3 = vsel %vm561_vm4, %v533_v56, %v569_v61  ;;  %v6838_v61 = vld [vmem:[%s9981_s3 + $0x30] sm:$0xff]  }
 0x189   :  { %v6115_v4 = vclamps-f32 %v584_v62, 256.0  ;;  %v585_v5 = vmul.f32 1.4142135, %v577_v3 }
 0x18a   :  { %611 = vst.msk [vmem:[#allocation3 + $0x31] sm:$0xff] %vm51_vm3, %v6117_v1  ;;  %v6118_v6 = vclamps-f32 %v587_v2, 256.0  ;;  %695 = vrot.lane.b32.xlu1 %v6117_v1, %s6927_s25  ;;  %662 = vrot.lane.b32.xlu0 %v6117_v1, %s6928_s26 }
 0x18b   :  { %609 = vst.msk [vmem:[#allocation3 + $0x11] sm:$0xff] %vm51_vm3, %v6115_v4  ;;  %v6116_v7 = vclamps-f32 %v585_v5, 256.0 }
 0x18c   :  { %612 = vst.msk [vmem:[#allocation3 + $0x41] sm:$0xff] %vm51_vm3, %v6118_v6 }
 0x18d   :  { %610 = vst.msk [vmem:[#allocation3 + $0x21] sm:$0xff] %vm51_vm3, %v6116_v7 }
 0x18e   :  { %691 = vrot.lane.b32.xlu1 %v6115_v4, %s6927_s25  ;;  %658 = vrot.lane.b32.xlu0 %v6115_v4, %s6928_s26 }
 0x191   :  { %v7374_v33 = vld [vmem:[#allocation3 + $0x31] sm:$0xff] }
 0x192   :  { %627 = vrot.lane.b32.xlu1 %v6116_v7, %s6929_s27  ;;  %625 = vrot.lane.b32.xlu0 %v6115_v4, %s6929_s27  ;;  %v841_v34 = vld [vmem:[#allocation3 + $0x11] sm:$0xff] }
 0x193   :  { %v7368_v31 = vld [vmem:[#allocation3 + $0x41] sm:$0xff] }
 0x194   :  { %v7370_v32 = vld [vmem:[#allocation3 + $0x21] sm:$0xff]  ;;  %v7378_v35 = vpack.c.bf16 %v7368_v31, %v7374_v33 }
 0x195   :  { %v7381_v36 = vpack.c.bf16 %v7370_v32, %v841_v34 }
 0x196   :  { %660 = vrot.lane.b32.xlu1 %v6116_v7, %s6928_s26  ;;  %693 = vrot.lane.b32.xlu0 %v6116_v7, %s6927_s25 }
 0x19a   :  { %631 = vrot.lane.b32.xlu1 %v6118_v6, %s6929_s27  ;;  %629 = vrot.lane.b32.xlu0 %v6117_v1, %s6929_s27 }
 0x19e   :  { %664 = vrot.lane.b32.xlu1 %v6118_v6, %s6928_s26  ;;  %697 = vrot.lane.b32.xlu0 %v6118_v6, %s6927_s25  ;;  %v6839_v6 = vld [vmem:[%s9981_s3 + $0x38] sm:$0xff]  }
 0x1a0   :  { %v6712_v8 = vpop.f32.mrb[4].mxu0 }
 0x1a1   :  { %v554_v9 = vadd.f32 %v6712_v8, %v6105_v46  ;;  %v545_v10 = vpop.f32.mrb[5].mxu0 }
 0x1a2   :  { %v546_v11 = vadd.f32 %v6105_v46, %v545_v10  ;;  %v6713_v12 = vpop.f32.mrb[6].mxu0 }
 0x1a3   :  { %vm566_vm14 = vcmp.ge.f32.partialorder %v554_v9, 0.0  ;;  %v574_v13 = vmul.f32 0.2, %v554_v9  ;;  %v557_v14 = vadd.f32 %v6713_v12, %v6105_v46  ;;  %v548_v0 = vpop.f32.mrb[7].mxu0 }
 0x1a4   :  { %vm564_vm15 = vcmp.ge.f32.partialorder %v546_v11, 0.0  ;;  %v572_v15 = vmul.f32 0.2, %v546_v11  ;;  %v549_v16 = vadd.f32 %v6105_v46, %v548_v0  ;;  %v6836_v46 = vld [vmem:[%s9981_s3 + $0x20] sm:$0xff]  }
 0x1a5   :  { %v582_v17 = vsel %vm566_vm14, %v554_v9, %v574_v13  ;;  %vm567_vm1 = vcmp.ge.f32.partialorder %v557_v14, 0.0  ;;  %v575_v18 = vmul.f32 0.2, %v557_v14  ;;  %1097 = vmatpush1.bf16.msra.mxu1 %v6836_v46  ;;  %vm770_vm14 = vcmask 261248  }
 0x1a6   :  { %v590_v19 = vmul.f32 1.4142135, %v582_v17  ;;  %v580_v20 = vsel %vm564_vm15, %v546_v11, %v572_v15  ;;  %vm565_vm4 = vcmp.ge.f32.partialorder %v549_v16, 0.0  ;;  %v573_v21 = vmul.f32 0.2, %v549_v16  ;;  %1098 = vmatprep.subr.bf16.mxu1 %v9987_v37  ;;  %v6840_v15 = vld [vmem:[%s9981_s3 + $0x40] sm:$0xff]  }
 0x1a7   :  { %v588_v22 = vmul.f32 1.4142135, %v580_v20  ;;  %v583_v23 = vsel %vm567_vm1, %v557_v14, %v575_v18  ;;  %vm803_vm15 = vcmask 392448   ;;  %vm836_vm1 = vcmask 523648  }
 0x1a8   :  { %v6121_v24 = vclamps-f32 %v590_v19, 256.0  ;;  %v591_v25 = vmul.f32 1.4142135, %v583_v23  ;;  %v581_v26 = vsel %vm565_vm4, %v549_v16, %v573_v21  ;;  %vm10004_vm4 = vcmask 654848  }
 0x1a9   :  { %v6119_v27 = vclamps-f32 %v588_v22, 256.0  ;;  %v589_v28 = vmul.f32 1.4142135, %v581_v26  ;;  %1099 = vmatpush1.bf16.msra.mxu1 %v6837_v52 }
 0x1aa   :  { %615 = vst.msk [vmem:[#allocation3 + $0x71] sm:$0xff] %vm51_vm3, %v6121_v24  ;;  %v6122_v29 = vclamps-f32 %v591_v25, 256.0  ;;  %703 = vrot.lane.b32.xlu1 %v6121_v24, %s6927_s25  ;;  %670 = vrot.lane.b32.xlu0 %v6121_v24, %s6928_s26 }
 0x1ab   :  { %613 = vst.msk [vmem:[#allocation3 + $0x51] sm:$0xff] %vm51_vm3, %v6119_v27  ;;  %v6120_v30 = vclamps-f32 %v589_v28, 256.0  ;;  %1100 = vmatprep.subr.bf16.mxu1 %v9987_v37 }
 0x1ac   :  { %616 = vst.msk [vmem:[#allocation3 + $0x81] sm:$0xff] %vm51_vm3, %v6122_v29 }
 0x1ad   :  { %614 = vst.msk [vmem:[#allocation3 + $0x61] sm:$0xff] %vm51_vm3, %v6120_v30  ;;  %1101 = vmatpush1.bf16.msra.mxu1 %v6838_v61 }
 0x1ae   :  { %699 = vrot.lane.b32.xlu1 %v6119_v27, %s6927_s25  ;;  %666 = vrot.lane.b32.xlu0 %v6119_v27, %s6928_s26 }
 0x1af   :  { %1102 = vmatprep.subr.bf16.mxu1 %v9987_v37 }
 0x1b1   :  { %1103 = vmatpush1.bf16.msra.mxu1 %v6839_v6  ;;  %v7510_v46 = vld [vmem:[#allocation3 + $0x71] sm:$0xff] }
 0x1b2   :  { %635 = vrot.lane.b32.xlu1 %v6120_v30, %s6929_s27  ;;  %633 = vrot.lane.b32.xlu0 %v6119_v27, %s6929_s27  ;;  %v2769_v6 = vld [vmem:[#allocation3 + $0x32] sm:$0xff] }
 0x1b3   :  { %1104 = vmatprep.subr.bf16.mxu1 %v9987_v37  ;;  %v7496_v39 = vld [vmem:[#allocation3 + $0x81] sm:$0xff] }
 0x1b4   :  { %v7547_v61 = vld [vmem:[#allocation3 + $0x61] sm:$0xff] }
 0x1b5   :  { %1105 = vmatpush1.bf16.msra.mxu1 %v6840_v15 }
 0x1b6   :  { %668 = vrot.lane.b32.xlu1 %v6120_v30, %s6928_s26  ;;  %701 = vrot.lane.b32.xlu0 %v6120_v30, %s6927_s25 }
 0x1ba   :  { %639 = vrot.lane.b32.xlu1 %v6122_v29, %s6929_s27  ;;  %637 = vrot.lane.b32.xlu0 %v6121_v24, %s6929_s27 }
 0x1be   :  { %672 = vrot.lane.b32.xlu1 %v6122_v29, %s6928_s26  ;;  %705 = vrot.lane.b32.xlu0 %v6122_v29, %s6927_s25 }
 0x1c2   :  { %859 = vrot.lane.b32.xlu0 %v7378_v35, %s6926_s20  ;;  %857 = vrot.lane.b32.xlu1 %v7381_v36, %s6926_s20 }
 0x1fc   :  { %v696_v41 = vpop.permute.xlu1 %695  ;;  %v663_v42 = vpop.permute.xlu0 %662 }
 0x1fd   :  { %718 = vst.msk [vmem:[#allocation3 + $0x211] sm:$0xff] %vm51_vm3, %v696_v41  ;;  %685 = vst.msk [vmem:[#allocation3 + $0x171] sm:$0xff] %vm51_vm3, %v663_v42 }
 0x200   :  { %v692_v44 = vpop.permute.xlu1 %691  ;;  %v659_v45 = vpop.permute.xlu0 %658 }
 0x201   :  { %716 = vst.msk [vmem:[#allocation3 + $0x1f1] sm:$0xff] %vm51_vm3, %v692_v44  ;;  %683 = vst.msk [vmem:[#allocation3 + $0x151] sm:$0xff] %vm51_vm3, %v659_v45 }
 0x204   :  { %v628_v47 = vpop.permute.xlu1 %627  ;;  %v626_v48 = vpop.permute.xlu0 %625  ;;  %v909_v14 = vld [vmem:[#allocation3 + $0x210] sm:$0xff] }
 0x205   :  { %651 = vst.msk [vmem:[#allocation3 + $0xc1] sm:$0xff] %vm51_vm3, %v628_v47  ;;  %650 = vst.msk [vmem:[#allocation3 + $0xb1] sm:$0xff] %vm51_vm3, %v626_v48  ;;  %v778_v22 = vld [vmem:[#allocation3 + $0x211] sm:$0xff] }
 0x206   :  { %v745_v30 = vld [vmem:[#allocation3 + $0x171] sm:$0xff] }
 0x207   :  { %v7512_v47 = vld [vmem:[#allocation3 + $0x172] sm:$0xff] }
 0x208   :  { %v661_v53 = vpop.permute.xlu1 %660  ;;  %v694_v54 = vpop.permute.xlu0 %693  ;;  %v743_v55 = vld [vmem:[#allocation3 + $0x151] sm:$0xff] }
 0x209   :  { %v776_v56 = vld [vmem:[#allocation3 + $0x1f1] sm:$0xff]  ;;  %684 = vst.msk [vmem:[#allocation3 + $0x161] sm:$0xff] %vm51_vm3, %v661_v53  ;;  %717 = vst.msk [vmem:[#allocation3 + $0x201] sm:$0xff] %vm51_vm3, %v694_v54  ;;  %v750_v57 = vpack.c.bf16 %v743_v55, %v742_v49 }
 0x20a   :  { %v7419_v58 = vpack.c.bf16 %v776_v56, %v775_v50  ;;  %v907_v59 = vld [vmem:[#allocation3 + $0x1f0] sm:$0xff] }
 0x20b   :  { %v733_v60 = vpack.c.bf16 %v907_v59, %v725_v51  ;;  %758 = vrot.lane.b32.xlu0 %v750_v57, %s6920_s24  ;;  %v7470_v21 = vld [vmem:[#allocation3 + $0x152] sm:$0xff]  ;;  %v7523_v51 = vpack.c.bf16 %v7496_v39, %v7510_v46 }
 0x20c   :  { %791 = vrot.lane.b32.xlu1 %v7419_v58, %s6922_s12  ;;  %v632_v62 = vpop.permute.xlu1 %631  ;;  %v630_v63 = vpop.permute.xlu0 %629  ;;  %v808_v1 = vld [vmem:[#allocation3 + $0xb0] sm:$0xff]  ;;  %v7428_v2 = vld [vmem:[#allocation3 + $0xc0] sm:$0xff] }
 0x20d   :  { %737 = vst.msk [vmem:[#allocation5] sm:$0xff] %vm51_vm3, %v733_v60  ;;  %653 = vst.msk [vmem:[#allocation3 + $0xe1] sm:$0xff] %vm51_vm3, %v632_v62  ;;  %v816_v3 = vpack.c.bf16 %v7428_v2, %v808_v1  ;;  %v874_v4 = vld [vmem:[#allocation3 + $0xb1] sm:$0xff]  ;;  %v875_v5 = vld [vmem:[#allocation3 + $0xc1] sm:$0xff] }
 0x20e   :  { %652 = vst.msk [vmem:[#allocation3 + $0xd1] sm:$0xff] %vm51_vm3, %v630_v63  ;;  %v7441_v10 = vpack.c.bf16 %v875_v5, %v874_v4  ;;  %v7514_v48 = vld [vmem:[#allocation3 + $0xc1] sm:$0xff] }
 0x20f   :  { %824 = vrot.lane.b32.xlu0 %v816_v3, %s6924_s18  ;;  %v2768_v62 = vld [vmem:[#allocation3 + $0x22] sm:$0xff] }
 0x210   :  { %v665_v7 = vpop.permute.xlu1 %664  ;;  %v698_v8 = vpop.permute.xlu0 %697  ;;  %v974_v9 = vld [vmem:[#allocation3 + $0x201] sm:$0xff] }
 0x211   :  { %686 = vst.msk [vmem:[#allocation3 + $0x181] sm:$0xff] %vm51_vm3, %v665_v7  ;;  %719 = vst.msk [vmem:[#allocation3 + $0x221] sm:$0xff] %vm51_vm3, %v698_v8  ;;  %v7443_v11 = vld [vmem:[#allocation3 + $0x161] sm:$0xff]  ;;  %v7445_v12 = vpack.c.bf16 %v974_v9, %v776_v56  ;;  %v7478_v25 = vpack.c.bf16 %v778_v22, %v974_v9  ;;  %v7555_v8 = vld [vmem:[#allocation3 + $0x51] sm:$0xff] }
 0x212   :  { %v908_v13 = vld [vmem:[#allocation3 + $0x200] sm:$0xff]  ;;  %v7461_v18 = vpack.c.bf16 %v7443_v11, %v743_v55  ;;  %v751_v45 = vpack.c.bf16 %v745_v30, %v7443_v11 }
 0x213   :  { %v734_v0 = vpack.c.bf16 %v909_v14, %v908_v13  ;;  %890 = vrot.lane.b32.xlu0 %v7441_v10, %s6927_s25  ;;  %985 = vst.msk [vmem:[#allocation5 + $0x8] sm:$0xff] %vm51_vm3, %v7445_v12  ;;  %v7465_v20 = vld [vmem:[#allocation3 + $0x162] sm:$0xff]  ;;  %v7485_v29 = vpack.c.bf16 %v908_v13, %v907_v59  ;;  %v2776_v13 = vpack.c.bf16 %v2769_v6, %v2768_v62  ;;  %v2771_v6 = vld [vmem:[#allocation3 + $0x52] sm:$0xff] }
 0x214   :  { %v7457_v17 = vld [vmem:[#allocation3 + $0xe0] sm:$0xff]  ;;  %v7476_v24 = vpack.c.bf16 %v7465_v20, %v7470_v21 }
 0x215   :  { %v7455_v16 = vld [vmem:[#allocation3 + $0xd0] sm:$0xff]  ;;  %738 = vst.msk [vmem:[#allocation5 + $0x10] sm:$0xff] %vm51_vm3, %v734_v0  ;;  %v877_v44 = vld [vmem:[#allocation3 + $0xe1] sm:$0xff] }
 0x216   :  { %v817_v19 = vpack.c.bf16 %v7457_v17, %v7455_v16  ;;  %v7500_v41 = vld [vmem:[#allocation3 + $0xd1] sm:$0xff] }
 0x217   :  { %956 = vrot.lane.b32.xlu0 %v7461_v18, %s6929_s27  ;;  %10028 = vst [vmem:[#allocation7_spill] sm:$0xff] %v7500_v41  ;;  %v7507_v43 = vld [vmem:[#allocation3 + $0xd1] sm:$0xff]  ;;  %v2178_v54 = vpack.c.bf16 %v7500_v41, %v7514_v48 }
 0x218   :  { %826 = vrot.lane.b32.xlu1 %v817_v19, %s6924_s18  ;;  %v7472_v23 = vld [vmem:[#allocation3 + $0x221] sm:$0xff]  ;;  %v7532_v55 = vpack.c.bf16 %v877_v44, %v7507_v43 }
 0x219   :  { %10027 = vst [vmem:[#allocation6_spill] sm:$0xff] %v7472_v23  ;;  %v7480_v26 = vld [vmem:[#allocation3 + $0x220] sm:$0xff]  ;;  %v7483_v27 = vpack.c.bf16 %v7472_v23, %v778_v22 }
 0x21a   :  { %v990_v28 = vld [vmem:[#allocation5 + $0x8] sm:$0xff]  ;;  %v7505_v42 = vpack.c.bf16 %v7480_v26, %v909_v14  ;;  %v7560_v14 = vpack.c.bf16 %v7547_v61, %v7555_v8 }
 0x21b   :  { %6133 = vmatprep.mubr.msk.bf16.mxu1 %vm51_vm3, %v990_v28  ;;  %1582 = vst.msk [vmem:[#allocation5 + $0x8] sm:$0xff] %vm51_vm3, %v7476_v24  ;;  %793 = vrot.lane.b32.xlu0 %v7478_v25, %s6922_s12  ;;  %986 = vst.msk [vmem:[#allocation5 + $0x18] sm:$0xff] %vm51_vm3, %v7483_v27  ;;  %v7498_v40 = vld [vmem:[#allocation3 + $0x182] sm:$0xff] }
 0x21c   :  { %923 = vrot.lane.b32.xlu1 %v7485_v29, %s6928_s26  ;;  %v704_v34 = vpop.permute.xlu1 %703  ;;  %v671_v38 = vpop.permute.xlu0 %670  ;;  %v943_v52 = vld [vmem:[#allocation3 + $0x181] sm:$0xff]  ;;  %v7527_v53 = vpack.c.bf16 %v7498_v40, %v7512_v47 }
 0x21d   :  { %722 = vst.msk [vmem:[#allocation3 + $0x251] sm:$0xff] %vm51_vm3, %v704_v34  ;;  %689 = vst.msk [vmem:[#allocation3 + $0x1b1] sm:$0xff] %vm51_vm3, %v671_v38  ;;  %v7549_v63 = vpack.c.bf16 %v943_v52, %v745_v30  ;;  %v7577_v34 = vld [vmem:[#allocation3 + $0xe1] sm:$0xff] }
 0x21e   :  { %10029 = vst [vmem:[#allocation8_spill] sm:$0xff] %v7527_v53  ;;  %10032 = vst [vmem:[#allocation11_spill] sm:$0xff] %v7577_v34 }
 0x21f   :  { %925 = vrot.lane.b32.xlu0 %v7505_v42, %s6928_s26 }
 0x220   :  { %760 = vrot.lane.b32.xlu1 %v751_v45, %s6920_s24  ;;  %v700_v49 = vpop.permute.xlu1 %699  ;;  %v667_v50 = vpop.permute.xlu0 %666 }
 0x221   :  { %720 = vst.msk [vmem:[#allocation3 + $0x231] sm:$0xff] %vm51_vm3, %v700_v49  ;;  %687 = vst.msk [vmem:[#allocation3 + $0x191] sm:$0xff] %vm51_vm3, %v667_v50 }
 0x222   :  { %v7534_v56 = vld [vmem:[#allocation5 + $0x18] sm:$0xff]  ;;  %v7536_v57 = vld [vmem:[#allocation5 + $0x8] sm:$0xff] }
 0x223   :  { %10030 = vst [vmem:[#allocation9_spill] sm:$0xff] %v7536_v57  ;;  %863 = vrot.lane.b32.xlu0 %v7523_v51, %s6926_s20  ;;  %1583 = vst.msk [vmem:[#allocation5 + $0x18] sm:$0xff] %vm51_vm3, %v7527_v53 }
 0x224   :  { %2182 = vst.msk [vmem:[#allocation5 + $0x8] sm:$0xff] %vm51_vm3, %v2178_v54  ;;  %892 = vrot.lane.b32.xlu1 %v7532_v55, %s6927_s25  ;;  %v636_v59 = vpop.permute.xlu1 %635  ;;  %v634_v60 = vpop.permute.xlu0 %633  ;;  %v782_v37 = vld [vmem:[#allocation3 + $0x251] sm:$0xff] }
 0x225   :  { %655 = vst.msk [vmem:[#allocation3 + $0x101] sm:$0xff] %vm51_vm3, %v636_v59  ;;  %654 = vst.msk [vmem:[#allocation3 + $0xf1] sm:$0xff] %vm51_vm3, %v634_v60 }
 0x228   :  { %958 = vrot.lane.b32.xlu1 %v7549_v63, %s6929_s27  ;;  %v669_v1 = vpop.permute.xlu1 %668  ;;  %v702_v3 = vpop.permute.xlu0 %701  ;;  %v747_v4 = vld [vmem:[#allocation3 + $0x191] sm:$0xff] }
 0x229   :  { %v911_v5 = vld [vmem:[#allocation3 + $0x230] sm:$0xff]  ;;  %688 = vst.msk [vmem:[#allocation3 + $0x1a1] sm:$0xff] %vm51_vm3, %v669_v1  ;;  %721 = vst.msk [vmem:[#allocation3 + $0x241] sm:$0xff] %vm51_vm3, %v702_v3  ;;  %v752_v7 = vpack.c.bf16 %v747_v4, %v943_v52 }
 0x22a   :  { %v735_v9 = vpack.c.bf16 %v911_v5, %v7480_v26  ;;  %v780_v0 = vld [vmem:[#allocation3 + $0x231] sm:$0xff] }
 0x22b   :  { %v7562_v15 = vld [vmem:[#allocation5 + $0x8] sm:$0xff]  ;;  %762 = vrot.lane.b32.xlu0 %v752_v7, %s6920_s24  ;;  %v7581_v44 = vld [vmem:[#allocation5 + $0x18] sm:$0xff]  ;;  %v7584_v45 = vpack.c.bf16 %v780_v0, %v7472_v23  ;;  %v913_v3 = vld [vmem:[#allocation3 + $0x250] sm:$0xff] }
 0x22c   :  { %10031 = vst [vmem:[#allocation10_spill] sm:$0xff] %v7562_v15  ;;  %739 = vst.msk [vmem:[#allocation5 + $0x20] sm:$0xff] %vm51_vm3, %v735_v9  ;;  %861 = vrot.lane.b32.xlu1 %v7560_v14, %s6926_s20  ;;  %v640_v19 = vpop.permute.xlu1 %639  ;;  %v638_v22 = vpop.permute.xlu0 %637  ;;  %v7569_v26 = vld [vmem:[#allocation3 + $0xf0] sm:$0xff]  ;;  %v7571_v28 = vld [vmem:[#allocation3 + $0x100] sm:$0xff] }
 0x22d   :  { %2780 = vst.msk [vmem:[#allocation5 + $0x8] sm:$0xff] %vm51_vm3, %v2776_v13  ;;  %657 = vst.msk [vmem:[#allocation3 + $0x121] sm:$0xff] %vm51_vm3, %v640_v19  ;;  %v818_v30 = vpack.c.bf16 %v7571_v28, %v7569_v26  ;;  %v7579_v38 = vld [vmem:[#allocation3 + $0xf1] sm:$0xff]  ;;  %v879_v50 = vld [vmem:[#allocation3 + $0x101] sm:$0xff] }
 0x22e   :  { %656 = vst.msk [vmem:[#allocation3 + $0x111] sm:$0xff] %vm51_vm3, %v638_v22  ;;  %10033 = vst [vmem:[#allocation12_spill] sm:$0xff] %v7579_v38  ;;  %v878_v49 = vld [vmem:[#allocation3 + $0xf1] sm:$0xff]  ;;  %v7588_v52 = vpack.c.bf16 %v7579_v38, %v7577_v34 }
 0x22f   :  { %10034 = vst [vmem:[#allocation13_spill] sm:$0xff] %v7581_v44  ;;  %828 = vrot.lane.b32.xlu0 %v818_v30, %s6924_s18  ;;  %v7597_v1 = vpack.c.bf16 %v879_v50, %v878_v49  ;;  %v7628_v57 = vld [vmem:[#allocation3 + $0x192] sm:$0xff] }
 0x230   :  { %10035 = vst [vmem:[#allocation14_spill] sm:$0xff] %v7588_v52  ;;  %795 = vrot.lane.b32.xlu1 %v7584_v45, %s6922_s12  ;;  %v673_v54 = vpop.permute.xlu1 %672  ;;  %v706_v59 = vpop.permute.xlu0 %705  ;;  %v781_v60 = vld [vmem:[#allocation3 + $0x241] sm:$0xff]  ;;  %2183 = vst.msk [vmem:[#allocation5 + $0x18] sm:$0xff] %vm51_vm3, %v7588_v52 }
 0x231   :  { %v912_v62 = vld [vmem:[#allocation3 + $0x240] sm:$0xff]  ;;  %690 = vst.msk [vmem:[#allocation3 + $0x1c1] sm:$0xff] %vm51_vm3, %v673_v54  ;;  %723 = vst.msk [vmem:[#allocation3 + $0x261] sm:$0xff] %vm51_vm3, %v706_v59  ;;  %v7599_v9 = vpack.c.bf16 %v781_v60, %v780_v0 }
 0x232   :  { %v945_v7 = vld [vmem:[#allocation3 + $0x1a1] sm:$0xff]  ;;  %v736_v13 = vpack.c.bf16 %v913_v3, %v912_v62 }
 0x233   :  { %894 = vrot.lane.b32.xlu0 %v7597_v1, %s6927_s25  ;;  %987 = vst.msk [vmem:[#allocation5 + $0x28] sm:$0xff] %vm51_vm3, %v7599_v9  ;;  %v7610_v30 = vpack.c.bf16 %v945_v7, %v747_v4  ;;  %v2770_v0 = vld [vmem:[#allocation3 + $0x42] sm:$0xff]  ;;  %v7624_v4 = vpack.c.bf16 %v782_v37, %v781_v60 }
 0x234   :  { %v7605_v22 = vld [vmem:[#allocation3 + $0x120] sm:$0xff]  ;;  %740 = vst.msk [vmem:[#allocation5 + $0x30] sm:$0xff] %vm51_vm3, %v736_v13  ;;  %v2777_v54 = vpack.c.bf16 %v2771_v6, %v2770_v0  ;;  %v7626_v13 = vpack.c.bf16 %v912_v62, %v911_v5  ;;  %v749_v0 = vld [vmem:[#allocation3 + $0x1b1] sm:$0xff] }
 0x235   :  { %v7603_v19 = vld [vmem:[#allocation3 + $0x110] sm:$0xff]  ;;  %v7614_v50 = vld [vmem:[#allocation3 + $0x1a2] sm:$0xff] }
 0x236   :  { %v819_v49 = vpack.c.bf16 %v7605_v22, %v7603_v19  ;;  %v880_v5 = vld [vmem:[#allocation3 + $0x111] sm:$0xff]  ;;  %v881_v62 = vld [vmem:[#allocation3 + $0x121] sm:$0xff] }
 0x237   :  { %960 = vrot.lane.b32.xlu0 %v7610_v30, %s6929_s27  ;;  %v7619_v59 = vld [vmem:[#allocation5 + $0x18] sm:$0xff]  ;;  %v7654_v52 = vld [vmem:[#allocation3 + $0x101] sm:$0xff]  ;;  %v7658_v34 = vpack.c.bf16 %v881_v62, %v880_v5 }
 0x238   :  { %830 = vrot.lane.b32.xlu1 %v819_v49, %s6924_s18  ;;  %10036 = vst [vmem:[#allocation15_spill] sm:$0xff] %v7619_v59  ;;  %v7621_v15 = vld [vmem:[#allocation3 + $0x261] sm:$0xff]  ;;  %2781 = vst.msk [vmem:[#allocation5 + $0x18] sm:$0xff] %vm51_vm3, %v2777_v54  ;;  %v7635_v49 = vpack.c.bf16 %v7614_v50, %v7628_v57  ;;  %v753_v59 = vpack.c.bf16 %v749_v0, %v945_v7  ;;  %v7656_v38 = vld [vmem:[#allocation3 + $0x111] sm:$0xff] }
 0x239   :  { %10037 = vst [vmem:[#allocation16_spill] sm:$0xff] %v7621_v15  ;;  %v914_v44 = vld [vmem:[#allocation3 + $0x260] sm:$0xff]  ;;  %v7631_v6 = vpack.c.bf16 %v7621_v15, %v782_v37  ;;  %v7649_v15 = vld [vmem:[#allocation3 + $0x1b2] sm:$0xff]  ;;  %10039 = vst [vmem:[#allocation18_spill] sm:$0xff] %v7654_v52 }
 0x23a   :  { %10038 = vst [vmem:[#allocation17_spill] sm:$0xff] %v7635_v49  ;;  %v7641_v60 = vld [vmem:[#allocation5 + $0x28] sm:$0xff]  ;;  %v7647_v54 = vpack.c.bf16 %v914_v44, %v913_v3  ;;  %10040 = vst [vmem:[#allocation19_spill] sm:$0xff] %v7656_v38  ;;  %v7667_v3 = vpack.c.bf16 %v7656_v38, %v7654_v52  ;;  %v2743_v38 = vld [vmem:[#allocation3 + $0x131] sm:$0xff] }
 0x23b   :  { %797 = vrot.lane.b32.xlu0 %v7624_v4, %s6922_s12  ;;  %988 = vst.msk [vmem:[#allocation5 + $0x38] sm:$0xff] %vm51_vm3, %v7631_v6  ;;  %1584 = vst.msk [vmem:[#allocation5 + $0x28] sm:$0xff] %vm51_vm3, %v7635_v49  ;;  %v1577_v37 = vld [vmem:[#allocation3 + $0x1c2] sm:$0xff] }
 0x23c   :  { %927 = vrot.lane.b32.xlu1 %v7626_v13, %s6928_s26  ;;  %v947_v53 = vld [vmem:[#allocation3 + $0x1c1] sm:$0xff]  ;;  %v7661_v49 = vpack.c.bf16 %v1577_v37, %v7649_v15  ;;  %10042 = vst [vmem:[#allocation21_spill] sm:$0xff] %v7667_v3 }
 0x23d   :  { %v1378_v5 = vld [vmem:[#allocation3 + $0x142] sm:$0xff] }
 0x23e   :  { %10041 = vst [vmem:[#allocation20_spill] sm:$0xff] %v7661_v49  ;;  %v1475_v62 = vld [vmem:[#allocation3 + $0x22] sm:$0xff] }
 0x23f   :  { %929 = vrot.lane.b32.xlu0 %v7647_v54, %s6928_s26  ;;  %v7681_v37 = vld [vmem:[#allocation3 + $0x121] sm:$0xff] }
 0x240   :  { %764 = vrot.lane.b32.xlu1 %v753_v59, %s6920_s24  ;;  %v7679_v59 = vpack.c.bf16 %v947_v53, %v749_v0  ;;  %v7691_v53 = vpack.c.bf16 %v2743_v38, %v7681_v37  ;;  %v2773_v0 = vld [vmem:[#allocation3 + $0x72] sm:$0xff]  ;;  %v1387_v38 = vpack.c.bf16 %v7512_v47, %v7465_v20 }
 0x241   :  { %v1476_v20 = vld [vmem:[#allocation3 + $0x32] sm:$0xff] }
 0x242   :  { %v7663_v44 = vld [vmem:[#allocation5 + $0x38] sm:$0xff]  ;;  %v7675_v7 = vld [vmem:[#allocation5 + $0x28] sm:$0xff] }
 0x243   :  { %1362 = vrot.lane.b32.xlu0 %v7419_v58, %s6920_s24  ;;  %1585 = vst.msk [vmem:[#allocation5 + $0x38] sm:$0xff] %vm51_vm3, %v7661_v49  ;;  %10043 = vst [vmem:[#allocation22_spill] sm:$0xff] %v7675_v7  ;;  %v2772_v58 = vld [vmem:[#allocation3 + $0x62] sm:$0xff]  ;;  %v1474_v49 = vld [vmem:[#allocation3 + $0x12] sm:$0xff]  ;;  %v1386_v7 = vpack.c.bf16 %v7470_v21, %v1378_v5 }
 0x244   :  { %896 = vrot.lane.b32.xlu1 %v7658_v34, %s6927_s25  ;;  %2184 = vst.msk [vmem:[#allocation5 + $0x28] sm:$0xff] %vm51_vm3, %v7667_v3  ;;  %v7687_v52 = vpack.c.bf16 %v1475_v62, %v1474_v49  ;;  %v2778_v41 = vpack.c.bf16 %v2773_v0, %v2772_v58  ;;  %v2774_v21 = vld [vmem:[#allocation3 + $0x82] sm:$0xff]  ;;  %v2775_v49 = vld [vmem:[#allocation3 + $0x92] sm:$0xff]  ;;  %v1388_v0 = vpack.c.bf16 %v7628_v57, %v7498_v40 }
 0x245   :  { %v2779_v5 = vpack.c.bf16 %v2775_v49, %v2774_v21  ;;  %v1479_v62 = vld [vmem:[#allocation3 + $0x62] sm:$0xff]  ;;  %v1389_v40 = vpack.c.bf16 %v7649_v15, %v7614_v50  ;;  %v860_v21 = vpop.permute.xlu0 %859  ;;  %v858_v49 = vpop.permute.xlu1 %857 }
 0x246   :  { %v1481_v57 = vld [vmem:[#allocation3 + $0x82] sm:$0xff] }
 0x247   :  { %1426 = vrot.lane.b32.xlu0 %v7381_v36, %s6924_s18 }
 0x248   :  { %962 = vrot.lane.b32.xlu1 %v7679_v59, %s6929_s27 }
 0x24a   :  { %v7693_v3 = vld [vmem:[#allocation5 + $0x38] sm:$0xff] }
 0x24b   :  { %1490 = vrot.lane.b32.xlu0 %v7687_v52, %s6927_s25  ;;  %2185 = vst.msk [vmem:[#allocation5 + $0x38] sm:$0xff] %vm51_vm3, %v7691_v53  ;;  %v7700_v23 = vld [vmem:[#allocation5 + $0x28] sm:$0xff] }
 0x24c   :  { %1394 = vrot.lane.b32.xlu1 %v1386_v7, %s6922_s12  ;;  %2782 = vst.msk [vmem:[#allocation5 + $0x28] sm:$0xff] %vm51_vm3, %v2778_v41  ;;  %v1477_v41 = vld [vmem:[#allocation3 + $0x42] sm:$0xff] }
 0x24d   :  { %v7723_v47 = vpack.c.bf16 %v1477_v41, %v1476_v20 }
 0x24f   :  { %1554 = vrot.lane.b32.xlu0 %v7445_v12, %s6929_s27 }
 0x250   :  { %1458 = vrot.lane.b32.xlu1 %v7441_v10, %s6926_s20 }
 0x252   :  { %v7709_v7 = vld [vmem:[#allocation5 + $0x38] sm:$0xff] }
 0x253   :  { %1396 = vrot.lane.b32.xlu0 %v1387_v38, %s6922_s12  ;;  %2783 = vst.msk [vmem:[#allocation5 + $0x38] sm:$0xff] %vm51_vm3, %v2779_v5 }
 0x254   :  { %1522 = vrot.lane.b32.xlu1 %v7461_v18, %s6928_s26 }
 0x257   :  { %1460 = vrot.lane.b32.xlu0 %v7532_v55, %s6926_s20 }
 0x258   :  { %1364 = vrot.lane.b32.xlu1 %v7478_v25, %s6920_s24  ;;  %v1478_v25 = vld [vmem:[#allocation3 + $0x52] sm:$0xff] }
 0x259   :  { %v7733_v58 = vpack.c.bf16 %v1479_v62, %v1478_v25  ;;  %v2147_v62 = vpack.c.bf16 %v7555_v8, %v7368_v31 }
 0x25b   :  { %1524 = vrot.lane.b32.xlu0 %v7549_v63, %s6928_s26 }
 0x25c   :  { %1428 = vrot.lane.b32.xlu1 %v7378_v35, %s6924_s18 }
 0x25f   :  { %1366 = vrot.lane.b32.xlu0 %v7584_v45, %s6920_s24  ;;  %v1480_v45 = vld [vmem:[#allocation3 + $0x72] sm:$0xff] }
 0x260   :  { %1492 = vrot.lane.b32.xlu1 %v7723_v47, %s6927_s25  ;;  %v7757_v38 = vpack.c.bf16 %v1481_v57, %v1480_v45  ;;  %v2115_v57 = vpack.c.bf16 %v7603_v19, %v7571_v28  ;;  %v7855_v19 = vld [vmem:[#allocation3 + $0x191] sm:$0xff] }
 0x263   :  { %1430 = vrot.lane.b32.xlu0 %v7560_v14, %s6924_s18 }
 0x264   :  { %1556 = vrot.lane.b32.xlu1 %v7483_v27, %s6929_s27 }
 0x267   :  { %1494 = vrot.lane.b32.xlu0 %v7733_v58, %s6927_s25 }
 0x268   :  { %1398 = vrot.lane.b32.xlu1 %v1388_v0, %s6922_s12  ;;  %v1332_v0 = vld [vmem:[#allocation3 + $0x161] sm:$0xff] }
 0x26b   :  { %1464 = vrot.lane.b32.xlu0 %v7658_v34, %s6926_s20 }
 0x26c   :  { %1432 = vrot.lane.b32.xlu1 %v7523_v51, %s6924_s18 }
 0x26f   :  { %1558 = vrot.lane.b32.xlu0 %v7599_v9, %s6929_s27 }
 0x270   :  { %1462 = vrot.lane.b32.xlu1 %v7597_v1, %s6926_s20 }
 0x273   :  { %1400 = vrot.lane.b32.xlu0 %v1389_v40, %s6922_s12 }
 0x274   :  { %1526 = vrot.lane.b32.xlu1 %v7610_v30, %s6928_s26 }
 0x277   :  { %1528 = vrot.lane.b32.xlu0 %v7679_v59, %s6928_s26 }
 0x278   :  { %1368 = vrot.lane.b32.xlu1 %v7624_v4, %s6920_s24 }
 0x27b   :  { %1960 = vrot.lane.b32.xlu0 %v7381_v36, %s6920_s24 }
 0x27c   :  { %1496 = vrot.lane.b32.xlu1 %v7757_v38, %s6927_s25 }
 0x27d   :  { %v759_v15 = vpop.permute.xlu0 %758 }
 0x27e   :  { %v792_v50 = vpop.permute.xlu1 %791  ;;  %771 = vst.msk [vmem:[#allocation5] sm:$0xff] %vm770_vm14, %v759_v15 }
 0x27f   :  { %804 = vst.msk [vmem:[#allocation5] sm:$0xff] %vm803_vm15, %v792_v50  ;;  %2024 = vrot.lane.b32.xlu0 %v7485_v29, %s6924_s18  ;;  %v2146_v29 = vpack.c.bf16 %v7374_v33, %v7370_v32  ;;  %v2114_v33 = vpack.c.bf16 %v7569_v26, %v7457_v17  ;;  %v2148_v26 = vpack.c.bf16 %v7510_v46, %v7547_v61  ;;  %v7825_v46 = vld [vmem:[#allocation3 + $0x171] sm:$0xff] }
 0x280   :  { %1560 = vrot.lane.b32.xlu1 %v7631_v6, %s6929_s27 }
 0x281   :  { %v825_v36 = vpop.permute.xlu0 %824 }
 0x282   :  { %837 = vst.msk [vmem:[#allocation5] sm:$0xff] %vm836_vm1, %v825_v36 }
 0x283   :  { %2088 = vrot.lane.b32.xlu0 %v7445_v12, %s6927_s25  ;;  %870 = vst.msk [vmem:[#allocation5] sm:$0xff] %vm10004_vm4, %v858_v49  ;;  %v2113_v12 = vpack.c.bf16 %v7455_v16, %v7428_v2 }
 0x284   :  { %1992 = vrot.lane.b32.xlu1 %v7441_v10, %s6922_s12 }
 0x285   :  { %v891_v4 = vpop.permute.xlu0 %890 }
 0x286   :  { %903 = vst.msk [vmem:[#allocation5] sm:$0xff] %vm10007_vm13, %v891_v4 }
 0x287   :  { %2154 = vrot.lane.b32.xlu0 %v2146_v29, %s6929_s27  ;;  %v2744_v29 = vpack.c.bf16 %v7507_v43, %v7514_v48  ;;  %v7898_v48 = vld [vmem:[#allocation3 + $0x31] sm:$0xff] }
 0x288   :  { %2056 = vrot.lane.b32.xlu1 %v7461_v18, %s6926_s20  ;;  %v1330_v18 = vld [vmem:[#allocation3 + $0x141] sm:$0xff] }
 0x289   :  { %v957_v5 = vpop.permute.xlu0 %956 }
 0x28a   :  { %v827_v41 = vpop.permute.xlu1 %826 }
 0x28b   :  { %1994 = vrot.lane.b32.xlu0 %v7532_v55, %s6922_s12  ;;  %v7798_v55 = vld [vmem:[#allocation3 + $0x151] sm:$0xff] }
 0x28c   :  { %2121 = vrot.lane.b32.xlu1 %v2113_v12, %s6928_s26  ;;  %v1338_v17 = vpack.c.bf16 %v7798_v55, %v1330_v18  ;;  %v2616_v49 = vpack.c.bf16 %v7443_v11, %v7798_v55  ;;  %v7892_v12 = vld [vmem:[#allocation3 + $0x21] sm:$0xff] }
 0x28d   :  { %v794_v20 = vpop.permute.xlu0 %793  ;;  %v10044_v55 = vld [vmem:[#allocation6_spill] sm:$0xff] }
 0x28e   :  { %v924_v32 = vpop.permute.xlu1 %923 }
 0x28f   :  { %936 = vst.msk [vmem:[#allocation5] sm:$0xff] %vm10005_vm2, %v924_v32  ;;  %2058 = vrot.lane.b32.xlu0 %v7549_v63, %s6926_s20 }
 0x290   :  { %1962 = vrot.lane.b32.xlu1 %v7378_v35, %s6920_s24  ;;  %969 = vst.msk [vmem:[#allocation5] sm:$0xff] %vm10006_vm12, %v957_v5  ;;  %v2640_v5 = vld [vmem:[#allocation3 + $0x1f1] sm:$0xff] }
 0x291   :  { %v926_v16 = vpop.permute.xlu0 %925 }
 0x292   :  { %v761_v2 = vpop.permute.xlu1 %760 }
 0x293   :  { %772 = vst.msk [vmem:[#allocation5 + $0x10] sm:$0xff] %vm770_vm14, %v761_v2  ;;  %2123 = vrot.lane.b32.xlu0 %v2114_v33, %s6928_s26  ;;  %v2712_v33 = vpack.c.bf16 %v7898_v48, %v7892_v12  ;;  %v2642_v2 = vld [vmem:[#allocation3 + $0x211] sm:$0xff] }
 0x294   :  { %2026 = vrot.lane.b32.xlu1 %v7505_v42, %s6924_s18  ;;  %805 = vst.msk [vmem:[#allocation5 + $0x10] sm:$0xff] %vm803_vm15, %v794_v20 }
 0x295   :  { %838 = vst.msk [vmem:[#allocation5 + $0x10] sm:$0xff] %vm836_vm1, %v827_v41  ;;  %v864_v63 = vpop.permute.xlu0 %863  ;;  %v2613_v41 = vld [vmem:[#allocation3 + $0x1a1] sm:$0xff] }
 0x296   :  { %871 = vst.msk [vmem:[#allocation5 + $0x10] sm:$0xff] %vm10004_vm4, %v860_v21  ;;  %v893_v35 = vpop.permute.xlu1 %892 }
 0x297   :  { %904 = vst.msk [vmem:[#allocation5 + $0x10] sm:$0xff] %vm10007_vm13, %v893_v35  ;;  %1964 = vrot.lane.b32.xlu0 %v7560_v14, %s6920_s24  ;;  %v989_v42 = vld [vmem:[#allocation5] sm:$0xff]  ;;  %v2649_v35 = vpack.c.bf16 %v10044_v55, %v2642_v2 }
 0x298   :  { %2090 = vrot.lane.b32.xlu1 %v7483_v27, %s6927_s25  ;;  %937 = vst.msk [vmem:[#allocation5 + $0x10] sm:$0xff] %vm10005_vm2, %v926_v16  ;;  %1121 = vmatmul.mubr.bf16.vlgmr.msra.gmra.mrb[0].mxu1 %v989_v42  ;;  %v10046_v42 = vld [vmem:[#allocation11_spill] sm:$0xff] }
 0x299   :  { %1342 = vst.msk [vmem:[#allocation5] sm:$0xff] %vm51_vm3, %v1338_v17  ;;  %6134 = vmatprep.mubr.msk.bf16.mxu1 %vm51_vm3, %v7534_v56  ;;  %v1339_v56 = vpack.c.bf16 %v7825_v46, %v1332_v0  ;;  %v10045_v17 = vld [vmem:[#allocation7_spill] sm:$0xff]  ;;  %v1929_v0 = vld [vmem:[#allocation3 + $0xc0] sm:$0xff] }
 0x29a   :  { %v959_v14 = vpop.permute.xlu1 %958 }
 0x29b   :  { %970 = vst.msk [vmem:[#allocation5 + $0x10] sm:$0xff] %vm10006_vm12, %v959_v14  ;;  %2158 = vrot.lane.b32.xlu0 %v2148_v26, %s6929_s27  ;;  %v7915_v26 = vld [vmem:[#allocation3 + $0x41] sm:$0xff] }
 0x29c   :  { %2156 = vrot.lane.b32.xlu1 %v2147_v62, %s6929_s27  ;;  %v2713_v14 = vpack.c.bf16 %v7555_v8, %v7915_v26  ;;  %v10047_v8 = vld [vmem:[#allocation8_spill] sm:$0xff] }
 0x29d   :  { %v763_v27 = vpop.permute.xlu0 %762 }
 0x29e   :  { %773 = vst.msk [vmem:[#allocation5 + $0x20] sm:$0xff] %vm770_vm14, %v763_v27  ;;  %v862_v25 = vpop.permute.xlu1 %861 }
 0x29f   :  { %2028 = vrot.lane.b32.xlu0 %v7626_v13, %s6924_s18 }
 0x2a0   :  { %1966 = vrot.lane.b32.xlu1 %v7523_v51, %s6920_s24 }
 0x2a1   :  { %v829_v31 = vpop.permute.xlu0 %828 }
 0x2a2   :  { %v796_v61 = vpop.permute.xlu1 %795  ;;  %v991_v40 = vld [vmem:[#allocation5 + $0x10] sm:$0xff] }
 0x2a3   :  { %806 = vst.msk [vmem:[#allocation5 + $0x20] sm:$0xff] %vm803_vm15, %v796_v61  ;;  %1129 = vmatmul.mubr.bf16.gmra.mrb[4].mxu1 %v991_v40  ;;  %2092 = vrot.lane.b32.xlu0 %v7599_v9, %s6927_s25 }
 0x2a4   :  { %1343 = vst.msk [vmem:[#allocation5 + $0x10] sm:$0xff] %vm51_vm3, %v1339_v56  ;;  %1996 = vrot.lane.b32.xlu1 %v7597_v1, %s6922_s12  ;;  %6135 = vmatprep.mubr.msk.bf16.mxu1 %vm51_vm3, %v7641_v60  ;;  %v2112_v1 = vld [vmem:[#allocation3 + $0x130] sm:$0xff] }
 0x2a5   :  { %839 = vst.msk [vmem:[#allocation5 + $0x20] sm:$0xff] %vm836_vm1, %v829_v31  ;;  %v895_v51 = vpop.permute.xlu0 %894  ;;  %v2116_v21 = vpack.c.bf16 %v2112_v1, %v7605_v22  ;;  %v7860_v22 = vld [vmem:[#allocation3 + $0x91] sm:$0xff] }
 0x2a6   :  { %872 = vst.msk [vmem:[#allocation5 + $0x20] sm:$0xff] %vm10004_vm4, %v862_v25  ;;  %v1928_v25 = vld [vmem:[#allocation3 + $0xb0] sm:$0xff] }
 0x2a7   :  { %905 = vst.msk [vmem:[#allocation5 + $0x20] sm:$0xff] %vm10007_vm13, %v895_v51  ;;  %1998 = vrot.lane.b32.xlu0 %v7658_v34, %s6922_s12  ;;  %v1936_v61 = vpack.c.bf16 %v1929_v0, %v1928_v25  ;;  %v1934_v0 = vld [vmem:[#allocation3 + $0x110] sm:$0xff] }
 0x2a8   :  { %2060 = vrot.lane.b32.xlu1 %v7610_v30, %s6926_s20  ;;  %v7865_v30 = vld [vmem:[#allocation3 + $0x181] sm:$0xff] }
 0x2a9   :  { %v961_v9 = vpop.permute.xlu0 %960  ;;  %v1340_v15 = vpack.c.bf16 %v7855_v19, %v7865_v30  ;;  %v2617_v27 = vpack.c.bf16 %v7865_v30, %v7825_v46  ;;  %v7949_v30 = vld [vmem:[#allocation3 + $0x71] sm:$0xff] }
 0x2aa   :  { %v831_v13 = vpop.permute.xlu1 %830 }
 0x2ab   :  { %2062 = vrot.lane.b32.xlu0 %v7679_v59, %s6926_s20 }
 0x2ac   :  { %2125 = vrot.lane.b32.xlu1 %v2115_v57, %s6928_s26 }
 0x2ad   :  { %v798_v60 = vpop.permute.xlu0 %797 }
 0x2ae   :  { %v928_v45 = vpop.permute.xlu1 %927 }
 0x2af   :  { %938 = vst.msk [vmem:[#allocation5 + $0x20] sm:$0xff] %vm10005_vm2, %v928_v45  ;;  %2127 = vrot.lane.b32.xlu0 %v2116_v21, %s6928_s26  ;;  %v2618_v45 = vpack.c.bf16 %v2613_v41, %v7855_v19  ;;  %v7945_v21 = vld [vmem:[#allocation3 + $0x61] sm:$0xff] }
 0x2b0   :  { %971 = vst.msk [vmem:[#allocation5 + $0x20] sm:$0xff] %vm10006_vm12, %v961_v9  ;;  %2030 = vrot.lane.b32.xlu1 %v7647_v54, %s6924_s18  ;;  %v10048_v9 = vld [vmem:[#allocation12_spill] sm:$0xff]  ;;  %v2714_v19 = vpack.c.bf16 %v7949_v30, %v7945_v21 }
 0x2b1   :  { %v930_v28 = vpop.permute.xlu0 %929 }
 0x2b2   :  { %v765_v34 = vpop.permute.xlu1 %764 }
 0x2b3   :  { %774 = vst.msk [vmem:[#allocation5 + $0x30] sm:$0xff] %vm770_vm14, %v765_v34  ;;  %2560 = vrot.lane.b32.xlu0 %v7441_v10, %s6920_s24  ;;  %v2149_v10 = vpack.c.bf16 %v7860_v22, %v7496_v39  ;;  %v2641_v39 = vld [vmem:[#allocation3 + $0x201] sm:$0xff] }
 0x2b4   :  { %807 = vst.msk [vmem:[#allocation5 + $0x30] sm:$0xff] %vm803_vm15, %v798_v60  ;;  %2094 = vrot.lane.b32.xlu1 %v7631_v6, %s6927_s25 }
 0x2b5   :  { %840 = vst.msk [vmem:[#allocation5 + $0x30] sm:$0xff] %vm836_vm1, %v831_v13  ;;  %v1363_v54 = vpop.permute.xlu0 %1362  ;;  %v10049_v13 = vld [vmem:[#allocation18_spill] sm:$0xff] }
 0x2b6   :  { %873 = vst.msk [vmem:[#allocation5 + $0x30] sm:$0xff] %vm10004_vm4, %v864_v63  ;;  %v897_v59 = vpop.permute.xlu1 %896  ;;  %v2553_v63 = vpack.c.bf16 %v10046_v42, %v10045_v17  ;;  %v2554_v57 = vpack.c.bf16 %v10049_v13, %v10048_v9  ;;  %v1933_v17 = vld [vmem:[#allocation3 + $0x100] sm:$0xff] }
 0x2b7   :  { %1374 = vst.msk [vmem:[#allocation5] sm:$0xff] %vm770_vm14, %v1363_v54  ;;  %v993_v6 = vld [vmem:[#allocation5 + $0x20] sm:$0xff]  ;;  %2624 = vrot.lane.b32.xlu0 %v2616_v49, %s6924_s18  ;;  %v1930_v54 = vld [vmem:[#allocation3 + $0xd0] sm:$0xff]  ;;  %v10051_v49 = vld [vmem:[#allocation17_spill] sm:$0xff] }
 0x2b8   :  { %906 = vst.msk [vmem:[#allocation5 + $0x30] sm:$0xff] %vm10007_vm13, %v897_v59  ;;  %1137 = vmatmul.mubr.bf16.gmra.mrb[8].mxu1 %v993_v6  ;;  %2160 = vrot.lane.b32.xlu1 %v2149_v10, %s6929_s27  ;;  %v1931_v59 = vld [vmem:[#allocation3 + $0xe0] sm:$0xff] }
 0x2b9   :  { %939 = vst.msk [vmem:[#allocation5 + $0x30] sm:$0xff] %vm10005_vm2, %v930_v28  ;;  %6136 = vmatprep.mubr.msk.bf16.mxu1 %vm51_vm3, %v7663_v44  ;;  %v1427_v11 = vpop.permute.xlu0 %1426  ;;  %v2648_v44 = vpack.c.bf16 %v2641_v39, %v2640_v5  ;;  %v10053_v39 = vld [vmem:[#allocation21_spill] sm:$0xff]  ;;  %v6841_v9 = vld [vmem:[%s9982_s5] sm:$0xff]  }
 0x2ba   :  { %1344 = vst.msk [vmem:[#allocation5 + $0x20] sm:$0xff] %vm51_vm3, %v1340_v15  ;;  %v963_v50 = vpop.permute.xlu1 %962  ;;  %v1937_v15 = vpack.c.bf16 %v1931_v59, %v1930_v54  ;;  %6714 = vmatprep.subr.bf16.mxu0 %v6841_v9 }
 0x2bb   :  { %972 = vst.msk [vmem:[#allocation5 + $0x30] sm:$0xff] %vm10006_vm12, %v963_v50  ;;  %2688 = vrot.lane.b32.xlu0 %v7476_v24, %s6927_s25  ;;  %v7894_v24 = vld [vmem:[#allocation3 + $0x1b1] sm:$0xff]  ;;  %6715 = vmatpush3.bf16.msra.mxu0 %v6841_v9 }
 0x2bc   :  { %2592 = vrot.lane.b32.xlu1 %v7687_v52, %s6922_s12  ;;  %v1341_v52 = vpack.c.bf16 %v7894_v24, %v2613_v41  ;;  %v10054_v41 = vld [vmem:[#allocation16_spill] sm:$0xff] }
 0x2bd   :  { %v1491_v36 = vpop.permute.xlu0 %1490 }
 0x2be   :  { %v1395_v4 = vpop.permute.xlu1 %1394 }
 0x2bf   :  { %1406 = vst.msk [vmem:[#allocation5] sm:$0xff] %vm803_vm15, %v1395_v4  ;;  %2752 = vrot.lane.b32.xlu0 %v2744_v29, %s6929_s27  ;;  %v2646_v4 = vld [vmem:[#allocation3 + $0x251] sm:$0xff] }
 0x2c0   :  { %1438 = vst.msk [vmem:[#allocation5] sm:$0xff] %vm836_vm1, %v1427_v11  ;;  %2656 = vrot.lane.b32.xlu1 %v2648_v44, %s6926_s20  ;;  %v10052_v11 = vld [vmem:[#allocation19_spill] sm:$0xff]  ;;  %v2651_v44 = vpack.c.bf16 %v10054_v41, %v2646_v4  ;;  %v2532_v41 = vld [vmem:[#allocation3 + $0x51] sm:$0xff] }
 0x2c1   :  { %v1555_v20 = vpop.permute.xlu0 %1554  ;;  %v2555_v50 = vpack.c.bf16 %v7681_v37, %v10052_v11  ;;  %v2615_v37 = vld [vmem:[#allocation3 + $0x1c1] sm:$0xff] }
 0x2c2   :  { %v1459_v32 = vpop.permute.xlu1 %1458  ;;  %v995_v43 = vld [vmem:[#allocation5 + $0x30] sm:$0xff] }
 0x2c3   :  { %1470 = vst.msk [vmem:[#allocation5] sm:$0xff] %vm10004_vm4, %v1459_v32  ;;  %1145 = vmatmul.mubr.bf16.gmra.mrb[12].mxu1 %v995_v43  ;;  %2594 = vrot.lane.b32.xlu0 %v7723_v47, %s6922_s12  ;;  %v7968_v32 = vld [vmem:[#allocation3 + $0x81] sm:$0xff] }
 0x2c4   :  { %1345 = vst.msk [vmem:[#allocation5 + $0x30] sm:$0xff] %vm51_vm3, %v1341_v52  ;;  %2720 = vrot.lane.b32.xlu1 %v2712_v33, %s6928_s26  ;;  %v2644_v52 = vld [vmem:[#allocation3 + $0x231] sm:$0xff]  ;;  %v2715_v2 = vpack.c.bf16 %v7860_v22, %v7968_v32 }
 0x2c5   :  { %1502 = vst.msk [vmem:[#allocation5] sm:$0xff] %vm10007_vm13, %v1491_v36  ;;  %v1397_v16 = vpop.permute.xlu0 %1396  ;;  %v2645_v36 = vld [vmem:[#allocation3 + $0x241] sm:$0xff]  ;;  %v10055_v22 = vld [vmem:[#allocation20_spill] sm:$0xff] }
 0x2c6   :  { %v1523_v18 = vpop.permute.xlu1 %1522 }
 0x2c7   :  { %1534 = vst.msk [vmem:[#allocation5] sm:$0xff] %vm10005_vm2, %v1523_v18  ;;  %2658 = vrot.lane.b32.xlu0 %v2649_v35, %s6926_s20  ;;  %v1932_v35 = vld [vmem:[#allocation3 + $0xf0] sm:$0xff] }
 0x2c8   :  { %1566 = vst.msk [vmem:[#allocation5] sm:$0xff] %vm10006_vm12, %v1555_v20  ;;  %2562 = vrot.lane.b32.xlu1 %v2553_v63, %s6920_s24  ;;  %v2650_v20 = vpack.c.bf16 %v2645_v36, %v2644_v52  ;;  %v1938_v63 = vpack.c.bf16 %v1933_v17, %v1932_v35  ;;  %v2538_v52 = vpack.c.bf16 %v7945_v21, %v2532_v41 }
 0x2c9   :  { %v1461_v47 = vpop.permute.xlu0 %1460  ;;  %v2539_v21 = vpack.c.bf16 %v7968_v32, %v7949_v30 }
 0x2ca   :  { %v1365_v62 = vpop.permute.xlu1 %1364 }
 0x2cb   :  { %1375 = vst.msk [vmem:[#allocation5 + $0x10] sm:$0xff] %vm770_vm14, %v1365_v62  ;;  %2722 = vrot.lane.b32.xlu0 %v2713_v14, %s6928_s26 }
 0x2cc   :  { %1407 = vst.msk [vmem:[#allocation5 + $0x10] sm:$0xff] %vm803_vm15, %v1397_v16  ;;  %2626 = vrot.lane.b32.xlu1 %v2617_v27, %s6924_s18  ;;  %v2619_v16 = vpack.c.bf16 %v2615_v37, %v7894_v24 }
 0x2cd   :  { %v1525_v31 = vpop.permute.xlu0 %1524 }
 0x2ce   :  { %v1429_v56 = vpop.permute.xlu1 %1428 }
 0x2cf   :  { %1439 = vst.msk [vmem:[#allocation5 + $0x10] sm:$0xff] %vm836_vm1, %v1429_v56  ;;  %v7926_v40 = vld [vmem:[#allocation5] sm:$0xff]  ;;  %2598 = vrot.lane.b32.xlu0 %v7757_v38, %s6922_s12 }
 0x2d0   :  { %1471 = vst.msk [vmem:[#allocation5 + $0x10] sm:$0xff] %vm10004_vm4, %v1461_v47  ;;  %2690 = vrot.lane.b32.xlu1 %v10047_v8, %s6927_s25  ;;  %v10050_v38 = vld [vmem:[#allocation14_spill] sm:$0xff] }
 0x2d1   :  { %1940 = vst.msk [vmem:[#allocation5] sm:$0xff] %vm51_vm3, %v1936_v61  ;;  %v1367_v46 = vpop.permute.xlu0 %1366 }
 0x2d2   :  { %v1493_v51 = vpop.permute.xlu1 %1492  ;;  %1376 = vst.msk [vmem:[#allocation5 + $0x20] sm:$0xff] %vm770_vm14, %v1367_v46 }
 0x2d3   :  { %1503 = vst.msk [vmem:[#allocation5 + $0x10] sm:$0xff] %vm10007_vm13, %v1493_v51  ;;  %2564 = vrot.lane.b32.xlu0 %v2554_v57, %s6920_s24 }
 0x2d4   :  { %1535 = vst.msk [vmem:[#allocation5 + $0x10] sm:$0xff] %vm10005_vm2, %v1525_v31  ;;  %2754 = vrot.lane.b32.xlu1 %v10050_v38, %s6929_s27  ;;  %v1935_v31 = vld [vmem:[#allocation3 + $0x120] sm:$0xff]  ;;  %v10056_v38 = vmov 0  }
 0x2d5   :  { %v1431_v1 = vpop.permute.xlu0 %1430  ;;  %v1939_v56 = vpack.c.bf16 %v1935_v31, %v1934_v0  ;;  %1685 = vmatprep.subr.bf16.mxu0 %v10056_v38 }
 0x2d6   :  { %v1557_v60 = vpop.permute.xlu1 %1556 }
 0x2d7   :  { %1567 = vst.msk [vmem:[#allocation5 + $0x10] sm:$0xff] %vm10006_vm12, %v1557_v60  ;;  %2628 = vrot.lane.b32.xlu0 %v2618_v45, %s6924_s18 }
 0x2d8   :  { %2596 = vrot.lane.b32.xlu1 %v7733_v58, %s6922_s12 }
 0x2d9   :  { %v1495_v28 = vpop.permute.xlu0 %1494 }
 0x2da   :  { %v1399_v34 = vpop.permute.xlu1 %1398 }
 0x2db   :  { %1408 = vst.msk [vmem:[#allocation5 + $0x20] sm:$0xff] %vm803_vm15, %v1399_v34  ;;  %2692 = vrot.lane.b32.xlu0 %v10051_v49, %s6927_s25 }
 0x2dc   :  { %1440 = vst.msk [vmem:[#allocation5 + $0x20] sm:$0xff] %vm836_vm1, %v1431_v1  ;;  %2724 = vrot.lane.b32.xlu1 %v2714_v19, %s6928_s26  ;;  %v2528_v1 = vld [vmem:[#allocation3 + $0x11] sm:$0xff] }
 0x2dd   :  { %v1465_v58 = vpop.permute.xlu0 %1464 }
 0x2de   :  { %v1433_v10 = vpop.permute.xlu1 %1432  ;;  %v7958_v6 = vld [vmem:[#allocation5 + $0x10] sm:$0xff] }
 0x2df   :  { %1941 = vst.msk [vmem:[#allocation5 + $0x10] sm:$0xff] %vm51_vm3, %v1937_v15  ;;  %2756 = vrot.lane.b32.xlu0 %v10053_v39, %s6929_s27 }
 0x2e0   :  { %2566 = vrot.lane.b32.xlu1 %v2555_v50, %s6920_s24 }
 0x2e1   :  { %v1559_v29 = vpop.permute.xlu0 %1558 }
 0x2e2   :  { %v1463_v5 = vpop.permute.xlu1 %1462 }
 0x2e3   :  { %1472 = vst.msk [vmem:[#allocation5 + $0x20] sm:$0xff] %vm10004_vm4, %v1463_v5  ;;  %2662 = vrot.lane.b32.xlu0 %v2651_v44, %s6926_s20 }
 0x2e4   :  { %1504 = vst.msk [vmem:[#allocation5 + $0x20] sm:$0xff] %vm10007_vm13, %v1495_v28  ;;  %2660 = vrot.lane.b32.xlu1 %v2650_v20, %s6926_s20  ;;  %v2536_v28 = vpack.c.bf16 %v7892_v12, %v2528_v1  ;;  %v8078_v1 = vld [vmem:[%s9983_s4] ss:$0 sm:$0xff] }
 0x2e5   :  { %v1401_v43 = vpop.permute.xlu0 %1400 }
 0x2e6   :  { %v1527_v33 = vpop.permute.xlu1 %1526 }
 0x2e7   :  { %1536 = vst.msk [vmem:[#allocation5 + $0x20] sm:$0xff] %vm10005_vm2, %v1527_v33  ;;  %2726 = vrot.lane.b32.xlu0 %v2715_v2, %s6928_s26 }
 0x2e8   :  { %1568 = vst.msk [vmem:[#allocation5 + $0x20] sm:$0xff] %vm10006_vm12, %v1559_v29  ;;  %2630 = vrot.lane.b32.xlu1 %v2619_v16, %s6924_s18 }
 0x2e9   :  { %v1529_v18 = vpop.permute.xlu0 %1528 }
 0x2ea   :  { %v1369_v55 = vpop.permute.xlu1 %1368 }
 0x2eb   :  { %1377 = vst.msk [vmem:[#allocation5 + $0x30] sm:$0xff] %vm770_vm14, %v1369_v55 }
 0x2ec   :  { %1409 = vst.msk [vmem:[#allocation5 + $0x30] sm:$0xff] %vm803_vm15, %v1401_v43  ;;  %2694 = vrot.lane.b32.xlu1 %v10055_v22, %s6927_s25 }
 0x2ed   :  { %1441 = vst.msk [vmem:[#allocation5 + $0x30] sm:$0xff] %vm836_vm1, %v1433_v10  ;;  %v1961_v24 = vpop.permute.xlu0 %1960 }
 0x2ee   :  { %1473 = vst.msk [vmem:[#allocation5 + $0x30] sm:$0xff] %vm10004_vm4, %v1465_v58  ;;  %v1497_v42 = vpop.permute.xlu1 %1496  ;;  %v2537_v58 = vpack.c.bf16 %v7915_v26, %v7898_v48 }
 0x2ef   :  { %1972 = vst.msk [vmem:[#allocation5] sm:$0xff] %vm770_vm14, %v1961_v24  ;;  %v7988_v47 = vld [vmem:[#allocation5 + $0x20] sm:$0xff] }
 0x2f0   :  { %1505 = vst.msk [vmem:[#allocation5 + $0x30] sm:$0xff] %vm10007_vm13, %v1497_v42  ;;  %2758 = vrot.lane.b32.xlu1 %v7691_v53, %s6929_s27 }
 0x2f1   :  { %1537 = vst.msk [vmem:[#allocation5 + $0x30] sm:$0xff] %vm10005_vm2, %v1529_v18  ;;  %v2025_v62 = vpop.permute.xlu0 %2024 }
 0x2f2   :  { %1942 = vst.msk [vmem:[#allocation5 + $0x20] sm:$0xff] %vm51_vm3, %v1938_v63  ;;  %v1561_v14 = vpop.permute.xlu1 %1560 }
 0x2f3   :  { %1569 = vst.msk [vmem:[#allocation5 + $0x30] sm:$0xff] %vm10006_vm12, %v1561_v14 }
 0x2f5   :  { %v2089_v27 = vpop.permute.xlu0 %2088 }
 0x2f6   :  { %v1993_v25 = vpop.permute.xlu1 %1992 }
 0x2f7   :  { %2004 = vst.msk [vmem:[#allocation5] sm:$0xff] %vm803_vm15, %v1993_v25 }
 0x2f8   :  { %2036 = vst.msk [vmem:[#allocation5] sm:$0xff] %vm836_vm1, %v2025_v62 }
 0x2f9   :  { %v2155_v61 = vpop.permute.xlu0 %2154 }
 0x2fa   :  { %v2057_v8 = vpop.permute.xlu1 %2056  ;;  %v7997_v46 = vld [vmem:[#allocation5 + $0x30] sm:$0xff] }
 0x2fb   :  { %2068 = vst.msk [vmem:[#allocation5] sm:$0xff] %vm10004_vm4, %v2057_v8 }
 0x2fc   :  { %1943 = vst.msk [vmem:[#allocation5 + $0x30] sm:$0xff] %vm51_vm3, %v1939_v56 }
 0x2fd   :  { %2100 = vst.msk [vmem:[#allocation5] sm:$0xff] %vm10007_vm13, %v2089_v27  ;;  %v1995_v53 = vpop.permute.xlu0 %1994 }
 0x2fe   :  { %v2122_v51 = vpop.permute.xlu1 %2121 }
 0x2ff   :  { %2133 = vst.msk [vmem:[#allocation5] sm:$0xff] %vm10005_vm2, %v2122_v51 }
 0x300   :  { %2166 = vst.msk [vmem:[#allocation5] sm:$0xff] %vm10006_vm12, %v2155_v61 }
 0x301   :  { %v2059_v13 = vpop.permute.xlu0 %2058 }
 0x302   :  { %v1963_v57 = vpop.permute.xlu1 %1962 }
 0x303   :  { %1973 = vst.msk [vmem:[#allocation5 + $0x10] sm:$0xff] %vm770_vm14, %v1963_v57 }
 0x304   :  { %2005 = vst.msk [vmem:[#allocation5 + $0x10] sm:$0xff] %vm803_vm15, %v1995_v53 }
 0x305   :  { %v2124_v60 = vpop.permute.xlu0 %2123 }
 0x306   :  { %v2027_v45 = vpop.permute.xlu1 %2026 }
 0x307   :  { %2037 = vst.msk [vmem:[#allocation5 + $0x10] sm:$0xff] %vm836_vm1, %v2027_v45  ;;  %v8012_v34 = vld [vmem:[#allocation5] sm:$0xff] }
 0x308   :  { %2069 = vst.msk [vmem:[#allocation5 + $0x10] sm:$0xff] %vm10004_vm4, %v2059_v13 }
 0x309   :  { %2540 = vst.msk [vmem:[#allocation5] sm:$0xff] %vm51_vm3, %v2536_v28  ;;  %v1965_v54 = vpop.permute.xlu0 %1964 }
 0x30a   :  { %v2091_v59 = vpop.permute.xlu1 %2090  ;;  %1974 = vst.msk [vmem:[#allocation5 + $0x20] sm:$0xff] %vm770_vm14, %v1965_v54 }
 0x30b   :  { %2101 = vst.msk [vmem:[#allocation5 + $0x10] sm:$0xff] %vm10007_vm13, %v2091_v59 }
 0x30c   :  { %2134 = vst.msk [vmem:[#allocation5 + $0x10] sm:$0xff] %vm10005_vm2, %v2124_v60 }
 0x30d   :  { %v2159_v19 = vpop.permute.xlu0 %2158 }
 0x30e   :  { %v2157_v49 = vpop.permute.xlu1 %2156 }
 0x30f   :  { %2167 = vst.msk [vmem:[#allocation5 + $0x10] sm:$0xff] %vm10006_vm12, %v2157_v49 }
 0x311   :  { %v2029_v12 = vpop.permute.xlu0 %2028 }
 0x312   :  { %v1967_v15 = vpop.permute.xlu1 %1966 }
 0x313   :  { %1975 = vst.msk [vmem:[#allocation5 + $0x30] sm:$0xff] %vm770_vm14, %v1967_v15 }
 0x315   :  { %v2093_v10 = vpop.permute.xlu0 %2092 }
 0x316   :  { %v8023_v11 = vld [vmem:[#allocation5 + $0x10] sm:$0xff]  ;;  %v1997_v50 = vpop.permute.xlu1 %1996 }
 0x317   :  { %2541 = vst.msk [vmem:[#allocation5 + $0x10] sm:$0xff] %vm51_vm3, %v2537_v58 }
 0x318   :  { %2006 = vst.msk [vmem:[#allocation5 + $0x20] sm:$0xff] %vm803_vm15, %v1997_v50 }
 0x319   :  { %2038 = vst.msk [vmem:[#allocation5 + $0x20] sm:$0xff] %vm836_vm1, %v2029_v12  ;;  %v1999_v39 = vpop.permute.xlu0 %1998 }
 0x31a   :  { %2007 = vst.msk [vmem:[#allocation5 + $0x30] sm:$0xff] %vm803_vm15, %v1999_v39  ;;  %v2061_v36 = vpop.permute.xlu1 %2060 }
 0x31b   :  { %2070 = vst.msk [vmem:[#allocation5 + $0x20] sm:$0xff] %vm10004_vm4, %v2061_v36 }
 0x31c   :  { %2102 = vst.msk [vmem:[#allocation5 + $0x20] sm:$0xff] %vm10007_vm13, %v2093_v10 }
 0x31d   :  { %v2063_v4 = vpop.permute.xlu0 %2062 }
 0x31e   :  { %v2126_v48 = vpop.permute.xlu1 %2125 }
 0x31f   :  { %2135 = vst.msk [vmem:[#allocation5 + $0x20] sm:$0xff] %vm10005_vm2, %v2126_v48 }
 0x320   :  { %2168 = vst.msk [vmem:[#allocation5 + $0x20] sm:$0xff] %vm10006_vm12, %v2159_v19 }
 0x321   :  { %v2128_v26 = vpop.permute.xlu0 %2127 }
 0x322   :  { %v2031_v29 = vpop.permute.xlu1 %2030 }
 0x323   :  { %2039 = vst.msk [vmem:[#allocation5 + $0x30] sm:$0xff] %vm836_vm1, %v2031_v29 }
 0x324   :  { %2071 = vst.msk [vmem:[#allocation5 + $0x30] sm:$0xff] %vm10004_vm4, %v2063_v4 }
 0x325   :  { %v2561_v5 = vpop.permute.xlu0 %2560 }
 0x326   :  { %2572 = vst.msk [vmem:[#allocation5] sm:$0xff] %vm770_vm14, %v2561_v5  ;;  %v2095_v44 = vpop.permute.xlu1 %2094 }
 0x327   :  { %2103 = vst.msk [vmem:[#allocation5 + $0x30] sm:$0xff] %vm10007_vm13, %v2095_v44  ;;  %v8038_v20 = vld [vmem:[#allocation5 + $0x20] sm:$0xff] }
 0x328   :  { %2136 = vst.msk [vmem:[#allocation5 + $0x30] sm:$0xff] %vm10005_vm2, %v2128_v26 }
 0x329   :  { %2542 = vst.msk [vmem:[#allocation5 + $0x20] sm:$0xff] %vm51_vm3, %v2538_v52  ;;  %v2625_v37 = vpop.permute.xlu0 %2624 }
 0x32a   :  { %v2161_v43 = vpop.permute.xlu1 %2160 }
 0x32b   :  { %2169 = vst.msk [vmem:[#allocation5 + $0x30] sm:$0xff] %vm10006_vm12, %v2161_v43 }
 0x32d   :  { %v2689_v33 = vpop.permute.xlu0 %2688 }
 0x32e   :  { %v2593_v2 = vpop.permute.xlu1 %2592 }
 0x32f   :  { %2604 = vst.msk [vmem:[#allocation5] sm:$0xff] %vm803_vm15, %v2593_v2 }
 0x330   :  { %2636 = vst.msk [vmem:[#allocation5] sm:$0xff] %vm836_vm1, %v2625_v37 }
 0x331   :  { %v2753_v16 = vpop.permute.xlu0 %2752 }
 0x332   :  { %v2657_v18 = vpop.permute.xlu1 %2656  ;;  %v8047_v55 = vld [vmem:[#allocation5 + $0x30] sm:$0xff] }
 0x333   :  { %2668 = vst.msk [vmem:[#allocation5] sm:$0xff] %vm10004_vm4, %v2657_v18 }
 0x334   :  { %2543 = vst.msk [vmem:[#allocation5 + $0x30] sm:$0xff] %vm51_vm3, %v2539_v21 }
 0x335   :  { %2700 = vst.msk [vmem:[#allocation5] sm:$0xff] %vm10007_vm13, %v2689_v33  ;;  %v2595_v35 = vpop.permute.xlu0 %2594 }
 0x336   :  { %v2721_v17 = vpop.permute.xlu1 %2720 }
 0x337   :  { %2732 = vst.msk [vmem:[#allocation5] sm:$0xff] %vm10005_vm2, %v2721_v17 }
 0x338   :  { %2764 = vst.msk [vmem:[#allocation5] sm:$0xff] %vm10006_vm12, %v2753_v16 }
 0x339   :  { %v2659_v22 = vpop.permute.xlu0 %2658 }
 0x33a   :  { %v2563_v24 = vpop.permute.xlu1 %2562 }
 0x33b   :  { %2573 = vst.msk [vmem:[#allocation5 + $0x10] sm:$0xff] %vm770_vm14, %v2563_v24  ;;  %v6844_v24 = vld [vmem:[%s9981_s3 + $0x10] sm:$0xff]  }
 0x33c   :  { %2605 = vst.msk [vmem:[#allocation5 + $0x10] sm:$0xff] %vm803_vm15, %v2595_v35  ;;  %v6842_v35 = vld [vmem:[%s9981_s3] sm:$0xff]  }
 0x33d   :  { %v2723_v30 = vpop.permute.xlu0 %2722 }
 0x33e   :  { %v2627_v32 = vpop.permute.xlu1 %2626 }
 0x33f   :  { %2637 = vst.msk [vmem:[#allocation5 + $0x10] sm:$0xff] %vm836_vm1, %v2627_v32 }
 0x340   :  { %2669 = vst.msk [vmem:[#allocation5 + $0x10] sm:$0xff] %vm10004_vm4, %v2659_v22  ;;  %v6843_v22 = vld [vmem:[%s9981_s3 + $0x8] sm:$0xff]  }
 0x341   :  { %v2599_v42 = vpop.permute.xlu0 %2598 }
 0x342   :  { %v2691_v63 = vpop.permute.xlu1 %2690 }
 0x343   :  { %2701 = vst.msk [vmem:[#allocation5 + $0x10] sm:$0xff] %vm10007_vm13, %v2691_v63 }
 0x344   :  { %2733 = vst.msk [vmem:[#allocation5 + $0x10] sm:$0xff] %vm10005_vm2, %v2723_v30 }
 0x345   :  { %v2565_v62 = vpop.permute.xlu0 %2564 }
 0x346   :  { %2574 = vst.msk [vmem:[#allocation5 + $0x20] sm:$0xff] %vm770_vm14, %v2565_v62  ;;  %v2755_v14 = vpop.permute.xlu1 %2754 }
 0x347   :  { %2765 = vst.msk [vmem:[#allocation5 + $0x10] sm:$0xff] %vm10006_vm12, %v2755_v14 }
 0x349   :  { %v2629_v27 = vpop.permute.xlu0 %2628 }
 0x34a   :  { %v2597_v25 = vpop.permute.xlu1 %2596 }
 0x34b   :  { %2606 = vst.msk [vmem:[#allocation5 + $0x20] sm:$0xff] %vm803_vm15, %v2597_v25  ;;  %v6845_v25 = vld [vmem:[%s9981_s3 + $0x18] sm:$0xff]  }
 0x34c   :  { %2638 = vst.msk [vmem:[#allocation5 + $0x20] sm:$0xff] %vm836_vm1, %v2629_v27 }
 0x34d   :  { %v2693_v0 = vpop.permute.xlu0 %2692 }
 0x34e   :  { %v2725_v31 = vpop.permute.xlu1 %2724 }
 0x351   :  { %v2757_v61 = vpop.permute.xlu0 %2756 }
 0x352   :  { %v2567_v56 = vpop.permute.xlu1 %2566 }
 0x353   :  { %2575 = vst.msk [vmem:[#allocation5 + $0x30] sm:$0xff] %vm770_vm14, %v2567_v56 }
 0x354   :  { %2607 = vst.msk [vmem:[#allocation5 + $0x30] sm:$0xff] %vm803_vm15, %v2599_v42 }
 0x355   :  { %v2663_v53 = vpop.permute.xlu0 %2662 }
 0x356   :  { %v2661_v8 = vpop.permute.xlu1 %2660 }
 0x357   :  { %2670 = vst.msk [vmem:[#allocation5 + $0x20] sm:$0xff] %vm10004_vm4, %v2661_v8  ;;  %v6846_v8 = vld [vmem:[%s9981_s3 + $0x20] sm:$0xff]  }
 0x358   :  { %2702 = vst.msk [vmem:[#allocation5 + $0x20] sm:$0xff] %vm10007_vm13, %v2693_v0 }
 0x359   :  { %2734 = vst.msk [vmem:[#allocation5 + $0x20] sm:$0xff] %vm10005_vm2, %v2725_v31  ;;  %v2727_v13 = vpop.permute.xlu0 %2726 }
 0x35a   :  { %2766 = vst.msk [vmem:[#allocation5 + $0x20] sm:$0xff] %vm10006_vm12, %v2757_v61  ;;  %v2631_v51 = vpop.permute.xlu1 %2630 }
 0x35b   :  { %2639 = vst.msk [vmem:[#allocation5 + $0x30] sm:$0xff] %vm836_vm1, %v2631_v51 }
 0x35c   :  { %2671 = vst.msk [vmem:[#allocation5 + $0x30] sm:$0xff] %vm10004_vm4, %v2663_v53 }
 0x35e   :  { %v2695_v9 = vpop.permute.xlu1 %2694 }
 0x35f   :  { %2703 = vst.msk [vmem:[#allocation5 + $0x30] sm:$0xff] %vm10007_vm13, %v2695_v9 }
 0x360   :  { %2735 = vst.msk [vmem:[#allocation5 + $0x30] sm:$0xff] %vm10005_vm2, %v2727_v13 }
 0x362   :  { %v2759_v57 = vpop.permute.xlu1 %2758 }
 0x363   :  { %2767 = vst.msk [vmem:[#allocation5 + $0x30] sm:$0xff] %vm10006_vm12, %v2759_v57  ;;  %v6847_v57 = vld [vmem:[%s9981_s3 + $0x28] sm:$0xff]  }
 0x36b   :  { %v1122_v60 = vpop.f32.mrb[0].mxu1 }
 0x36c   :  { %v1123_v45 = vadd.f32 %v8078_v1, %v1122_v60  ;;  %v1124_v28 = vpop.f32.mrb[1].mxu1 }
 0x36d   :  { %v1125_v54 = vpop.f32.mrb[2].mxu1 }
 0x36e   :  { %vm1153_vm4 = vcmp.ge.f32.partialorder %v1123_v45, 0.0  ;;  %v1161_v59 = vmul.f32 0.2, %v1123_v45  ;;  %v1126_v19 = vadd.f32 %v8078_v1, %v1125_v54  ;;  %v1127_v49 = vpop.f32.mrb[3].mxu1 }
 0x370   :  { %v1169_v12 = vsel %vm1153_vm4, %v1123_v45, %v1161_v59  ;;  %vm1154_vm2 = vcmp.ge.f32.partialorder %v1126_v19, 0.0  ;;  %v1162_v15 = vmul.f32 0.2, %v1126_v19 }
 0x371   :  { %v1177_v58 = vmul.f32 1.4142135, %v1169_v12  ;;  %v6848_v12 = vld [vmem:[%s9981_s3 + $0x30] sm:$0xff]  }
 0x372   :  { %v1170_v10 = vsel %vm1154_vm2, %v1126_v19, %v1162_v15 }
 0x373   :  { %v6137_v50 = vclamps-f32 %v1177_v58, 256.0  ;;  %v1178_v39 = vmul.f32 1.4142135, %v1170_v10 }
 0x375   :  { %1201 = vst.msk [vmem:[%s9984_s7] sm:$0xff] %vm51_vm3, %v6137_v50  ;;  %v6138_v36 = vclamps-f32 %v1178_v39, 256.0 }
 0x376   :  { %v1130_v4 = vpop.f32.mrb[4].mxu1 }
 0x377   :  { %1202 = vst.msk [vmem:[%s9984_s7 + $0x8] sm:$0xff] %vm51_vm3, %v6138_v36  ;;  %v1131_v48 = vadd.f32 %v8078_v1, %v1130_v4  ;;  %v1132_v26 = vpop.f32.mrb[5].mxu1  ;;  %v1209_v29 = vpack.c.bf16 %v6138_v36, %v6137_v50  ;;  %v6849_v4 = vld [vmem:[%s9981_s3 + $0x38] sm:$0xff]  }
 0x378   :  { %v1133_v5 = vpop.f32.mrb[6].mxu1 }
 0x379   :  { %vm1155_vm2 = vcmp.ge.f32.partialorder %v1131_v48, 0.0  ;;  %v1163_v41 = vmul.f32 0.2, %v1131_v48  ;;  %v1134_v44 = vadd.f32 %v8078_v1, %v1133_v5  ;;  %v1135_v52 = vpop.f32.mrb[7].mxu1  ;;  %6716 = vmatprep.mubr.msk.bf16.mxu0 %vm51_vm3, %v1209_v29  ;;  %v6850_v29 = vld [vmem:[%s9981_s3 + $0x40] sm:$0xff]   ;;  %v10057_v5 = vld [vmem:[#allocation9_spill] sm:$0xff] }
 0x37a   :  { %v6851_v52 = vld [vmem:[%s9982_s5] sm:$0xff]  }
 0x37b   :  { %v1171_v37 = vsel %vm1155_vm2, %v1131_v48, %v1163_v41  ;;  %vm1156_vm4 = vcmp.ge.f32.partialorder %v1134_v44, 0.0  ;;  %v1164_v43 = vmul.f32 0.2, %v1134_v44  ;;  %v10058_v41 = vld [vmem:[#allocation13_spill] sm:$0xff]  ;;  %6724 = vmatprep.subr.bf16.mxu1 %v6851_v52 }
 0x37c   :  { %v1179_v33 = vmul.f32 1.4142135, %v1171_v37  ;;  %6725 = vmatpush3.bf16.msra.mxu1 %v6851_v52 }
 0x37d   :  { %v1172_v2 = vsel %vm1156_vm4, %v1134_v44, %v1164_v43  ;;  %v10059_v44 = vld [vmem:[#allocation22_spill] sm:$0xff]  ;;  %2285 = vmatprep.subr.bf16.mxu1 %v10056_v38 }
 0x37e   :  { %v6139_v16 = vclamps-f32 %v1179_v33, 256.0  ;;  %v1180_v21 = vmul.f32 1.4142135, %v1172_v2 }
 0x380   :  { %1203 = vst.msk [vmem:[%s9984_s7 + $0x10] sm:$0xff] %vm51_vm3, %v6139_v16  ;;  %v6140_v18 = vclamps-f32 %v1180_v21, 256.0 }
 0x382   :  { %1204 = vst.msk [vmem:[%s9984_s7 + $0x18] sm:$0xff] %vm51_vm3, %v6140_v18  ;;  %v1210_v17 = vpack.c.bf16 %v6140_v18, %v6139_v16 }
 0x384   :  { %6717 = vmatmul.mubr.msk.bf16.vlgmr.msra.gmra.mrb[8].mxu0 %vm51_vm3, %v1210_v17 }
 0x385   :  { %1686 = vmatpush1.bf16.msra.mxu0 %v6842_v35 }
 0x386   :  { %1687 = vmatprep.subr.bf16.mxu0 %v10056_v38 }
 0x389   :  { %1688 = vmatpush1.bf16.msra.mxu0 %v6843_v22 }
 0x38a   :  { %1689 = vmatprep.subr.bf16.mxu0 %v10056_v38 }
 0x38b   :  { %v1138_v30 = vpop.f32.mrb[8].mxu1 }
 0x38c   :  { %v1139_v32 = vadd.f32 %v8078_v1, %v1138_v30  ;;  %v1140_v42 = vpop.f32.mrb[9].mxu1 }
 0x38d   :  { %v1141_v63 = vpop.f32.mrb[10].mxu1  ;;  %1690 = vmatpush1.bf16.msra.mxu0 %v6844_v24 }
 0x38e   :  { %vm1157_vm2 = vcmp.ge.f32.partialorder %v1139_v32, 0.0  ;;  %v1165_v62 = vmul.f32 0.2, %v1139_v32  ;;  %v1142_v14 = vadd.f32 %v8078_v1, %v1141_v63  ;;  %v1143_v27 = vpop.f32.mrb[11].mxu1  ;;  %1691 = vmatprep.subr.bf16.mxu0 %v10056_v38 }
 0x390   :  { %v1173_v0 = vsel %vm1157_vm2, %v1139_v32, %v1165_v62  ;;  %vm1158_vm4 = vcmp.ge.f32.partialorder %v1142_v14, 0.0  ;;  %v1166_v31 = vmul.f32 0.2, %v1142_v14 }
 0x391   :  { %v1181_v56 = vmul.f32 1.4142135, %v1173_v0  ;;  %1692 = vmatpush1.bf16.msra.mxu0 %v6845_v25 }
 0x392   :  { %v1174_v61 = vsel %vm1158_vm4, %v1142_v14, %v1166_v31  ;;  %1693 = vmatprep.subr.bf16.mxu0 %v10056_v38 }
 0x393   :  { %v6141_v53 = vclamps-f32 %v1181_v56, 256.0  ;;  %v1182_v51 = vmul.f32 1.4142135, %v1174_v61 }
 0x395   :  { %1205 = vst.msk [vmem:[%s9984_s7 + $0x20] sm:$0xff] %vm51_vm3, %v6141_v53  ;;  %v6142_v9 = vclamps-f32 %v1182_v51, 256.0  ;;  %1694 = vmatpush1.bf16.msra.mxu0 %v6846_v8 }
 0x396   :  { %v1146_v13 = vpop.f32.mrb[12].mxu1  ;;  %1695 = vmatprep.subr.bf16.mxu0 %v10056_v38 }
 0x397   :  { %1206 = vst.msk [vmem:[%s9984_s7 + $0x28] sm:$0xff] %vm51_vm3, %v6142_v9  ;;  %v1147_v60 = vadd.f32 %v8078_v1, %v1146_v13  ;;  %v1148_v45 = vpop.f32.mrb[13].mxu1  ;;  %v1211_v28 = vpack.c.bf16 %v6142_v9, %v6141_v53 }
 0x398   :  { %v1149_v54 = vpop.f32.mrb[14].mxu1 }
 0x399   :  { %vm1159_vm2 = vcmp.ge.f32.partialorder %v1147_v60, 0.0  ;;  %v1167_v59 = vmul.f32 0.2, %v1147_v60  ;;  %v1150_v19 = vadd.f32 %v8078_v1, %v1149_v54  ;;  %v1151_v49 = vpop.f32.mrb[15].mxu1  ;;  %6720 = vmatprep.mubr.msk.bf16.mxu0 %vm51_vm3, %v1211_v28  ;;  %1696 = vmatpush1.bf16.msra.mxu0 %v6847_v57 }
 0x39a   :  { %1697 = vmatprep.subr.bf16.mxu0 %v10056_v38 }
 0x39b   :  { %v1175_v15 = vsel %vm1159_vm2, %v1147_v60, %v1167_v59  ;;  %vm1160_vm4 = vcmp.ge.f32.partialorder %v1150_v19, 0.0  ;;  %v1168_v58 = vmul.f32 0.2, %v1150_v19  ;;  %vm1321_vm2 = vcmask 23552  }
 0x39c   :  { %v1183_v10 = vmul.f32 1.4142135, %v1175_v15 }
 0x39d   :  { %v1176_v50 = vsel %vm1160_vm4, %v1150_v19, %v1168_v58  ;;  %1698 = vmatpush1.bf16.msra.mxu0 %v6848_v12 }
 0x39e   :  { %v6143_v39 = vclamps-f32 %v1183_v10, 256.0  ;;  %v1184_v36 = vmul.f32 1.4142135, %v1176_v50  ;;  %1699 = vmatprep.subr.bf16.mxu0 %v10056_v38 }
 0x3a0   :  { %1207 = vst.msk [vmem:[%s9984_s7 + $0x30] sm:$0xff] %vm51_vm3, %v6143_v39  ;;  %v6144_v48 = vclamps-f32 %v1184_v36, 256.0 }
 0x3a1   :  { %1700 = vmatpush1.bf16.msra.mxu0 %v6849_v4 }
 0x3a2   :  { %1208 = vst.msk [vmem:[%s9984_s7 + $0x38] sm:$0xff] %vm51_vm3, %v6144_v48  ;;  %v1212_v26 = vpack.c.bf16 %v6144_v48, %v6143_v39  ;;  %1701 = vmatprep.subr.bf16.mxu0 %v10056_v38 }
 0x3a4   :  { %6721 = vmatmul.mubr.msk.bf16.gmra.mrb[12].mxu0 %vm51_vm3, %v1212_v26 }
 0x3a5   :  { %6169 = vmatprep.mubr.msk.bf16.mxu0 %vm51_vm3, %v10057_v5  ;;  %1702 = vmatpush1.bf16.msra.mxu0 %v6850_v29 }
 0x3ac   :  { %1718 = vmatmul.mubr.bf16.vlgmr.msra.gmra.mrb[16].mxu0 %v7926_v40  ;;  %v8178_v40 = vld [vmem:[%s9985_s6] ss:$0 sm:$0xff] }
 0x3ad   :  { %6170 = vmatprep.mubr.msk.bf16.mxu0 %vm51_vm3, %v10058_v41 }
 0x3b4   :  { %1726 = vmatmul.mubr.bf16.gmra.mrb[20].mxu0 %v7958_v6 }
 0x3b5   :  { %6171 = vmatprep.mubr.msk.bf16.mxu0 %vm51_vm3, %v10059_v44 }
 0x3bc   :  { %1734 = vmatmul.mubr.bf16.gmra.mrb[24].mxu0 %v7988_v47 }
 0x3bd   :  { %6172 = vmatprep.mubr.msk.bf16.mxu0 %vm51_vm3, %v7693_v3 }
 0x3c4   :  { %1742 = vmatmul.mubr.bf16.gmra.mrb[28].mxu0 %v7997_v46 }
 0x457   :  { %v6718_v6 = vpop.f32.mrb[8].mxu0 }
 0x458   :  { %v1283_v47 = vadd.f32 %v6718_v6, %v8178_v40  ;;  %v1274_v37 = vpop.f32.mrb[9].mxu0 }
 0x459   :  { %v1275_v3 = vadd.f32 %v8178_v40, %v1274_v37  ;;  %v6719_v46 = vpop.f32.mrb[10].mxu0 }
 0x45a   :  { %v6153_v43 = vclamps-f32 %v1283_v47, 256.0  ;;  %v1286_v33 = vadd.f32 %v6719_v46, %v8178_v40  ;;  %v1277_v2 = vpop.f32.mrb[11].mxu0 }
 0x45b   :  { %v6151_v16 = vclamps-f32 %v1275_v3, 256.0  ;;  %v1278_v21 = vadd.f32 %v8178_v40, %v1277_v2 }
 0x45c   :  { %1324 = vst.msk [vmem:[%s9986_s8 + $0x10] sm:$0xff] %vm1321_vm2, %v6153_v43  ;;  %v6154_v18 = vclamps-f32 %v1286_v33, 256.0  ;;  %v6852_v43 = vld [vmem:[%s9981_s3] sm:$0xff]  }
 0x45d   :  { %1322 = vst.msk [vmem:[%s9986_s8] sm:$0xff] %vm1321_vm2, %v6151_v16  ;;  %v6152_v35 = vclamps-f32 %v1278_v21, 256.0 }
 0x45e   :  { %1325 = vst.msk [vmem:[%s9986_s8 + $0x18] sm:$0xff] %vm1321_vm2, %v6154_v18 }
 0x45f   :  { %1323 = vst.msk [vmem:[%s9986_s8 + $0x8] sm:$0xff] %vm1321_vm2, %v6152_v35  ;;  %v6853_v35 = vld [vmem:[%s9981_s3 + $0x8] sm:$0xff]  }
 0x477   :  { %v6722_v17 = vpop.f32.mrb[12].mxu0 }
 0x478   :  { %v1299_v22 = vadd.f32 %v6722_v17, %v8178_v40  ;;  %v1290_v24 = vpop.f32.mrb[13].mxu0 }
 0x479   :  { %v1291_v30 = vadd.f32 %v8178_v40, %v1290_v24  ;;  %v6723_v32 = vpop.f32.mrb[14].mxu0 }
 0x47a   :  { %v6157_v42 = vclamps-f32 %v1299_v22, 256.0  ;;  %v1302_v63 = vadd.f32 %v6723_v32, %v8178_v40  ;;  %v1293_v62 = vpop.f32.mrb[15].mxu0 }
 0x47b   :  { %v6155_v14 = vclamps-f32 %v1291_v30, 256.0  ;;  %v1294_v27 = vadd.f32 %v8178_v40, %v1293_v62 }
 0x47c   :  { %1328 = vst.msk [vmem:[%s9986_s8 + $0x30] sm:$0xff] %vm1321_vm2, %v6157_v42  ;;  %v6158_v25 = vclamps-f32 %v1302_v63, 256.0 }
 0x47d   :  { %1326 = vst.msk [vmem:[%s9986_s8 + $0x20] sm:$0xff] %vm1321_vm2, %v6155_v14  ;;  %v6156_v0 = vclamps-f32 %v1294_v27, 256.0 }
 0x47e   :  { %1329 = vst.msk [vmem:[%s9986_s8 + $0x38] sm:$0xff] %vm1321_vm2, %v6158_v25  ;;  %v6854_v25 = vld [vmem:[%s9981_s3 + $0x10] sm:$0xff]  }
 0x47f   :  { %1327 = vst.msk [vmem:[%s9986_s8 + $0x28] sm:$0xff] %vm1321_vm2, %v6156_v0  ;;  %v1719_v31 = vpop.f32.mrb[16].mxu0 }
 0x480   :  { %v1720_v56 = vadd.f32 %v8078_v1, %v1719_v31  ;;  %v1721_v61 = vpop.f32.mrb[17].mxu0 }
 0x481   :  { %v1722_v8 = vpop.f32.mrb[18].mxu0 }
 0x482   :  { %vm1750_vm4 = vcmp.ge.f32.partialorder %v1720_v56, 0.0  ;;  %v1758_v53 = vmul.f32 0.2, %v1720_v56  ;;  %v1723_v51 = vadd.f32 %v8078_v1, %v1722_v8  ;;  %v1724_v9 = vpop.f32.mrb[19].mxu0 }
 0x484   :  { %v1766_v13 = vsel %vm1750_vm4, %v1720_v56, %v1758_v53  ;;  %vm1751_vm12 = vcmp.ge.f32.partialorder %v1723_v51, 0.0  ;;  %v1759_v57 = vmul.f32 0.2, %v1723_v51  ;;  %v6855_v53 = vld [vmem:[%s9981_s3 + $0x18] sm:$0xff]  }
 0x485   :  { %v1774_v60 = vmul.f32 1.4142135, %v1766_v13 }
 0x486   :  { %v1767_v45 = vsel %vm1751_vm12, %v1723_v51, %v1759_v57  ;;  %v6856_v57 = vld [vmem:[%s9981_s3 + $0x20] sm:$0xff]  }
 0x487   :  { %v6173_v28 = vclamps-f32 %v1774_v60, 256.0  ;;  %v1775_v54 = vmul.f32 1.4142135, %v1767_v45  ;;  %v1727_v59 = vpop.f32.mrb[20].mxu0  ;;  %v10060_v45 = vld [vmem:[#allocation10_spill] sm:$0xff] }
 0x488   :  { %v1728_v19 = vadd.f32 %v8078_v1, %v1727_v59  ;;  %v1729_v49 = vpop.f32.mrb[21].mxu0  ;;  %v6859_v59 = vld [vmem:[%s9981_s3 + $0x38] sm:$0xff]  }
 0x489   :  { %6181 = vst.msk [vmem:[%s9984_s7 + $0x40] sm:$0xff] %vm51_vm3, %v6173_v28  ;;  %v6174_v12 = vclamps-f32 %v1775_v54, 256.0  ;;  %v1730_v15 = vpop.f32.mrb[22].mxu0  ;;  %v6858_v54 = vld [vmem:[%s9981_s3 + $0x30] sm:$0xff]   ;;  %v10061_v49 = vld [vmem:[#allocation15_spill] sm:$0xff] }
 0x48a   :  { %vm1752_vm13 = vcmp.ge.f32.partialorder %v1728_v19, 0.0  ;;  %v1760_v58 = vmul.f32 0.2, %v1728_v19  ;;  %v1731_v10 = vadd.f32 %v8078_v1, %v1730_v15  ;;  %v1732_v50 = vpop.f32.mrb[23].mxu0  ;;  %v3192_v15 = vld [vmem:[#allocation2 + $0x12] sm:$0xff] }
 0x48b   :  { %6182 = vst.msk [vmem:[%s9984_s7 + $0x48] sm:$0xff] %vm51_vm3, %v6174_v12  ;;  %v1807_v39 = vpack.c.bf16 %v6174_v12, %v6173_v28  ;;  %v6857_v28 = vld [vmem:[%s9981_s3 + $0x28] sm:$0xff]   ;;  %v6861_v12 = vld [vmem:[%s9982_s5] sm:$0xff]  }
 0x48c   :  { %v1768_v36 = vsel %vm1752_vm13, %v1728_v19, %v1760_v58  ;;  %vm1753_vm12 = vcmp.ge.f32.partialorder %v1731_v10, 0.0  ;;  %v1761_v4 = vmul.f32 0.2, %v1731_v10  ;;  %v6860_v19 = vld [vmem:[%s9981_s3 + $0x40] sm:$0xff]   ;;  %6734 = vmatprep.subr.bf16.mxu0 %v6861_v12  ;;  %v6318_v58 = vld [vmem:[%s9978_s0 + $0x58] sm:$0xff] }
 0x48d   :  { %v1776_v48 = vmul.f32 1.4142135, %v1768_v36  ;;  %6726 = vmatprep.mubr.msk.bf16.mxu1 %vm51_vm3, %v1807_v39  ;;  %6735 = vmatpush3.bf16.msra.mxu0 %v6861_v12  ;;  %3138 = vst.msk [vmem:[#allocation2 + $0x41] sm:$0xff] %vm29_vm0, %v6318_v58  ;;  %v6320_v39 = vld [vmem:[%s9978_s0 + $0x68] sm:$0xff]  ;;  %v6321_v36 = vld [vmem:[%s9978_s0 + $0x70] sm:$0xff] }
 0x48e   :  { %v1769_v26 = vsel %vm1753_vm12, %v1731_v10, %v1761_v4  ;;  %2883 = vmatprep.subr.bf16.mxu0 %v10056_v38  ;;  %v6319_v10 = vld [vmem:[%s9978_s0 + $0x60] sm:$0xff]  ;;  %3140 = vst.msk [vmem:[#allocation2 + $0x61] sm:$0xff] %vm29_vm0, %v6320_v39  ;;  %3141 = vst.msk [vmem:[#allocation2 + $0x71] sm:$0xff] %vm29_vm0, %v6321_v36  ;;  %v8340_v4 = vld [vmem:[#allocation2 + $0x10] sm:$0xff] }
 0x48f   :  { %v6175_v29 = vclamps-f32 %v1776_v48, 256.0  ;;  %v1777_v5 = vmul.f32 1.4142135, %v1769_v26  ;;  %v1735_v41 = vpop.f32.mrb[24].mxu0  ;;  %3139 = vst.msk [vmem:[#allocation2 + $0x51] sm:$0xff] %vm29_vm0, %v6319_v10  ;;  %v3230_v39 = vld [vmem:[#allocation2 + $0x80] sm:$0xff] }
 0x490   :  { %v1736_v44 = vadd.f32 %v8078_v1, %v1735_v41  ;;  %v1737_v52 = vpop.f32.mrb[25].mxu0 }
 0x491   :  { %6183 = vst.msk [vmem:[%s9984_s7 + $0x50] sm:$0xff] %vm51_vm3, %v6175_v29  ;;  %v6176_v6 = vclamps-f32 %v1777_v5, 256.0  ;;  %v1738_v47 = vpop.f32.mrb[26].mxu0 }
 0x492   :  { %vm1754_vm13 = vcmp.ge.f32.partialorder %v1736_v44, 0.0  ;;  %v1762_v37 = vmul.f32 0.2, %v1736_v44  ;;  %v1739_v3 = vadd.f32 %v8078_v1, %v1738_v47  ;;  %v1740_v46 = vpop.f32.mrb[27].mxu0 }
 0x493   :  { %6184 = vst.msk [vmem:[%s9984_s7 + $0x58] sm:$0xff] %vm51_vm3, %v6176_v6  ;;  %v1808_v33 = vpack.c.bf16 %v6176_v6, %v6175_v29 }
 0x494   :  { %v1770_v2 = vsel %vm1754_vm13, %v1736_v44, %v1762_v37  ;;  %vm1755_vm4 = vcmp.ge.f32.partialorder %v1739_v3, 0.0  ;;  %v1763_v16 = vmul.f32 0.2, %v1739_v3 }
 0x495   :  { %v1778_v21 = vmul.f32 1.4142135, %v1770_v2  ;;  %6727 = vmatmul.mubr.msk.bf16.vlgmr.msra.gmra.mrb[16].mxu1 %vm51_vm3, %v1808_v33  ;;  %v3198_v58 = vld [vmem:[#allocation2 + $0x72] sm:$0xff] }
 0x496   :  { %v1771_v18 = vsel %vm1755_vm4, %v1739_v3, %v1763_v16  ;;  %2286 = vmatpush1.bf16.msra.mxu1 %v6852_v43  ;;  %v3226_v43 = vld [vmem:[#allocation2 + $0x40] sm:$0xff]  ;;  %v8346_v2 = vld [vmem:[#allocation2 + $0x50] sm:$0xff] }
 0x497   :  { %v6177_v17 = vclamps-f32 %v1778_v21, 256.0  ;;  %v1779_v22 = vmul.f32 1.4142135, %v1771_v18  ;;  %v1743_v24 = vpop.f32.mrb[28].mxu0  ;;  %2287 = vmatprep.subr.bf16.mxu1 %v10056_v38 }
 0x498   :  { %v1744_v30 = vadd.f32 %v8078_v1, %v1743_v24  ;;  %v1745_v32 = vpop.f32.mrb[29].mxu0 }
 0x499   :  { %6185 = vst.msk [vmem:[%s9984_s7 + $0x60] sm:$0xff] %vm51_vm3, %v6177_v17  ;;  %v6178_v42 = vclamps-f32 %v1779_v22, 256.0  ;;  %v1746_v63 = vpop.f32.mrb[30].mxu0 }
 0x49a   :  { %vm1756_vm12 = vcmp.ge.f32.partialorder %v1744_v30, 0.0  ;;  %v1764_v62 = vmul.f32 0.2, %v1744_v30  ;;  %v1747_v14 = vadd.f32 %v8078_v1, %v1746_v63  ;;  %2288 = vmatpush1.bf16.msra.mxu1 %v6853_v35  ;;  %v1748_v27 = vpop.f32.mrb[31].mxu0  ;;  %v3328_v35 = vpack.c.bf16 %v8346_v2, %v3226_v43 }
 0x49b   :  { %6186 = vst.msk [vmem:[%s9984_s7 + $0x68] sm:$0xff] %vm51_vm3, %v6178_v42  ;;  %2289 = vmatprep.subr.bf16.mxu1 %v10056_v38  ;;  %v1809_v0 = vpack.c.bf16 %v6178_v42, %v6177_v17 }
 0x49c   :  { %v1772_v31 = vsel %vm1756_vm12, %v1744_v30, %v1764_v62  ;;  %vm1757_vm13 = vcmp.ge.f32.partialorder %v1747_v14, 0.0  ;;  %v1765_v56 = vmul.f32 0.2, %v1747_v14  ;;  %3157 = vst.msk [vmem:[#allocation4 + $0x10] sm:$0xff] %vm29_vm0, %v3328_v35  ;;  %v3228_v62 = vld [vmem:[#allocation2 + $0x60] sm:$0xff] }
 0x49d   :  { %v1780_v61 = vmul.f32 1.4142135, %v1772_v31  ;;  %6730 = vmatprep.mubr.msk.bf16.mxu1 %vm51_vm3, %v1809_v0  ;;  %v3258_v31 = vld [vmem:[#allocation2 + $0x41] sm:$0xff] }
 0x49e   :  { %v1773_v8 = vsel %vm1757_vm13, %v1747_v14, %v1765_v56  ;;  %2290 = vmatpush1.bf16.msra.mxu1 %v6854_v25  ;;  %v8360_v14 = vld [vmem:[#allocation2 + $0x70] sm:$0xff] }
 0x49f   :  { %v6179_v51 = vclamps-f32 %v1780_v61, 256.0  ;;  %v1781_v9 = vmul.f32 1.4142135, %v1773_v8  ;;  %2291 = vmatprep.subr.bf16.mxu1 %v10056_v38  ;;  %v8368_v0 = vpack.c.bf16 %v8360_v14, %v3228_v62  ;;  %v3290_v61 = vld [vmem:[#allocation2 + $0x42] sm:$0xff] }
 0x4a1   :  { %6187 = vst.msk [vmem:[%s9984_s7 + $0x70] sm:$0xff] %vm51_vm3, %v6179_v51  ;;  %v6180_v13 = vclamps-f32 %v1781_v9, 256.0 }
 0x4a2   :  { %2292 = vmatpush1.bf16.msra.mxu1 %v6855_v53  ;;  %3158 = vst.msk [vmem:[#allocation4 + $0x18] sm:$0xff] %vm29_vm0, %v8368_v0 }
 0x4a3   :  { %6188 = vst.msk [vmem:[%s9984_s7 + $0x78] sm:$0xff] %vm51_vm3, %v6180_v13  ;;  %2293 = vmatprep.subr.bf16.mxu1 %v10056_v38  ;;  %v1810_v60 = vpack.c.bf16 %v6180_v13, %v6179_v51 }
 0x4a5   :  { %6731 = vmatmul.mubr.msk.bf16.gmra.mrb[20].mxu1 %vm51_vm3, %v1810_v60 }
 0x4a6   :  { %2294 = vmatpush1.bf16.msra.mxu1 %v6856_v57  ;;  %6221 = vmatprep.mubr.msk.bf16.mxu1 %vm51_vm3, %v10060_v45 }
 0x4a7   :  { %2295 = vmatprep.subr.bf16.mxu1 %v10056_v38 }
 0x4aa   :  { %2296 = vmatpush1.bf16.msra.mxu1 %v6857_v28 }
 0x4ab   :  { %2297 = vmatprep.subr.bf16.mxu1 %v10056_v38 }
 0x4ae   :  { %2298 = vmatpush1.bf16.msra.mxu1 %v6858_v54  ;;  %v3354_v54 = vld [vmem:[#allocation2 + $0x51] sm:$0xff] }
 0x4af   :  { %2299 = vmatprep.subr.bf16.mxu1 %v10056_v38 }
 0x4b2   :  { %2300 = vmatpush1.bf16.msra.mxu1 %v6859_v59 }
 0x4b3   :  { %2301 = vmatprep.subr.bf16.mxu1 %v10056_v38 }
 0x4b6   :  { %2302 = vmatpush1.bf16.msra.mxu1 %v6860_v19 }
 0x4b9   :  { %2318 = vmatmul.mubr.bf16.vlgmr.msra.gmra.mrb[24].mxu1 %v8012_v34  ;;  %v3159_v34 = vld [vmem:[#allocation2 + $0x1] sm:$0xff] }
 0x4ba   :  { %6222 = vmatprep.mubr.msk.bf16.mxu1 %vm51_vm3, %v10061_v49 }
 0x4c1   :  { %2326 = vmatmul.mubr.bf16.gmra.mrb[28].mxu1 %v8023_v11  ;;  %v3160_v11 = vld [vmem:[#allocation2 + $0x11] sm:$0xff] }
 0x4c2   :  { %6223 = vmatprep.mubr.msk.bf16.mxu1 %vm51_vm3, %v7700_v23  ;;  %v6316_v23 = vld [vmem:[%s9978_s0 + $0x48] sm:$0xff] }
 0x4c3   :  { %3136 = vst.msk [vmem:[#allocation2 + $0x21] sm:$0xff] %vm29_vm0, %v6316_v23  ;;  %v3165_v23 = vld [vmem:[#allocation2 + $0x61] sm:$0xff] }
 0x4c4   :  { %v3265_v10 = vpack.c.bf16 %v3165_v23, %v3354_v54 }
 0x4c9   :  { %2334 = vmatmul.mubr.bf16.gmra.mrb[32].mxu1 %v8038_v20  ;;  %v3167_v20 = vpack.c.bf16 %v3160_v11, %v3159_v34  ;;  %v3360_v34 = vpack.c.bf16 %v3354_v54, %v3258_v31 }
 0x4ca   :  { %6224 = vmatprep.mubr.msk.bf16.mxu1 %vm51_vm3, %v7709_v7  ;;  %v6317_v7 = vld [vmem:[%s9978_s0 + $0x50] sm:$0xff]  ;;  %v3161_v48 = vld [vmem:[#allocation2 + $0x21] sm:$0xff] }
 0x4cb   :  { %3137 = vst.msk [vmem:[#allocation2 + $0x31] sm:$0xff] %vm29_vm0, %v6317_v7  ;;  %3175 = vrot.lane.b32.xlu0 %v3167_v20, %s6919_s23  ;;  %v3193_v26 = vld [vmem:[#allocation2 + $0x22] sm:$0xff]  ;;  %v3263_v33 = vpack.c.bf16 %v3161_v48, %v3160_v11  ;;  %v3166_v20 = vld [vmem:[#allocation2 + $0x71] sm:$0xff]  ;;  %v3233_v7 = vpack.c.bf16 %v3228_v62, %v8346_v2 }
 0x4cc   :  { %v3224_v29 = vld [vmem:[#allocation2 + $0x20] sm:$0xff]  ;;  %v3295_v63 = vpack.c.bf16 %v3193_v26, %v3192_v15  ;;  %v3326_v62 = vld [vmem:[#allocation2 + $0x90] sm:$0xff] }
 0x4cd   :  { %v3231_v44 = vpack.c.bf16 %v3224_v29, %v8340_v4  ;;  %v8422_v2 = vld [vmem:[#allocation2 + $0x82] sm:$0xff] }
 0x4d1   :  { %2342 = vmatmul.mubr.bf16.gmra.mrb[36].mxu1 %v8047_v55  ;;  %v3191_v55 = vld [vmem:[#allocation2 + $0x2] sm:$0xff] }
 0x4d2   :  { %v3199_v50 = vpack.c.bf16 %v3192_v15, %v3191_v55  ;;  %v3162_v5 = vld [vmem:[#allocation2 + $0x31] sm:$0xff]  ;;  %v3170_v55 = vpack.c.bf16 %v3166_v20, %v3165_v23  ;;  %v3197_v15 = vld [vmem:[#allocation2 + $0x62] sm:$0xff] }
 0x4d3   :  { %v3194_v41 = vld [vmem:[#allocation2 + $0x32] sm:$0xff]  ;;  %v3168_v47 = vpack.c.bf16 %v3162_v5, %v3161_v48  ;;  %v3264_v56 = vpack.c.bf16 %v3258_v31, %v3162_v5  ;;  %v3330_v31 = vpack.c.bf16 %v3326_v62, %v3230_v39  ;;  %v3143_v62 = vld [vmem:[#allocation2] sm:$0xff] }
 0x4d4   :  { %3207 = vrot.lane.b32.xlu0 %v3199_v50, %s6920_s24  ;;  %v3225_v52 = vld [vmem:[#allocation2 + $0x30] sm:$0xff]  ;;  %v3200_v18 = vpack.c.bf16 %v3194_v41, %v3193_v26  ;;  %v3296_v8 = vpack.c.bf16 %v3290_v61, %v3194_v41  ;;  %v3202_v50 = vpack.c.bf16 %v3198_v58, %v3197_v15  ;;  %v3234_v41 = vpack.c.bf16 %v3230_v39, %v8360_v14 }
 0x4d5   :  { %v3327_v37 = vpack.c.bf16 %v3225_v52, %v3224_v29  ;;  %3177 = vrot.lane.b32.xlu1 %v3168_v47, %s6919_s23  ;;  %v3232_v25 = vpack.c.bf16 %v3226_v43, %v3225_v52 }
 0x4d7   :  { %3156 = vst.msk [vmem:[#allocation4 + $0x8] sm:$0xff] %vm29_vm0, %v3327_v37 }
 0x4d8   :  { %3239 = vrot.lane.b32.xlu0 %v3231_v44, %s6921_s9 }
 0x4d9   :  { %3209 = vrot.lane.b32.xlu1 %v3200_v18, %s6920_s24 }
 0x4dc   :  { %3271 = vrot.lane.b32.xlu0 %v3263_v33, %s6922_s12 }
 0x4dd   :  { %3241 = vrot.lane.b32.xlu1 %v3232_v25, %s6921_s9 }
 0x4e0   :  { %3303 = vrot.lane.b32.xlu0 %v3295_v63, %s6923_s15 }
 0x4e1   :  { %3273 = vrot.lane.b32.xlu1 %v3264_v56, %s6922_s12 }
 0x4e4   :  { %3335 = vrot.lane.b32.xlu0 %v3327_v37, %s6924_s18 }
 0x4e5   :  { %3305 = vrot.lane.b32.xlu1 %v3296_v8, %s6923_s15 }
 0x4e8   :  { %3367 = vrot.lane.b32.xlu0 %v3168_v47, %s6925_s19  ;;  %v3262_v47 = vld [vmem:[#allocation2 + $0x81] sm:$0xff] }
 0x4e9   :  { %3337 = vrot.lane.b32.xlu1 %v3328_v35, %s6924_s18  ;;  %v3266_v43 = vpack.c.bf16 %v3262_v47, %v3166_v20 }
 0x4ec   :  { %3399 = vrot.lane.b32.xlu0 %v3200_v18, %s6926_s20 }
 0x4ed   :  { %3369 = vrot.lane.b32.xlu1 %v3360_v34, %s6925_s19 }
 0x4f0   :  { %3179 = vrot.lane.b32.xlu0 %v3360_v34, %s6919_s23 }
 0x568   :  { %v6728_v6 = vpop.f32.mrb[16].mxu1 }
 0x569   :  { %v1881_v3 = vadd.f32 %v6728_v6, %v8178_v40  ;;  %v1872_v46 = vpop.f32.mrb[17].mxu1 }
 0x56a   :  { %v1873_v16 = vadd.f32 %v8178_v40, %v1872_v46  ;;  %v6729_v21 = vpop.f32.mrb[18].mxu1 }
 0x56b   :  { %v6197_v17 = vclamps-f32 %v1881_v3, 256.0  ;;  %v1884_v22 = vadd.f32 %v6729_v21, %v8178_v40  ;;  %v1875_v24 = vpop.f32.mrb[19].mxu1 }
 0x56c   :  { %v6195_v30 = vclamps-f32 %v1873_v16, 256.0  ;;  %v1876_v32 = vadd.f32 %v8178_v40, %v1875_v24 }
 0x56d   :  { %6205 = vst.msk [vmem:[%s9986_s8 + $0x50] sm:$0xff] %vm1321_vm2, %v6197_v17  ;;  %v6198_v42 = vclamps-f32 %v1884_v22, 256.0 }
 0x56e   :  { %6203 = vst.msk [vmem:[%s9986_s8 + $0x40] sm:$0xff] %vm1321_vm2, %v6195_v30  ;;  %v6196_v27 = vclamps-f32 %v1876_v32, 256.0  ;;  %v3298_v30 = vpack.c.bf16 %v8422_v2, %v3198_v58 }
 0x56f   :  { %6206 = vst.msk [vmem:[%s9986_s8 + $0x58] sm:$0xff] %vm1321_vm2, %v6198_v42 }
 0x570   :  { %6204 = vst.msk [vmem:[%s9986_s8 + $0x48] sm:$0xff] %vm1321_vm2, %v6196_v27 }
 0x578   :  { %v6732_v53 = vpop.f32.mrb[20].mxu1 }
 0x579   :  { %v1897_v51 = vadd.f32 %v6732_v53, %v8178_v40  ;;  %v1888_v9 = vpop.f32.mrb[21].mxu1 }
 0x57a   :  { %v1889_v13 = vadd.f32 %v8178_v40, %v1888_v9  ;;  %v6733_v57 = vpop.f32.mrb[22].mxu1 }
 0x57b   :  { %v6201_v60 = vclamps-f32 %v1897_v51, 256.0  ;;  %v1900_v45 = vadd.f32 %v6733_v57, %v8178_v40  ;;  %v1891_v28 = vpop.f32.mrb[23].mxu1 }
 0x57c   :  { %v6199_v59 = vclamps-f32 %v1889_v13, 256.0  ;;  %v1892_v19 = vadd.f32 %v8178_v40, %v1891_v28  ;;  %v3386_v40 = vld [vmem:[#allocation2 + $0x52] sm:$0xff] }
 0x57d   :  { %6209 = vst.msk [vmem:[%s9986_s8 + $0x70] sm:$0xff] %vm1321_vm2, %v6201_v60  ;;  %v6202_v49 = vclamps-f32 %v1900_v45, 256.0  ;;  %v3392_v11 = vpack.c.bf16 %v3386_v40, %v3290_v61  ;;  %v3297_v29 = vpack.c.bf16 %v3197_v15, %v3386_v40  ;;  %v3358_v61 = vld [vmem:[#allocation2 + $0x91] sm:$0xff] }
 0x57e   :  { %6207 = vst.msk [vmem:[%s9986_s8 + $0x60] sm:$0xff] %vm1321_vm2, %v6199_v59  ;;  %v6200_v12 = vclamps-f32 %v1892_v19, 256.0  ;;  %v3362_v45 = vpack.c.bf16 %v3358_v61, %v3262_v47  ;;  %v6862_v19 = vld [vmem:[%s9981_s3] sm:$0xff]   ;;  %v6865_v47 = vld [vmem:[%s9981_s3 + $0x18] sm:$0xff]  }
 0x57f   :  { %6210 = vst.msk [vmem:[%s9986_s8 + $0x78] sm:$0xff] %vm1321_vm2, %v6202_v49  ;;  %3211 = vrot.lane.b32.xlu0 %v3392_v11, %s6920_s24  ;;  %3401 = vrot.lane.b32.xlu1 %v3392_v11, %s6926_s20  ;;  %v3390_v49 = vld [vmem:[#allocation2 + $0x92] sm:$0xff] }
 0x580   :  { %6208 = vst.msk [vmem:[%s9986_s8 + $0x68] sm:$0xff] %vm1321_vm2, %v6200_v12  ;;  %v3394_v23 = vpack.c.bf16 %v3390_v49, %v8422_v2  ;;  %v2785_v2 = vld [vmem:[#allocation5 + $0x8] sm:$0xff] }
 0x583   :  { %3243 = vrot.lane.b32.xlu0 %v3233_v7, %s6921_s9  ;;  %3181 = vrot.lane.b32.xlu1 %v3170_v55, %s6919_s23  ;;  %v6863_v7 = vld [vmem:[%s9981_s3 + $0x8] sm:$0xff]  }
 0x587   :  { %3275 = vrot.lane.b32.xlu0 %v3265_v10, %s6922_s12  ;;  %3213 = vrot.lane.b32.xlu1 %v3202_v50, %s6920_s24 }
 0x58b   :  { %3307 = vrot.lane.b32.xlu0 %v3297_v29, %s6923_s15  ;;  %3245 = vrot.lane.b32.xlu1 %v3234_v41, %s6921_s9 }
 0x58c   :  { %v2319_v36 = vpop.f32.mrb[24].mxu1 }
 0x58d   :  { %v2320_v48 = vadd.f32 %v8078_v1, %v2319_v36  ;;  %v2321_v26 = vpop.f32.mrb[25].mxu1 }
 0x58e   :  { %v2322_v5 = vpop.f32.mrb[26].mxu1 }
 0x58f   :  { %vm2350_vm4 = vcmp.ge.f32.partialorder %v2320_v48, 0.0  ;;  %v2358_v44 = vmul.f32 0.2, %v2320_v48  ;;  %v2323_v52 = vadd.f32 %v8078_v1, %v2322_v5  ;;  %v2324_v6 = vpop.f32.mrb[27].mxu1  ;;  %3339 = vrot.lane.b32.xlu0 %v8368_v0, %s6924_s18  ;;  %3277 = vrot.lane.b32.xlu1 %v3266_v43, %s6922_s12  ;;  %v6864_v5 = vld [vmem:[%s9981_s3 + $0x10] sm:$0xff]   ;;  %v6866_v43 = vld [vmem:[%s9981_s3 + $0x20] sm:$0xff]  }
 0x591   :  { %v2366_v37 = vsel %vm2350_vm4, %v2320_v48, %v2358_v44  ;;  %vm2351_vm12 = vcmp.ge.f32.partialorder %v2323_v52, 0.0  ;;  %v2359_v3 = vmul.f32 0.2, %v2323_v52 }
 0x592   :  { %v2374_v46 = vmul.f32 1.4142135, %v2366_v37 }
 0x593   :  { %v2367_v33 = vsel %vm2351_vm12, %v2323_v52, %v2359_v3  ;;  %3371 = vrot.lane.b32.xlu0 %v3170_v55, %s6925_s19  ;;  %3309 = vrot.lane.b32.xlu1 %v3298_v30, %s6923_s15  ;;  %v2789_v30 = vld [vmem:[#allocation5 + $0x28] sm:$0xff] }
 0x594   :  { %v6225_v16 = vclamps-f32 %v2374_v46, 256.0  ;;  %v2375_v21 = vmul.f32 1.4142135, %v2367_v33  ;;  %v2327_v18 = vpop.f32.mrb[28].mxu1 }
 0x595   :  { %v2328_v35 = vadd.f32 %v8078_v1, %v2327_v18  ;;  %v2329_v17 = vpop.f32.mrb[29].mxu1  ;;  %v6869_v18 = vld [vmem:[%s9981_s3 + $0x38] sm:$0xff]  }
 0x596   :  { %6233 = vst.msk [vmem:[%s9984_s7 + $0x80] sm:$0xff] %vm51_vm3, %v6225_v16  ;;  %v6226_v22 = vclamps-f32 %v2375_v21, 256.0  ;;  %v2330_v24 = vpop.f32.mrb[30].mxu1  ;;  %v6868_v21 = vld [vmem:[%s9981_s3 + $0x30] sm:$0xff]   ;;  %v2784_v17 = vld [vmem:[#allocation5] sm:$0xff] }
 0x597   :  { %vm2352_vm13 = vcmp.ge.f32.partialorder %v2328_v35, 0.0  ;;  %v2360_v32 = vmul.f32 0.2, %v2328_v35  ;;  %v2331_v42 = vadd.f32 %v8078_v1, %v2330_v24  ;;  %v2332_v63 = vpop.f32.mrb[31].mxu1  ;;  %3403 = vrot.lane.b32.xlu0 %v3202_v50, %s6926_s20  ;;  %3341 = vrot.lane.b32.xlu1 %v3330_v31, %s6924_s18  ;;  %v2786_v24 = vld [vmem:[#allocation5 + $0x10] sm:$0xff] }
 0x598   :  { %6234 = vst.msk [vmem:[%s9984_s7 + $0x88] sm:$0xff] %vm51_vm3, %v6226_v22  ;;  %v2407_v14 = vpack.c.bf16 %v6226_v22, %v6225_v16  ;;  %v6867_v16 = vld [vmem:[%s9981_s3 + $0x28] sm:$0xff]   ;;  %v2787_v22 = vld [vmem:[#allocation5 + $0x18] sm:$0xff]  ;;  %v2790_v63 = vld [vmem:[#allocation5 + $0x30] sm:$0xff] }
 0x599   :  { %v2368_v27 = vsel %vm2352_vm13, %v2328_v35, %v2360_v32  ;;  %vm2353_vm4 = vcmp.ge.f32.partialorder %v2331_v42, 0.0  ;;  %v2361_v25 = vmul.f32 0.2, %v2331_v42  ;;  %v6870_v35 = vld [vmem:[%s9981_s3 + $0x40] sm:$0xff]  }
 0x59a   :  { %v2376_v0 = vmul.f32 1.4142135, %v2368_v27  ;;  %6736 = vmatprep.mubr.msk.bf16.mxu0 %vm51_vm3, %v2407_v14  ;;  %v2788_v32 = vld [vmem:[#allocation5 + $0x20] sm:$0xff]  ;;  %v3176_v14 = vpop.permute.xlu0 %3175  ;;  %v3151_v27 = vpack.c.bf16 %v8340_v4, %v3143_v62 }
 0x59b   :  { %v2369_v56 = vsel %vm2353_vm4, %v2331_v42, %v2361_v25  ;;  %3373 = vrot.lane.b32.xlu1 %v3362_v45, %s6925_s19  ;;  %v2791_v42 = vld [vmem:[#allocation5 + $0x38] sm:$0xff]  ;;  %v3178_v25 = vpop.permute.xlu1 %3177 }
 0x59c   :  { %v6227_v8 = vclamps-f32 %v2376_v0, 256.0  ;;  %v2377_v53 = vmul.f32 1.4142135, %v2369_v56  ;;  %v2335_v51 = vpop.f32.mrb[32].mxu1  ;;  %v6871_v0 = vld [vmem:[%s9982_s5] sm:$0xff]   ;;  %3188 = vst.msk [vmem:[#allocation4 + $0x8] sm:$0xff] %vm194_vm5, %v3178_v25 }
 0x59d   :  { %v2336_v9 = vadd.f32 %v8078_v1, %v2335_v51  ;;  %v2337_v13 = vpop.f32.mrb[33].mxu1  ;;  %3155 = vst.msk [vmem:[#allocation4] sm:$0xff] %vm29_vm0, %v3151_v27  ;;  %6744 = vmatprep.subr.bf16.mxu1 %v6871_v0  ;;  %vm10062_vm0 = vcmask 589312  }
 0x59e   :  { %6235 = vst.msk [vmem:[%s9984_s7 + $0x90] sm:$0xff] %vm51_vm3, %v6227_v8  ;;  %v6228_v57 = vclamps-f32 %v2377_v53, 256.0  ;;  %v2338_v60 = vpop.f32.mrb[34].mxu1  ;;  %v3208_v31 = vpop.permute.xlu0 %3207  ;;  %6745 = vmatpush3.bf16.msra.mxu1 %v6871_v0 }
 0x59f   :  { %vm2354_vm12 = vcmp.ge.f32.partialorder %v2336_v9, 0.0  ;;  %v2362_v28 = vmul.f32 0.2, %v2336_v9  ;;  %v2339_v54 = vadd.f32 %v8078_v1, %v2338_v60  ;;  %v2340_v59 = vpop.f32.mrb[35].mxu1  ;;  %3405 = vrot.lane.b32.xlu1 %v3394_v23, %s6926_s20  ;;  %3187 = vst.msk [vmem:[#allocation4] sm:$0xff] %vm194_vm5, %v3176_v14  ;;  %v3210_v56 = vpop.permute.xlu1 %3209 }
 0x5a0   :  { %6236 = vst.msk [vmem:[%s9984_s7 + $0x98] sm:$0xff] %vm51_vm3, %v6228_v57  ;;  %v2408_v12 = vpack.c.bf16 %v6228_v57, %v6227_v8 }
 0x5a1   :  { %v2370_v34 = vsel %vm2354_vm12, %v2336_v9, %v2362_v28  ;;  %vm2355_vm13 = vcmp.ge.f32.partialorder %v2339_v54, 0.0  ;;  %v2363_v40 = vmul.f32 0.2, %v2339_v54  ;;  %3219 = vst.msk [vmem:[#allocation4] sm:$0xff] %vm227_vm6, %v3208_v31  ;;  %3220 = vst.msk [vmem:[#allocation4 + $0x8] sm:$0xff] %vm227_vm6, %v3210_v56 }
 0x5a2   :  { %v2378_v11 = vmul.f32 1.4142135, %v2370_v34  ;;  %6737 = vmatmul.mubr.msk.bf16.vlgmr.msra.gmra.mrb[32].mxu0 %vm51_vm3, %v2408_v12  ;;  %v3240_v4 = vpop.permute.xlu0 %3239 }
 0x5a3   :  { %v2371_v20 = vsel %vm2355_vm13, %v2339_v54, %v2363_v40  ;;  %2884 = vmatpush1.bf16.msra.mxu0 %v6862_v19  ;;  %3251 = vst.msk [vmem:[#allocation4] sm:$0xff] %vm260_vm7, %v3240_v4  ;;  %v3242_v61 = vpop.permute.xlu1 %3241  ;;  %vm10063_vm13 = vmmov %vm10062_vm0  ;;  %v8545_v40 = vld [vmem:[%s9979_s1 + $0x24] sm:$0xff]  }
 0x5a4   :  { %v6229_v55 = vclamps-f32 %v2378_v11, 256.0  ;;  %v2379_v15 = vmul.f32 1.4142135, %v2371_v20  ;;  %v2343_v58 = vpop.f32.mrb[36].mxu1  ;;  %2885 = vmatprep.subr.bf16.mxu0 %v10056_v38  ;;  %3252 = vst.msk [vmem:[#allocation4 + $0x8] sm:$0xff] %vm260_vm7, %v3242_v61  ;;  %6754 = vmatprep.subr.bf16.mxu1 %v8545_v40 }
 0x5a5   :  { %v2344_v10 = vadd.f32 %v8078_v1, %v2343_v58  ;;  %v2345_v50 = vpop.f32.mrb[37].mxu1 }
 0x5a6   :  { %6237 = vst.msk [vmem:[%s9984_s7 + $0xa0] sm:$0xff] %vm51_vm3, %v6229_v55  ;;  %v6230_v39 = vclamps-f32 %v2379_v15, 256.0  ;;  %v2346_v36 = vpop.f32.mrb[38].mxu1  ;;  %v3272_v8 = vpop.permute.xlu0 %3271 }
 0x5a7   :  { %vm2356_vm4 = vcmp.ge.f32.partialorder %v2344_v10, 0.0  ;;  %v2364_v48 = vmul.f32 0.2, %v2344_v10  ;;  %v2347_v26 = vadd.f32 %v8078_v1, %v2346_v36  ;;  %2886 = vmatpush1.bf16.msra.mxu0 %v6863_v7  ;;  %v2348_v29 = vpop.f32.mrb[39].mxu1  ;;  %3283 = vst.msk [vmem:[#allocation4] sm:$0xff] %vm293_vm8, %v3272_v8  ;;  %v3274_v53 = vpop.permute.xlu1 %3273 }
 0x5a8   :  { %6238 = vst.msk [vmem:[%s9984_s7 + $0xa8] sm:$0xff] %vm51_vm3, %v6230_v39  ;;  %2887 = vmatprep.subr.bf16.mxu0 %v10056_v38  ;;  %v2409_v41 = vpack.c.bf16 %v6230_v39, %v6229_v55 }
 0x5a9   :  { %v2372_v44 = vsel %vm2356_vm4, %v2344_v10, %v2364_v48  ;;  %vm2357_vm12 = vcmp.ge.f32.partialorder %v2347_v26, 0.0  ;;  %v2365_v52 = vmul.f32 0.2, %v2347_v26  ;;  %3284 = vst.msk [vmem:[#allocation4 + $0x8] sm:$0xff] %vm293_vm8, %v3274_v53  ;;  %v8563_v48 = vld [vmem:[%s9985_s6] ss:$0 sm:$0xff] }
 0x5aa   :  { %v2380_v6 = vmul.f32 1.4142135, %v2372_v44  ;;  %6740 = vmatprep.mubr.msk.bf16.mxu0 %vm51_vm3, %v2409_v41  ;;  %v3304_v51 = vpop.permute.xlu0 %3303 }
 0x5ab   :  { %v2373_v1 = vsel %vm2357_vm12, %v2347_v26, %v2365_v52  ;;  %2888 = vmatpush1.bf16.msra.mxu0 %v6864_v5  ;;  %3315 = vst.msk [vmem:[#allocation4] sm:$0xff] %vm326_vm9, %v3304_v51  ;;  %v3306_v9 = vpop.permute.xlu1 %3305 }
 0x5ac   :  { %v6231_v37 = vclamps-f32 %v2380_v6, 256.0  ;;  %v2381_v3 = vmul.f32 1.4142135, %v2373_v1  ;;  %2889 = vmatprep.subr.bf16.mxu0 %v10056_v38  ;;  %3316 = vst.msk [vmem:[#allocation4 + $0x8] sm:$0xff] %vm326_vm9, %v3306_v9 }
 0x5ae   :  { %6239 = vst.msk [vmem:[%s9984_s7 + $0xb0] sm:$0xff] %vm51_vm3, %v6231_v37  ;;  %v6232_v46 = vclamps-f32 %v2381_v3, 256.0  ;;  %v3336_v13 = vpop.permute.xlu0 %3335 }
 0x5af   :  { %2890 = vmatpush1.bf16.msra.mxu0 %v6865_v47  ;;  %3347 = vst.msk [vmem:[#allocation4] sm:$0xff] %vm360_vm10, %v3336_v13  ;;  %v3338_v57 = vpop.permute.xlu1 %3337 }
 0x5b0   :  { %6240 = vst.msk [vmem:[%s9984_s7 + $0xb8] sm:$0xff] %vm51_vm3, %v6232_v46  ;;  %2891 = vmatprep.subr.bf16.mxu0 %v10056_v38  ;;  %v2410_v33 = vpack.c.bf16 %v6232_v46, %v6231_v37 }
 0x5b1   :  { %3348 = vst.msk [vmem:[#allocation4 + $0x8] sm:$0xff] %vm360_vm10, %v3338_v57 }
 0x5b2   :  { %6741 = vmatmul.mubr.msk.bf16.gmra.mrb[36].mxu0 %vm51_vm3, %v2410_v33  ;;  %v3368_v60 = vpop.permute.xlu0 %3367 }
 0x5b3   :  { %2892 = vmatpush1.bf16.msra.mxu0 %v6866_v43  ;;  %6273 = vmatprep.mubr.msk.bf16.mxu0 %vm51_vm3, %v2785_v2  ;;  %3379 = vst.msk [vmem:[#allocation4] sm:$0xff] %vm393_vm11, %v3368_v60  ;;  %v3370_v45 = vpop.permute.xlu1 %3369 }
 0x5b4   :  { %2893 = vmatprep.subr.bf16.mxu0 %v10056_v38  ;;  %3380 = vst.msk [vmem:[#allocation4 + $0x8] sm:$0xff] %vm393_vm11, %v3370_v45 }
 0x5b6   :  { %v3400_v28 = vpop.permute.xlu0 %3399 }
 0x5b7   :  { %2894 = vmatpush1.bf16.msra.mxu0 %v6867_v16  ;;  %3411 = vst.msk [vmem:[#allocation4] sm:$0xff] %vm10062_vm0, %v3400_v28 }
 0x5b8   :  { %2895 = vmatprep.subr.bf16.mxu0 %v10056_v38 }
 0x5ba   :  { %v3180_v59 = vpop.permute.xlu0 %3179 }
 0x5bb   :  { %2896 = vmatpush1.bf16.msra.mxu0 %v6868_v21  ;;  %3189 = vst.msk [vmem:[#allocation4 + $0x10] sm:$0xff] %vm194_vm5, %v3180_v59 }
 0x5bc   :  { %2897 = vmatprep.subr.bf16.mxu0 %v10056_v38 }
 0x5bf   :  { %2898 = vmatpush1.bf16.msra.mxu0 %v6869_v18 }
 0x5c0   :  { %2899 = vmatprep.subr.bf16.mxu0 %v10056_v38 }
 0x5c3   :  { %2900 = vmatpush1.bf16.msra.mxu0 %v6870_v35 }
 0x5c4   :  { %4059 = vmatprep.subr.bf16.mxu0 %v10056_v38 }
 0x5c6   :  { %2916 = vmatmul.mubr.bf16.vlgmr.msra.gmra.mrb[40].mxu0 %v2784_v17 }
 0x5c7   :  { %6274 = vmatprep.mubr.msk.bf16.mxu0 %vm51_vm3, %v2787_v22 }
 0x5ce   :  { %2924 = vmatmul.mubr.bf16.gmra.mrb[44].mxu0 %v2786_v24 }
 0x5cf   :  { %6275 = vmatprep.mubr.msk.bf16.mxu0 %vm51_vm3, %v2789_v30 }
 0x5d6   :  { %2932 = vmatmul.mubr.bf16.gmra.mrb[48].mxu0 %v2788_v32 }
 0x5d7   :  { %6276 = vmatprep.mubr.msk.bf16.mxu0 %vm51_vm3, %v2791_v42  ;;  %v8608_v42 = vld [vmem:[%s9983_s4] ss:$0 sm:$0xff] }
 0x5de   :  { %2940 = vmatmul.mubr.bf16.gmra.mrb[52].mxu0 %v2790_v63 }
 0x5f1   :  { %v3402_v54 = vpop.permute.xlu1 %3401  ;;  %v3212_v49 = vpop.permute.xlu0 %3211 }
 0x5f2   :  { %3412 = vst.msk [vmem:[#allocation4 + $0x8] sm:$0xff] %vm10063_vm13, %v3402_v54  ;;  %vm10066_vm13 = vcmask 1043456  }
 0x5f3   :  { %3221 = vst.msk [vmem:[#allocation4 + $0x10] sm:$0xff] %vm227_vm6, %v3212_v49 }
 0x5f5   :  { %v3182_v19 = vpop.permute.xlu1 %3181  ;;  %v3244_v34 = vpop.permute.xlu0 %3243 }
 0x5f6   :  { %3190 = vst.msk [vmem:[#allocation4 + $0x18] sm:$0xff] %vm194_vm5, %v3182_v19  ;;  %vm10064_vm5 = vmmov %vm10062_vm0 }
 0x5f7   :  { %3253 = vst.msk [vmem:[#allocation4 + $0x10] sm:$0xff] %vm260_vm7, %v3244_v34 }
 0x5f9   :  { %v3214_v12 = vpop.permute.xlu1 %3213  ;;  %v3276_v23 = vpop.permute.xlu0 %3275 }
 0x5fa   :  { %3222 = vst.msk [vmem:[#allocation4 + $0x18] sm:$0xff] %vm227_vm6, %v3214_v12  ;;  %vm10065_vm6 = vmmov %vm10062_vm0 }
 0x5fb   :  { %3285 = vst.msk [vmem:[#allocation4 + $0x10] sm:$0xff] %vm293_vm8, %v3276_v23 }
 0x5fd   :  { %v3246_v11 = vpop.permute.xlu1 %3245  ;;  %v3308_v7 = vpop.permute.xlu0 %3307 }
 0x5fe   :  { %3254 = vst.msk [vmem:[#allocation4 + $0x18] sm:$0xff] %vm260_vm7, %v3246_v11 }
 0x5ff   :  { %3317 = vst.msk [vmem:[#allocation4 + $0x10] sm:$0xff] %vm326_vm9, %v3308_v7 }
 0x601   :  { %v3278_v20 = vpop.permute.xlu1 %3277  ;;  %v3340_v15 = vpop.permute.xlu0 %3339 }
 0x602   :  { %3286 = vst.msk [vmem:[#allocation4 + $0x18] sm:$0xff] %vm293_vm8, %v3278_v20 }
 0x603   :  { %3349 = vst.msk [vmem:[#allocation4 + $0x10] sm:$0xff] %vm360_vm10, %v3340_v15 }
 0x605   :  { %v3310_v55 = vpop.permute.xlu1 %3309  ;;  %v3372_v10 = vpop.permute.xlu0 %3371 }
 0x606   :  { %3318 = vst.msk [vmem:[#allocation4 + $0x18] sm:$0xff] %vm326_vm9, %v3310_v55 }
 0x607   :  { %3381 = vst.msk [vmem:[#allocation4 + $0x10] sm:$0xff] %vm393_vm11, %v3372_v10 }
 0x609   :  { %v3342_v58 = vpop.permute.xlu1 %3341  ;;  %v3404_v39 = vpop.permute.xlu0 %3403 }
 0x60a   :  { %3350 = vst.msk [vmem:[#allocation4 + $0x18] sm:$0xff] %vm360_vm10, %v3342_v58 }
 0x60b   :  { %3413 = vst.msk [vmem:[#allocation4 + $0x10] sm:$0xff] %vm10064_vm5, %v3404_v39  ;;  %vm10067_vm5 = vmmov %vm10066_vm13 }
 0x60d   :  { %v3374_v50 = vpop.permute.xlu1 %3373 }
 0x60e   :  { %3382 = vst.msk [vmem:[#allocation4 + $0x18] sm:$0xff] %vm393_vm11, %v3374_v50 }
 0x611   :  { %v3406_v36 = vpop.permute.xlu1 %3405 }
 0x612   :  { %3414 = vst.msk [vmem:[#allocation4 + $0x18] sm:$0xff] %vm10065_vm6, %v3406_v36  ;;  %vm10068_vm6 = vcmask 588800  }
 0x675   :  { %v6738_v26 = vpop.f32.mrb[32].mxu0 }
 0x676   :  { %v2481_v29 = vadd.f32 %v6738_v26, %v8563_v48  ;;  %v2472_v5 = vpop.f32.mrb[33].mxu0 }
 0x677   :  { %v2473_v41 = vadd.f32 %v8563_v48, %v2472_v5  ;;  %v6739_v44 = vpop.f32.mrb[34].mxu0 }
 0x678   :  { %v6249_v52 = vclamps-f32 %v2481_v29, 256.0  ;;  %v2484_v6 = vadd.f32 %v6739_v44, %v8563_v48  ;;  %v2475_v1 = vpop.f32.mrb[35].mxu0  ;;  %v6873_v29 = vld [vmem:[%s9979_s1 + $0x2c] sm:$0xff]  }
 0x679   :  { %v6247_v47 = vclamps-f32 %v2473_v41, 256.0  ;;  %v2476_v37 = vadd.f32 %v8563_v48, %v2475_v1 }
 0x67a   :  { %6257 = vst.msk [vmem:[%s9986_s8 + $0x90] sm:$0xff] %vm1321_vm2, %v6249_v52  ;;  %v6250_v3 = vclamps-f32 %v2484_v6, 256.0 }
 0x67b   :  { %6255 = vst.msk [vmem:[%s9986_s8 + $0x80] sm:$0xff] %vm1321_vm2, %v6247_v47  ;;  %v6248_v46 = vclamps-f32 %v2476_v37, 256.0  ;;  %v6874_v37 = vld [vmem:[%s9979_s1 + $0x34] sm:$0xff]  }
 0x67c   :  { %6258 = vst.msk [vmem:[%s9986_s8 + $0x98] sm:$0xff] %vm1321_vm2, %v6250_v3 }
 0x67d   :  { %6256 = vst.msk [vmem:[%s9986_s8 + $0x88] sm:$0xff] %vm1321_vm2, %v6248_v46 }
 0x685   :  { %v6742_v43 = vpop.f32.mrb[36].mxu0 }
 0x686   :  { %v2497_v33 = vadd.f32 %v6742_v43, %v8563_v48  ;;  %v2488_v2 = vpop.f32.mrb[37].mxu0 }
 0x687   :  { %v2489_v16 = vadd.f32 %v8563_v48, %v2488_v2  ;;  %v6743_v21 = vpop.f32.mrb[38].mxu0 }
 0x688   :  { %v6253_v18 = vclamps-f32 %v2497_v33, 256.0  ;;  %v2500_v35 = vadd.f32 %v6743_v21, %v8563_v48  ;;  %v2491_v17 = vpop.f32.mrb[39].mxu0 }
 0x689   :  { %v6251_v22 = vclamps-f32 %v2489_v16, 256.0  ;;  %v2492_v24 = vadd.f32 %v8563_v48, %v2491_v17 }
 0x68a   :  { %6261 = vst.msk [vmem:[%s9986_s8 + $0xb0] sm:$0xff] %vm1321_vm2, %v6253_v18  ;;  %v6254_v30 = vclamps-f32 %v2500_v35, 256.0  ;;  %v6875_v18 = vld [vmem:[%s9979_s1 + $0x3c] sm:$0xff]  }
 0x68b   :  { %6259 = vst.msk [vmem:[%s9986_s8 + $0xa0] sm:$0xff] %vm1321_vm2, %v6251_v22  ;;  %v6252_v32 = vclamps-f32 %v2492_v24, 256.0 }
 0x68c   :  { %6262 = vst.msk [vmem:[%s9986_s8 + $0xb8] sm:$0xff] %vm1321_vm2, %v6254_v30 }
 0x68d   :  { %6260 = vst.msk [vmem:[%s9986_s8 + $0xa8] sm:$0xff] %vm1321_vm2, %v6252_v32 }
 0x699   :  { %v2917_v63 = vpop.f32.mrb[40].mxu0 }
 0x69a   :  { %v2918_v62 = vadd.f32 %v8608_v42, %v2917_v63  ;;  %v2919_v14 = vpop.f32.mrb[41].mxu0 }
 0x69b   :  { %v2920_v27 = vpop.f32.mrb[42].mxu0  ;;  %v3415_v14 = vld [vmem:[#allocation4] sm:$0xff] }
 0x69c   :  { %vm2948_vm7 = vcmp.ge.f32.partialorder %v2918_v62, 0.0  ;;  %v2956_v25 = vmul.f32 0.2, %v2918_v62  ;;  %v2921_v0 = vadd.f32 %v8608_v42, %v2920_v27  ;;  %v2922_v31 = vpop.f32.mrb[43].mxu0 }
 0x69d   :  { %v3418_v31 = vld [vmem:[#allocation4 + $0x18] sm:$0xff] }
 0x69e   :  { %v2964_v56 = vsel %vm2948_vm7, %v2918_v62, %v2956_v25  ;;  %vm2949_vm8 = vcmp.ge.f32.partialorder %v2921_v0, 0.0  ;;  %v2957_v4 = vmul.f32 0.2, %v2921_v0  ;;  %v3417_v25 = vld [vmem:[#allocation4 + $0x10] sm:$0xff]  ;;  %vm10069_vm7 = vmmov %vm10068_vm6 }
 0x69f   :  { %v2972_v61 = vmul.f32 1.4142135, %v2964_v56 }
 0x6a0   :  { %v2965_v8 = vsel %vm2949_vm8, %v2921_v0, %v2957_v4  ;;  %v3416_v0 = vld [vmem:[#allocation4 + $0x8] sm:$0xff]  ;;  %vm10070_vm8 = vmmov %vm10068_vm6 }
 0x6a1   :  { %v6277_v53 = vclamps-f32 %v2972_v61, 256.0  ;;  %v2973_v51 = vmul.f32 1.4142135, %v2965_v8  ;;  %v2925_v9 = vpop.f32.mrb[44].mxu0 }
 0x6a2   :  { %v2926_v13 = vadd.f32 %v8608_v42, %v2925_v9  ;;  %v2927_v57 = vpop.f32.mrb[45].mxu0 }
 0x6a3   :  { %6285 = vst.msk [vmem:[%s9984_s7 + $0xc0] sm:$0xff] %vm51_vm3, %v6277_v53  ;;  %v6278_v60 = vclamps-f32 %v2973_v51, 256.0  ;;  %v2928_v45 = vpop.f32.mrb[46].mxu0 }
 0x6a4   :  { %vm2950_vm9 = vcmp.ge.f32.partialorder %v2926_v13, 0.0  ;;  %v2958_v28 = vmul.f32 0.2, %v2926_v13  ;;  %v2929_v54 = vadd.f32 %v8608_v42, %v2928_v45  ;;  %v2930_v59 = vpop.f32.mrb[47].mxu0 }
 0x6a5   :  { %6286 = vst.msk [vmem:[%s9984_s7 + $0xc8] sm:$0xff] %vm51_vm3, %v6278_v60  ;;  %v3005_v19 = vpack.c.bf16 %v6278_v60, %v6277_v53 }
 0x6a6   :  { %v2966_v49 = vsel %vm2950_vm9, %v2926_v13, %v2958_v28  ;;  %vm2951_vm10 = vcmp.ge.f32.partialorder %v2929_v54, 0.0  ;;  %v2959_v12 = vmul.f32 0.2, %v2929_v54  ;;  %vm10071_vm9 = vmmov %vm10068_vm6 }
 0x6a7   :  { %v2974_v34 = vmul.f32 1.4142135, %v2966_v49  ;;  %6746 = vmatprep.mubr.msk.bf16.mxu1 %vm51_vm3, %v3005_v19 }
 0x6a8   :  { %v2967_v11 = vsel %vm2951_vm10, %v2929_v54, %v2959_v12 }
 0x6a9   :  { %v6279_v23 = vclamps-f32 %v2974_v34, 256.0  ;;  %v2975_v20 = vmul.f32 1.4142135, %v2967_v11  ;;  %v2933_v7 = vpop.f32.mrb[48].mxu0 }
 0x6aa   :  { %v2934_v55 = vadd.f32 %v8608_v42, %v2933_v7  ;;  %v2935_v15 = vpop.f32.mrb[49].mxu0 }
 0x6ab   :  { %6287 = vst.msk [vmem:[%s9984_s7 + $0xd0] sm:$0xff] %vm51_vm3, %v6279_v23  ;;  %v6280_v58 = vclamps-f32 %v2975_v20, 256.0  ;;  %v2936_v10 = vpop.f32.mrb[50].mxu0 }
 0x6ac   :  { %vm2952_vm11 = vcmp.ge.f32.partialorder %v2934_v55, 0.0  ;;  %v2960_v50 = vmul.f32 0.2, %v2934_v55  ;;  %v2937_v39 = vadd.f32 %v8608_v42, %v2936_v10  ;;  %v2938_v36 = vpop.f32.mrb[51].mxu0 }
 0x6ad   :  { %6288 = vst.msk [vmem:[%s9984_s7 + $0xd8] sm:$0xff] %vm51_vm3, %v6280_v58  ;;  %v3006_v26 = vpack.c.bf16 %v6280_v58, %v6279_v23  ;;  %v6332_v58 = vld [vmem:[%s9980_s2] ss:$0 sm:$0xff] }
 0x6ae   :  { %v2968_v5 = vsel %vm2952_vm11, %v2934_v55, %v2960_v50  ;;  %vm2953_vm4 = vcmp.ge.f32.partialorder %v2937_v39, 0.0  ;;  %v2961_v41 = vmul.f32 0.2, %v2937_v39 }
 0x6af   :  { %v2976_v44 = vmul.f32 1.4142135, %v2968_v5  ;;  %6747 = vmatmul.mubr.msk.bf16.vlgmr.msra.gmra.mrb[40].mxu1 %vm51_vm3, %v3006_v26 }
 0x6b0   :  { %v2969_v52 = vsel %vm2953_vm4, %v2937_v39, %v2961_v41  ;;  %6755 = vmatpush3.bf16.msra.mxu1 %v8545_v40 }
 0x6b1   :  { %v6281_v6 = vclamps-f32 %v2976_v44, 256.0  ;;  %v2977_v1 = vmul.f32 1.4142135, %v2969_v52  ;;  %v2941_v47 = vpop.f32.mrb[52].mxu0  ;;  %6756 = vmatprep.subr.bf16.mxu1 %v6873_v29 }
 0x6b2   :  { %v2942_v3 = vadd.f32 %v8608_v42, %v2941_v47  ;;  %v2943_v46 = vpop.f32.mrb[53].mxu0 }
 0x6b3   :  { %6289 = vst.msk [vmem:[%s9984_s7 + $0xe0] sm:$0xff] %vm51_vm3, %v6281_v6  ;;  %v6282_v43 = vclamps-f32 %v2977_v1, 256.0  ;;  %v2944_v33 = vpop.f32.mrb[54].mxu0 }
 0x6b4   :  { %vm2954_vm12 = vcmp.ge.f32.partialorder %v2942_v3, 0.0  ;;  %v2962_v40 = vmul.f32 0.2, %v2942_v3  ;;  %v2945_v2 = vadd.f32 %v8608_v42, %v2944_v33  ;;  %v2946_v16 = vpop.f32.mrb[55].mxu0  ;;  %6757 = vmatpush3.bf16.msra.mxu1 %v6873_v29  ;;  %v6876_v42 = vld [vmem:[%s9979_s1 + $0x44] ss:$0 sps:$4 sm:$0xff]  }
 0x6b5   :  { %6290 = vst.msk [vmem:[%s9984_s7 + $0xe8] sm:$0xff] %vm51_vm3, %v6282_v43  ;;  %v3007_v21 = vpack.c.bf16 %v6282_v43, %v6281_v6  ;;  %6758 = vmatprep.subr.bf16.mxu1 %v6874_v37  ;;  %v3476_v27 = vsel %vm10067_vm5, %v6876_v42, 0 }
 0x6b6   :  { %v2970_v35 = vsel %vm2954_vm12, %v2942_v3, %v2962_v40  ;;  %vm2955_vm0 = vcmp.ge.f32.partialorder %v2945_v2, 0.0  ;;  %v2963_v17 = vmul.f32 0.2, %v2945_v2 }
 0x6b7   :  { %v2978_v22 = vmul.f32 1.4142135, %v2970_v35  ;;  %6750 = vmatprep.mubr.msk.bf16.mxu1 %vm51_vm3, %v3007_v21 }
 0x6b8   :  { %v2971_v24 = vsel %vm2955_vm0, %v2945_v2, %v2963_v17  ;;  %6759 = vmatpush3.bf16.msra.mxu1 %v6874_v37 }
 0x6b9   :  { %v6283_v30 = vclamps-f32 %v2978_v22, 256.0  ;;  %v2979_v32 = vmul.f32 1.4142135, %v2971_v24  ;;  %6760 = vmatprep.subr.bf16.mxu1 %v6875_v18 }
 0x6bb   :  { %6291 = vst.msk [vmem:[%s9984_s7 + $0xf0] sm:$0xff] %vm51_vm3, %v6283_v30  ;;  %v6284_v63 = vclamps-f32 %v2979_v32, 256.0 }
 0x6bc   :  { %6761 = vmatpush3.bf16.msra.mxu1 %v6875_v18 }
 0x6bd   :  { %6292 = vst.msk [vmem:[%s9984_s7 + $0xf8] sm:$0xff] %vm51_vm3, %v6284_v63  ;;  %v3008_v62 = vpack.c.bf16 %v6284_v63, %v6283_v30  ;;  %6813 = vmatprep.subr.msk.bf16.mxu1 %vm10066_vm13, %v6876_v42 }
 0x6bf   :  { %6751 = vmatmul.mubr.msk.bf16.gmra.mrb[44].mxu1 %vm51_vm3, %v3008_v62 }
 0x6c0   :  { %6764 = vmatprep.mubr.msk.bf16.mxu1 %vm10068_vm6, %v3415_v14  ;;  %6763 = vmatpush3.bf16.msra.mxu1 %v3476_v27 }
 0x6c7   :  { %6765 = vmatmul.mubr.msk.bf16.vlgmr.msra.gmra.mrb[48].mxu1 %vm10069_vm7, %v3416_v0  ;;  %vm10093_vm7 = vcmask 654848  }
 0x6c8   :  { %6768 = vmatprep.mubr.msk.bf16.mxu1 %vm10070_vm8, %v3417_v25  ;;  %vm10095_vm8 = vcmask 786048  }
 0x6cf   :  { %6769 = vmatmul.mubr.msk.bf16.gmra.mrb[52].mxu1 %vm10071_vm9, %v3418_v31  ;;  %vm10097_vm9 = vcmask 917248  }
 0x782   :  { %v6748_v56 = vpop.f32.mrb[40].mxu1 }
 0x783   :  { %v3079_v4 = vadd.f32 %v6748_v56, %v8563_v48  ;;  %v3070_v61 = vpop.f32.mrb[41].mxu1 }
 0x784   :  { %v3071_v8 = vadd.f32 %v8563_v48, %v3070_v61  ;;  %v6749_v53 = vpop.f32.mrb[42].mxu1 }
 0x785   :  { %v6301_v51 = vclamps-f32 %v3079_v4, 256.0  ;;  %v3082_v9 = vadd.f32 %v6749_v53, %v8563_v48  ;;  %v3073_v13 = vpop.f32.mrb[43].mxu1 }
 0x786   :  { %v6299_v57 = vclamps-f32 %v3071_v8, 256.0  ;;  %v3074_v60 = vadd.f32 %v8563_v48, %v3073_v13 }
 0x787   :  { %6309 = vst.msk [vmem:[%s9986_s8 + $0xd0] sm:$0xff] %vm1321_vm2, %v6301_v51  ;;  %v6302_v45 = vclamps-f32 %v3082_v9, 256.0 }
 0x788   :  { %6307 = vst.msk [vmem:[%s9986_s8 + $0xc0] sm:$0xff] %vm1321_vm2, %v6299_v57  ;;  %v6300_v28 = vclamps-f32 %v3074_v60, 256.0 }
 0x789   :  { %6310 = vst.msk [vmem:[%s9986_s8 + $0xd8] sm:$0xff] %vm1321_vm2, %v6302_v45 }
 0x78a   :  { %6308 = vst.msk [vmem:[%s9986_s8 + $0xc8] sm:$0xff] %vm1321_vm2, %v6300_v28 }
 0x792   :  { %v6752_v54 = vpop.f32.mrb[44].mxu1 }
 0x793   :  { %v3095_v59 = vadd.f32 %v6752_v54, %v8563_v48  ;;  %v3086_v19 = vpop.f32.mrb[45].mxu1 }
 0x794   :  { %v3087_v49 = vadd.f32 %v8563_v48, %v3086_v19  ;;  %v6753_v12 = vpop.f32.mrb[46].mxu1 }
 0x795   :  { %v6305_v34 = vclamps-f32 %v3095_v59, 256.0  ;;  %v3098_v11 = vadd.f32 %v6753_v12, %v8563_v48  ;;  %v3089_v23 = vpop.f32.mrb[47].mxu1 }
 0x796   :  { %v6303_v20 = vclamps-f32 %v3087_v49, 256.0  ;;  %v3090_v7 = vadd.f32 %v8563_v48, %v3089_v23 }
 0x797   :  { %6313 = vst.msk [vmem:[%s9986_s8 + $0xf0] sm:$0xff] %vm1321_vm2, %v6305_v34  ;;  %v6306_v55 = vclamps-f32 %v3098_v11, 256.0 }
 0x798   :  { %6311 = vst.msk [vmem:[%s9986_s8 + $0xe0] sm:$0xff] %vm1321_vm2, %v6303_v20  ;;  %v6304_v15 = vclamps-f32 %v3090_v7, 256.0 }
 0x799   :  { %6314 = vst.msk [vmem:[%s9986_s8 + $0xf8] sm:$0xff] %vm1321_vm2, %v6306_v55 }
 0x79a   :  { %6312 = vst.msk [vmem:[%s9986_s8 + $0xe8] sm:$0xff] %vm1321_vm2, %v6304_v15  ;;  %v6766_v48 = vpop.f32.mrb[48].mxu1 }
 0x79b   :  { %v3521_v10 = vadd.f32 %v6766_v48, %v6332_v58  ;;  %v3512_v50 = vpop.f32.mrb[49].mxu1 }
 0x79c   :  { %v3513_v39 = vadd.f32 %v6332_v58, %v3512_v50  ;;  %v6767_v36 = vpop.f32.mrb[50].mxu1 }
 0x79d   :  { %vm3545_vm10 = vcmp.ge.f32.partialorder %v3521_v10, 0.0  ;;  %v3553_v26 = vmul.f32 0.2, %v3521_v10  ;;  %v3524_v29 = vadd.f32 %v6767_v36, %v6332_v58  ;;  %v3515_v5 = vpop.f32.mrb[51].mxu1  ;;  %v6878_v36 = vld [vmem:[%s9981_s3 + $0x50] sm:$0xff]  }
 0x79e   :  { %vm3543_vm11 = vcmp.ge.f32.partialorder %v3513_v39, 0.0  ;;  %v3551_v41 = vmul.f32 0.2, %v3513_v39  ;;  %v3516_v44 = vadd.f32 %v6332_v58, %v3515_v5  ;;  %v6879_v5 = vld [vmem:[%s9981_s3 + $0x58] sm:$0xff]  }
 0x79f   :  { %v3561_v52 = vsel %vm3545_vm10, %v3521_v10, %v3553_v26  ;;  %vm3546_vm4 = vcmp.ge.f32.partialorder %v3524_v29, 0.0  ;;  %v3554_v6 = vmul.f32 0.2, %v3524_v29  ;;  %vm10099_vm10 = vcmask 1048448  }
 0x7a0   :  { %v3569_v1 = vmul.f32 1.4142135, %v3561_v52  ;;  %v3559_v47 = vsel %vm3543_vm11, %v3513_v39, %v3551_v41  ;;  %vm3544_vm12 = vcmp.ge.f32.partialorder %v3516_v44, 0.0  ;;  %v3552_v37 = vmul.f32 0.2, %v3516_v44  ;;  %v6877_v39 = vld [vmem:[%s9981_s3 + $0x48] sm:$0xff]   ;;  %vm10100_vm11 = vmmov %vm10093_vm7 }
 0x7a1   :  { %v3567_v3 = vmul.f32 1.4142135, %v3559_v47  ;;  %v3562_v46 = vsel %vm3546_vm4, %v3524_v29, %v3554_v6  ;;  %4060 = vmatpush1.bf16.msra.mxu0 %v6877_v39  ;;  %v6880_v52 = vld [vmem:[%s9981_s3 + $0x60] sm:$0xff]   ;;  %v6881_v47 = vld [vmem:[%s9981_s3 + $0x68] sm:$0xff]   ;;  %vm10101_vm4 = vmmov %vm10095_vm8 }
 0x7a2   :  { %v6344_v43 = vclamps-f32 %v3569_v1, 256.0  ;;  %v3570_v33 = vmul.f32 1.4142135, %v3562_v46  ;;  %v3560_v40 = vsel %vm3544_vm12, %v3516_v44, %v3552_v37  ;;  %v6770_v2 = vpop.f32.mrb[52].mxu1  ;;  %4061 = vmatprep.subr.bf16.mxu0 %v10056_v38  ;;  %v3719_v37 = vld [vmem:[#allocation3 + $0x141] sm:$0xff]  ;;  %vm10103_vm12 = vmmov %vm10097_vm9 }
 0x7a3   :  { %v6342_v16 = vclamps-f32 %v3567_v3, 256.0  ;;  %v3568_v21 = vmul.f32 1.4142135, %v3560_v40  ;;  %v3537_v18 = vadd.f32 %v6770_v2, %v6332_v58  ;;  %v3528_v35 = vpop.f32.mrb[53].mxu1  ;;  %v3751_v3 = vld [vmem:[#allocation3 + $0x1e1] sm:$0xff] }
 0x7a4   :  { %3593 = vst.msk [vmem:[#allocation3 + $0x31] sm:$0xff] %vm51_vm3, %v6344_v43  ;;  %v6345_v17 = vclamps-f32 %v3570_v33, 256.0  ;;  %v3529_v22 = vadd.f32 %v6332_v58, %v3528_v35  ;;  %3675 = vrot.lane.b32.xlu1 %v6344_v43, %s6927_s25  ;;  %3643 = vrot.lane.b32.xlu0 %v6344_v43, %s6928_s26  ;;  %v6771_v24 = vpop.f32.mrb[54].mxu1  ;;  %v3703_v46 = vld [vmem:[#allocation3 + $0x1e0] sm:$0xff]  ;;  %v6882_v35 = vld [vmem:[%s9981_s3 + $0x70] sm:$0xff]  }
 0x7a5   :  { %3591 = vst.msk [vmem:[#allocation3 + $0x11] sm:$0xff] %vm51_vm3, %v6342_v16  ;;  %v6343_v30 = vclamps-f32 %v3568_v21, 256.0  ;;  %vm3549_vm0 = vcmp.ge.f32.partialorder %v3537_v18, 0.0  ;;  %v3557_v32 = vmul.f32 0.2, %v3537_v18  ;;  %v3540_v42 = vadd.f32 %v6771_v24, %v6332_v58  ;;  %v3531_v63 = vpop.f32.mrb[55].mxu1  ;;  %4062 = vmatpush1.bf16.msra.mxu0 %v6878_v36 }
 0x7a6   :  { %3594 = vst.msk [vmem:[#allocation3 + $0x41] sm:$0xff] %vm51_vm3, %v6345_v17  ;;  %vm3547_vm13 = vcmp.ge.f32.partialorder %v3529_v22, 0.0  ;;  %v3555_v62 = vmul.f32 0.2, %v3529_v22  ;;  %v3532_v14 = vadd.f32 %v6332_v58, %v3531_v63  ;;  %4063 = vmatprep.subr.bf16.mxu0 %v10056_v38  ;;  %v6883_v63 = vld [vmem:[%s9981_s3 + $0x78] sm:$0xff]  }
 0x7a7   :  { %3592 = vst.msk [vmem:[#allocation3 + $0x21] sm:$0xff] %vm51_vm3, %v6343_v30  ;;  %v3565_v27 = vsel %vm3549_vm0, %v3537_v18, %v3557_v32  ;;  %vm3550_vm5 = vcmp.ge.f32.partialorder %v3540_v42, 0.0  ;;  %v3558_v25 = vmul.f32 0.2, %v3540_v42  ;;  %vm10105_vm0 = vmmov %vm10099_vm10 }
 0x7a8   :  { %v3573_v0 = vmul.f32 1.4142135, %v3565_v27  ;;  %v3563_v31 = vsel %vm3547_vm13, %v3529_v22, %v3555_v62  ;;  %3671 = vrot.lane.b32.xlu1 %v6342_v16, %s6927_s25  ;;  %3639 = vrot.lane.b32.xlu0 %v6342_v16, %s6928_s26  ;;  %vm3548_vm6 = vcmp.ge.f32.partialorder %v3532_v14, 0.0  ;;  %v3556_v56 = vmul.f32 0.2, %v3532_v14  ;;  %vm10106_vm13 = vmmov %vm10093_vm7 }
 0x7a9   :  { %v3571_v4 = vmul.f32 1.4142135, %v3563_v31  ;;  %v3566_v61 = vsel %vm3550_vm5, %v3540_v42, %v3558_v25  ;;  %4064 = vmatpush1.bf16.msra.mxu0 %v6879_v5  ;;  %v6885_v5 = vld [vmem:[%s9981_s3 + $0x88] sm:$0xff]   ;;  %vm10107_vm5 = vmmov %vm10101_vm4 }
 0x7aa   :  { %v6348_v8 = vclamps-f32 %v3573_v0, 256.0  ;;  %v3574_v53 = vmul.f32 1.4142135, %v3566_v61  ;;  %v3564_v51 = vsel %vm3548_vm6, %v3532_v14, %v3556_v56  ;;  %4065 = vmatprep.subr.bf16.mxu0 %v10056_v38  ;;  %vm10109_vm6 = vmmov %vm10097_vm9 }
 0x7ab   :  { %v6346_v9 = vclamps-f32 %v3571_v4, 256.0  ;;  %v3572_v13 = vmul.f32 1.4142135, %v3564_v51  ;;  %v8728_v45 = vld [vmem:[#allocation3 + $0x31] sm:$0xff] }
 0x7ac   :  { %3597 = vst.msk [vmem:[#allocation3 + $0x71] sm:$0xff] %vm51_vm3, %v6348_v8  ;;  %3609 = vrot.lane.b32.xlu1 %v6343_v30, %s6929_s27  ;;  %3607 = vrot.lane.b32.xlu0 %v6342_v16, %s6929_s27  ;;  %v6349_v57 = vclamps-f32 %v3574_v53, 256.0  ;;  %10072 = vst [vmem:[#allocation6_spill] sm:$0xff] %v8728_v45  ;;  %v8735_v59 = vld [vmem:[#allocation3 + $0x31] sm:$0xff] }
 0x7ad   :  { %3595 = vst.msk [vmem:[#allocation3 + $0x51] sm:$0xff] %vm51_vm3, %v6346_v9  ;;  %v6347_v60 = vclamps-f32 %v3572_v13, 256.0  ;;  %v8730_v28 = vld [vmem:[#allocation3 + $0x41] sm:$0xff]  ;;  %v3815_v48 = vld [vmem:[#allocation3 + $0x11] sm:$0xff]  ;;  %4066 = vmatpush1.bf16.msra.mxu0 %v6880_v52 }
 0x7ae   :  { %10073 = vst [vmem:[#allocation7_spill] sm:$0xff] %v8730_v28  ;;  %3598 = vst.msk [vmem:[#allocation3 + $0x81] sm:$0xff] %vm51_vm3, %v6349_v57  ;;  %v8733_v54 = vld [vmem:[#allocation3 + $0x21] sm:$0xff]  ;;  %4067 = vmatprep.subr.bf16.mxu0 %v10056_v38 }
 0x7af   :  { %3596 = vst.msk [vmem:[#allocation3 + $0x61] sm:$0xff] %vm51_vm3, %v6347_v60  ;;  %v8746_v12 = vld [vmem:[#allocation3 + $0x41] sm:$0xff]  ;;  %v8779_v10 = vpack.c.bf16 %v8733_v54, %v3815_v48 }
 0x7b0   :  { %3641 = vrot.lane.b32.xlu1 %v6343_v30, %s6928_s26  ;;  %3673 = vrot.lane.b32.xlu0 %v6343_v30, %s6927_s25  ;;  %v8783_v50 = vpack.c.bf16 %v8746_v12, %v8735_v59 }
 0x7b1   :  { %4068 = vmatpush1.bf16.msra.mxu0 %v6881_v47 }
 0x7b2   :  { %4069 = vmatprep.subr.bf16.mxu0 %v10056_v38 }
 0x7b3   :  { %v8748_v34 = vld [vmem:[#allocation3 + $0x71] sm:$0xff] }
 0x7b4   :  { %3613 = vrot.lane.b32.xlu1 %v6345_v17, %s6929_s27  ;;  %3611 = vrot.lane.b32.xlu0 %v6344_v43, %s6929_s27  ;;  %v8750_v11 = vld [vmem:[#allocation3 + $0x51] sm:$0xff] }
 0x7b5   :  { %v8754_v20 = vld [vmem:[#allocation3 + $0x71] sm:$0xff]  ;;  %v8756_v7 = vld [vmem:[#allocation3 + $0x81] sm:$0xff]  ;;  %4070 = vmatpush1.bf16.msra.mxu0 %v6882_v35 }
 0x7b6   :  { %10074 = vst [vmem:[#allocation11_spill] sm:$0xff] %v8754_v20  ;;  %10075 = vst [vmem:[#allocation8_spill] sm:$0xff] %v8756_v7  ;;  %v8758_v55 = vld [vmem:[#allocation3 + $0x61] sm:$0xff]  ;;  %4071 = vmatprep.subr.bf16.mxu0 %v10056_v38 }
 0x7b7   :  { %v8985_v15 = vpack.c.bf16 %v8758_v55, %v8750_v11 }
 0x7b8   :  { %3645 = vrot.lane.b32.xlu1 %v6345_v17, %s6928_s26  ;;  %3677 = vrot.lane.b32.xlu0 %v6345_v17, %s6927_s25 }
 0x7b9   :  { %4072 = vmatpush1.bf16.msra.mxu0 %v6883_v63 }
 0x7ba   :  { %4073 = vmatprep.subr.bf16.mxu0 %v10056_v38 }
 0x7bc   :  { %3683 = vrot.lane.b32.xlu1 %v6348_v8, %s6927_s25  ;;  %3651 = vrot.lane.b32.xlu0 %v6348_v8, %s6928_s26 }
 0x7c0   :  { %3679 = vrot.lane.b32.xlu1 %v6346_v9, %s6927_s25  ;;  %3647 = vrot.lane.b32.xlu0 %v6346_v9, %s6928_s26 }
 0x7c4   :  { %3617 = vrot.lane.b32.xlu1 %v6347_v60, %s6929_s27  ;;  %3615 = vrot.lane.b32.xlu0 %v6346_v9, %s6929_s27 }
 0x7c8   :  { %3649 = vrot.lane.b32.xlu1 %v6347_v60, %s6928_s26  ;;  %3681 = vrot.lane.b32.xlu0 %v6347_v60, %s6927_s25 }
 0x7cc   :  { %3621 = vrot.lane.b32.xlu1 %v6349_v57, %s6929_s27  ;;  %3619 = vrot.lane.b32.xlu0 %v6348_v8, %s6929_s27  ;;  %v6884_v8 = vld [vmem:[%s9981_s3 + $0x80] sm:$0xff]  }
 0x7cd   :  { %4074 = vmatpush1.bf16.msra.mxu0 %v6884_v8 }
 0x7ce   :  { %4075 = vmatprep.subr.bf16.mxu0 %v10056_v38  ;;  %v5742_v38 = vld [vmem:[#allocation3 + $0x52] sm:$0xff] }
 0x7d0   :  { %3653 = vrot.lane.b32.xlu1 %v6349_v57, %s6928_s26  ;;  %3685 = vrot.lane.b32.xlu0 %v6349_v57, %s6927_s25 }
 0x7d1   :  { %4076 = vmatpush1.bf16.msra.mxu0 %v6885_v5 }
 0x7d4   :  { %3831 = vrot.lane.b32.xlu1 %v8779_v10, %s6926_s20  ;;  %3833 = vrot.lane.b32.xlu0 %v8783_v50, %s6926_s20 }
 0x816   :  { %v3644_v26 = vpop.permute.xlu0 %3643  ;;  %v3676_v29 = vpop.permute.xlu1 %3675 }
 0x817   :  { %3665 = vst.msk [vmem:[#allocation3 + $0x171] sm:$0xff] %vm51_vm3, %v3644_v26  ;;  %3697 = vst.msk [vmem:[#allocation3 + $0x211] sm:$0xff] %vm51_vm3, %v3676_v29 }
 0x81a   :  { %v3640_v41 = vpop.permute.xlu0 %3639  ;;  %v3672_v44 = vpop.permute.xlu1 %3671 }
 0x81b   :  { %3663 = vst.msk [vmem:[#allocation3 + $0x151] sm:$0xff] %vm51_vm3, %v3640_v41  ;;  %3695 = vst.msk [vmem:[#allocation3 + $0x1f1] sm:$0xff] %vm51_vm3, %v3672_v44 }
 0x81e   :  { %v3608_v6 = vpop.permute.xlu0 %3607  ;;  %v3610_v1 = vpop.permute.xlu1 %3609  ;;  %v3881_v61 = vld [vmem:[#allocation3 + $0x210] sm:$0xff] }
 0x81f   :  { %3631 = vst.msk [vmem:[#allocation3 + $0xb1] sm:$0xff] %vm51_vm3, %v3608_v6  ;;  %3632 = vst.msk [vmem:[#allocation3 + $0xc1] sm:$0xff] %vm51_vm3, %v3610_v1  ;;  %v3754_v47 = vld [vmem:[#allocation3 + $0x211] sm:$0xff] }
 0x822   :  { %v3674_v43 = vpop.permute.xlu0 %3673  ;;  %v3642_v33 = vpop.permute.xlu1 %3641  ;;  %v3720_v40 = vld [vmem:[#allocation3 + $0x151] sm:$0xff] }
 0x823   :  { %v3752_v2 = vld [vmem:[#allocation3 + $0x1f1] sm:$0xff]  ;;  %3696 = vst.msk [vmem:[#allocation3 + $0x201] sm:$0xff] %vm51_vm3, %v3674_v43  ;;  %3664 = vst.msk [vmem:[#allocation3 + $0x161] sm:$0xff] %vm51_vm3, %v3642_v33  ;;  %v8817_v16 = vpack.c.bf16 %v3720_v40, %v3719_v37 }
 0x824   :  { %v8819_v21 = vpack.c.bf16 %v3752_v2, %v3751_v3  ;;  %v8821_v18 = vld [vmem:[#allocation3 + $0x1f0] sm:$0xff] }
 0x825   :  { %v3711_v17 = vpack.c.bf16 %v8821_v18, %v3703_v46  ;;  %3735 = vrot.lane.b32.xlu0 %v8817_v16, %s6920_s24  ;;  %v8887_v1 = vld [vmem:[#allocation3 + $0x152] sm:$0xff] }
 0x826   :  { %3767 = vrot.lane.b32.xlu1 %v8819_v21, %s6922_s12  ;;  %v3612_v22 = vpop.permute.xlu0 %3611  ;;  %v3614_v24 = vpop.permute.xlu1 %3613  ;;  %v3783_v30 = vld [vmem:[#allocation3 + $0xb0] sm:$0xff]  ;;  %v8831_v32 = vld [vmem:[#allocation3 + $0xc0] sm:$0xff] }
 0x827   :  { %3715 = vst.msk [vmem:[#allocation5] sm:$0xff] %vm51_vm3, %v3711_v17  ;;  %3633 = vst.msk [vmem:[#allocation3 + $0xd1] sm:$0xff] %vm51_vm3, %v3612_v22  ;;  %v3791_v42 = vpack.c.bf16 %v8831_v32, %v3783_v30  ;;  %v3847_v62 = vld [vmem:[#allocation3 + $0xb1] sm:$0xff]  ;;  %v3848_v14 = vld [vmem:[#allocation3 + $0xc1] sm:$0xff] }
 0x828   :  { %3634 = vst.msk [vmem:[#allocation3 + $0xe1] sm:$0xff] %vm51_vm3, %v3614_v24  ;;  %v8844_v31 = vpack.c.bf16 %v3848_v14, %v3847_v62  ;;  %v8858_v9 = vld [vmem:[#allocation3 + $0xc1] sm:$0xff]  ;;  %v3722_v22 = vld [vmem:[#allocation3 + $0x171] sm:$0xff] }
 0x829   :  { %3799 = vrot.lane.b32.xlu0 %v3791_v42, %s6924_s18  ;;  %10076 = vst [vmem:[#allocation12_spill] sm:$0xff] %v8858_v9  ;;  %v8919_v30 = vld [vmem:[#allocation3 + $0x81] sm:$0xff] }
 0x82a   :  { %v3678_v27 = vpop.permute.xlu0 %3677  ;;  %v3646_v25 = vpop.permute.xlu1 %3645  ;;  %v3944_v0 = vld [vmem:[#allocation3 + $0x201] sm:$0xff] }
 0x82b   :  { %3698 = vst.msk [vmem:[#allocation3 + $0x221] sm:$0xff] %vm51_vm3, %v3678_v27  ;;  %3666 = vst.msk [vmem:[#allocation3 + $0x181] sm:$0xff] %vm51_vm3, %v3646_v25  ;;  %v8846_v56 = vpack.c.bf16 %v3944_v0, %v3752_v2  ;;  %v3880_v4 = vld [vmem:[#allocation3 + $0x200] sm:$0xff]  ;;  %v8897_v46 = vpack.c.bf16 %v3754_v47, %v3944_v0  ;;  %v8928_v0 = vld [vmem:[#allocation3 + $0x172] sm:$0xff] }
 0x82c   :  { %v8852_v53 = vld [vmem:[#allocation3 + $0x161] sm:$0xff]  ;;  %v3712_v51 = vpack.c.bf16 %v3881_v61, %v3880_v4 }
 0x82d   :  { %3863 = vrot.lane.b32.xlu0 %v8844_v31, %s6927_s25  ;;  %3955 = vst.msk [vmem:[#allocation5 + $0x8] sm:$0xff] %vm51_vm3, %v8846_v56  ;;  %v8870_v36 = vpack.c.bf16 %v8852_v53, %v3720_v40  ;;  %v8882_v44 = vld [vmem:[#allocation3 + $0x162] sm:$0xff]  ;;  %v8903_v40 = vpack.c.bf16 %v3880_v4, %v8821_v18  ;;  %v3728_v24 = vpack.c.bf16 %v3722_v22, %v8852_v53 }
 0x82e   :  { %v3652_v13 = vpop.permute.xlu0 %3651  ;;  %v3684_v57 = vpop.permute.xlu1 %3683  ;;  %v8860_v60 = vld [vmem:[#allocation3 + $0xd0] sm:$0xff]  ;;  %3716 = vst.msk [vmem:[#allocation5 + $0x10] sm:$0xff] %vm51_vm3, %v3712_v51  ;;  %v8895_v3 = vpack.c.bf16 %v8882_v44, %v8887_v1  ;;  %v8934_v4 = vpack.c.bf16 %v8919_v30, %v8748_v34 }
 0x82f   :  { %v8862_v48 = vld [vmem:[#allocation3 + $0xe0] sm:$0xff]  ;;  %v8864_v39 = vld [vmem:[#allocation3 + $0xd1] sm:$0xff]  ;;  %3669 = vst.msk [vmem:[#allocation3 + $0x1b1] sm:$0xff] %vm51_vm3, %v3652_v13  ;;  %3701 = vst.msk [vmem:[#allocation3 + $0x251] sm:$0xff] %vm51_vm3, %v3684_v57 }
 0x830   :  { %v3792_v26 = vpack.c.bf16 %v8862_v48, %v8860_v60  ;;  %v5142_v63 = vld [vmem:[#allocation3 + $0xd1] sm:$0xff]  ;;  %v3850_v62 = vld [vmem:[#allocation3 + $0xe1] sm:$0xff] }
 0x831   :  { %3927 = vrot.lane.b32.xlu0 %v8870_v36, %s6929_s27  ;;  %v5149_v51 = vpack.c.bf16 %v5142_v63, %v8858_v9  ;;  %v8943_v13 = vpack.c.bf16 %v3850_v62, %v8864_v39  ;;  %v5739_v62 = vld [vmem:[#allocation3 + $0x22] sm:$0xff] }
 0x832   :  { %3801 = vrot.lane.b32.xlu1 %v3792_v26, %s6924_s18  ;;  %v3648_v52 = vpop.permute.xlu0 %3647  ;;  %v3680_v6 = vpop.permute.xlu1 %3679  ;;  %v8889_v37 = vld [vmem:[#allocation3 + $0x221] sm:$0xff] }
 0x833   :  { %10077 = vst [vmem:[#allocation18_spill] sm:$0xff] %v8889_v37  ;;  %3667 = vst.msk [vmem:[#allocation3 + $0x191] sm:$0xff] %vm51_vm3, %v3648_v52  ;;  %v8900_v43 = vpack.c.bf16 %v8889_v37, %v3754_v47  ;;  %v3882_v2 = vld [vmem:[#allocation3 + $0x220] sm:$0xff] }
 0x834   :  { %3699 = vst.msk [vmem:[#allocation3 + $0x231] sm:$0xff] %vm51_vm3, %v3680_v6  ;;  %v3960_v33 = vld [vmem:[#allocation5 + $0x8] sm:$0xff]  ;;  %v8916_v18 = vpack.c.bf16 %v3882_v2, %v3881_v61 }
 0x835   :  { %6378 = vmatprep.mubr.msk.bf16.mxu0 %vm51_vm3, %v3960_v33  ;;  %4555 = vst.msk [vmem:[#allocation5 + $0x8] sm:$0xff] %vm51_vm3, %v8895_v3  ;;  %3769 = vrot.lane.b32.xlu0 %v8897_v46, %s6922_s12  ;;  %3956 = vst.msk [vmem:[#allocation5 + $0x18] sm:$0xff] %vm51_vm3, %v8900_v43  ;;  %v8921_v42 = vld [vmem:[#allocation3 + $0x182] sm:$0xff] }
 0x836   :  { %3895 = vrot.lane.b32.xlu1 %v8903_v40, %s6928_s26  ;;  %v3616_v35 = vpop.permute.xlu0 %3615  ;;  %v3618_v17 = vpop.permute.xlu1 %3617  ;;  %v8938_v61 = vpack.c.bf16 %v8921_v42, %v8928_v0  ;;  %v8953_v52 = vld [vmem:[#allocation3 + $0x181] sm:$0xff]  ;;  %v3885_v41 = vld [vmem:[#allocation3 + $0x250] sm:$0xff] }
 0x837   :  { %3635 = vst.msk [vmem:[#allocation3 + $0xf1] sm:$0xff] %vm51_vm3, %v3616_v35  ;;  %3636 = vst.msk [vmem:[#allocation3 + $0x101] sm:$0xff] %vm51_vm3, %v3618_v17  ;;  %v8970_v17 = vpack.c.bf16 %v8953_v52, %v3722_v22  ;;  %v9068_v45 = vld [vmem:[#allocation3 + $0x1b2] sm:$0xff] }
 0x838   :  { %10078 = vst [vmem:[#allocation14_spill] sm:$0xff] %v8938_v61  ;;  %10080 = vst [vmem:[#allocation19_spill] sm:$0xff] %v8953_v52 }
 0x839   :  { %3897 = vrot.lane.b32.xlu0 %v8916_v18, %s6928_s26 }
 0x83a   :  { %3737 = vrot.lane.b32.xlu1 %v3728_v24, %s6920_s24  ;;  %v3682_v14 = vpop.permute.xlu0 %3681  ;;  %v3650_v27 = vpop.permute.xlu1 %3649  ;;  %v8945_v57 = vld [vmem:[#allocation3 + $0x191] sm:$0xff] }
 0x83b   :  { %v8926_v25 = vld [vmem:[#allocation3 + $0x230] sm:$0xff]  ;;  %3700 = vst.msk [vmem:[#allocation3 + $0x241] sm:$0xff] %vm51_vm3, %v3682_v14  ;;  %3668 = vst.msk [vmem:[#allocation3 + $0x1a1] sm:$0xff] %vm51_vm3, %v3650_v27 }
 0x83c   :  { %v3713_v8 = vpack.c.bf16 %v8926_v25, %v3882_v2  ;;  %v8947_v26 = vld [vmem:[#allocation5 + $0x18] sm:$0xff]  ;;  %v8949_v5 = vld [vmem:[#allocation5 + $0x8] sm:$0xff]  ;;  %v3729_v2 = vpack.c.bf16 %v8945_v57, %v8953_v52 }
 0x83d   :  { %10079 = vst [vmem:[#allocation17_spill] sm:$0xff] %v8949_v5  ;;  %3837 = vrot.lane.b32.xlu0 %v8934_v4, %s6926_s20  ;;  %4556 = vst.msk [vmem:[#allocation5 + $0x18] sm:$0xff] %vm51_vm3, %v8938_v61  ;;  %v5740_v14 = vld [vmem:[#allocation3 + $0x32] sm:$0xff] }
 0x83e   :  { %3717 = vst.msk [vmem:[#allocation5 + $0x20] sm:$0xff] %vm51_vm3, %v3713_v8  ;;  %5153 = vst.msk [vmem:[#allocation5 + $0x8] sm:$0xff] %vm51_vm3, %v5149_v51  ;;  %3865 = vrot.lane.b32.xlu1 %v8943_v13, %s6927_s25  ;;  %v3620_v6 = vpop.permute.xlu0 %3619  ;;  %v3622_v47 = vpop.permute.xlu1 %3621  ;;  %v8961_v33 = vld [vmem:[#allocation3 + $0xf0] sm:$0xff]  ;;  %v8972_v24 = vld [vmem:[#allocation3 + $0x100] sm:$0xff]  ;;  %v5747_v23 = vpack.c.bf16 %v5740_v14, %v5739_v62 }
 0x83f   :  { %3637 = vst.msk [vmem:[#allocation3 + $0x111] sm:$0xff] %vm51_vm3, %v3620_v6  ;;  %3638 = vst.msk [vmem:[#allocation3 + $0x121] sm:$0xff] %vm51_vm3, %v3622_v47  ;;  %v5710_v63 = vld [vmem:[#allocation3 + $0xf1] sm:$0xff]  ;;  %v5709_v47 = vld [vmem:[#allocation3 + $0xe1] sm:$0xff]  ;;  %v3793_v22 = vpack.c.bf16 %v8972_v24, %v8961_v33 }
 0x840   :  { %v3756_v58 = vld [vmem:[#allocation3 + $0x231] sm:$0xff]  ;;  %v3852_v35 = vld [vmem:[#allocation3 + $0x101] sm:$0xff] }
 0x841   :  { %3739 = vrot.lane.b32.xlu0 %v3729_v2, %s6920_s24  ;;  %v3851_v19 = vld [vmem:[#allocation3 + $0xf1] sm:$0xff]  ;;  %v8981_v2 = vpack.c.bf16 %v5710_v63, %v5709_v47  ;;  %v9006_v14 = vld [vmem:[#allocation3 + $0x101] sm:$0xff]  ;;  %v9019_v5 = vpack.c.bf16 %v3756_v58, %v8889_v37 }
 0x842   :  { %3929 = vrot.lane.b32.xlu1 %v8970_v17, %s6929_s27  ;;  %v3686_v27 = vpop.permute.xlu0 %3685  ;;  %v3654_v8 = vpop.permute.xlu1 %3653  ;;  %v3757_v51 = vld [vmem:[#allocation3 + $0x241] sm:$0xff]  ;;  %10084 = vst [vmem:[#allocation9_spill] sm:$0xff] %v9006_v14  ;;  %v9008_v47 = vpack.c.bf16 %v3852_v35, %v3851_v19 }
 0x843   :  { %v3884_v6 = vld [vmem:[#allocation3 + $0x240] sm:$0xff]  ;;  %3702 = vst.msk [vmem:[#allocation3 + $0x261] sm:$0xff] %vm51_vm3, %v3686_v27  ;;  %3670 = vst.msk [vmem:[#allocation3 + $0x1c1] sm:$0xff] %vm51_vm3, %v3654_v8  ;;  %v8987_v29 = vpack.c.bf16 %v3757_v51, %v3756_v58 }
 0x844   :  { %10081 = vst [vmem:[#allocation21_spill] sm:$0xff] %v8981_v2  ;;  %v3714_v49 = vpack.c.bf16 %v3885_v41, %v3884_v6  ;;  %v8989_v27 = vld [vmem:[#allocation5 + $0x18] sm:$0xff]  ;;  %v3916_v7 = vld [vmem:[#allocation3 + $0x1a1] sm:$0xff] }
 0x845   :  { %10082 = vst [vmem:[#allocation16_spill] sm:$0xff] %v8989_v27  ;;  %v8991_v8 = vld [vmem:[#allocation5 + $0x8] sm:$0xff]  ;;  %3803 = vrot.lane.b32.xlu0 %v3793_v22, %s6924_s18  ;;  %5154 = vst.msk [vmem:[#allocation5 + $0x18] sm:$0xff] %vm51_vm3, %v8981_v2  ;;  %v9034_v20 = vpack.c.bf16 %v3916_v7, %v8945_v57  ;;  %v9036_v2 = vld [vmem:[#allocation3 + $0x192] sm:$0xff] }
 0x846   :  { %10083 = vst [vmem:[#allocation20_spill] sm:$0xff] %v8991_v8  ;;  %5751 = vst.msk [vmem:[#allocation5 + $0x8] sm:$0xff] %vm51_vm3, %v5747_v23  ;;  %3835 = vrot.lane.b32.xlu1 %v8985_v15, %s6926_s20  ;;  %v8999_v63 = vld [vmem:[#allocation3 + $0x110] sm:$0xff]  ;;  %v9016_v27 = vld [vmem:[#allocation3 + $0x121] sm:$0xff] }
 0x847   :  { %v9001_v62 = vld [vmem:[#allocation3 + $0x111] sm:$0xff]  ;;  %3957 = vst.msk [vmem:[#allocation5 + $0x28] sm:$0xff] %vm51_vm3, %v8987_v29  ;;  %3718 = vst.msk [vmem:[#allocation5 + $0x30] sm:$0xff] %vm51_vm3, %v3714_v49  ;;  %v9025_v19 = vld [vmem:[#allocation3 + $0x120] sm:$0xff] }
 0x848   :  { %v9014_v8 = vld [vmem:[#allocation3 + $0x111] sm:$0xff]  ;;  %v9027_v35 = vld [vmem:[#allocation3 + $0x1a2] sm:$0xff]  ;;  %v3794_v52 = vpack.c.bf16 %v9025_v19, %v8999_v63 }
 0x849   :  { %10085 = vst [vmem:[#allocation13_spill] sm:$0xff] %v9014_v8  ;;  %3867 = vrot.lane.b32.xlu0 %v9008_v47, %s6927_s25  ;;  %v3758_v23 = vld [vmem:[#allocation3 + $0x251] sm:$0xff]  ;;  %v5741_v58 = vld [vmem:[#allocation3 + $0x42] sm:$0xff]  ;;  %v9045_v28 = vpack.c.bf16 %v9027_v35, %v9036_v2 }
 0x84a   :  { %3771 = vrot.lane.b32.xlu1 %v9019_v5, %s6922_s12  ;;  %v9031_v22 = vld [vmem:[#allocation3 + $0x261] sm:$0xff]  ;;  %v5748_v61 = vpack.c.bf16 %v5742_v38, %v5741_v58  ;;  %v9059_v38 = vpack.c.bf16 %v3758_v23, %v3757_v51  ;;  %v9062_v58 = vpack.c.bf16 %v3884_v6, %v8926_v25  ;;  %v5151_v25 = vpack.c.bf16 %v9014_v8, %v9006_v14  ;;  %v5744_v8 = vld [vmem:[#allocation3 + $0x72] sm:$0xff] }
 0x84b   :  { %10086 = vst [vmem:[#allocation22_spill] sm:$0xff] %v9031_v22  ;;  %v9039_v49 = vpack.c.bf16 %v9031_v22, %v3758_v23  ;;  %10087 = vst [vmem:[#allocation10_spill] sm:$0xff] %v9045_v28  ;;  %v4550_v22 = vld [vmem:[#allocation3 + $0x1c2] sm:$0xff] }
 0x84c   :  { %v9047_v37 = vld [vmem:[#allocation5 + $0x18] sm:$0xff]  ;;  %v3854_v6 = vld [vmem:[#allocation3 + $0x121] sm:$0xff] }
 0x84d   :  { %10088 = vst [vmem:[#allocation15_spill] sm:$0xff] %v9047_v37  ;;  %3931 = vrot.lane.b32.xlu0 %v9034_v20, %s6929_s27  ;;  %3958 = vst.msk [vmem:[#allocation5 + $0x38] sm:$0xff] %vm51_vm3, %v9039_v49  ;;  %v3886_v37 = vld [vmem:[#allocation3 + $0x260] sm:$0xff] }
 0x84e   :  { %v9051_v57 = vld [vmem:[#allocation5 + $0x28] sm:$0xff]  ;;  %5752 = vst.msk [vmem:[#allocation5 + $0x18] sm:$0xff] %vm51_vm3, %v5748_v61  ;;  %3805 = vrot.lane.b32.xlu1 %v3794_v52, %s6924_s18  ;;  %v9070_v61 = vpack.c.bf16 %v3886_v37, %v3885_v41  ;;  %v3726_v52 = vld [vmem:[#allocation3 + $0x1b1] sm:$0xff] }
 0x84f   :  { %4557 = vst.msk [vmem:[#allocation5 + $0x28] sm:$0xff] %vm51_vm3, %v9045_v28  ;;  %v9073_v28 = vpack.c.bf16 %v4550_v22, %v9068_v45  ;;  %v3730_v51 = vpack.c.bf16 %v3726_v52, %v3916_v7  ;;  %v9088_v7 = vpack.c.bf16 %v3854_v6, %v9001_v62  ;;  %v5714_v41 = vld [vmem:[#allocation3 + $0x131] sm:$0xff]  ;;  %v3918_v37 = vld [vmem:[#allocation3 + $0x1c1] sm:$0xff] }
 0x850   :  { %v5743_v22 = vld [vmem:[#allocation3 + $0x62] sm:$0xff] }
 0x851   :  { %3773 = vrot.lane.b32.xlu0 %v9059_v38, %s6922_s12  ;;  %10089 = vst [vmem:[#allocation23_spill] sm:$0xff] %v9073_v28  ;;  %v5749_v6 = vpack.c.bf16 %v5744_v8, %v5743_v22  ;;  %v4351_v14 = vld [vmem:[#allocation3 + $0x142] sm:$0xff]  ;;  %v5746_v22 = vld [vmem:[#allocation3 + $0x92] sm:$0xff] }
 0x852   :  { %3899 = vrot.lane.b32.xlu1 %v9062_v58, %s6928_s26  ;;  %v5745_v8 = vld [vmem:[#allocation3 + $0x82] sm:$0xff] }
 0x854   :  { %v9075_v23 = vld [vmem:[#allocation5 + $0x38] sm:$0xff] }
 0x855   :  { %3901 = vrot.lane.b32.xlu0 %v9070_v61, %s6928_s26  ;;  %4558 = vst.msk [vmem:[#allocation5 + $0x38] sm:$0xff] %vm51_vm3, %v9073_v28  ;;  %v9095_v28 = vpack.c.bf16 %v5714_v41, %v9016_v27  ;;  %v4447_v41 = vld [vmem:[#allocation3 + $0x12] sm:$0xff] }
 0x856   :  { %v9083_v9 = vld [vmem:[#allocation5 + $0x28] sm:$0xff]  ;;  %3741 = vrot.lane.b32.xlu1 %v3730_v51, %s6920_s24 }
 0x857   :  { %10090 = vst [vmem:[#allocation24_spill] sm:$0xff] %v9083_v9  ;;  %5155 = vst.msk [vmem:[#allocation5 + $0x28] sm:$0xff] %vm51_vm3, %v5151_v25  ;;  %v9097_v9 = vpack.c.bf16 %v3918_v37, %v3726_v52  ;;  %v4448_v51 = vld [vmem:[#allocation3 + $0x22] sm:$0xff]  ;;  %v4359_v37 = vpack.c.bf16 %v8887_v1, %v4351_v14  ;;  %v4360_v1 = vpack.c.bf16 %v8928_v0, %v8882_v44  ;;  %v4451_v0 = vld [vmem:[#allocation3 + $0x52] sm:$0xff] }
 0x858   :  { %10091 = vst [vmem:[#allocation25_spill] sm:$0xff] %v9095_v28  ;;  %v9110_v52 = vpack.c.bf16 %v4448_v51, %v4447_v41  ;;  %v4450_v14 = vld [vmem:[#allocation3 + $0x42] sm:$0xff]  ;;  %v4449_v51 = vld [vmem:[#allocation3 + $0x32] sm:$0xff] }
 0x859   :  { %4335 = vrot.lane.b32.xlu0 %v8819_v21, %s6920_s24  ;;  %v9136_v44 = vpack.c.bf16 %v4450_v14, %v4449_v51 }
 0x85a   :  { %3869 = vrot.lane.b32.xlu1 %v9088_v7, %s6927_s25 }
 0x85c   :  { %v9099_v25 = vld [vmem:[#allocation5 + $0x38] sm:$0xff] }
 0x85d   :  { %10092 = vst [vmem:[#allocation26_spill] sm:$0xff] %v9099_v25  ;;  %4399 = vrot.lane.b32.xlu0 %v8779_v10, %s6924_s18  ;;  %5156 = vst.msk [vmem:[#allocation5 + $0x38] sm:$0xff] %vm51_vm3, %v9095_v28  ;;  %v5750_v25 = vpack.c.bf16 %v5746_v22, %v5745_v8 }
 0x85e   :  { %v9105_v21 = vld [vmem:[#allocation5 + $0x28] sm:$0xff]  ;;  %3933 = vrot.lane.b32.xlu1 %v9097_v9, %s6929_s27 }
 0x85f   :  { %5753 = vst.msk [vmem:[#allocation5 + $0x28] sm:$0xff] %vm51_vm3, %v5749_v6  ;;  %v4361_v6 = vpack.c.bf16 %v9036_v2, %v8921_v42  ;;  %v4362_v42 = vpack.c.bf16 %v9068_v45, %v9027_v35  ;;  %v4454_v2 = vld [vmem:[#allocation3 + $0x82] sm:$0xff]  ;;  %v3834_v45 = vpop.permute.xlu0 %3833  ;;  %v3832_v35 = vpop.permute.xlu1 %3831 }
 0x861   :  { %4463 = vrot.lane.b32.xlu0 %v9110_v52, %s6927_s25 }
 0x862   :  { %4367 = vrot.lane.b32.xlu1 %v4359_v37, %s6922_s12 }
 0x864   :  { %v9116_v28 = vld [vmem:[#allocation5 + $0x38] sm:$0xff] }
 0x865   :  { %4527 = vrot.lane.b32.xlu0 %v8846_v56, %s6929_s27  ;;  %5754 = vst.msk [vmem:[#allocation5 + $0x38] sm:$0xff] %vm51_vm3, %v5750_v25  ;;  %v4452_v25 = vld [vmem:[#allocation3 + $0x62] sm:$0xff] }
 0x866   :  { %4431 = vrot.lane.b32.xlu1 %v8844_v31, %s6926_s20 }
 0x869   :  { %4369 = vrot.lane.b32.xlu0 %v4360_v1, %s6922_s12 }
 0x86a   :  { %4495 = vrot.lane.b32.xlu1 %v8870_v36, %s6928_s26 }
 0x86d   :  { %4433 = vrot.lane.b32.xlu0 %v8943_v13, %s6926_s20 }
 0x86e   :  { %4337 = vrot.lane.b32.xlu1 %v8897_v46, %s6920_s24  ;;  %v9146_v46 = vpack.c.bf16 %v4452_v25, %v4451_v0 }
 0x871   :  { %4497 = vrot.lane.b32.xlu0 %v8970_v17, %s6928_s26 }
 0x872   :  { %4401 = vrot.lane.b32.xlu1 %v8783_v50, %s6924_s18 }
 0x875   :  { %4339 = vrot.lane.b32.xlu0 %v9019_v5, %s6920_s24  ;;  %v4453_v5 = vld [vmem:[#allocation3 + $0x72] sm:$0xff] }
 0x876   :  { %4465 = vrot.lane.b32.xlu1 %v9136_v44, %s6927_s25  ;;  %v9170_v41 = vpack.c.bf16 %v4454_v2, %v4453_v5  ;;  %v4307_v5 = vld [vmem:[#allocation3 + $0x181] sm:$0xff] }
 0x879   :  { %4403 = vrot.lane.b32.xlu0 %v8985_v15, %s6924_s18 }
 0x87a   :  { %4529 = vrot.lane.b32.xlu1 %v8900_v43, %s6929_s27 }
 0x87d   :  { %4467 = vrot.lane.b32.xlu0 %v9146_v46, %s6927_s25 }
 0x87e   :  { %4371 = vrot.lane.b32.xlu1 %v4361_v6, %s6922_s12 }
 0x881   :  { %4437 = vrot.lane.b32.xlu0 %v9088_v7, %s6926_s20 }
 0x882   :  { %4405 = vrot.lane.b32.xlu1 %v8934_v4, %s6924_s18 }
 0x885   :  { %4531 = vrot.lane.b32.xlu0 %v8987_v29, %s6929_s27 }
 0x886   :  { %4435 = vrot.lane.b32.xlu1 %v9008_v47, %s6926_s20 }
 0x889   :  { %4373 = vrot.lane.b32.xlu0 %v4362_v42, %s6922_s12 }
 0x88a   :  { %4499 = vrot.lane.b32.xlu1 %v9034_v20, %s6928_s26 }
 0x88d   :  { %4501 = vrot.lane.b32.xlu0 %v9097_v9, %s6928_s26 }
 0x88e   :  { %4341 = vrot.lane.b32.xlu1 %v9059_v38, %s6920_s24 }
 0x891   :  { %4933 = vrot.lane.b32.xlu0 %v8779_v10, %s6920_s24 }
 0x892   :  { %4469 = vrot.lane.b32.xlu1 %v9170_v41, %s6927_s25 }
 0x895   :  { %4997 = vrot.lane.b32.xlu0 %v8903_v40, %s6924_s18  ;;  %v10094_v40 = vpack.c.bf16 %v8735_v59, %v8733_v54 }
 0x896   :  { %4533 = vrot.lane.b32.xlu1 %v9039_v49, %s6929_s27 }
 0x897   :  { %v3736_v37 = vpop.permute.xlu0 %3735 }
 0x898   :  { %v3768_v8 = vpop.permute.xlu1 %3767  ;;  %3747 = vst.msk [vmem:[#allocation5] sm:$0xff] %vm770_vm14, %v3736_v37 }
 0x899   :  { %3779 = vst.msk [vmem:[#allocation5] sm:$0xff] %vm803_vm15, %v3768_v8  ;;  %5061 = vrot.lane.b32.xlu0 %v8846_v56, %s6927_s25  ;;  %v10096_v56 = vpack.c.bf16 %v8860_v60, %v8831_v32  ;;  %v5611_v8 = vld [vmem:[#allocation3 + $0x1f1] sm:$0xff] }
 0x89a   :  { %4965 = vrot.lane.b32.xlu1 %v8844_v31, %s6922_s12 }
 0x89b   :  { %v3800_v10 = vpop.permute.xlu0 %3799 }
 0x89c   :  { %3811 = vst.msk [vmem:[#allocation5] sm:$0xff] %vm836_vm1, %v3800_v10 }
 0x89d   :  { %3843 = vst.msk [vmem:[#allocation5] sm:$0xff] %vm10093_vm7, %v3832_v35  ;;  %5125 = vrot.lane.b32.xlu0 %v10094_v40, %s6929_s27  ;;  %vm10110_vm7 = vmmov %vm10105_vm0 }
 0x89e   :  { %5029 = vrot.lane.b32.xlu1 %v8870_v36, %s6926_s20  ;;  %v10098_v36 = vpack.c.bf16 %v8961_v33, %v8862_v48 }
 0x89f   :  { %v3864_v38 = vpop.permute.xlu0 %3863 }
 0x8a0   :  { %3875 = vst.msk [vmem:[#allocation5] sm:$0xff] %vm10095_vm8, %v3864_v38  ;;  %vm10111_vm8 = vmmov %vm10100_vm11  ;;  %v5584_v38 = vld [vmem:[#allocation3 + $0x1a1] sm:$0xff] }
 0x8a1   :  { %4967 = vrot.lane.b32.xlu0 %v8943_v13, %s6922_s12 }
 0x8a2   :  { %5093 = vrot.lane.b32.xlu1 %v10096_v56, %s6928_s26 }
 0x8a3   :  { %v3928_v22 = vpop.permute.xlu0 %3927 }
 0x8a4   :  { %v3802_v1 = vpop.permute.xlu1 %3801 }
 0x8a5   :  { %5031 = vrot.lane.b32.xlu0 %v8970_v17, %s6926_s20  ;;  %v4305_v17 = vld [vmem:[#allocation3 + $0x161] sm:$0xff] }
 0x8a6   :  { %4935 = vrot.lane.b32.xlu1 %v8783_v50, %s6920_s24 }
 0x8a7   :  { %v3770_v54 = vpop.permute.xlu0 %3769 }
 0x8a8   :  { %v3896_v59 = vpop.permute.xlu1 %3895 }
 0x8a9   :  { %3907 = vst.msk [vmem:[#allocation5] sm:$0xff] %vm10097_vm9, %v3896_v59  ;;  %5095 = vrot.lane.b32.xlu0 %v10098_v36, %s6928_s26  ;;  %vm10112_vm9 = vmmov %vm10101_vm4  ;;  %v10117_v36 = vld [vmem:[#allocation6_spill] sm:$0xff] }
 0x8aa   :  { %3939 = vst.msk [vmem:[#allocation5] sm:$0xff] %vm10099_vm10, %v3928_v22  ;;  %4999 = vrot.lane.b32.xlu1 %v8916_v18, %s6924_s18  ;;  %v10102_v18 = vpack.c.bf16 %v8748_v34, %v8758_v55  ;;  %vm10113_vm10 = vmmov %vm10109_vm6  ;;  %v9305_v22 = vld [vmem:[#allocation3 + $0x21] sm:$0xff] }
 0x8ab   :  { %v3898_v32 = vpop.permute.xlu0 %3897 }
 0x8ac   :  { %v3738_v60 = vpop.permute.xlu1 %3737 }
 0x8ad   :  { %3748 = vst.msk [vmem:[#allocation5 + $0x10] sm:$0xff] %vm770_vm14, %v3738_v60  ;;  %4937 = vrot.lane.b32.xlu0 %v8985_v15, %s6920_s24  ;;  %v10104_v15 = vpack.c.bf16 %v8750_v11, %v8746_v12 }
 0x8ae   :  { %3780 = vst.msk [vmem:[#allocation5 + $0x10] sm:$0xff] %vm803_vm15, %v3770_v54  ;;  %5063 = vrot.lane.b32.xlu1 %v8900_v43, %s6927_s25 }
 0x8af   :  { %3812 = vst.msk [vmem:[#allocation5 + $0x10] sm:$0xff] %vm836_vm1, %v3802_v1  ;;  %v3838_v50 = vpop.permute.xlu0 %3837 }
 0x8b0   :  { %3844 = vst.msk [vmem:[#allocation5 + $0x10] sm:$0xff] %vm10100_vm11, %v3834_v45  ;;  %v3866_v48 = vpop.permute.xlu1 %3865  ;;  %vm10114_vm11 = vmmov %vm10105_vm0 }
 0x8b1   :  { %3876 = vst.msk [vmem:[#allocation5 + $0x10] sm:$0xff] %vm10101_vm4, %v3866_v48  ;;  %5129 = vrot.lane.b32.xlu0 %v10102_v18, %s6929_s27  ;;  %v3959_v33 = vld [vmem:[#allocation5] sm:$0xff]  ;;  %vm10118_vm4 = vmmov %vm10111_vm8 }
 0x8b2   :  { %3908 = vst.msk [vmem:[#allocation5 + $0x10] sm:$0xff] %vm10103_vm12, %v3898_v32  ;;  %5127 = vrot.lane.b32.xlu1 %v10104_v15, %s6929_s27  ;;  %4092 = vmatmul.mubr.bf16.vlgmr.msra.gmra.mrb[56].mxu0 %v3959_v33  ;;  %v5683_v32 = vpack.c.bf16 %v10117_v36, %v9305_v22  ;;  %vm10119_vm12 = vmmov %vm10107_vm5  ;;  %v10123_v33 = vld [vmem:[#allocation7_spill] sm:$0xff] }
 0x8b3   :  { %4315 = vst.msk [vmem:[#allocation5] sm:$0xff] %vm51_vm3, %v8817_v16  ;;  %6379 = vmatprep.mubr.msk.bf16.mxu0 %vm51_vm3, %v8947_v26  ;;  %v3740_v43 = vpop.permute.xlu0 %3739  ;;  %v9245_v16 = vld [vmem:[#allocation3 + $0x171] sm:$0xff]  ;;  %v5684_v15 = vpack.c.bf16 %v8750_v11, %v10123_v33 }
 0x8b4   :  { %3749 = vst.msk [vmem:[#allocation5 + $0x20] sm:$0xff] %vm770_vm14, %v3740_v43  ;;  %v3930_v34 = vpop.permute.xlu1 %3929  ;;  %v4312_v14 = vpack.c.bf16 %v9245_v16, %v4305_v17  ;;  %v4902_v17 = vld [vmem:[#allocation3 + $0xc0] sm:$0xff] }
 0x8b5   :  { %3940 = vst.msk [vmem:[#allocation5 + $0x10] sm:$0xff] %vm10105_vm0, %v3930_v34  ;;  %5001 = vrot.lane.b32.xlu0 %v9062_v58, %s6924_s18  ;;  %v5084_v58 = vld [vmem:[#allocation3 + $0x130] sm:$0xff]  ;;  %vm10121_vm0 = vmmov %vm10109_vm6  ;;  %v10124_v34 = vld [vmem:[#allocation19_spill] sm:$0xff] }
 0x8b6   :  { %4939 = vrot.lane.b32.xlu1 %v8934_v4, %s6920_s24 }
 0x8b7   :  { %v3804_v12 = vpop.permute.xlu0 %3803 }
 0x8b8   :  { %v3836_v55 = vpop.permute.xlu1 %3835 }
 0x8b9   :  { %5065 = vrot.lane.b32.xlu0 %v8987_v29, %s6927_s25 }
 0x8ba   :  { %4969 = vrot.lane.b32.xlu1 %v9008_v47, %s6922_s12 }
 0x8bb   :  { %v3868_v26 = vpop.permute.xlu0 %3867 }
 0x8bc   :  { %v3772_v51 = vpop.permute.xlu1 %3771  ;;  %v3961_v0 = vld [vmem:[#allocation5 + $0x10] sm:$0xff] }
 0x8bd   :  { %3781 = vst.msk [vmem:[#allocation5 + $0x20] sm:$0xff] %vm803_vm15, %v3772_v51  ;;  %4100 = vmatmul.mubr.bf16.gmra.mrb[60].mxu0 %v3961_v0  ;;  %4971 = vrot.lane.b32.xlu0 %v9088_v7, %s6922_s12  ;;  %v10108_v7 = vpack.c.bf16 %v8999_v63, %v8972_v24  ;;  %v9274_v24 = vld [vmem:[#allocation3 + $0x91] sm:$0xff] }
 0x8be   :  { %4316 = vst.msk [vmem:[#allocation5 + $0x10] sm:$0xff] %vm51_vm3, %v4312_v14  ;;  %5033 = vrot.lane.b32.xlu1 %v9034_v20, %s6926_s20  ;;  %6380 = vmatprep.mubr.msk.bf16.mxu0 %vm51_vm3, %v9051_v57  ;;  %v5088_v20 = vpack.c.bf16 %v5084_v58, %v9025_v19  ;;  %v9276_v63 = vld [vmem:[#allocation3 + $0x191] sm:$0xff]  ;;  %v5120_v2 = vpack.c.bf16 %v9274_v24, %v8919_v30  ;;  %v5612_v30 = vld [vmem:[#allocation3 + $0x201] sm:$0xff] }
 0x8bf   :  { %3813 = vst.msk [vmem:[#allocation5 + $0x20] sm:$0xff] %vm836_vm1, %v3804_v12  ;;  %v3932_v29 = vpop.permute.xlu0 %3931  ;;  %v5579_v19 = vld [vmem:[#allocation3 + $0x151] sm:$0xff]  ;;  %v4313_v45 = vpack.c.bf16 %v9276_v63, %v4307_v5  ;;  %v5619_v40 = vpack.c.bf16 %v5612_v30, %v5611_v8  ;;  %v5588_v12 = vpack.c.bf16 %v10124_v34, %v9245_v16  ;;  %v10126_v16 = vld [vmem:[#allocation14_spill] sm:$0xff] }
 0x8c0   :  { %3845 = vst.msk [vmem:[#allocation5 + $0x20] sm:$0xff] %vm10106_vm13, %v3836_v55  ;;  %v3806_v4 = vpop.permute.xlu1 %3805  ;;  %v5587_v42 = vpack.c.bf16 %v8852_v53, %v5579_v19  ;;  %vm10122_vm13 = vmmov %vm10110_vm7  ;;  %v4901_v55 = vld [vmem:[#allocation3 + $0xb0] sm:$0xff]  ;;  %v10133_v5 = vld [vmem:[#allocation9_spill] sm:$0xff] }
 0x8c1   :  { %3877 = vst.msk [vmem:[#allocation5 + $0x20] sm:$0xff] %vm10107_vm5, %v3868_v26  ;;  %5035 = vrot.lane.b32.xlu0 %v9097_v9, %s6926_s20  ;;  %v4909_v14 = vpack.c.bf16 %v4902_v17, %v4901_v55  ;;  %vm10125_vm5 = vmmov %vm10118_vm4  ;;  %v10137_v30 = vld [vmem:[#allocation22_spill] sm:$0xff]  ;;  %v5615_v8 = vld [vmem:[#allocation3 + $0x231] sm:$0xff] }
 0x8c2   :  { %5097 = vrot.lane.b32.xlu1 %v10108_v7, %s6928_s26  ;;  %v9353_v7 = vld [vmem:[#allocation3 + $0x61] sm:$0xff]  ;;  %v4907_v34 = vld [vmem:[#allocation3 + $0x110] sm:$0xff] }
 0x8c3   :  { %v3774_v25 = vpop.permute.xlu0 %3773 }
 0x8c4   :  { %v3900_v6 = vpop.permute.xlu1 %3899 }
 0x8c5   :  { %3909 = vst.msk [vmem:[#allocation5 + $0x20] sm:$0xff] %vm10109_vm6, %v3900_v6  ;;  %5099 = vrot.lane.b32.xlu0 %v5088_v20, %s6928_s26  ;;  %vm10127_vm6 = vmmov %vm10112_vm9  ;;  %v10131_v20 = vld [vmem:[#allocation11_spill] sm:$0xff] }
 0x8c6   :  { %3941 = vst.msk [vmem:[#allocation5 + $0x20] sm:$0xff] %vm10110_vm7, %v3932_v29  ;;  %5003 = vrot.lane.b32.xlu1 %v9070_v61, %s6924_s18  ;;  %vm10128_vm7 = vmmov %vm10121_vm0  ;;  %v5685_v6 = vpack.c.bf16 %v10131_v20, %v9353_v7 }
 0x8c7   :  { %v3902_v57 = vpop.permute.xlu0 %3901 }
 0x8c8   :  { %v3742_v9 = vpop.permute.xlu1 %3741 }
 0x8c9   :  { %3750 = vst.msk [vmem:[#allocation5 + $0x30] sm:$0xff] %vm770_vm14, %v3742_v9  ;;  %5531 = vrot.lane.b32.xlu0 %v8844_v31, %s6920_s24  ;;  %v4904_v9 = vld [vmem:[#allocation3 + $0xe0] sm:$0xff] }
 0x8ca   :  { %3782 = vst.msk [vmem:[#allocation5 + $0x30] sm:$0xff] %vm803_vm15, %v3774_v25  ;;  %5067 = vrot.lane.b32.xlu1 %v9039_v49, %s6927_s25 }
 0x8cb   :  { %3814 = vst.msk [vmem:[#allocation5 + $0x30] sm:$0xff] %vm836_vm1, %v3806_v4  ;;  %v4336_v61 = vpop.permute.xlu0 %4335  ;;  %v5589_v4 = vpack.c.bf16 %v5584_v38, %v9276_v63  ;;  %v10132_v63 = vld [vmem:[#allocation10_spill] sm:$0xff] }
 0x8cc   :  { %3846 = vst.msk [vmem:[#allocation5 + $0x30] sm:$0xff] %vm10111_vm8, %v3838_v50  ;;  %v3870_v31 = vpop.permute.xlu1 %3869  ;;  %v10120_v50 = vld [vmem:[#allocation18_spill] sm:$0xff]  ;;  %vm10130_vm8 = vmmov %vm10114_vm11 }
 0x8cd   :  { %4347 = vst.msk [vmem:[#allocation5] sm:$0xff] %vm770_vm14, %v4336_v61  ;;  %5595 = vrot.lane.b32.xlu0 %v5587_v42, %s6924_s18  ;;  %v3963_v49 = vld [vmem:[#allocation5 + $0x20] sm:$0xff] }
 0x8ce   :  { %3878 = vst.msk [vmem:[#allocation5 + $0x30] sm:$0xff] %vm10112_vm9, %v3870_v31  ;;  %5131 = vrot.lane.b32.xlu1 %v5120_v2, %s6929_s27  ;;  %4108 = vmatmul.mubr.bf16.gmra.mrb[64].mxu0 %v3963_v49  ;;  %v10134_v31 = vpack.c.bf16 %v9001_v62, %v10133_v5  ;;  %v5616_v2 = vld [vmem:[#allocation3 + $0x241] sm:$0xff]  ;;  %vm10138_vm9 = vmmov %vm10118_vm4 }
 0x8cf   :  { %3910 = vst.msk [vmem:[#allocation5 + $0x30] sm:$0xff] %vm10113_vm10, %v3902_v57  ;;  %6381 = vmatprep.mubr.msk.bf16.mxu0 %vm51_vm3, %v9075_v23  ;;  %v4400_v53 = vpop.permute.xlu0 %4399  ;;  %v10115_v23 = vld [vmem:[#allocation12_spill] sm:$0xff]  ;;  %v5586_v62 = vld [vmem:[#allocation3 + $0x1c1] sm:$0xff]  ;;  %vm10139_vm10 = vmmov %vm10127_vm6 }
 0x8d0   :  { %4317 = vst.msk [vmem:[#allocation5 + $0x20] sm:$0xff] %vm51_vm3, %v4313_v45  ;;  %v3934_v35 = vpop.permute.xlu1 %3933  ;;  %v10116_v56 = vpack.c.bf16 %v8864_v39, %v10115_v23  ;;  %v5613_v39 = vld [vmem:[#allocation3 + $0x211] sm:$0xff]  ;;  %v6917_v23 = vld [vmem:[#allocation3 + $0x81] sm:$0xff] }
 0x8d1   :  { %3942 = vst.msk [vmem:[#allocation5 + $0x30] sm:$0xff] %vm10114_vm11, %v3934_v35  ;;  %5659 = vrot.lane.b32.xlu0 %v8895_v3, %s6927_s25  ;;  %v9309_v3 = vld [vmem:[#allocation3 + $0x1b1] sm:$0xff]  ;;  %v5620_v48 = vpack.c.bf16 %v10120_v50, %v5613_v39  ;;  %vm10140_vm11 = vmmov %vm10121_vm0 }
 0x8d2   :  { %5563 = vrot.lane.b32.xlu1 %v9110_v52, %s6922_s12  ;;  %v4314_v1 = vpack.c.bf16 %v9309_v3, %v5584_v38  ;;  %v4903_v57 = vld [vmem:[#allocation3 + $0xd0] sm:$0xff]  ;;  %v10135_v45 = vld [vmem:[#allocation13_spill] sm:$0xff] }
 0x8d3   :  { %v4464_v37 = vpop.permute.xlu0 %4463  ;;  %v4910_v61 = vpack.c.bf16 %v4904_v9, %v4903_v57  ;;  %v10136_v49 = vpack.c.bf16 %v9016_v27, %v10135_v45  ;;  %v5686_v27 = vpack.c.bf16 %v9274_v24, %v6917_v23  ;;  %v10142_v24 = vld [vmem:[#allocation23_spill] sm:$0xff] }
 0x8d4   :  { %v4368_v10 = vpop.permute.xlu1 %4367 }
 0x8d5   :  { %4379 = vst.msk [vmem:[#allocation5] sm:$0xff] %vm803_vm15, %v4368_v10  ;;  %5723 = vrot.lane.b32.xlu0 %v10116_v56, %s6929_s27 }
 0x8d6   :  { %4411 = vst.msk [vmem:[#allocation5] sm:$0xff] %vm836_vm1, %v4400_v53  ;;  %5627 = vrot.lane.b32.xlu1 %v5619_v40, %s6926_s20  ;;  %v5617_v53 = vld [vmem:[#allocation3 + $0x251] sm:$0xff]  ;;  %v5621_v40 = vpack.c.bf16 %v5616_v2, %v5615_v8  ;;  %v10157_v2 = vpack.c.bf16 %v10123_v33, %v10117_v36 }
 0x8d7   :  { %v4528_v52 = vpop.permute.xlu0 %4527  ;;  %v5503_v33 = vld [vmem:[#allocation3 + $0x51] sm:$0xff] }
 0x8d8   :  { %v4432_v54 = vpop.permute.xlu1 %4431  ;;  %v3965_v59 = vld [vmem:[#allocation5 + $0x30] sm:$0xff] }
 0x8d9   :  { %4443 = vst.msk [vmem:[#allocation5] sm:$0xff] %vm10118_vm4, %v4432_v54  ;;  %4116 = vmatmul.mubr.bf16.gmra.mrb[68].mxu0 %v3965_v59  ;;  %5565 = vrot.lane.b32.xlu0 %v9136_v44, %s6922_s12  ;;  %vm10141_vm4 = vmmov %vm10130_vm8  ;;  %v4905_v59 = vld [vmem:[#allocation3 + $0xf0] sm:$0xff] }
 0x8da   :  { %4318 = vst.msk [vmem:[#allocation5 + $0x30] sm:$0xff] %vm51_vm3, %v4314_v1  ;;  %5691 = vrot.lane.b32.xlu1 %v5683_v32, %s6928_s26  ;;  %v4906_v32 = vld [vmem:[#allocation3 + $0x100] sm:$0xff] }
 0x8db   :  { %4475 = vst.msk [vmem:[#allocation5] sm:$0xff] %vm10119_vm12, %v4464_v37  ;;  %v4370_v60 = vpop.permute.xlu0 %4369  ;;  %v5622_v37 = vpack.c.bf16 %v10137_v30, %v5617_v53  ;;  %vm10143_vm12 = vmmov %vm10125_vm5 }
 0x8dc   :  { %v4496_v18 = vpop.permute.xlu1 %4495 }
 0x8dd   :  { %4507 = vst.msk [vmem:[#allocation5] sm:$0xff] %vm10121_vm0, %v4496_v18  ;;  %5629 = vrot.lane.b32.xlu0 %v5620_v48, %s6926_s20  ;;  %vm10144_vm0 = vmmov %vm10127_vm6  ;;  %v10146_v48 = vld [vmem:[#allocation25_spill] sm:$0xff] }
 0x8de   :  { %4539 = vst.msk [vmem:[#allocation5] sm:$0xff] %vm10122_vm13, %v4528_v52  ;;  %5533 = vrot.lane.b32.xlu1 %v8943_v13, %s6920_s24  ;;  %v5590_v52 = vpack.c.bf16 %v5586_v62, %v9309_v3  ;;  %vm10145_vm13 = vmmov %vm10128_vm7 }
 0x8df   :  { %v4434_v44 = vpop.permute.xlu0 %4433 }
 0x8e0   :  { %v4338_v43 = vpop.permute.xlu1 %4337 }
 0x8e1   :  { %4348 = vst.msk [vmem:[#allocation5 + $0x10] sm:$0xff] %vm770_vm14, %v4338_v43  ;;  %5693 = vrot.lane.b32.xlu0 %v5684_v15, %s6928_s26 }
 0x8e2   :  { %4380 = vst.msk [vmem:[#allocation5 + $0x10] sm:$0xff] %vm803_vm15, %v4370_v60  ;;  %5597 = vrot.lane.b32.xlu1 %v5588_v12, %s6924_s18  ;;  %v4911_v60 = vpack.c.bf16 %v4906_v32, %v4905_v59  ;;  %v4908_v12 = vld [vmem:[#allocation3 + $0x120] sm:$0xff] }
 0x8e3   :  { %v4498_v26 = vpop.permute.xlu0 %4497  ;;  %v4912_v17 = vpack.c.bf16 %v4908_v12, %v4907_v34 }
 0x8e4   :  { %v4402_v13 = vpop.permute.xlu1 %4401 }
 0x8e5   :  { %4412 = vst.msk [vmem:[#allocation5 + $0x10] sm:$0xff] %vm836_vm1, %v4402_v13  ;;  %5569 = vrot.lane.b32.xlu0 %v9170_v41, %s6922_s12  ;;  %v9337_v11 = vld [vmem:[#allocation5] sm:$0xff]  ;;  %v10129_v41 = vld [vmem:[#allocation21_spill] sm:$0xff] }
 0x8e6   :  { %4444 = vst.msk [vmem:[#allocation5 + $0x10] sm:$0xff] %vm10125_vm5, %v4434_v44  ;;  %5661 = vrot.lane.b32.xlu1 %v10126_v16, %s6927_s25  ;;  %vm10147_vm5 = vmmov %vm10141_vm4 }
 0x8e7   :  { %4913 = vst.msk [vmem:[#allocation5] sm:$0xff] %vm51_vm3, %v4909_v14  ;;  %v4340_v51 = vpop.permute.xlu0 %4339  ;;  %v6886_v14 = vld [vmem:[%s9982_s5 + $0x8] sm:$0xff]  }
 0x8e8   :  { %4349 = vst.msk [vmem:[#allocation5 + $0x20] sm:$0xff] %vm770_vm14, %v4340_v51  ;;  %v4466_v0 = vpop.permute.xlu1 %4465  ;;  %6772 = vmatprep.subr.bf16.mxu1 %v6886_v14 }
 0x8e9   :  { %4476 = vst.msk [vmem:[#allocation5 + $0x10] sm:$0xff] %vm10127_vm6, %v4466_v0  ;;  %5535 = vrot.lane.b32.xlu0 %v9008_v47, %s6920_s24  ;;  %vm10148_vm6 = vmmov %vm10138_vm9  ;;  %6773 = vmatpush3.bf16.msra.mxu1 %v6886_v14  ;;  %v10151_v0 = vmov 0  }
 0x8ea   :  { %4508 = vst.msk [vmem:[#allocation5 + $0x10] sm:$0xff] %vm10128_vm7, %v4498_v26  ;;  %5725 = vrot.lane.b32.xlu1 %v10129_v41, %s6929_s27  ;;  %vm10149_vm7 = vmmov %vm10144_vm0  ;;  %4658 = vmatprep.subr.bf16.mxu1 %v10151_v0 }
 0x8eb   :  { %v4404_v29 = vpop.permute.xlu0 %4403 }
 0x8ec   :  { %v4530_v58 = vpop.permute.xlu1 %4529 }
 0x8ed   :  { %4540 = vst.msk [vmem:[#allocation5 + $0x10] sm:$0xff] %vm10130_vm8, %v4530_v58  ;;  %5599 = vrot.lane.b32.xlu0 %v5589_v4, %s6924_s18  ;;  %vm10150_vm8 = vmmov %vm10140_vm11  ;;  %v5499_v58 = vld [vmem:[#allocation3 + $0x11] sm:$0xff] }
 0x8ee   :  { %5567 = vrot.lane.b32.xlu1 %v9146_v46, %s6922_s12 }
 0x8ef   :  { %v4468_v25 = vpop.permute.xlu0 %4467 }
 0x8f0   :  { %v4372_v47 = vpop.permute.xlu1 %4371 }
 0x8f1   :  { %4381 = vst.msk [vmem:[#allocation5 + $0x20] sm:$0xff] %vm803_vm15, %v4372_v47  ;;  %5663 = vrot.lane.b32.xlu0 %v10132_v63, %s6927_s25  ;;  %v5507_v47 = vpack.c.bf16 %v9305_v22, %v5499_v58 }
 0x8f2   :  { %4413 = vst.msk [vmem:[#allocation5 + $0x20] sm:$0xff] %vm836_vm1, %v4404_v29  ;;  %5695 = vrot.lane.b32.xlu1 %v5685_v6, %s6928_s26 }
 0x8f3   :  { %v4438_v19 = vpop.permute.xlu0 %4437 }
 0x8f4   :  { %v4406_v42 = vpop.permute.xlu1 %4405  ;;  %v9364_v46 = vld [vmem:[#allocation5 + $0x10] sm:$0xff] }
 0x8f5   :  { %5727 = vrot.lane.b32.xlu0 %v10134_v31, %s6929_s27  ;;  %4914 = vst.msk [vmem:[#allocation5 + $0x10] sm:$0xff] %vm51_vm3, %v4910_v61 }
 0x8f6   :  { %5537 = vrot.lane.b32.xlu1 %v10136_v49, %s6920_s24 }
 0x8f7   :  { %v4532_v35 = vpop.permute.xlu0 %4531 }
 0x8f8   :  { %v4436_v10 = vpop.permute.xlu1 %4435 }
 0x8f9   :  { %4445 = vst.msk [vmem:[#allocation5 + $0x20] sm:$0xff] %vm10138_vm9, %v4436_v10  ;;  %5633 = vrot.lane.b32.xlu0 %v5622_v37, %s6926_s20  ;;  %vm10152_vm9 = vmmov %vm10141_vm4  ;;  %v5509_v10 = vpack.c.bf16 %v9353_v7, %v5503_v33 }
 0x8fa   :  { %4477 = vst.msk [vmem:[#allocation5 + $0x20] sm:$0xff] %vm10139_vm10, %v4468_v25  ;;  %5631 = vrot.lane.b32.xlu1 %v5621_v40, %s6926_s20  ;;  %vm10153_vm10 = vmmov %vm10148_vm6 }
 0x8fb   :  { %v4374_v38 = vpop.permute.xlu0 %4373 }
 0x8fc   :  { %v4500_v56 = vpop.permute.xlu1 %4499 }
 0x8fd   :  { %4509 = vst.msk [vmem:[#allocation5 + $0x20] sm:$0xff] %vm10140_vm11, %v4500_v56  ;;  %5697 = vrot.lane.b32.xlu0 %v5686_v27, %s6928_s26  ;;  %vm10154_vm11 = vmmov %vm10144_vm0 }
 0x8fe   :  { %4541 = vst.msk [vmem:[#allocation5 + $0x20] sm:$0xff] %vm10141_vm4, %v4532_v35  ;;  %5601 = vrot.lane.b32.xlu1 %v5590_v52, %s6924_s18  ;;  %vm10155_vm4 = vmmov %vm10150_vm8 }
 0x8ff   :  { %v4502_v1 = vpop.permute.xlu0 %4501 }
 0x900   :  { %v4342_v54 = vpop.permute.xlu1 %4341 }
 0x901   :  { %4350 = vst.msk [vmem:[#allocation5 + $0x30] sm:$0xff] %vm770_vm14, %v4342_v54 }
 0x902   :  { %4382 = vst.msk [vmem:[#allocation5 + $0x30] sm:$0xff] %vm803_vm15, %v4374_v38  ;;  %5665 = vrot.lane.b32.xlu1 %v10142_v24, %s6927_s25 }
 0x903   :  { %4414 = vst.msk [vmem:[#allocation5 + $0x30] sm:$0xff] %vm836_vm1, %v4406_v42  ;;  %v4934_v3 = vpop.permute.xlu0 %4933 }
 0x904   :  { %4446 = vst.msk [vmem:[#allocation5 + $0x30] sm:$0xff] %vm10143_vm12, %v4438_v19  ;;  %v4470_v39 = vpop.permute.xlu1 %4469  ;;  %vm10156_vm12 = vmmov %vm10147_vm5 }
 0x905   :  { %4945 = vst.msk [vmem:[#allocation5] sm:$0xff] %vm770_vm14, %v4934_v3  ;;  %v9394_v50 = vld [vmem:[#allocation5 + $0x20] sm:$0xff] }
 0x906   :  { %4478 = vst.msk [vmem:[#allocation5 + $0x30] sm:$0xff] %vm10144_vm0, %v4470_v39  ;;  %5729 = vrot.lane.b32.xlu1 %v10146_v48, %s6929_s27  ;;  %vm10158_vm0 = vmmov %vm10148_vm6 }
 0x907   :  { %4510 = vst.msk [vmem:[#allocation5 + $0x30] sm:$0xff] %vm10145_vm13, %v4502_v1  ;;  %v4998_v18 = vpop.permute.xlu0 %4997  ;;  %vm10159_vm13 = vmmov %vm10149_vm7  ;;  %v10167_v1 = vld [vmem:[#allocation8_spill] sm:$0xff] }
 0x908   :  { %4915 = vst.msk [vmem:[#allocation5 + $0x20] sm:$0xff] %vm51_vm3, %v4911_v60  ;;  %v4534_v44 = vpop.permute.xlu1 %4533  ;;  %v10168_v54 = vpack.c.bf16 %v10167_v1, %v10131_v20 }
 0x909   :  { %4542 = vst.msk [vmem:[#allocation5 + $0x30] sm:$0xff] %vm10147_vm5, %v4534_v44  ;;  %vm10160_vm5 = vmmov %vm10155_vm4 }
 0x90b   :  { %v5062_v15 = vpop.permute.xlu0 %5061 }
 0x90c   :  { %v4966_v43 = vpop.permute.xlu1 %4965 }
 0x90d   :  { %4977 = vst.msk [vmem:[#allocation5] sm:$0xff] %vm803_vm15, %v4966_v43 }
 0x90e   :  { %5009 = vst.msk [vmem:[#allocation5] sm:$0xff] %vm836_vm1, %v4998_v18 }
 0x90f   :  { %v5126_v55 = vpop.permute.xlu0 %5125 }
 0x910   :  { %v5030_v26 = vpop.permute.xlu1 %5029  ;;  %v9403_v13 = vld [vmem:[#allocation5 + $0x30] sm:$0xff] }
 0x911   :  { %5041 = vst.msk [vmem:[#allocation5] sm:$0xff] %vm10148_vm6, %v5030_v26  ;;  %vm10161_vm6 = vmmov %vm10152_vm9 }
 0x912   :  { %4916 = vst.msk [vmem:[#allocation5 + $0x30] sm:$0xff] %vm51_vm3, %v4912_v17 }
 0x913   :  { %5073 = vst.msk [vmem:[#allocation5] sm:$0xff] %vm10149_vm7, %v5062_v15  ;;  %v4968_v16 = vpop.permute.xlu0 %4967  ;;  %vm10162_vm7 = vmmov %vm10158_vm0 }
 0x914   :  { %v5094_v51 = vpop.permute.xlu1 %5093 }
 0x915   :  { %5105 = vst.msk [vmem:[#allocation5] sm:$0xff] %vm10150_vm8, %v5094_v51  ;;  %vm10163_vm8 = vmmov %vm10154_vm11 }
 0x916   :  { %5137 = vst.msk [vmem:[#allocation5] sm:$0xff] %vm10152_vm9, %v5126_v55  ;;  %vm10164_vm9 = vmmov %vm10155_vm4 }
 0x917   :  { %v5032_v41 = vpop.permute.xlu0 %5031 }
 0x918   :  { %v4936_v29 = vpop.permute.xlu1 %4935 }
 0x919   :  { %4946 = vst.msk [vmem:[#allocation5 + $0x10] sm:$0xff] %vm770_vm14, %v4936_v29 }
 0x91a   :  { %4978 = vst.msk [vmem:[#allocation5 + $0x10] sm:$0xff] %vm803_vm15, %v4968_v16 }
 0x91b   :  { %v5096_v4 = vpop.permute.xlu0 %5095 }
 0x91c   :  { %v5000_v25 = vpop.permute.xlu1 %4999 }
 0x91d   :  { %5010 = vst.msk [vmem:[#allocation5 + $0x10] sm:$0xff] %vm836_vm1, %v5000_v25  ;;  %v9418_v6 = vld [vmem:[#allocation5] sm:$0xff] }
 0x91e   :  { %5042 = vst.msk [vmem:[#allocation5 + $0x10] sm:$0xff] %vm10153_vm10, %v5032_v41  ;;  %vm10165_vm10 = vmmov %vm10161_vm6 }
 0x91f   :  { %5511 = vst.msk [vmem:[#allocation5] sm:$0xff] %vm51_vm3, %v5507_v47  ;;  %v4938_v57 = vpop.permute.xlu0 %4937 }
 0x920   :  { %4947 = vst.msk [vmem:[#allocation5 + $0x20] sm:$0xff] %vm770_vm14, %v4938_v57  ;;  %v5064_v9 = vpop.permute.xlu1 %5063 }
 0x921   :  { %5074 = vst.msk [vmem:[#allocation5 + $0x10] sm:$0xff] %vm10154_vm11, %v5064_v9  ;;  %vm10166_vm11 = vmmov %vm10158_vm0 }
 0x922   :  { %5106 = vst.msk [vmem:[#allocation5 + $0x10] sm:$0xff] %vm10155_vm4, %v5096_v4  ;;  %vm10169_vm4 = vmmov %vm10163_vm8  ;;  %v9486_v4 = vld [vmem:[%s9983_s4] ss:$0 sm:$0xff] }
 0x923   :  { %v5130_v63 = vpop.permute.xlu0 %5129 }
 0x924   :  { %v5128_v19 = vpop.permute.xlu1 %5127 }
 0x925   :  { %5138 = vst.msk [vmem:[#allocation5 + $0x10] sm:$0xff] %vm10156_vm12, %v5128_v19  ;;  %vm10170_vm12 = vmmov %vm10160_vm5 }
 0x927   :  { %v5002_v22 = vpop.permute.xlu0 %5001 }
 0x928   :  { %v4940_v61 = vpop.permute.xlu1 %4939 }
 0x929   :  { %4948 = vst.msk [vmem:[#allocation5 + $0x30] sm:$0xff] %vm770_vm14, %v4940_v61 }
 0x92b   :  { %v5066_v42 = vpop.permute.xlu0 %5065 }
 0x92c   :  { %v4970_v5 = vpop.permute.xlu1 %4969  ;;  %v9427_v31 = vld [vmem:[#allocation5 + $0x10] sm:$0xff] }
 0x92d   :  { %4979 = vst.msk [vmem:[#allocation5 + $0x20] sm:$0xff] %vm803_vm15, %v4970_v5 }
 0x92e   :  { %5512 = vst.msk [vmem:[#allocation5 + $0x10] sm:$0xff] %vm51_vm3, %v10157_v2 }
 0x92f   :  { %5011 = vst.msk [vmem:[#allocation5 + $0x20] sm:$0xff] %vm836_vm1, %v5002_v22  ;;  %v4972_v45 = vpop.permute.xlu0 %4971 }
 0x930   :  { %4980 = vst.msk [vmem:[#allocation5 + $0x30] sm:$0xff] %vm803_vm15, %v4972_v45  ;;  %v5034_v49 = vpop.permute.xlu1 %5033 }
 0x931   :  { %5043 = vst.msk [vmem:[#allocation5 + $0x20] sm:$0xff] %vm10158_vm0, %v5034_v49  ;;  %vm10171_vm0 = vmmov %vm10161_vm6 }
 0x932   :  { %5075 = vst.msk [vmem:[#allocation5 + $0x20] sm:$0xff] %vm10159_vm13, %v5066_v42  ;;  %vm10172_vm13 = vmmov %vm10162_vm7 }
 0x933   :  { %v5036_v53 = vpop.permute.xlu0 %5035 }
 0x934   :  { %v5098_v35 = vpop.permute.xlu1 %5097 }
 0x935   :  { %5107 = vst.msk [vmem:[#allocation5 + $0x20] sm:$0xff] %vm10160_vm5, %v5098_v35  ;;  %vm10173_vm5 = vmmov %vm10169_vm4 }
 0x936   :  { %5139 = vst.msk [vmem:[#allocation5 + $0x20] sm:$0xff] %vm10161_vm6, %v5130_v63  ;;  %vm10174_vm6 = vmmov %vm10164_vm9 }
 0x937   :  { %v5100_v30 = vpop.permute.xlu0 %5099 }
 0x938   :  { %v5004_v36 = vpop.permute.xlu1 %5003 }
 0x939   :  { %5012 = vst.msk [vmem:[#allocation5 + $0x30] sm:$0xff] %vm836_vm1, %v5004_v36 }
 0x93a   :  { %5044 = vst.msk [vmem:[#allocation5 + $0x30] sm:$0xff] %vm10162_vm7, %v5036_v53  ;;  %vm10175_vm7 = vmmov %vm10171_vm0 }
 0x93b   :  { %v5532_v37 = vpop.permute.xlu0 %5531 }
 0x93c   :  { %5543 = vst.msk [vmem:[#allocation5] sm:$0xff] %vm770_vm14, %v5532_v37  ;;  %v5068_v8 = vpop.permute.xlu1 %5067 }
 0x93d   :  { %5076 = vst.msk [vmem:[#allocation5 + $0x30] sm:$0xff] %vm10163_vm8, %v5068_v8  ;;  %v9445_v40 = vld [vmem:[#allocation5 + $0x20] sm:$0xff]  ;;  %vm10176_vm8 = vmmov %vm10166_vm11 }
 0x93e   :  { %5108 = vst.msk [vmem:[#allocation5 + $0x30] sm:$0xff] %vm10164_vm9, %v5100_v30  ;;  %vm10177_vm9 = vmmov %vm10169_vm4 }
 0x93f   :  { %5513 = vst.msk [vmem:[#allocation5 + $0x20] sm:$0xff] %vm51_vm3, %v5509_v10  ;;  %v5596_v62 = vpop.permute.xlu0 %5595 }
 0x940   :  { %v5132_v38 = vpop.permute.xlu1 %5131 }
 0x941   :  { %5140 = vst.msk [vmem:[#allocation5 + $0x30] sm:$0xff] %vm10165_vm10, %v5132_v38  ;;  %vm10178_vm10 = vmmov %vm10174_vm6 }
 0x943   :  { %v5660_v23 = vpop.permute.xlu0 %5659 }
 0x944   :  { %v5564_v27 = vpop.permute.xlu1 %5563 }
 0x945   :  { %5575 = vst.msk [vmem:[#allocation5] sm:$0xff] %vm803_vm15, %v5564_v27 }
 0x946   :  { %5607 = vst.msk [vmem:[#allocation5] sm:$0xff] %vm836_vm1, %v5596_v62 }
 0x947   :  { %v5724_v56 = vpop.permute.xlu0 %5723 }
 0x948   :  { %v5628_v7 = vpop.permute.xlu1 %5627  ;;  %v9452_v52 = vld [vmem:[#allocation5 + $0x30] sm:$0xff] }
 0x949   :  { %5639 = vst.msk [vmem:[#allocation5] sm:$0xff] %vm10166_vm11, %v5628_v7  ;;  %vm10179_vm11 = vmmov %vm10171_vm0 }
 0x94a   :  { %5514 = vst.msk [vmem:[#allocation5 + $0x30] sm:$0xff] %vm51_vm3, %v10168_v54  ;;  %v6887_v54 = vld [vmem:[%s9981_s3 + $0x48] sm:$0xff]  }
 0x94b   :  { %5671 = vst.msk [vmem:[#allocation5] sm:$0xff] %vm10169_vm4, %v5660_v23  ;;  %v5566_v59 = vpop.permute.xlu0 %5565  ;;  %vm10180_vm4 = vmmov %vm10176_vm8 }
 0x94c   :  { %v5692_v32 = vpop.permute.xlu1 %5691 }
 0x94d   :  { %5703 = vst.msk [vmem:[#allocation5] sm:$0xff] %vm10170_vm12, %v5692_v32  ;;  %vm10183_vm12 = vmmov %vm10171_vm0  ;;  %v6888_v32 = vld [vmem:[%s9981_s3 + $0x50] sm:$0xff]  }
 0x94e   :  { %5735 = vst.msk [vmem:[#allocation5] sm:$0xff] %vm10171_vm0, %v5724_v56 }
 0x94f   :  { %v5630_v24 = vpop.permute.xlu0 %5629 }
 0x950   :  { %v5534_v3 = vpop.permute.xlu1 %5533 }
 0x951   :  { %5544 = vst.msk [vmem:[#allocation5 + $0x10] sm:$0xff] %vm770_vm14, %v5534_v3 }
 0x952   :  { %5576 = vst.msk [vmem:[#allocation5 + $0x10] sm:$0xff] %vm803_vm15, %v5566_v59 }
 0x953   :  { %v5694_v39 = vpop.permute.xlu0 %5693 }
 0x954   :  { %v5598_v60 = vpop.permute.xlu1 %5597 }
 0x955   :  { %5608 = vst.msk [vmem:[#allocation5 + $0x10] sm:$0xff] %vm836_vm1, %v5598_v60 }
 0x956   :  { %5640 = vst.msk [vmem:[#allocation5 + $0x10] sm:$0xff] %vm10172_vm13, %v5630_v24 }
 0x957   :  { %v5570_v20 = vpop.permute.xlu0 %5569 }
 0x958   :  { %v5662_v48 = vpop.permute.xlu1 %5661 }
 0x959   :  { %5672 = vst.msk [vmem:[#allocation5 + $0x10] sm:$0xff] %vm10173_vm5, %v5662_v48 }
 0x95a   :  { %5704 = vst.msk [vmem:[#allocation5 + $0x10] sm:$0xff] %vm10174_vm6, %v5694_v39 }
 0x95b   :  { %v5536_v18 = vpop.permute.xlu0 %5535 }
 0x95c   :  { %5545 = vst.msk [vmem:[#allocation5 + $0x20] sm:$0xff] %vm770_vm14, %v5536_v18  ;;  %v5726_v44 = vpop.permute.xlu1 %5725 }
 0x95d   :  { %5736 = vst.msk [vmem:[#allocation5 + $0x10] sm:$0xff] %vm10175_vm7, %v5726_v44 }
 0x95f   :  { %v5600_v15 = vpop.permute.xlu0 %5599 }
 0x960   :  { %v5568_v43 = vpop.permute.xlu1 %5567 }
 0x961   :  { %5577 = vst.msk [vmem:[#allocation5 + $0x20] sm:$0xff] %vm803_vm15, %v5568_v43 }
 0x962   :  { %5609 = vst.msk [vmem:[#allocation5 + $0x20] sm:$0xff] %vm836_vm1, %v5600_v15 }
 0x963   :  { %v5664_v34 = vpop.permute.xlu0 %5663 }
 0x964   :  { %v5696_v12 = vpop.permute.xlu1 %5695 }
 0x967   :  { %v5728_v17 = vpop.permute.xlu0 %5727 }
 0x968   :  { %v5538_v55 = vpop.permute.xlu1 %5537 }
 0x969   :  { %5546 = vst.msk [vmem:[#allocation5 + $0x30] sm:$0xff] %vm770_vm14, %v5538_v55  ;;  %vm10181_vm14 = vmmov %vm10173_vm5 }
 0x96a   :  { %5578 = vst.msk [vmem:[#allocation5 + $0x30] sm:$0xff] %vm803_vm15, %v5570_v20  ;;  %vm10182_vm15 = vmmov %vm10174_vm6  ;;  %v6889_v20 = vld [vmem:[%s9981_s3 + $0x58] sm:$0xff]  }
 0x96b   :  { %v5634_v14 = vpop.permute.xlu0 %5633 }
 0x96c   :  { %v5632_v26 = vpop.permute.xlu1 %5631 }
 0x96d   :  { %5641 = vst.msk [vmem:[#allocation5 + $0x20] sm:$0xff] %vm10176_vm8, %v5632_v26 }
 0x96e   :  { %5673 = vst.msk [vmem:[#allocation5 + $0x20] sm:$0xff] %vm10177_vm9, %v5664_v34 }
 0x96f   :  { %5705 = vst.msk [vmem:[#allocation5 + $0x20] sm:$0xff] %vm10178_vm10, %v5696_v12  ;;  %v5698_v41 = vpop.permute.xlu0 %5697  ;;  %v6890_v12 = vld [vmem:[%s9981_s3 + $0x60] sm:$0xff]  }
 0x970   :  { %5737 = vst.msk [vmem:[#allocation5 + $0x20] sm:$0xff] %vm10179_vm11, %v5728_v17  ;;  %v5602_v16 = vpop.permute.xlu1 %5601 }
 0x971   :  { %5610 = vst.msk [vmem:[#allocation5 + $0x30] sm:$0xff] %vm836_vm1, %v5602_v16  ;;  %v6891_v16 = vld [vmem:[%s9981_s3 + $0x68] sm:$0xff]  }
 0x972   :  { %5642 = vst.msk [vmem:[#allocation5 + $0x30] sm:$0xff] %vm10180_vm4, %v5634_v14 }
 0x974   :  { %v5666_v51 = vpop.permute.xlu1 %5665 }
 0x975   :  { %5674 = vst.msk [vmem:[#allocation5 + $0x30] sm:$0xff] %vm10181_vm14, %v5666_v51 }
 0x976   :  { %5706 = vst.msk [vmem:[#allocation5 + $0x30] sm:$0xff] %vm10182_vm15, %v5698_v41 }
 0x978   :  { %v5730_v29 = vpop.permute.xlu1 %5729 }
 0x979   :  { %5738 = vst.msk [vmem:[#allocation5 + $0x30] sm:$0xff] %vm10183_vm12, %v5730_v29 }
 0x985   :  { %v4093_v58 = vpop.f32.mrb[56].mxu0 }
 0x986   :  { %v4094_v25 = vadd.f32 %v9486_v4, %v4093_v58  ;;  %v4095_v47 = vpop.f32.mrb[57].mxu0 }
 0x987   :  { %v4096_v57 = vpop.f32.mrb[58].mxu0 }
 0x988   :  { %vm4124_vm1 = vcmp.ge.f32.partialorder %v4094_v25, 0.0  ;;  %v4132_v9 = vmul.f32 0.2, %v4094_v25  ;;  %v4097_v63 = vadd.f32 %v9486_v4, %v4096_v57  ;;  %v4098_v19 = vpop.f32.mrb[59].mxu0 }
 0x98a   :  { %v4140_v22 = vsel %vm4124_vm1, %v4094_v25, %v4132_v9  ;;  %vm4125_vm0 = vcmp.ge.f32.partialorder %v4097_v63, 0.0  ;;  %v4133_v61 = vmul.f32 0.2, %v4097_v63 }
 0x98b   :  { %v4148_v42 = vmul.f32 1.4142135, %v4140_v22 }
 0x98c   :  { %v4141_v5 = vsel %vm4125_vm0, %v4097_v63, %v4133_v61  ;;  %v6892_v63 = vld [vmem:[%s9981_s3 + $0x70] sm:$0xff]  }
 0x98d   :  { %v6382_v2 = vclamps-f32 %v4148_v42, 256.0  ;;  %v4149_v45 = vmul.f32 1.4142135, %v4141_v5  ;;  %v6893_v5 = vld [vmem:[%s9981_s3 + $0x78] sm:$0xff]  }
 0x98f   :  { %6390 = vst.msk [vmem:[%s9984_s7 + $0x100] sm:$0xff] %vm51_vm3, %v6382_v2  ;;  %v6383_v49 = vclamps-f32 %v4149_v45, 256.0 }
 0x990   :  { %v4101_v53 = vpop.f32.mrb[60].mxu0 }
 0x991   :  { %6391 = vst.msk [vmem:[%s9984_s7 + $0x108] sm:$0xff] %vm51_vm3, %v6383_v49  ;;  %v4102_v35 = vadd.f32 %v9486_v4, %v4101_v53  ;;  %v4103_v30 = vpop.f32.mrb[61].mxu0  ;;  %v4181_v36 = vpack.c.bf16 %v6383_v49, %v6382_v2  ;;  %v6894_v53 = vld [vmem:[%s9981_s3 + $0x80] sm:$0xff]  }
 0x992   :  { %v4104_v33 = vpop.f32.mrb[62].mxu0  ;;  %v10184_v30 = vld [vmem:[#allocation17_spill] sm:$0xff] }
 0x993   :  { %vm4126_vm13 = vcmp.ge.f32.partialorder %v4102_v35, 0.0  ;;  %v4134_v37 = vmul.f32 0.2, %v4102_v35  ;;  %v4105_v8 = vadd.f32 %v9486_v4, %v4104_v33  ;;  %v4106_v10 = vpop.f32.mrb[63].mxu0  ;;  %6774 = vmatprep.mubr.msk.bf16.mxu1 %vm51_vm3, %v4181_v36  ;;  %v6895_v36 = vld [vmem:[%s9981_s3 + $0x88] sm:$0xff]   ;;  %v10185_v33 = vld [vmem:[#allocation16_spill] sm:$0xff] }
 0x994   :  { %v6896_v10 = vld [vmem:[%s9982_s5 + $0x8] sm:$0xff]  }
 0x995   :  { %v4142_v62 = vsel %vm4126_vm13, %v4102_v35, %v4134_v37  ;;  %vm4127_vm5 = vcmp.ge.f32.partialorder %v4105_v8, 0.0  ;;  %v4135_v38 = vmul.f32 0.2, %v4105_v8  ;;  %v10186_v37 = vld [vmem:[#allocation24_spill] sm:$0xff]  ;;  %6782 = vmatprep.subr.bf16.mxu0 %v6896_v10 }
 0x996   :  { %v4150_v23 = vmul.f32 1.4142135, %v4142_v62  ;;  %6783 = vmatpush3.bf16.msra.mxu0 %v6896_v10 }
 0x997   :  { %v4143_v27 = vsel %vm4127_vm5, %v4105_v8, %v4135_v38  ;;  %v10187_v8 = vld [vmem:[#allocation26_spill] sm:$0xff]  ;;  %5256 = vmatprep.subr.bf16.mxu0 %v10151_v0 }
 0x998   :  { %v6384_v56 = vclamps-f32 %v4150_v23, 256.0  ;;  %v4151_v7 = vmul.f32 1.4142135, %v4143_v27 }
 0x99a   :  { %6392 = vst.msk [vmem:[%s9984_s7 + $0x110] sm:$0xff] %vm51_vm3, %v6384_v56  ;;  %v6385_v1 = vclamps-f32 %v4151_v7, 256.0 }
 0x99c   :  { %6393 = vst.msk [vmem:[%s9984_s7 + $0x118] sm:$0xff] %vm51_vm3, %v6385_v1  ;;  %v4182_v59 = vpack.c.bf16 %v6385_v1, %v6384_v56 }
 0x99e   :  { %6775 = vmatmul.mubr.msk.bf16.vlgmr.msra.gmra.mrb[56].mxu1 %vm51_vm3, %v4182_v59 }
 0x99f   :  { %4659 = vmatpush1.bf16.msra.mxu1 %v6887_v54 }
 0x9a0   :  { %4660 = vmatprep.subr.bf16.mxu1 %v10151_v0 }
 0x9a1   :  { %v4109_v24 = vpop.f32.mrb[64].mxu0 }
 0x9a2   :  { %v4110_v3 = vadd.f32 %v9486_v4, %v4109_v24  ;;  %v4111_v39 = vpop.f32.mrb[65].mxu0 }
 0x9a3   :  { %v4112_v60 = vpop.f32.mrb[66].mxu0  ;;  %4661 = vmatpush1.bf16.msra.mxu1 %v6888_v32 }
 0x9a4   :  { %vm4128_vm6 = vcmp.ge.f32.partialorder %v4110_v3, 0.0  ;;  %v4136_v48 = vmul.f32 0.2, %v4110_v3  ;;  %v4113_v18 = vadd.f32 %v9486_v4, %v4112_v60  ;;  %v4114_v44 = vpop.f32.mrb[67].mxu0  ;;  %4662 = vmatprep.subr.bf16.mxu1 %v10151_v0 }
 0x9a6   :  { %v4144_v15 = vsel %vm4128_vm6, %v4110_v3, %v4136_v48  ;;  %vm4129_vm7 = vcmp.ge.f32.partialorder %v4113_v18, 0.0  ;;  %v4137_v43 = vmul.f32 0.2, %v4113_v18 }
 0x9a7   :  { %v4152_v34 = vmul.f32 1.4142135, %v4144_v15  ;;  %4663 = vmatpush1.bf16.msra.mxu1 %v6889_v20 }
 0x9a8   :  { %v4145_v55 = vsel %vm4129_vm7, %v4113_v18, %v4137_v43  ;;  %4664 = vmatprep.subr.bf16.mxu1 %v10151_v0 }
 0x9a9   :  { %v6386_v17 = vclamps-f32 %v4152_v34, 256.0  ;;  %v4153_v26 = vmul.f32 1.4142135, %v4145_v55 }
 0x9ab   :  { %6394 = vst.msk [vmem:[%s9984_s7 + $0x120] sm:$0xff] %vm51_vm3, %v6386_v17  ;;  %v6387_v14 = vclamps-f32 %v4153_v26, 256.0  ;;  %4665 = vmatpush1.bf16.msra.mxu1 %v6890_v12 }
 0x9ac   :  { %v4117_v51 = vpop.f32.mrb[68].mxu0  ;;  %4666 = vmatprep.subr.bf16.mxu1 %v10151_v0 }
 0x9ad   :  { %6395 = vst.msk [vmem:[%s9984_s7 + $0x128] sm:$0xff] %vm51_vm3, %v6387_v14  ;;  %v4118_v41 = vadd.f32 %v9486_v4, %v4117_v51  ;;  %v4119_v29 = vpop.f32.mrb[69].mxu0  ;;  %v4183_v58 = vpack.c.bf16 %v6387_v14, %v6386_v17 }
 0x9ae   :  { %v4120_v25 = vpop.f32.mrb[70].mxu0 }
 0x9af   :  { %vm4130_vm8 = vcmp.ge.f32.partialorder %v4118_v41, 0.0  ;;  %v4138_v47 = vmul.f32 0.2, %v4118_v41  ;;  %v4121_v57 = vadd.f32 %v9486_v4, %v4120_v25  ;;  %v4122_v9 = vpop.f32.mrb[71].mxu0  ;;  %6778 = vmatprep.mubr.msk.bf16.mxu1 %vm51_vm3, %v4183_v58  ;;  %4667 = vmatpush1.bf16.msra.mxu1 %v6891_v16 }
 0x9b0   :  { %4668 = vmatprep.subr.bf16.mxu1 %v10151_v0 }
 0x9b1   :  { %v4146_v19 = vsel %vm4130_vm8, %v4118_v41, %v4138_v47  ;;  %vm4131_vm9 = vcmp.ge.f32.partialorder %v4121_v57, 0.0  ;;  %v4139_v22 = vmul.f32 0.2, %v4121_v57 }
 0x9b2   :  { %v4154_v61 = vmul.f32 1.4142135, %v4146_v19 }
 0x9b3   :  { %v4147_v42 = vsel %vm4131_vm9, %v4121_v57, %v4139_v22  ;;  %4669 = vmatpush1.bf16.msra.mxu1 %v6892_v63 }
 0x9b4   :  { %v6388_v2 = vclamps-f32 %v4154_v61, 256.0  ;;  %v4155_v45 = vmul.f32 1.4142135, %v4147_v42  ;;  %4670 = vmatprep.subr.bf16.mxu1 %v10151_v0 }
 0x9b6   :  { %6396 = vst.msk [vmem:[%s9984_s7 + $0x130] sm:$0xff] %vm51_vm3, %v6388_v2  ;;  %v6389_v49 = vclamps-f32 %v4155_v45, 256.0 }
 0x9b7   :  { %4671 = vmatpush1.bf16.msra.mxu1 %v6893_v5 }
 0x9b8   :  { %6397 = vst.msk [vmem:[%s9984_s7 + $0x138] sm:$0xff] %vm51_vm3, %v6389_v49  ;;  %v4184_v35 = vpack.c.bf16 %v6389_v49, %v6388_v2  ;;  %4672 = vmatprep.subr.bf16.mxu1 %v10151_v0 }
 0x9ba   :  { %6779 = vmatmul.mubr.msk.bf16.gmra.mrb[60].mxu1 %vm51_vm3, %v4184_v35 }
 0x9bb   :  { %4673 = vmatpush1.bf16.msra.mxu1 %v6894_v53  ;;  %6450 = vmatprep.mubr.msk.bf16.mxu1 %vm51_vm3, %v10184_v30 }
 0x9bc   :  { %4674 = vmatprep.subr.bf16.mxu1 %v10151_v0 }
 0x9bf   :  { %4675 = vmatpush1.bf16.msra.mxu1 %v6895_v36 }
 0x9c2   :  { %4691 = vmatmul.mubr.bf16.vlgmr.msra.gmra.mrb[64].mxu1 %v9337_v11  ;;  %v9586_v11 = vld [vmem:[%s9985_s6] ss:$0 sm:$0xff] }
 0x9c3   :  { %6451 = vmatprep.mubr.msk.bf16.mxu1 %vm51_vm3, %v10185_v33 }
 0x9ca   :  { %4699 = vmatmul.mubr.bf16.gmra.mrb[68].mxu1 %v9364_v46 }
 0x9cb   :  { %6452 = vmatprep.mubr.msk.bf16.mxu1 %vm51_vm3, %v10186_v37 }
 0x9d2   :  { %4707 = vmatmul.mubr.bf16.gmra.mrb[72].mxu1 %v9394_v50 }
 0x9d3   :  { %6453 = vmatprep.mubr.msk.bf16.mxu1 %vm51_vm3, %v10187_v8 }
 0x9da   :  { %4715 = vmatmul.mubr.bf16.gmra.mrb[76].mxu1 %v9403_v13 }
 0xa71   :  { %v6776_v46 = vpop.f32.mrb[56].mxu1 }
 0xa72   :  { %v4256_v50 = vadd.f32 %v6776_v46, %v9586_v11  ;;  %v4247_v62 = vpop.f32.mrb[57].mxu1 }
 0xa73   :  { %v4248_v38 = vadd.f32 %v9586_v11, %v4247_v62  ;;  %v6777_v13 = vpop.f32.mrb[58].mxu1 }
 0xa74   :  { %v6408_v23 = vclamps-f32 %v4256_v50, 256.0  ;;  %v4259_v27 = vadd.f32 %v6777_v13, %v9586_v11  ;;  %v4250_v56 = vpop.f32.mrb[59].mxu1 }
 0xa75   :  { %v6406_v7 = vclamps-f32 %v4248_v38, 256.0  ;;  %v4251_v1 = vadd.f32 %v9586_v11, %v4250_v56 }
 0xa76   :  { %6416 = vst.msk [vmem:[%s9986_s8 + $0x110] sm:$0xff] %vm1321_vm2, %v6408_v23  ;;  %v6409_v54 = vclamps-f32 %v4259_v27, 256.0  ;;  %v6897_v23 = vld [vmem:[%s9981_s3 + $0x48] sm:$0xff]  }
 0xa77   :  { %6414 = vst.msk [vmem:[%s9986_s8 + $0x100] sm:$0xff] %vm1321_vm2, %v6406_v7  ;;  %v6407_v59 = vclamps-f32 %v4251_v1, 256.0 }
 0xa78   :  { %6417 = vst.msk [vmem:[%s9986_s8 + $0x118] sm:$0xff] %vm1321_vm2, %v6409_v54 }
 0xa79   :  { %6415 = vst.msk [vmem:[%s9986_s8 + $0x108] sm:$0xff] %vm1321_vm2, %v6407_v59  ;;  %v6898_v59 = vld [vmem:[%s9981_s3 + $0x50] sm:$0xff]  }
 0xa8d   :  { %v6780_v32 = vpop.f32.mrb[60].mxu1 }
 0xa8e   :  { %v4272_v24 = vadd.f32 %v6780_v32, %v9586_v11  ;;  %v4263_v3 = vpop.f32.mrb[61].mxu1 }
 0xa8f   :  { %v4264_v39 = vadd.f32 %v9586_v11, %v4263_v3  ;;  %v6781_v60 = vpop.f32.mrb[62].mxu1 }
 0xa90   :  { %v6412_v20 = vclamps-f32 %v4272_v24, 256.0  ;;  %v4275_v48 = vadd.f32 %v6781_v60, %v9586_v11  ;;  %v4266_v18 = vpop.f32.mrb[63].mxu1 }
 0xa91   :  { %v6410_v44 = vclamps-f32 %v4264_v39, 256.0  ;;  %v4267_v15 = vadd.f32 %v9586_v11, %v4266_v18 }
 0xa92   :  { %6420 = vst.msk [vmem:[%s9986_s8 + $0x130] sm:$0xff] %vm1321_vm2, %v6412_v20  ;;  %v6413_v43 = vclamps-f32 %v4275_v48, 256.0 }
 0xa93   :  { %6418 = vst.msk [vmem:[%s9986_s8 + $0x120] sm:$0xff] %vm1321_vm2, %v6410_v44  ;;  %v6411_v34 = vclamps-f32 %v4267_v15, 256.0 }
 0xa94   :  { %6421 = vst.msk [vmem:[%s9986_s8 + $0x138] sm:$0xff] %vm1321_vm2, %v6413_v43  ;;  %v6899_v43 = vld [vmem:[%s9981_s3 + $0x58] sm:$0xff]  }
 0xa95   :  { %6419 = vst.msk [vmem:[%s9986_s8 + $0x128] sm:$0xff] %vm1321_vm2, %v6411_v34  ;;  %v4692_v12 = vpop.f32.mrb[64].mxu1 }
 0xa96   :  { %v4693_v55 = vadd.f32 %v9486_v4, %v4692_v12  ;;  %v4694_v17 = vpop.f32.mrb[65].mxu1 }
 0xa97   :  { %v4695_v26 = vpop.f32.mrb[66].mxu1 }
 0xa98   :  { %vm4723_vm10 = vcmp.ge.f32.partialorder %v4693_v55, 0.0  ;;  %v4731_v14 = vmul.f32 0.2, %v4693_v55  ;;  %v4696_v16 = vadd.f32 %v9486_v4, %v4695_v26  ;;  %v4697_v51 = vpop.f32.mrb[67].mxu1 }
 0xa9a   :  { %v4739_v41 = vsel %vm4723_vm10, %v4693_v55, %v4731_v14  ;;  %vm4724_vm11 = vcmp.ge.f32.partialorder %v4696_v16, 0.0  ;;  %v4732_v29 = vmul.f32 0.2, %v4696_v16  ;;  %v6900_v14 = vld [vmem:[%s9981_s3 + $0x60] sm:$0xff]  }
 0xa9b   :  { %v4747_v58 = vmul.f32 1.4142135, %v4739_v41 }
 0xa9c   :  { %v4740_v25 = vsel %vm4724_vm11, %v4696_v16, %v4732_v29  ;;  %v6901_v29 = vld [vmem:[%s9981_s3 + $0x68] sm:$0xff]  }
 0xa9d   :  { %v6454_v47 = vclamps-f32 %v4747_v58, 256.0  ;;  %v4748_v57 = vmul.f32 1.4142135, %v4740_v25  ;;  %v4700_v9 = vpop.f32.mrb[68].mxu1  ;;  %v10188_v25 = vld [vmem:[#allocation20_spill] sm:$0xff] }
 0xa9e   :  { %v4701_v63 = vadd.f32 %v9486_v4, %v4700_v9  ;;  %v4702_v19 = vpop.f32.mrb[69].mxu1  ;;  %v6904_v9 = vld [vmem:[%s9981_s3 + $0x80] sm:$0xff]  }
 0xa9f   :  { %6462 = vst.msk [vmem:[%s9984_s7 + $0x140] sm:$0xff] %vm51_vm3, %v6454_v47  ;;  %v6455_v22 = vclamps-f32 %v4748_v57, 256.0  ;;  %v4703_v61 = vpop.f32.mrb[70].mxu1  ;;  %v6903_v57 = vld [vmem:[%s9981_s3 + $0x78] sm:$0xff]   ;;  %v10189_v19 = vld [vmem:[#allocation15_spill] sm:$0xff] }
 0xaa0   :  { %vm4725_vm4 = vcmp.ge.f32.partialorder %v4701_v63, 0.0  ;;  %v4733_v42 = vmul.f32 0.2, %v4701_v63  ;;  %v4704_v5 = vadd.f32 %v9486_v4, %v4703_v61  ;;  %v4705_v2 = vpop.f32.mrb[71].mxu1 }
 0xaa1   :  { %6463 = vst.msk [vmem:[%s9984_s7 + $0x148] sm:$0xff] %vm51_vm3, %v6455_v22  ;;  %v4780_v45 = vpack.c.bf16 %v6455_v22, %v6454_v47  ;;  %v6902_v47 = vld [vmem:[%s9981_s3 + $0x70] sm:$0xff]   ;;  %v6906_v22 = vld [vmem:[%s9982_s5 + $0x8] sm:$0xff]  }
 0xaa2   :  { %v4741_v49 = vsel %vm4725_vm4, %v4701_v63, %v4733_v42  ;;  %vm4726_vm14 = vcmp.ge.f32.partialorder %v4704_v5, 0.0  ;;  %v4734_v53 = vmul.f32 0.2, %v4704_v5  ;;  %v6905_v63 = vld [vmem:[%s9981_s3 + $0x88] sm:$0xff]   ;;  %6792 = vmatprep.subr.bf16.mxu1 %v6906_v22 }
 0xaa3   :  { %v4749_v35 = vmul.f32 1.4142135, %v4741_v49  ;;  %6784 = vmatprep.mubr.msk.bf16.mxu0 %vm51_vm3, %v4780_v45  ;;  %6793 = vmatpush3.bf16.msra.mxu1 %v6906_v22  ;;  %v6907_v22 = vld [vmem:[%s9981_s3 + $0x48] sm:$0xff]  }
 0xaa4   :  { %v4742_v30 = vsel %vm4726_vm14, %v4704_v5, %v4734_v53  ;;  %5854 = vmatprep.subr.bf16.mxu1 %v10151_v0 }
 0xaa5   :  { %v6456_v36 = vclamps-f32 %v4749_v35, 256.0  ;;  %v4750_v33 = vmul.f32 1.4142135, %v4742_v30  ;;  %v4708_v37 = vpop.f32.mrb[72].mxu1 }
 0xaa6   :  { %v4709_v8 = vadd.f32 %v9486_v4, %v4708_v37  ;;  %v4710_v10 = vpop.f32.mrb[73].mxu1 }
 0xaa7   :  { %6464 = vst.msk [vmem:[%s9984_s7 + $0x150] sm:$0xff] %vm51_vm3, %v6456_v36  ;;  %v6457_v46 = vclamps-f32 %v4750_v33, 256.0  ;;  %v4711_v50 = vpop.f32.mrb[74].mxu1 }
 0xaa8   :  { %vm4727_vm15 = vcmp.ge.f32.partialorder %v4709_v8, 0.0  ;;  %v4735_v62 = vmul.f32 0.2, %v4709_v8  ;;  %v4712_v38 = vadd.f32 %v9486_v4, %v4711_v50  ;;  %v4713_v13 = vpop.f32.mrb[75].mxu1 }
 0xaa9   :  { %6465 = vst.msk [vmem:[%s9984_s7 + $0x158] sm:$0xff] %vm51_vm3, %v6457_v46  ;;  %v4781_v27 = vpack.c.bf16 %v6457_v46, %v6456_v36 }
 0xaaa   :  { %v4743_v56 = vsel %vm4727_vm15, %v4709_v8, %v4735_v62  ;;  %vm4728_vm12 = vcmp.ge.f32.partialorder %v4712_v38, 0.0  ;;  %v4736_v7 = vmul.f32 0.2, %v4712_v38 }
 0xaab   :  { %v4751_v1 = vmul.f32 1.4142135, %v4743_v56  ;;  %6785 = vmatmul.mubr.msk.bf16.vlgmr.msra.gmra.mrb[72].mxu0 %vm51_vm3, %v4781_v27 }
 0xaac   :  { %v4744_v54 = vsel %vm4728_vm12, %v4712_v38, %v4736_v7  ;;  %5257 = vmatpush1.bf16.msra.mxu0 %v6897_v23 }
 0xaad   :  { %v6458_v32 = vclamps-f32 %v4751_v1, 256.0  ;;  %v4752_v24 = vmul.f32 1.4142135, %v4744_v54  ;;  %v4716_v3 = vpop.f32.mrb[76].mxu1  ;;  %5258 = vmatprep.subr.bf16.mxu0 %v10151_v0 }
 0xaae   :  { %v4717_v39 = vadd.f32 %v9486_v4, %v4716_v3  ;;  %v4718_v60 = vpop.f32.mrb[77].mxu1 }
 0xaaf   :  { %6466 = vst.msk [vmem:[%s9984_s7 + $0x160] sm:$0xff] %vm51_vm3, %v6458_v32  ;;  %v6459_v20 = vclamps-f32 %v4752_v24, 256.0  ;;  %v4719_v48 = vpop.f32.mrb[78].mxu1 }
 0xab0   :  { %vm4729_vm1 = vcmp.ge.f32.partialorder %v4717_v39, 0.0  ;;  %v4737_v18 = vmul.f32 0.2, %v4717_v39  ;;  %v4720_v44 = vadd.f32 %v9486_v4, %v4719_v48  ;;  %5259 = vmatpush1.bf16.msra.mxu0 %v6898_v59  ;;  %v4721_v15 = vpop.f32.mrb[79].mxu1 }
 0xab1   :  { %6467 = vst.msk [vmem:[%s9984_s7 + $0x168] sm:$0xff] %vm51_vm3, %v6459_v20  ;;  %5260 = vmatprep.subr.bf16.mxu0 %v10151_v0  ;;  %v4782_v34 = vpack.c.bf16 %v6459_v20, %v6458_v32 }
 0xab2   :  { %v4745_v12 = vsel %vm4729_vm1, %v4717_v39, %v4737_v18  ;;  %vm4730_vm0 = vcmp.ge.f32.partialorder %v4720_v44, 0.0  ;;  %v4738_v55 = vmul.f32 0.2, %v4720_v44 }
 0xab3   :  { %v4753_v17 = vmul.f32 1.4142135, %v4745_v12  ;;  %6788 = vmatprep.mubr.msk.bf16.mxu0 %vm51_vm3, %v4782_v34 }
 0xab4   :  { %v4746_v26 = vsel %vm4730_vm0, %v4720_v44, %v4738_v55  ;;  %5261 = vmatpush1.bf16.msra.mxu0 %v6899_v43 }
 0xab5   :  { %v6460_v16 = vclamps-f32 %v4753_v17, 256.0  ;;  %v4754_v51 = vmul.f32 1.4142135, %v4746_v26  ;;  %5262 = vmatprep.subr.bf16.mxu0 %v10151_v0 }
 0xab7   :  { %6468 = vst.msk [vmem:[%s9984_s7 + $0x170] sm:$0xff] %vm51_vm3, %v6460_v16  ;;  %v6461_v41 = vclamps-f32 %v4754_v51, 256.0 }
 0xab8   :  { %5263 = vmatpush1.bf16.msra.mxu0 %v6900_v14 }
 0xab9   :  { %6469 = vst.msk [vmem:[%s9984_s7 + $0x178] sm:$0xff] %vm51_vm3, %v6461_v41  ;;  %5264 = vmatprep.subr.bf16.mxu0 %v10151_v0  ;;  %v4783_v58 = vpack.c.bf16 %v6461_v41, %v6460_v16 }
 0xabb   :  { %6789 = vmatmul.mubr.msk.bf16.gmra.mrb[76].mxu0 %vm51_vm3, %v4783_v58 }
 0xabc   :  { %5265 = vmatpush1.bf16.msra.mxu0 %v6901_v29  ;;  %6522 = vmatprep.mubr.msk.bf16.mxu0 %vm51_vm3, %v10188_v25 }
 0xabd   :  { %5266 = vmatprep.subr.bf16.mxu0 %v10151_v0 }
 0xac0   :  { %5267 = vmatpush1.bf16.msra.mxu0 %v6902_v47 }
 0xac1   :  { %5268 = vmatprep.subr.bf16.mxu0 %v10151_v0 }
 0xac4   :  { %5269 = vmatpush1.bf16.msra.mxu0 %v6903_v57 }
 0xac5   :  { %5270 = vmatprep.subr.bf16.mxu0 %v10151_v0 }
 0xac8   :  { %5271 = vmatpush1.bf16.msra.mxu0 %v6904_v9 }
 0xac9   :  { %5272 = vmatprep.subr.bf16.mxu0 %v10151_v0 }
 0xacc   :  { %5273 = vmatpush1.bf16.msra.mxu0 %v6905_v63 }
 0xacf   :  { %5289 = vmatmul.mubr.bf16.vlgmr.msra.gmra.mrb[80].mxu0 %v9418_v6 }
 0xad0   :  { %6523 = vmatprep.mubr.msk.bf16.mxu0 %vm51_vm3, %v10189_v19 }
 0xad7   :  { %5297 = vmatmul.mubr.bf16.gmra.mrb[84].mxu0 %v9427_v31 }
 0xad8   :  { %6524 = vmatprep.mubr.msk.bf16.mxu0 %vm51_vm3, %v9105_v21 }
 0xadf   :  { %5305 = vmatmul.mubr.bf16.gmra.mrb[88].mxu0 %v9445_v40 }
 0xae0   :  { %6525 = vmatprep.mubr.msk.bf16.mxu0 %vm51_vm3, %v9116_v28 }
 0xae7   :  { %5313 = vmatmul.mubr.bf16.gmra.mrb[92].mxu0 %v9452_v52 }
 0xb7e   :  { %v6786_v6 = vpop.f32.mrb[72].mxu0 }
 0xb7f   :  { %v4854_v31 = vadd.f32 %v6786_v6, %v9586_v11  ;;  %v4845_v61 = vpop.f32.mrb[73].mxu0 }
 0xb80   :  { %v4846_v21 = vadd.f32 %v9586_v11, %v4845_v61  ;;  %v6787_v40 = vpop.f32.mrb[74].mxu0 }
 0xb81   :  { %v6480_v42 = vclamps-f32 %v4854_v31, 256.0  ;;  %v4857_v28 = vadd.f32 %v6787_v40, %v9586_v11  ;;  %v4848_v5 = vpop.f32.mrb[75].mxu0 }
 0xb82   :  { %v6478_v52 = vclamps-f32 %v4846_v21, 256.0  ;;  %v4849_v2 = vadd.f32 %v9586_v11, %v4848_v5 }
 0xb83   :  { %6488 = vst.msk [vmem:[%s9986_s8 + $0x150] sm:$0xff] %vm1321_vm2, %v6480_v42  ;;  %v6481_v45 = vclamps-f32 %v4857_v28, 256.0  ;;  %v6908_v42 = vld [vmem:[%s9981_s3 + $0x50] sm:$0xff]  }
 0xb84   :  { %6486 = vst.msk [vmem:[%s9986_s8 + $0x140] sm:$0xff] %vm1321_vm2, %v6478_v52  ;;  %v6479_v49 = vclamps-f32 %v4849_v2, 256.0 }
 0xb85   :  { %6489 = vst.msk [vmem:[%s9986_s8 + $0x158] sm:$0xff] %vm1321_vm2, %v6481_v45 }
 0xb86   :  { %6487 = vst.msk [vmem:[%s9986_s8 + $0x148] sm:$0xff] %vm1321_vm2, %v6479_v49 }
 0xb8e   :  { %v6790_v53 = vpop.f32.mrb[76].mxu0 }
 0xb8f   :  { %v4870_v35 = vadd.f32 %v6790_v53, %v9586_v11  ;;  %v4861_v30 = vpop.f32.mrb[77].mxu0 }
 0xb90   :  { %v4862_v36 = vadd.f32 %v9586_v11, %v4861_v30  ;;  %v6791_v33 = vpop.f32.mrb[78].mxu0 }
 0xb91   :  { %v6484_v37 = vclamps-f32 %v4870_v35, 256.0  ;;  %v4873_v8 = vadd.f32 %v6791_v33, %v9586_v11  ;;  %v4864_v10 = vpop.f32.mrb[79].mxu0  ;;  %v6909_v33 = vld [vmem:[%s9981_s3 + $0x58] sm:$0xff]  }
 0xb92   :  { %v6482_v46 = vclamps-f32 %v4862_v36, 256.0  ;;  %v4865_v50 = vadd.f32 %v9586_v11, %v4864_v10 }
 0xb93   :  { %6492 = vst.msk [vmem:[%s9986_s8 + $0x170] sm:$0xff] %vm1321_vm2, %v6484_v37  ;;  %v6485_v62 = vclamps-f32 %v4873_v8, 256.0 }
 0xb94   :  { %6490 = vst.msk [vmem:[%s9986_s8 + $0x160] sm:$0xff] %vm1321_vm2, %v6482_v46  ;;  %v6483_v38 = vclamps-f32 %v4865_v50, 256.0  ;;  %v6910_v50 = vld [vmem:[%s9981_s3 + $0x60] sm:$0xff]  }
 0xb95   :  { %6493 = vst.msk [vmem:[%s9986_s8 + $0x178] sm:$0xff] %vm1321_vm2, %v6485_v62 }
 0xb96   :  { %6491 = vst.msk [vmem:[%s9986_s8 + $0x168] sm:$0xff] %vm1321_vm2, %v6483_v38 }
 0xba2   :  { %v5290_v13 = vpop.f32.mrb[80].mxu0 }
 0xba3   :  { %v5291_v23 = vadd.f32 %v9486_v4, %v5290_v13  ;;  %v5292_v27 = vpop.f32.mrb[81].mxu0 }
 0xba4   :  { %v5293_v56 = vpop.f32.mrb[82].mxu0 }
 0xba5   :  { %vm5321_vm13 = vcmp.ge.f32.partialorder %v5291_v23, 0.0  ;;  %v5329_v7 = vmul.f32 0.2, %v5291_v23  ;;  %v5294_v1 = vadd.f32 %v9486_v4, %v5293_v56  ;;  %v5295_v54 = vpop.f32.mrb[83].mxu0  ;;  %v5756_v56 = vld [vmem:[#allocation5 + $0x8] sm:$0xff] }
 0xba6   :  { %v6914_v54 = vld [vmem:[%s9981_s3 + $0x80] sm:$0xff]  }
 0xba7   :  { %v5337_v59 = vsel %vm5321_vm13, %v5291_v23, %v5329_v7  ;;  %vm5322_vm5 = vcmp.ge.f32.partialorder %v5294_v1, 0.0  ;;  %v5330_v32 = vmul.f32 0.2, %v5294_v1  ;;  %v6911_v23 = vld [vmem:[%s9981_s3 + $0x68] sm:$0xff]   ;;  %v6912_v7 = vld [vmem:[%s9981_s3 + $0x70] sm:$0xff]  }
 0xba8   :  { %v5345_v24 = vmul.f32 1.4142135, %v5337_v59  ;;  %v6915_v59 = vld [vmem:[%s9981_s3 + $0x88] sm:$0xff]  }
 0xba9   :  { %v5338_v3 = vsel %vm5322_vm5, %v5294_v1, %v5330_v32  ;;  %v6913_v1 = vld [vmem:[%s9981_s3 + $0x78] sm:$0xff]   ;;  %v5755_v32 = vld [vmem:[#allocation5] sm:$0xff] }
 0xbaa   :  { %v6526_v39 = vclamps-f32 %v5345_v24, 256.0  ;;  %v5346_v60 = vmul.f32 1.4142135, %v5338_v3  ;;  %v5298_v20 = vpop.f32.mrb[84].mxu0  ;;  %v5758_v24 = vld [vmem:[#allocation5 + $0x18] sm:$0xff]  ;;  %v5757_v3 = vld [vmem:[#allocation5 + $0x10] sm:$0xff] }
 0xbab   :  { %v5299_v48 = vadd.f32 %v9486_v4, %v5298_v20  ;;  %v5300_v18 = vpop.f32.mrb[85].mxu0  ;;  %v5762_v20 = vld [vmem:[#allocation5 + $0x38] sm:$0xff] }
 0xbac   :  { %6534 = vst.msk [vmem:[%s9984_s7 + $0x180] sm:$0xff] %vm51_vm3, %v6526_v39  ;;  %v6527_v44 = vclamps-f32 %v5346_v60, 256.0  ;;  %v5301_v15 = vpop.f32.mrb[86].mxu0  ;;  %v5759_v60 = vld [vmem:[#allocation5 + $0x20] sm:$0xff] }
 0xbad   :  { %vm5323_vm6 = vcmp.ge.f32.partialorder %v5299_v48, 0.0  ;;  %v5331_v43 = vmul.f32 0.2, %v5299_v48  ;;  %v5302_v34 = vadd.f32 %v9486_v4, %v5301_v15  ;;  %v5303_v12 = vpop.f32.mrb[87].mxu0 }
 0xbae   :  { %6535 = vst.msk [vmem:[%s9984_s7 + $0x188] sm:$0xff] %vm51_vm3, %v6527_v44  ;;  %v5378_v55 = vpack.c.bf16 %v6527_v44, %v6526_v39  ;;  %v5760_v39 = vld [vmem:[#allocation5 + $0x28] sm:$0xff] }
 0xbaf   :  { %v5339_v17 = vsel %vm5323_vm6, %v5299_v48, %v5331_v43  ;;  %vm5324_vm7 = vcmp.ge.f32.partialorder %v5302_v34, 0.0  ;;  %v5332_v26 = vmul.f32 0.2, %v5302_v34  ;;  %v5761_v48 = vld [vmem:[#allocation5 + $0x30] sm:$0xff] }
 0xbb0   :  { %v5347_v14 = vmul.f32 1.4142135, %v5339_v17  ;;  %6794 = vmatprep.mubr.msk.bf16.mxu1 %vm51_vm3, %v5378_v55 }
 0xbb1   :  { %v5340_v16 = vsel %vm5324_vm7, %v5302_v34, %v5332_v26 }
 0xbb2   :  { %v6528_v51 = vclamps-f32 %v5347_v14, 256.0  ;;  %v5348_v41 = vmul.f32 1.4142135, %v5340_v16  ;;  %v5306_v29 = vpop.f32.mrb[88].mxu0 }
 0xbb3   :  { %v5307_v58 = vadd.f32 %v9486_v4, %v5306_v29  ;;  %v5308_v25 = vpop.f32.mrb[89].mxu0 }
 0xbb4   :  { %6536 = vst.msk [vmem:[%s9984_s7 + $0x190] sm:$0xff] %vm51_vm3, %v6528_v51  ;;  %v6529_v47 = vclamps-f32 %v5348_v41, 256.0  ;;  %v5309_v57 = vpop.f32.mrb[90].mxu0 }
 0xbb5   :  { %vm5325_vm8 = vcmp.ge.f32.partialorder %v5307_v58, 0.0  ;;  %v5333_v9 = vmul.f32 0.2, %v5307_v58  ;;  %v5310_v63 = vadd.f32 %v9486_v4, %v5309_v57  ;;  %v5311_v19 = vpop.f32.mrb[91].mxu0 }
 0xbb6   :  { %6537 = vst.msk [vmem:[%s9984_s7 + $0x198] sm:$0xff] %vm51_vm3, %v6529_v47  ;;  %v5379_v6 = vpack.c.bf16 %v6529_v47, %v6528_v51 }
 0xbb7   :  { %v5341_v31 = vsel %vm5325_vm8, %v5307_v58, %v5333_v9  ;;  %vm5326_vm9 = vcmp.ge.f32.partialorder %v5310_v63, 0.0  ;;  %v5334_v61 = vmul.f32 0.2, %v5310_v63 }
 0xbb8   :  { %v5349_v21 = vmul.f32 1.4142135, %v5341_v31  ;;  %6795 = vmatmul.mubr.msk.bf16.vlgmr.msra.gmra.mrb[80].mxu1 %vm51_vm3, %v5379_v6 }
 0xbb9   :  { %v5342_v40 = vsel %vm5326_vm9, %v5310_v63, %v5334_v61  ;;  %5855 = vmatpush1.bf16.msra.mxu1 %v6907_v22  ;;  %v9892_v61 = vld [vmem:[%s9983_s4] ss:$0 sm:$0xff] }
 0xbba   :  { %v6530_v28 = vclamps-f32 %v5349_v21, 256.0  ;;  %v5350_v5 = vmul.f32 1.4142135, %v5342_v40  ;;  %v5314_v52 = vpop.f32.mrb[92].mxu0  ;;  %5856 = vmatprep.subr.bf16.mxu1 %v10151_v0 }
 0xbbb   :  { %v5315_v2 = vadd.f32 %v9486_v4, %v5314_v52  ;;  %v5316_v45 = vpop.f32.mrb[93].mxu0 }
 0xbbc   :  { %6538 = vst.msk [vmem:[%s9984_s7 + $0x1a0] sm:$0xff] %vm51_vm3, %v6530_v28  ;;  %v6531_v49 = vclamps-f32 %v5350_v5, 256.0  ;;  %v5317_v53 = vpop.f32.mrb[94].mxu0 }
 0xbbd   :  { %vm5327_vm10 = vcmp.ge.f32.partialorder %v5315_v2, 0.0  ;;  %v5335_v35 = vmul.f32 0.2, %v5315_v2  ;;  %v5318_v30 = vadd.f32 %v9486_v4, %v5317_v53  ;;  %5857 = vmatpush1.bf16.msra.mxu1 %v6908_v42  ;;  %v5319_v36 = vpop.f32.mrb[95].mxu0 }
 0xbbe   :  { %6539 = vst.msk [vmem:[%s9984_s7 + $0x1a8] sm:$0xff] %vm51_vm3, %v6531_v49  ;;  %5858 = vmatprep.subr.bf16.mxu1 %v10151_v0  ;;  %v5380_v37 = vpack.c.bf16 %v6531_v49, %v6530_v28 }
 0xbbf   :  { %v5343_v8 = vsel %vm5327_vm10, %v5315_v2, %v5335_v35  ;;  %vm5328_vm11 = vcmp.ge.f32.partialorder %v5318_v30, 0.0  ;;  %v5336_v10 = vmul.f32 0.2, %v5318_v30 }
 0xbc0   :  { %v5351_v46 = vmul.f32 1.4142135, %v5343_v8  ;;  %6798 = vmatprep.mubr.msk.bf16.mxu1 %vm51_vm3, %v5380_v37 }
 0xbc1   :  { %v5344_v4 = vsel %vm5328_vm11, %v5318_v30, %v5336_v10  ;;  %5859 = vmatpush1.bf16.msra.mxu1 %v6909_v33 }
 0xbc2   :  { %v6532_v62 = vclamps-f32 %v5351_v46, 256.0  ;;  %v5352_v38 = vmul.f32 1.4142135, %v5344_v4  ;;  %5860 = vmatprep.subr.bf16.mxu1 %v10151_v0 }
 0xbc4   :  { %6540 = vst.msk [vmem:[%s9984_s7 + $0x1b0] sm:$0xff] %vm51_vm3, %v6532_v62  ;;  %v6533_v13 = vclamps-f32 %v5352_v38, 256.0 }
 0xbc5   :  { %5861 = vmatpush1.bf16.msra.mxu1 %v6910_v50 }
 0xbc6   :  { %6541 = vst.msk [vmem:[%s9984_s7 + $0x1b8] sm:$0xff] %vm51_vm3, %v6533_v13  ;;  %5862 = vmatprep.subr.bf16.mxu1 %v10151_v0  ;;  %v5381_v27 = vpack.c.bf16 %v6533_v13, %v6532_v62 }
 0xbc8   :  { %6799 = vmatmul.mubr.msk.bf16.gmra.mrb[84].mxu1 %vm51_vm3, %v5381_v27 }
 0xbc9   :  { %5863 = vmatpush1.bf16.msra.mxu1 %v6911_v23  ;;  %6594 = vmatprep.mubr.msk.bf16.mxu1 %vm51_vm3, %v5756_v56 }
 0xbca   :  { %5864 = vmatprep.subr.bf16.mxu1 %v10151_v0 }
 0xbcd   :  { %5865 = vmatpush1.bf16.msra.mxu1 %v6912_v7 }
 0xbce   :  { %5866 = vmatprep.subr.bf16.mxu1 %v10151_v0 }
 0xbd1   :  { %5867 = vmatpush1.bf16.msra.mxu1 %v6913_v1 }
 0xbd2   :  { %5868 = vmatprep.subr.bf16.mxu1 %v10151_v0 }
 0xbd5   :  { %5869 = vmatpush1.bf16.msra.mxu1 %v6914_v54 }
 0xbd6   :  { %5870 = vmatprep.subr.bf16.mxu1 %v10151_v0  ;;  %v6916_v0 = vld [vmem:[%s9982_s5 + $0x8] sm:$0xff]  }
 0xbd7   :  { %6802 = vmatprep.subr.bf16.mxu0 %v6916_v0 }
 0xbd8   :  { %6803 = vmatpush3.bf16.msra.mxu0 %v6916_v0 }
 0xbd9   :  { %5871 = vmatpush1.bf16.msra.mxu1 %v6915_v59 }
 0xbdc   :  { %5887 = vmatmul.mubr.bf16.vlgmr.msra.gmra.mrb[88].mxu1 %v5755_v32 }
 0xbdd   :  { %6595 = vmatprep.mubr.msk.bf16.mxu1 %vm51_vm3, %v5758_v24 }
 0xbe4   :  { %5895 = vmatmul.mubr.bf16.gmra.mrb[92].mxu1 %v5757_v3 }
 0xbe5   :  { %6596 = vmatprep.mubr.msk.bf16.mxu1 %vm51_vm3, %v5760_v39 }
 0xbec   :  { %5903 = vmatmul.mubr.bf16.gmra.mrb[96].mxu1 %v5759_v60 }
 0xbed   :  { %6597 = vmatprep.mubr.msk.bf16.mxu1 %vm51_vm3, %v5762_v20 }
 0xbf4   :  { %5911 = vmatmul.mubr.bf16.gmra.mrb[100].mxu1 %v5761_v48 }
 0xc8b   :  { %v6796_v18 = vpop.f32.mrb[80].mxu1 }
 0xc8c   :  { %v5452_v44 = vadd.f32 %v6796_v18, %v9586_v11  ;;  %v5443_v15 = vpop.f32.mrb[81].mxu1 }
 0xc8d   :  { %v5444_v43 = vadd.f32 %v9586_v11, %v5443_v15  ;;  %v6797_v34 = vpop.f32.mrb[82].mxu1 }
 0xc8e   :  { %v6552_v12 = vclamps-f32 %v5452_v44, 256.0  ;;  %v5455_v55 = vadd.f32 %v6797_v34, %v9586_v11  ;;  %v5446_v17 = vpop.f32.mrb[83].mxu1 }
 0xc8f   :  { %v6550_v26 = vclamps-f32 %v5444_v43, 256.0  ;;  %v5447_v14 = vadd.f32 %v9586_v11, %v5446_v17 }
 0xc90   :  { %6560 = vst.msk [vmem:[%s9986_s8 + $0x190] sm:$0xff] %vm1321_vm2, %v6552_v12  ;;  %v6553_v16 = vclamps-f32 %v5455_v55, 256.0 }
 0xc91   :  { %6558 = vst.msk [vmem:[%s9986_s8 + $0x180] sm:$0xff] %vm1321_vm2, %v6550_v26  ;;  %v6551_v51 = vclamps-f32 %v5447_v14, 256.0 }
 0xc92   :  { %6561 = vst.msk [vmem:[%s9986_s8 + $0x198] sm:$0xff] %vm1321_vm2, %v6553_v16 }
 0xc93   :  { %6559 = vst.msk [vmem:[%s9986_s8 + $0x188] sm:$0xff] %vm1321_vm2, %v6551_v51 }
 0xc9b   :  { %v6800_v41 = vpop.f32.mrb[84].mxu1 }
 0xc9c   :  { %v5468_v29 = vadd.f32 %v6800_v41, %v9586_v11  ;;  %v5459_v58 = vpop.f32.mrb[85].mxu1 }
 0xc9d   :  { %v5460_v25 = vadd.f32 %v9586_v11, %v5459_v58  ;;  %v6801_v47 = vpop.f32.mrb[86].mxu1 }
 0xc9e   :  { %v6556_v57 = vclamps-f32 %v5468_v29, 256.0  ;;  %v5471_v9 = vadd.f32 %v6801_v47, %v9586_v11  ;;  %v5462_v63 = vpop.f32.mrb[87].mxu1 }
 0xc9f   :  { %v6554_v19 = vclamps-f32 %v5460_v25, 256.0  ;;  %v5463_v22 = vadd.f32 %v9586_v11, %v5462_v63 }
 0xca0   :  { %6564 = vst.msk [vmem:[%s9986_s8 + $0x1b0] sm:$0xff] %vm1321_vm2, %v6556_v57  ;;  %v6557_v6 = vclamps-f32 %v5471_v9, 256.0 }
 0xca1   :  { %6562 = vst.msk [vmem:[%s9986_s8 + $0x1a0] sm:$0xff] %vm1321_vm2, %v6554_v19  ;;  %v6555_v31 = vclamps-f32 %v5463_v22, 256.0 }
 0xca2   :  { %6565 = vst.msk [vmem:[%s9986_s8 + $0x1b8] sm:$0xff] %vm1321_vm2, %v6557_v6 }
 0xca3   :  { %6563 = vst.msk [vmem:[%s9986_s8 + $0x1a8] sm:$0xff] %vm1321_vm2, %v6555_v31 }
 0xcaf   :  { %v5888_v21 = vpop.f32.mrb[88].mxu1 }
 0xcb0   :  { %v5889_v40 = vadd.f32 %v9892_v61, %v5888_v21  ;;  %v5890_v42 = vpop.f32.mrb[89].mxu1 }
 0xcb1   :  { %v5891_v28 = vpop.f32.mrb[90].mxu1 }
 0xcb2   :  { %vm5919_vm4 = vcmp.ge.f32.partialorder %v5889_v40, 0.0  ;;  %v5927_v5 = vmul.f32 0.2, %v5889_v40  ;;  %v5892_v52 = vadd.f32 %v9892_v61, %v5891_v28  ;;  %v5893_v2 = vpop.f32.mrb[91].mxu1 }
 0xcb4   :  { %v5935_v45 = vsel %vm5919_vm4, %v5889_v40, %v5927_v5  ;;  %vm5920_vm14 = vcmp.ge.f32.partialorder %v5892_v52, 0.0  ;;  %v5928_v49 = vmul.f32 0.2, %v5892_v52 }
 0xcb5   :  { %v5943_v53 = vmul.f32 1.4142135, %v5935_v45 }
 0xcb6   :  { %v5936_v35 = vsel %vm5920_vm14, %v5892_v52, %v5928_v49 }
 0xcb7   :  { %v6598_v30 = vclamps-f32 %v5943_v53, 256.0  ;;  %v5944_v36 = vmul.f32 1.4142135, %v5936_v35  ;;  %v5896_v33 = vpop.f32.mrb[92].mxu1 }
 0xcb8   :  { %v5897_v37 = vadd.f32 %v9892_v61, %v5896_v33  ;;  %v5898_v8 = vpop.f32.mrb[93].mxu1 }
 0xcb9   :  { %6606 = vst.msk [vmem:[%s9984_s7 + $0x1c0] sm:$0xff] %vm51_vm3, %v6598_v30  ;;  %v6599_v10 = vclamps-f32 %v5944_v36, 256.0  ;;  %v5899_v46 = vpop.f32.mrb[94].mxu1 }
 0xcba   :  { %vm5921_vm15 = vcmp.ge.f32.partialorder %v5897_v37, 0.0  ;;  %v5929_v4 = vmul.f32 0.2, %v5897_v37  ;;  %v5900_v50 = vadd.f32 %v9892_v61, %v5899_v46  ;;  %v5901_v62 = vpop.f32.mrb[95].mxu1 }
 0xcbb   :  { %6607 = vst.msk [vmem:[%s9984_s7 + $0x1c8] sm:$0xff] %vm51_vm3, %v6599_v10  ;;  %v5976_v38 = vpack.c.bf16 %v6599_v10, %v6598_v30 }
 0xcbc   :  { %v5937_v13 = vsel %vm5921_vm15, %v5897_v37, %v5929_v4  ;;  %vm5922_vm12 = vcmp.ge.f32.partialorder %v5900_v50, 0.0  ;;  %v5930_v23 = vmul.f32 0.2, %v5900_v50 }
 0xcbd   :  { %v5945_v27 = vmul.f32 1.4142135, %v5937_v13  ;;  %6804 = vmatprep.mubr.msk.bf16.mxu0 %vm51_vm3, %v5976_v38 }
 0xcbe   :  { %v5938_v56 = vsel %vm5922_vm12, %v5900_v50, %v5930_v23 }
 0xcbf   :  { %v6600_v7 = vclamps-f32 %v5945_v27, 256.0  ;;  %v5946_v1 = vmul.f32 1.4142135, %v5938_v56  ;;  %v5904_v54 = vpop.f32.mrb[96].mxu1 }
 0xcc0   :  { %v5905_v59 = vadd.f32 %v9892_v61, %v5904_v54  ;;  %v5906_v32 = vpop.f32.mrb[97].mxu1 }
 0xcc1   :  { %6608 = vst.msk [vmem:[%s9984_s7 + $0x1d0] sm:$0xff] %vm51_vm3, %v6600_v7  ;;  %v6601_v24 = vclamps-f32 %v5946_v1, 256.0  ;;  %v5907_v3 = vpop.f32.mrb[98].mxu1 }
 0xcc2   :  { %vm5923_vm1 = vcmp.ge.f32.partialorder %v5905_v59, 0.0  ;;  %v5931_v39 = vmul.f32 0.2, %v5905_v59  ;;  %v5908_v60 = vadd.f32 %v9892_v61, %v5907_v3  ;;  %v5909_v20 = vpop.f32.mrb[99].mxu1 }
 0xcc3   :  { %6609 = vst.msk [vmem:[%s9984_s7 + $0x1d8] sm:$0xff] %vm51_vm3, %v6601_v24  ;;  %v5977_v48 = vpack.c.bf16 %v6601_v24, %v6600_v7 }
 0xcc4   :  { %v5939_v0 = vsel %vm5923_vm1, %v5905_v59, %v5931_v39  ;;  %vm5924_vm0 = vcmp.ge.f32.partialorder %v5908_v60, 0.0  ;;  %v5932_v18 = vmul.f32 0.2, %v5908_v60 }
 0xcc5   :  { %v5947_v44 = vmul.f32 1.4142135, %v5939_v0  ;;  %6805 = vmatmul.mubr.msk.bf16.vlgmr.msra.gmra.mrb[96].mxu0 %vm51_vm3, %v5977_v48 }
 0xcc6   :  { %v5940_v15 = vsel %vm5924_vm0, %v5908_v60, %v5932_v18 }
 0xcc7   :  { %v6602_v43 = vclamps-f32 %v5947_v44, 256.0  ;;  %v5948_v34 = vmul.f32 1.4142135, %v5940_v15  ;;  %v5912_v12 = vpop.f32.mrb[100].mxu1 }
 0xcc8   :  { %v5913_v55 = vadd.f32 %v9892_v61, %v5912_v12  ;;  %v5914_v17 = vpop.f32.mrb[101].mxu1 }
 0xcc9   :  { %6610 = vst.msk [vmem:[%s9984_s7 + $0x1e0] sm:$0xff] %vm51_vm3, %v6602_v43  ;;  %v6603_v26 = vclamps-f32 %v5948_v34, 256.0  ;;  %v5915_v14 = vpop.f32.mrb[102].mxu1 }
 0xcca   :  { %vm5925_vm13 = vcmp.ge.f32.partialorder %v5913_v55, 0.0  ;;  %v5933_v16 = vmul.f32 0.2, %v5913_v55  ;;  %v5916_v51 = vadd.f32 %v9892_v61, %v5915_v14  ;;  %v5917_v41 = vpop.f32.mrb[103].mxu1 }
 0xccb   :  { %6611 = vst.msk [vmem:[%s9984_s7 + $0x1e8] sm:$0xff] %vm51_vm3, %v6603_v26  ;;  %v5978_v29 = vpack.c.bf16 %v6603_v26, %v6602_v43 }
 0xccc   :  { %v5941_v58 = vsel %vm5925_vm13, %v5913_v55, %v5933_v16  ;;  %vm5926_vm5 = vcmp.ge.f32.partialorder %v5916_v51, 0.0  ;;  %v5934_v25 = vmul.f32 0.2, %v5916_v51 }
 0xccd   :  { %v5949_v47 = vmul.f32 1.4142135, %v5941_v58  ;;  %6808 = vmatprep.mubr.msk.bf16.mxu0 %vm51_vm3, %v5978_v29 }
 0xcce   :  { %v5942_v57 = vsel %vm5926_vm5, %v5916_v51, %v5934_v25 }
 0xccf   :  { %v6604_v9 = vclamps-f32 %v5949_v47, 256.0  ;;  %v5950_v63 = vmul.f32 1.4142135, %v5942_v57 }
 0xcd1   :  { %6612 = vst.msk [vmem:[%s9984_s7 + $0x1f0] sm:$0xff] %vm51_vm3, %v6604_v9  ;;  %v6605_v19 = vclamps-f32 %v5950_v63, 256.0 }
 0xcd3   :  { %6613 = vst.msk [vmem:[%s9984_s7 + $0x1f8] sm:$0xff] %vm51_vm3, %v6605_v19  ;;  %v5979_v22 = vpack.c.bf16 %v6605_v19, %v6604_v9 }
 0xcd5   :  { %6809 = vmatmul.mubr.msk.bf16.gmra.mrb[100].mxu0 %vm51_vm3, %v5979_v22 }
 0xd98   :  { %v6806_v6 = vpop.f32.mrb[96].mxu0 }
 0xd99   :  { %v6050_v31 = vadd.f32 %v6806_v6, %v9586_v11  ;;  %v6041_v61 = vpop.f32.mrb[97].mxu0 }
 0xd9a   :  { %v6042_v21 = vadd.f32 %v9586_v11, %v6041_v61  ;;  %v6807_v40 = vpop.f32.mrb[98].mxu0 }
 0xd9b   :  { %v6624_v42 = vclamps-f32 %v6050_v31, 256.0  ;;  %v6053_v28 = vadd.f32 %v6807_v40, %v9586_v11  ;;  %v6044_v5 = vpop.f32.mrb[99].mxu0 }
 0xd9c   :  { %v6622_v52 = vclamps-f32 %v6042_v21, 256.0  ;;  %v6045_v2 = vadd.f32 %v9586_v11, %v6044_v5 }
 0xd9d   :  { %6632 = vst.msk [vmem:[%s9986_s8 + $0x1d0] sm:$0xff] %vm1321_vm2, %v6624_v42  ;;  %v6625_v45 = vclamps-f32 %v6053_v28, 256.0 }
 0xd9e   :  { %6630 = vst.msk [vmem:[%s9986_s8 + $0x1c0] sm:$0xff] %vm1321_vm2, %v6622_v52  ;;  %v6623_v49 = vclamps-f32 %v6045_v2, 256.0 }
 0xd9f   :  { %6633 = vst.msk [vmem:[%s9986_s8 + $0x1d8] sm:$0xff] %vm1321_vm2, %v6625_v45 }
 0xda0   :  { %6631 = vst.msk [vmem:[%s9986_s8 + $0x1c8] sm:$0xff] %vm1321_vm2, %v6623_v49 }
 0xda8   :  { %v6810_v53 = vpop.f32.mrb[100].mxu0 }
 0xda9   :  { %v6066_v35 = vadd.f32 %v6810_v53, %v9586_v11  ;;  %v6057_v30 = vpop.f32.mrb[101].mxu0 }
 0xdaa   :  { %v6058_v36 = vadd.f32 %v9586_v11, %v6057_v30  ;;  %v6811_v33 = vpop.f32.mrb[102].mxu0 }
 0xdab   :  { %v6628_v37 = vclamps-f32 %v6066_v35, 256.0  ;;  %v6069_v8 = vadd.f32 %v6811_v33, %v9586_v11  ;;  %v6060_v10 = vpop.f32.mrb[103].mxu0 }
 0xdac   :  { %v6626_v46 = vclamps-f32 %v6058_v36, 256.0  ;;  %v6061_v4 = vadd.f32 %v9586_v11, %v6060_v10 }
 0xdad   :  { %6636 = vst.msk [vmem:[%s9986_s8 + $0x1f0] sm:$0xff] %vm1321_vm2, %v6628_v37  ;;  %v6629_v50 = vclamps-f32 %v6069_v8, 256.0 }
 0xdae   :  { %6634 = vst.msk [vmem:[%s9986_s8 + $0x1e0] sm:$0xff] %vm1321_vm2, %v6626_v46  ;;  %v6627_v62 = vclamps-f32 %v6061_v4, 256.0 }
 0xdaf   :  { %6637 = vst.msk [vmem:[%s9986_s8 + $0x1f8] sm:$0xff] %vm1321_vm2, %v6629_v50 }
 0xdb0   :  { %6635 = vst.msk [vmem:[%s9986_s8 + $0x1e8] sm:$0xff] %vm1321_vm2, %v6627_v62 }

</bundles_post_ra>
